<compile_context>
chip_gen: v7x
topology: tpu7x:2x2x1
jax: 0.10.0
libtpu: 0.0.40
codegen_flags: <defaults>
</compile_context>

<pallas_src>
import functools

import jax
import jax.numpy as jnp
from jax.experimental import pallas as pl
from jax.experimental.pallas import tpu as pltpu  # noqa: F401  (kept for TPU-specific tuning)

# ----------------------------- configuration (module-consistent small shapes) ---------------
IMAGE_FEATURES = 16
GRU_LAYERS = 1                        # fused kernel assumes a single (bidirectional) layer
HIDDEN_SIZE = 128                     # module hard-codes LSTM hidden = 128
NUM_CLASSES = 5
NUM_CLASSES_TYPE = 3                  # unused in forward (kept for fidelity)
CANDIDATE_WINDOW_SIZE = 7             # T = CANDIDATE_WINDOW_SIZE + 1
SEQ_LEN = CANDIDATE_WINDOW_SIZE + 1   # = 8
BATCH = 2
NUM_DIRECTIONS = 2                    # bidirectional=True
LIN_SIZES = (256, 128, 64, 32, 16)    # linear_1 .. linear_5

# (lstm, direction) stacking order used for the packed LSTM weights
# k = 0: encoder fwd, 1: encoder bwd, 2: decoder fwd, 3: decoder bwd
_NUM_CELLS = 4


# ----------------------------- fused forward kernel -----------------------------------------
def _fused_forward_kernel(x_ref, h0_ref, c0_ref, wih_ref, whh_ref, b_ref,
                          w1_ref, b1_ref, w2_ref, b2_ref, w3_ref, b3_ref,
                          w4_ref, b4_ref, w5_ref, b5_ref, wo_ref, bo_ref,
                          out_ref, *, train_mode):
    B, T, F = x_ref.shape
    H = whh_ref.shape[1]

    # ---- hoisted input projections: x @ W_ih + (b_ih + b_hh) for all 4 cells -----------
    x_all = x_ref[...]                                                   # (B, T, F)
    # time-major rows: row t*B + b  <->  x[b, t, :]
    x_tm = jnp.concatenate([x_all[:, t, :] for t in range(T)], axis=0)   # (T*B, F)
    xproj = []
    for k in range(_NUM_CELLS):
        xp = jnp.dot(x_tm, wih_ref[k], preferred_element_type=jnp.float32) + b_ref[k]
        xproj.append(xp)                                                 # (T*B, 4H)

    whh_ef = whh_ref[0]
    whh_eb = whh_ref[1]
    whh_df = whh_ref[2]
    whh_db = whh_ref[3]

    def cell(xp_t, h, c, whh):
        gates = xp_t + jnp.dot(h, whh, preferred_element_type=jnp.float32)   # (B, 4H)
        i = jax.nn.sigmoid(gates[:, 0 * H:1 * H])
        f = jax.nn.sigmoid(gates[:, 1 * H:2 * H])
        g = jnp.tanh(gates[:, 2 * H:3 * H])
        o = jax.nn.sigmoid(gates[:, 3 * H:4 * H])
        c_new = f * c + i * g
        h_new = o * jnp.tanh(c_new)
        return h_new, c_new

    def step_rows(xp, t):
        return xp[t * B:(t + 1) * B, :]                                  # (B, 4H), static slice

    # ---- initial states: hidden/cell come in as (B, 2, H) like init_hidden() ------------
    h0_all = h0_ref[...]
    c0_all = c0_ref[...]
    h_f, c_f = h0_all[:, 0, :], c0_all[:, 0, :]     # forward direction state
    h_b, c_b = h0_all[:, 1, :], c0_all[:, 1, :]     # backward direction state

    # ---- encoder: outputs discarded, only final (h, c) kept (matches PyTorch forward) ----
    for s in range(T):
        h_f, c_f = cell(step_rows(xproj[0], s), h_f, c_f, whh_ef)
        h_b, c_b = cell(step_rows(xproj[1], T - 1 - s), h_b, c_b, whh_eb)

    # ---- decoder: seeded with encoder final state; collect per-time outputs --------------
    y_f = [None] * T
    y_b = [None] * T
    for s in range(T):
        h_f, c_f = cell(step_rows(xproj[2], s), h_f, c_f, whh_df)
        h_b, c_b = cell(step_rows(xproj[3], T - 1 - s), h_b, c_b, whh_db)
        y_f[s] = h_f
        y_b[T - 1 - s] = h_b

    # ---- flatten(start_dim=1, end_dim=2) of (B, T, 2H): [t0_fwd | t0_bwd | t1_fwd | ...] --
    cols = []
    for t in range(T):
        cols.append(y_f[t])
        cols.append(y_b[t])
    flat = jnp.concatenate(cols, axis=1)                                 # (B, T*2H) f32

    # ---- fused MLP head (dropout p=0.0 == identity), bf16 weights, f32 accumulation ------
    def lin(h, w_r, b_r):
        return (jnp.dot(h.astype(w_r.dtype), w_r[...],
                        preferred_element_type=jnp.float32) + b_r[...])

    h1 = jnp.maximum(lin(flat, w1_ref, b1_ref), 0.0)
    h2 = jnp.maximum(lin(h1, w2_ref, b2_ref), 0.0)
    h3 = jnp.maximum(lin(h2, w3_ref, b3_ref), 0.0)
    h4 = jnp.maximum(lin(h3, w4_ref, b4_ref), 0.0)
    h5 = jnp.maximum(lin(h4, w5_ref, b5_ref), 0.0)
    logits = lin(h5, wo_ref, bo_ref)                                     # (B, NUM_CLASSES)

    m = jnp.max(logits, axis=1, keepdims=True)
    e = jnp.exp(logits - m)
    s_ = jnp.sum(e, axis=1, keepdims=True)
    if train_mode:
        out_ref[...] = (logits - m) - jnp.log(s_)    # LogSoftmax(dim=1)
    else:
        out_ref[...] = e / s_                        # Softmax(dim=1)


def transducer_gru_forward(params, x, hidden, cell_state, train_mode=False):
    """hidden / cell_state: (B, num_directions*num_layers, H) as produced by init_hidden()."""
    B = x.shape[0]
    kernel = functools.partial(_fused_forward_kernel, train_mode=train_mode)
    return pl.pallas_call(
        kernel,
        out_shape=jax.ShapeDtypeStruct((B, NUM_CLASSES), jnp.float32),
    )(x, hidden, cell_state,
      params["wih"], params["whh"], params["b"],
      *params["mlp"])


# ----------------------------- parameter init (deterministic, PyTorch-like) -----------------
def init_params(key):
    assert GRU_LAYERS == 1, "fused kernel implements the single-layer bidirectional module"
    stdv = 1.0 / float(HIDDEN_SIZE) ** 0.5
    keys = iter(jax.random.split(key, 256))

    def u(shape, s):
        return jax.random.uniform(next(keys), shape, jnp.float32, -s, s)

    # Stacked LSTM params for (encoder fwd, encoder bwd, decoder fwd, decoder bwd).
    # Stored transposed vs PyTorch ((in,4H) / (H,4H) instead of (4H,in)/(4H,H));
    # b = b_ih + b_hh (mathematically identical to two separate biases).
    wih = jnp.stack([u((IMAGE_FEATURES, 4 * HIDDEN_SIZE), stdv) for _ in range(_NUM_CELLS)])
    whh = jnp.stack([u((HIDDEN_SIZE, 4 * HIDDEN_SIZE), stdv) for _ in range(_NUM_CELLS)])
    b = jnp.stack([u((1, 4 * HIDDEN_SIZE), stdv) + u((1, 4 * HIDDEN_SIZE), stdv)
                   for _ in range(_NUM_CELLS)])

    # MLP: weights in bf16 (w1 dominates HBM/weight bytes), biases in f32.
    dims = [NUM_DIRECTIONS * HIDDEN_SIZE * SEQ_LEN] + list(LIN_SIZES) + [NUM_CLASSES]
    mlp = []
    for fin, fout in zip(dims[:-1], dims[1:]):
        s = 1.0 / float(fin) ** 0.5
        mlp.append(u((fin, fout), s).astype(jnp.bfloat16))
        mlp.append(u((1, fout), s))
    return {"wih": wih, "whh": whh, "b": b, "mlp": tuple(mlp)}


def init_hidden(batch_size):
    return jnp.zeros((batch_size, NUM_DIRECTIONS * GRU_LAYERS, HIDDEN_SIZE), jnp.float32)


# ----------------------------- pure-JAX reference (same math, for validation) ---------------
def _reference_forward(params, x, hidden, cell_state, train_mode=False):
    B, T, _ = x.shape
    H = HIDDEN_SIZE
    wih, whh, b = params["wih"], params["whh"], params["b"]

    def run_dir(k, xs, h, c):
        ys = []
        for t in range(T):
            g = xs[:, t, :] @ wih[k] + h @ whh[k] + b[k]
            i = jax.nn.sigmoid(g[:, :H])
            f = jax.nn.sigmoid(g[:, H:2 * H])
            gg = jnp.tanh(g[:, 2 * H:3 * H])
            o = jax.nn.sigmoid(g[:, 3 * H:])
            c = f * c + i * gg
            h = o * jnp.tanh(c)
            ys.append(h)
        return jnp.stack(ys, axis=1), h, c

    h0 = jnp.transpose(hidden, (1, 0, 2))
    c0 = jnp.transpose(cell_state, (1, 0, 2))
    _, hef, cef = run_dir(0, x, h0[0], c0[0])
    _, heb, ceb = run_dir(1, jnp.flip(x, axis=1), h0[1], c0[1])
    yf, _, _ = run_dir(2, x, hef, cef)
    yb_rev, _, _ = run_dir(3, jnp.flip(x, axis=1), heb, ceb)
    yb = jnp.flip(yb_rev, axis=1)
    y = jnp.concatenate([yf, yb], axis=-1)            # (B, T, 2H)
    h = y.reshape(B, -1)
    mlp = params["mlp"]
    for li in range(6):
        w, bb = mlp[2 * li], mlp[2 * li + 1]
        h = jnp.dot(h.astype(w.dtype), w, preferred_element_type=jnp.float32) + bb
        if li < 5:
            h = jnp.maximum(h, 0.0)
    if train_mode:
        return jax.nn.log_softmax(h, axis=1)
    return jax.nn.softmax(h, axis=1)


# ----------------------------- main ----------------------------------------------------------
if __name__ == "__main__":
    key = jax.random.PRNGKey(0)
    k_params, k_x = jax.random.split(key)

    params = init_params(k_params)
    x = jax.random.normal(k_x, (BATCH, SEQ_LEN, IMAGE_FEATURES), jnp.float32)
    hidden = init_hidden(BATCH)
    cell_state = init_hidden(BATCH)

    fwd = jax.jit(functools.partial(transducer_gru_forward, train_mode=False))
    out = jax.block_until_ready(fwd(params, x, hidden, cell_state))

    assert out.shape == (BATCH, NUM_CLASSES)
    # softmax rows must sum to ~1
    assert bool(jnp.all(jnp.abs(jnp.sum(out, axis=1) - 1.0) < 1e-4))
    # match the pure-JAX reference of the same math
    ref = _reference_forward(params, x, hidden, cell_state, train_mode=False)
    assert bool(jnp.all(jnp.abs(out - ref) < 2e-2))
    print("KERNEL_OK")
</pallas_src>

<mosaic_0001>
module attributes {stable_mosaic.version = 11 : i64} {
  func.func @_fused_forward_kernel(%arg0: memref<2x8x16xf32, #tpu.memory_space<vmem>>, %arg1: memref<2x2x128xf32, #tpu.memory_space<vmem>>, %arg2: memref<2x2x128xf32, #tpu.memory_space<vmem>>, %arg3: memref<4x16x512xf32, #tpu.memory_space<vmem>>, %arg4: memref<4x128x512xf32, #tpu.memory_space<vmem>>, %arg5: memref<4x1x512xf32, #tpu.memory_space<vmem>>, %arg6: memref<2048x256xbf16, #tpu.memory_space<vmem>>, %arg7: memref<1x256xf32, #tpu.memory_space<vmem>>, %arg8: memref<256x128xbf16, #tpu.memory_space<vmem>>, %arg9: memref<1x128xf32, #tpu.memory_space<vmem>>, %arg10: memref<128x64xbf16, #tpu.memory_space<vmem>>, %arg11: memref<1x64xf32, #tpu.memory_space<vmem>>, %arg12: memref<64x32xbf16, #tpu.memory_space<vmem>>, %arg13: memref<1x32xf32, #tpu.memory_space<vmem>>, %arg14: memref<32x16xbf16, #tpu.memory_space<vmem>>, %arg15: memref<1x16xf32, #tpu.memory_space<vmem>>, %arg16: memref<16x5xbf16, #tpu.memory_space<vmem>>, %arg17: memref<1x5xf32, #tpu.memory_space<vmem>>, %arg18: memref<2x5xf32, #tpu.memory_space<vmem>>) attributes {dimension_semantics = [], scalar_prefetch = 0 : i64, scratch_operands = 0 : i64, tpu.core_type = #tpu.core_type<tc>} {
    %c0 = arith.constant 0 : index
    %c0_0 = arith.constant 0 : index
    %c0_1 = arith.constant 0 : index
    %0 = vector.load %arg0[%c0, %c0_0, %c0_1] : memref<2x8x16xf32, #tpu.memory_space<vmem>>, vector<2x8x16xf32>
    %1 = vector.extract_strided_slice %0 {offsets = [0, 0, 0], sizes = [2, 1, 16], strides = [1, 1, 1]} : vector<2x8x16xf32> to vector<2x1x16xf32>
    %2 = vector.shape_cast %1 : vector<2x1x16xf32> to vector<2x16xf32>
    %3 = vector.extract_strided_slice %0 {offsets = [0, 1, 0], sizes = [2, 1, 16], strides = [1, 1, 1]} : vector<2x8x16xf32> to vector<2x1x16xf32>
    %4 = vector.shape_cast %3 : vector<2x1x16xf32> to vector<2x16xf32>
    %5 = vector.extract_strided_slice %0 {offsets = [0, 2, 0], sizes = [2, 1, 16], strides = [1, 1, 1]} : vector<2x8x16xf32> to vector<2x1x16xf32>
    %6 = vector.shape_cast %5 : vector<2x1x16xf32> to vector<2x16xf32>
    %7 = vector.extract_strided_slice %0 {offsets = [0, 3, 0], sizes = [2, 1, 16], strides = [1, 1, 1]} : vector<2x8x16xf32> to vector<2x1x16xf32>
    %8 = vector.shape_cast %7 : vector<2x1x16xf32> to vector<2x16xf32>
    %9 = vector.extract_strided_slice %0 {offsets = [0, 4, 0], sizes = [2, 1, 16], strides = [1, 1, 1]} : vector<2x8x16xf32> to vector<2x1x16xf32>
    %10 = vector.shape_cast %9 : vector<2x1x16xf32> to vector<2x16xf32>
    %11 = vector.extract_strided_slice %0 {offsets = [0, 5, 0], sizes = [2, 1, 16], strides = [1, 1, 1]} : vector<2x8x16xf32> to vector<2x1x16xf32>
    %12 = vector.shape_cast %11 : vector<2x1x16xf32> to vector<2x16xf32>
    %13 = vector.extract_strided_slice %0 {offsets = [0, 6, 0], sizes = [2, 1, 16], strides = [1, 1, 1]} : vector<2x8x16xf32> to vector<2x1x16xf32>
    %14 = vector.shape_cast %13 : vector<2x1x16xf32> to vector<2x16xf32>
    %15 = vector.extract_strided_slice %0 {offsets = [0, 7, 0], sizes = [2, 1, 16], strides = [1, 1, 1]} : vector<2x8x16xf32> to vector<2x1x16xf32>
    %16 = vector.shape_cast %15 : vector<2x1x16xf32> to vector<2x16xf32>
    %17 = tpu.concatenate %2, %4, %6, %8, %10, %12, %14, %16 in 0 : vector<2x16xf32>, vector<2x16xf32>, vector<2x16xf32>, vector<2x16xf32>, vector<2x16xf32>, vector<2x16xf32>, vector<2x16xf32>, vector<2x16xf32> -> vector<16x16xf32>
    %c0_2 = arith.constant 0 : index
    %c0_3 = arith.constant 0 : index
    %c0_4 = arith.constant 0 : index
    %18 = vector.load %arg3[%c0_2, %c0_3, %c0_4] : memref<4x16x512xf32, #tpu.memory_space<vmem>>, vector<1x16x512xf32>
    %19 = vector.shape_cast %18 : vector<1x16x512xf32> to vector<16x512xf32>
    %cst = arith.constant dense<0.000000e+00> : vector<16x512xf32>
    %20 = tpu.matmul %17, %19, %cst {dimension_numbers = #tpu.dot_dimension_numbers<[1], [0], [0], [1], [0, 0, 1, 1], [], []>} : vector<16x16xf32>, vector<16x512xf32>, vector<16x512xf32> -> vector<16x512xf32>
    %c0_5 = arith.constant 0 : index
    %c0_6 = arith.constant 0 : index
    %c0_7 = arith.constant 0 : index
    %21 = vector.load %arg5[%c0_5, %c0_6, %c0_7] : memref<4x1x512xf32, #tpu.memory_space<vmem>>, vector<1x1x512xf32>
    %22 = vector.shape_cast %21 : vector<1x1x512xf32> to vector<1x512xf32>
    %23 = vector.broadcast %22 : vector<1x512xf32> to vector<16x512xf32>
    %24 = arith.addf %20, %23 : vector<16x512xf32>
    %c1 = arith.constant 1 : index
    %c0_8 = arith.constant 0 : index
    %c0_9 = arith.constant 0 : index
    %25 = vector.load %arg3[%c1, %c0_8, %c0_9] : memref<4x16x512xf32, #tpu.memory_space<vmem>>, vector<1x16x512xf32>
    %26 = vector.shape_cast %25 : vector<1x16x512xf32> to vector<16x512xf32>
    %cst_10 = arith.constant dense<0.000000e+00> : vector<16x512xf32>
    %27 = tpu.matmul %17, %26, %cst_10 {dimension_numbers = #tpu.dot_dimension_numbers<[1], [0], [0], [1], [0, 0, 1, 1], [], []>} : vector<16x16xf32>, vector<16x512xf32>, vector<16x512xf32> -> vector<16x512xf32>
    %c1_11 = arith.constant 1 : index
    %c0_12 = arith.constant 0 : index
    %c0_13 = arith.constant 0 : index
    %28 = vector.load %arg5[%c1_11, %c0_12, %c0_13] : memref<4x1x512xf32, #tpu.memory_space<vmem>>, vector<1x1x512xf32>
    %29 = vector.shape_cast %28 : vector<1x1x512xf32> to vector<1x512xf32>
    %30 = vector.broadcast %29 : vector<1x512xf32> to vector<16x512xf32>
    %31 = arith.addf %27, %30 : vector<16x512xf32>
    %c2 = arith.constant 2 : index
    %c0_14 = arith.constant 0 : index
    %c0_15 = arith.constant 0 : index
    %32 = vector.load %arg3[%c2, %c0_14, %c0_15] : memref<4x16x512xf32, #tpu.memory_space<vmem>>, vector<1x16x512xf32>
    %33 = vector.shape_cast %32 : vector<1x16x512xf32> to vector<16x512xf32>
    %cst_16 = arith.constant dense<0.000000e+00> : vector<16x512xf32>
    %34 = tpu.matmul %17, %33, %cst_16 {dimension_numbers = #tpu.dot_dimension_numbers<[1], [0], [0], [1], [0, 0, 1, 1], [], []>} : vector<16x16xf32>, vector<16x512xf32>, vector<16x512xf32> -> vector<16x512xf32>
    %c2_17 = arith.constant 2 : index
    %c0_18 = arith.constant 0 : index
    %c0_19 = arith.constant 0 : index
    %35 = vector.load %arg5[%c2_17, %c0_18, %c0_19] : memref<4x1x512xf32, #tpu.memory_space<vmem>>, vector<1x1x512xf32>
    %36 = vector.shape_cast %35 : vector<1x1x512xf32> to vector<1x512xf32>
    %37 = vector.broadcast %36 : vector<1x512xf32> to vector<16x512xf32>
    %38 = arith.addf %34, %37 : vector<16x512xf32>
    %c3 = arith.constant 3 : index
    %c0_20 = arith.constant 0 : index
    %c0_21 = arith.constant 0 : index
    %39 = vector.load %arg3[%c3, %c0_20, %c0_21] : memref<4x16x512xf32, #tpu.memory_space<vmem>>, vector<1x16x512xf32>
    %40 = vector.shape_cast %39 : vector<1x16x512xf32> to vector<16x512xf32>
    %cst_22 = arith.constant dense<0.000000e+00> : vector<16x512xf32>
    %41 = tpu.matmul %17, %40, %cst_22 {dimension_numbers = #tpu.dot_dimension_numbers<[1], [0], [0], [1], [0, 0, 1, 1], [], []>} : vector<16x16xf32>, vector<16x512xf32>, vector<16x512xf32> -> vector<16x512xf32>
    %c3_23 = arith.constant 3 : index
    %c0_24 = arith.constant 0 : index
    %c0_25 = arith.constant 0 : index
    %42 = vector.load %arg5[%c3_23, %c0_24, %c0_25] : memref<4x1x512xf32, #tpu.memory_space<vmem>>, vector<1x1x512xf32>
    %43 = vector.shape_cast %42 : vector<1x1x512xf32> to vector<1x512xf32>
    %44 = vector.broadcast %43 : vector<1x512xf32> to vector<16x512xf32>
    %45 = arith.addf %41, %44 : vector<16x512xf32>
    %c0_26 = arith.constant 0 : index
    %c0_27 = arith.constant 0 : index
    %c0_28 = arith.constant 0 : index
    %46 = vector.load %arg4[%c0_26, %c0_27, %c0_28] : memref<4x128x512xf32, #tpu.memory_space<vmem>>, vector<1x128x512xf32>
    %47 = vector.shape_cast %46 : vector<1x128x512xf32> to vector<128x512xf32>
    %c1_29 = arith.constant 1 : index
    %c0_30 = arith.constant 0 : index
    %c0_31 = arith.constant 0 : index
    %48 = vector.load %arg4[%c1_29, %c0_30, %c0_31] : memref<4x128x512xf32, #tpu.memory_space<vmem>>, vector<1x128x512xf32>
    %49 = vector.shape_cast %48 : vector<1x128x512xf32> to vector<128x512xf32>
    %c2_32 = arith.constant 2 : index
    %c0_33 = arith.constant 0 : index
    %c0_34 = arith.constant 0 : index
    %50 = vector.load %arg4[%c2_32, %c0_33, %c0_34] : memref<4x128x512xf32, #tpu.memory_space<vmem>>, vector<1x128x512xf32>
    %51 = vector.shape_cast %50 : vector<1x128x512xf32> to vector<128x512xf32>
    %c3_35 = arith.constant 3 : index
    %c0_36 = arith.constant 0 : index
    %c0_37 = arith.constant 0 : index
    %52 = vector.load %arg4[%c3_35, %c0_36, %c0_37] : memref<4x128x512xf32, #tpu.memory_space<vmem>>, vector<1x128x512xf32>
    %53 = vector.shape_cast %52 : vector<1x128x512xf32> to vector<128x512xf32>
    %c0_38 = arith.constant 0 : index
    %c0_39 = arith.constant 0 : index
    %c0_40 = arith.constant 0 : index
    %54 = vector.load %arg1[%c0_38, %c0_39, %c0_40] : memref<2x2x128xf32, #tpu.memory_space<vmem>>, vector<2x2x128xf32>
    %c0_41 = arith.constant 0 : index
    %c0_42 = arith.constant 0 : index
    %c0_43 = arith.constant 0 : index
    %55 = vector.load %arg2[%c0_41, %c0_42, %c0_43] : memref<2x2x128xf32, #tpu.memory_space<vmem>>, vector<2x2x128xf32>
    %56 = vector.extract_strided_slice %54 {offsets = [0, 0, 0], sizes = [2, 1, 128], strides = [1, 1, 1]} : vector<2x2x128xf32> to vector<2x1x128xf32>
    %57 = vector.shape_cast %56 : vector<2x1x128xf32> to vector<2x128xf32>
    %58 = vector.extract_strided_slice %55 {offsets = [0, 0, 0], sizes = [2, 1, 128], strides = [1, 1, 1]} : vector<2x2x128xf32> to vector<2x1x128xf32>
    %59 = vector.shape_cast %58 : vector<2x1x128xf32> to vector<2x128xf32>
    %60 = vector.extract_strided_slice %54 {offsets = [0, 1, 0], sizes = [2, 1, 128], strides = [1, 1, 1]} : vector<2x2x128xf32> to vector<2x1x128xf32>
    %61 = vector.shape_cast %60 : vector<2x1x128xf32> to vector<2x128xf32>
    %62 = vector.extract_strided_slice %55 {offsets = [0, 1, 0], sizes = [2, 1, 128], strides = [1, 1, 1]} : vector<2x2x128xf32> to vector<2x1x128xf32>
    %63 = vector.shape_cast %62 : vector<2x1x128xf32> to vector<2x128xf32>
    %64 = vector.extract_strided_slice %24 {offsets = [0, 0], sizes = [2, 512], strides = [1, 1]} : vector<16x512xf32> to vector<2x512xf32>
    %cst_44 = arith.constant dense<0.000000e+00> : vector<2x512xf32>
    %65 = tpu.matmul %57, %47, %cst_44 {dimension_numbers = #tpu.dot_dimension_numbers<[1], [0], [0], [1], [0, 0, 1, 1], [], []>} : vector<2x128xf32>, vector<128x512xf32>, vector<2x512xf32> -> vector<2x512xf32>
    %66 = arith.addf %64, %65 : vector<2x512xf32>
    %67 = vector.extract_strided_slice %66 {offsets = [0, 0], sizes = [2, 128], strides = [1, 1]} : vector<2x512xf32> to vector<2x128xf32>
    %68 = arith.negf %67 : vector<2x128xf32>
    %69 = math.exp %68 : vector<2x128xf32>
    %cst_45 = arith.constant 1.000000e+00 : f32
    %70 = vector.broadcast %cst_45 : f32 to vector<2x128xf32>
    %71 = arith.addf %70, %69 : vector<2x128xf32>
    %72 = arith.divf %70, %71 : vector<2x128xf32>
    %73 = vector.extract_strided_slice %66 {offsets = [0, 128], sizes = [2, 128], strides = [1, 1]} : vector<2x512xf32> to vector<2x128xf32>
    %74 = arith.negf %73 : vector<2x128xf32>
    %75 = math.exp %74 : vector<2x128xf32>
    %cst_46 = arith.constant 1.000000e+00 : f32
    %76 = vector.broadcast %cst_46 : f32 to vector<2x128xf32>
    %77 = arith.addf %76, %75 : vector<2x128xf32>
    %78 = arith.divf %76, %77 : vector<2x128xf32>
    %79 = vector.extract_strided_slice %66 {offsets = [0, 256], sizes = [2, 128], strides = [1, 1]} : vector<2x512xf32> to vector<2x128xf32>
    %80 = math.tanh %79 : vector<2x128xf32>
    %81 = vector.extract_strided_slice %66 {offsets = [0, 384], sizes = [2, 128], strides = [1, 1]} : vector<2x512xf32> to vector<2x128xf32>
    %82 = arith.negf %81 : vector<2x128xf32>
    %83 = math.exp %82 : vector<2x128xf32>
    %cst_47 = arith.constant 1.000000e+00 : f32
    %84 = vector.broadcast %cst_47 : f32 to vector<2x128xf32>
    %85 = arith.addf %84, %83 : vector<2x128xf32>
    %86 = arith.divf %84, %85 : vector<2x128xf32>
    %87 = arith.mulf %78, %59 : vector<2x128xf32>
    %88 = arith.mulf %72, %80 : vector<2x128xf32>
    %89 = arith.addf %87, %88 : vector<2x128xf32>
    %90 = math.tanh %89 : vector<2x128xf32>
    %91 = arith.mulf %86, %90 : vector<2x128xf32>
    %92 = vector.extract_strided_slice %31 {offsets = [14, 0], sizes = [2, 512], strides = [1, 1]} : vector<16x512xf32> to vector<2x512xf32>
    %cst_48 = arith.constant dense<0.000000e+00> : vector<2x512xf32>
    %93 = tpu.matmul %61, %49, %cst_48 {dimension_numbers = #tpu.dot_dimension_numbers<[1], [0], [0], [1], [0, 0, 1, 1], [], []>} : vector<2x128xf32>, vector<128x512xf32>, vector<2x512xf32> -> vector<2x512xf32>
    %94 = arith.addf %92, %93 : vector<2x512xf32>
    %95 = vector.extract_strided_slice %94 {offsets = [0, 0], sizes = [2, 128], strides = [1, 1]} : vector<2x512xf32> to vector<2x128xf32>
    %96 = arith.negf %95 : vector<2x128xf32>
    %97 = math.exp %96 : vector<2x128xf32>
    %cst_49 = arith.constant 1.000000e+00 : f32
    %98 = vector.broadcast %cst_49 : f32 to vector<2x128xf32>
    %99 = arith.addf %98, %97 : vector<2x128xf32>
    %100 = arith.divf %98, %99 : vector<2x128xf32>
    %101 = vector.extract_strided_slice %94 {offsets = [0, 128], sizes = [2, 128], strides = [1, 1]} : vector<2x512xf32> to vector<2x128xf32>
    %102 = arith.negf %101 : vector<2x128xf32>
    %103 = math.exp %102 : vector<2x128xf32>
    %cst_50 = arith.constant 1.000000e+00 : f32
    %104 = vector.broadcast %cst_50 : f32 to vector<2x128xf32>
    %105 = arith.addf %104, %103 : vector<2x128xf32>
    %106 = arith.divf %104, %105 : vector<2x128xf32>
    %107 = vector.extract_strided_slice %94 {offsets = [0, 256], sizes = [2, 128], strides = [1, 1]} : vector<2x512xf32> to vector<2x128xf32>
    %108 = math.tanh %107 : vector<2x128xf32>
    %109 = vector.extract_strided_slice %94 {offsets = [0, 384], sizes = [2, 128], strides = [1, 1]} : vector<2x512xf32> to vector<2x128xf32>
    %110 = arith.negf %109 : vector<2x128xf32>
    %111 = math.exp %110 : vector<2x128xf32>
    %cst_51 = arith.constant 1.000000e+00 : f32
    %112 = vector.broadcast %cst_51 : f32 to vector<2x128xf32>
    %113 = arith.addf %112, %111 : vector<2x128xf32>
    %114 = arith.divf %112, %113 : vector<2x128xf32>
    %115 = arith.mulf %106, %63 : vector<2x128xf32>
    %116 = arith.mulf %100, %108 : vector<2x128xf32>
    %117 = arith.addf %115, %116 : vector<2x128xf32>
    %118 = math.tanh %117 : vector<2x128xf32>
    %119 = arith.mulf %114, %118 : vector<2x128xf32>
    %120 = vector.extract_strided_slice %24 {offsets = [2, 0], sizes = [2, 512], strides = [1, 1]} : vector<16x512xf32> to vector<2x512xf32>
    %cst_52 = arith.constant dense<0.000000e+00> : vector<2x512xf32>
    %121 = tpu.matmul %91, %47, %cst_52 {dimension_numbers = #tpu.dot_dimension_numbers<[1], [0], [0], [1], [0, 0, 1, 1], [], []>} : vector<2x128xf32>, vector<128x512xf32>, vector<2x512xf32> -> vector<2x512xf32>
    %122 = arith.addf %120, %121 : vector<2x512xf32>
    %123 = vector.extract_strided_slice %122 {offsets = [0, 0], sizes = [2, 128], strides = [1, 1]} : vector<2x512xf32> to vector<2x128xf32>
    %124 = arith.negf %123 : vector<2x128xf32>
    %125 = math.exp %124 : vector<2x128xf32>
    %cst_53 = arith.constant 1.000000e+00 : f32
    %126 = vector.broadcast %cst_53 : f32 to vector<2x128xf32>
    %127 = arith.addf %126, %125 : vector<2x128xf32>
    %128 = arith.divf %126, %127 : vector<2x128xf32>
    %129 = vector.extract_strided_slice %122 {offsets = [0, 128], sizes = [2, 128], strides = [1, 1]} : vector<2x512xf32> to vector<2x128xf32>
    %130 = arith.negf %129 : vector<2x128xf32>
    %131 = math.exp %130 : vector<2x128xf32>
    %cst_54 = arith.constant 1.000000e+00 : f32
    %132 = vector.broadcast %cst_54 : f32 to vector<2x128xf32>
    %133 = arith.addf %132, %131 : vector<2x128xf32>
    %134 = arith.divf %132, %133 : vector<2x128xf32>
    %135 = vector.extract_strided_slice %122 {offsets = [0, 256], sizes = [2, 128], strides = [1, 1]} : vector<2x512xf32> to vector<2x128xf32>
    %136 = math.tanh %135 : vector<2x128xf32>
    %137 = vector.extract_strided_slice %122 {offsets = [0, 384], sizes = [2, 128], strides = [1, 1]} : vector<2x512xf32> to vector<2x128xf32>
    %138 = arith.negf %137 : vector<2x128xf32>
    %139 = math.exp %138 : vector<2x128xf32>
    %cst_55 = arith.constant 1.000000e+00 : f32
    %140 = vector.broadcast %cst_55 : f32 to vector<2x128xf32>
    %141 = arith.addf %140, %139 : vector<2x128xf32>
    %142 = arith.divf %140, %141 : vector<2x128xf32>
    %143 = arith.mulf %134, %89 : vector<2x128xf32>
    %144 = arith.mulf %128, %136 : vector<2x128xf32>
    %145 = arith.addf %143, %144 : vector<2x128xf32>
    %146 = math.tanh %145 : vector<2x128xf32>
    %147 = arith.mulf %142, %146 : vector<2x128xf32>
    %148 = vector.extract_strided_slice %31 {offsets = [12, 0], sizes = [2, 512], strides = [1, 1]} : vector<16x512xf32> to vector<2x512xf32>
    %cst_56 = arith.constant dense<0.000000e+00> : vector<2x512xf32>
    %149 = tpu.matmul %119, %49, %cst_56 {dimension_numbers = #tpu.dot_dimension_numbers<[1], [0], [0], [1], [0, 0, 1, 1], [], []>} : vector<2x128xf32>, vector<128x512xf32>, vector<2x512xf32> -> vector<2x512xf32>
    %150 = arith.addf %148, %149 : vector<2x512xf32>
    %151 = vector.extract_strided_slice %150 {offsets = [0, 0], sizes = [2, 128], strides = [1, 1]} : vector<2x512xf32> to vector<2x128xf32>
    %152 = arith.negf %151 : vector<2x128xf32>
    %153 = math.exp %152 : vector<2x128xf32>
    %cst_57 = arith.constant 1.000000e+00 : f32
    %154 = vector.broadcast %cst_57 : f32 to vector<2x128xf32>
    %155 = arith.addf %154, %153 : vector<2x128xf32>
    %156 = arith.divf %154, %155 : vector<2x128xf32>
    %157 = vector.extract_strided_slice %150 {offsets = [0, 128], sizes = [2, 128], strides = [1, 1]} : vector<2x512xf32> to vector<2x128xf32>
    %158 = arith.negf %157 : vector<2x128xf32>
    %159 = math.exp %158 : vector<2x128xf32>
    %cst_58 = arith.constant 1.000000e+00 : f32
    %160 = vector.broadcast %cst_58 : f32 to vector<2x128xf32>
    %161 = arith.addf %160, %159 : vector<2x128xf32>
    %162 = arith.divf %160, %161 : vector<2x128xf32>
    %163 = vector.extract_strided_slice %150 {offsets = [0, 256], sizes = [2, 128], strides = [1, 1]} : vector<2x512xf32> to vector<2x128xf32>
    %164 = math.tanh %163 : vector<2x128xf32>
    %165 = vector.extract_strided_slice %150 {offsets = [0, 384], sizes = [2, 128], strides = [1, 1]} : vector<2x512xf32> to vector<2x128xf32>
    %166 = arith.negf %165 : vector<2x128xf32>
    %167 = math.exp %166 : vector<2x128xf32>
    %cst_59 = arith.constant 1.000000e+00 : f32
    %168 = vector.broadcast %cst_59 : f32 to vector<2x128xf32>
    %169 = arith.addf %168, %167 : vector<2x128xf32>
    %170 = arith.divf %168, %169 : vector<2x128xf32>
    %171 = arith.mulf %162, %117 : vector<2x128xf32>
    %172 = arith.mulf %156, %164 : vector<2x128xf32>
    %173 = arith.addf %171, %172 : vector<2x128xf32>
    %174 = math.tanh %173 : vector<2x128xf32>
    %175 = arith.mulf %170, %174 : vector<2x128xf32>
    %176 = vector.extract_strided_slice %24 {offsets = [4, 0], sizes = [2, 512], strides = [1, 1]} : vector<16x512xf32> to vector<2x512xf32>
    %cst_60 = arith.constant dense<0.000000e+00> : vector<2x512xf32>
    %177 = tpu.matmul %147, %47, %cst_60 {dimension_numbers = #tpu.dot_dimension_numbers<[1], [0], [0], [1], [0, 0, 1, 1], [], []>} : vector<2x128xf32>, vector<128x512xf32>, vector<2x512xf32> -> vector<2x512xf32>
    %178 = arith.addf %176, %177 : vector<2x512xf32>
    %179 = vector.extract_strided_slice %178 {offsets = [0, 0], sizes = [2, 128], strides = [1, 1]} : vector<2x512xf32> to vector<2x128xf32>
    %180 = arith.negf %179 : vector<2x128xf32>
    %181 = math.exp %180 : vector<2x128xf32>
    %cst_61 = arith.constant 1.000000e+00 : f32
    %182 = vector.broadcast %cst_61 : f32 to vector<2x128xf32>
    %183 = arith.addf %182, %181 : vector<2x128xf32>
    %184 = arith.divf %182, %183 : vector<2x128xf32>
    %185 = vector.extract_strided_slice %178 {offsets = [0, 128], sizes = [2, 128], strides = [1, 1]} : vector<2x512xf32> to vector<2x128xf32>
    %186 = arith.negf %185 : vector<2x128xf32>
    %187 = math.exp %186 : vector<2x128xf32>
    %cst_62 = arith.constant 1.000000e+00 : f32
    %188 = vector.broadcast %cst_62 : f32 to vector<2x128xf32>
    %189 = arith.addf %188, %187 : vector<2x128xf32>
    %190 = arith.divf %188, %189 : vector<2x128xf32>
    %191 = vector.extract_strided_slice %178 {offsets = [0, 256], sizes = [2, 128], strides = [1, 1]} : vector<2x512xf32> to vector<2x128xf32>
    %192 = math.tanh %191 : vector<2x128xf32>
    %193 = vector.extract_strided_slice %178 {offsets = [0, 384], sizes = [2, 128], strides = [1, 1]} : vector<2x512xf32> to vector<2x128xf32>
    %194 = arith.negf %193 : vector<2x128xf32>
    %195 = math.exp %194 : vector<2x128xf32>
    %cst_63 = arith.constant 1.000000e+00 : f32
    %196 = vector.broadcast %cst_63 : f32 to vector<2x128xf32>
    %197 = arith.addf %196, %195 : vector<2x128xf32>
    %198 = arith.divf %196, %197 : vector<2x128xf32>
    %199 = arith.mulf %190, %145 : vector<2x128xf32>
    %200 = arith.mulf %184, %192 : vector<2x128xf32>
    %201 = arith.addf %199, %200 : vector<2x128xf32>
    %202 = math.tanh %201 : vector<2x128xf32>
    %203 = arith.mulf %198, %202 : vector<2x128xf32>
    %204 = vector.extract_strided_slice %31 {offsets = [10, 0], sizes = [2, 512], strides = [1, 1]} : vector<16x512xf32> to vector<2x512xf32>
    %cst_64 = arith.constant dense<0.000000e+00> : vector<2x512xf32>
    %205 = tpu.matmul %175, %49, %cst_64 {dimension_numbers = #tpu.dot_dimension_numbers<[1], [0], [0], [1], [0, 0, 1, 1], [], []>} : vector<2x128xf32>, vector<128x512xf32>, vector<2x512xf32> -> vector<2x512xf32>
    %206 = arith.addf %204, %205 : vector<2x512xf32>
    %207 = vector.extract_strided_slice %206 {offsets = [0, 0], sizes = [2, 128], strides = [1, 1]} : vector<2x512xf32> to vector<2x128xf32>
    %208 = arith.negf %207 : vector<2x128xf32>
    %209 = math.exp %208 : vector<2x128xf32>
    %cst_65 = arith.constant 1.000000e+00 : f32
    %210 = vector.broadcast %cst_65 : f32 to vector<2x128xf32>
    %211 = arith.addf %210, %209 : vector<2x128xf32>
    %212 = arith.divf %210, %211 : vector<2x128xf32>
    %213 = vector.extract_strided_slice %206 {offsets = [0, 128], sizes = [2, 128], strides = [1, 1]} : vector<2x512xf32> to vector<2x128xf32>
    %214 = arith.negf %213 : vector<2x128xf32>
    %215 = math.exp %214 : vector<2x128xf32>
    %cst_66 = arith.constant 1.000000e+00 : f32
    %216 = vector.broadcast %cst_66 : f32 to vector<2x128xf32>
    %217 = arith.addf %216, %215 : vector<2x128xf32>
    %218 = arith.divf %216, %217 : vector<2x128xf32>
    %219 = vector.extract_strided_slice %206 {offsets = [0, 256], sizes = [2, 128], strides = [1, 1]} : vector<2x512xf32> to vector<2x128xf32>
    %220 = math.tanh %219 : vector<2x128xf32>
    %221 = vector.extract_strided_slice %206 {offsets = [0, 384], sizes = [2, 128], strides = [1, 1]} : vector<2x512xf32> to vector<2x128xf32>
    %222 = arith.negf %221 : vector<2x128xf32>
    %223 = math.exp %222 : vector<2x128xf32>
    %cst_67 = arith.constant 1.000000e+00 : f32
    %224 = vector.broadcast %cst_67 : f32 to vector<2x128xf32>
    %225 = arith.addf %224, %223 : vector<2x128xf32>
    %226 = arith.divf %224, %225 : vector<2x128xf32>
    %227 = arith.mulf %218, %173 : vector<2x128xf32>
    %228 = arith.mulf %212, %220 : vector<2x128xf32>
    %229 = arith.addf %227, %228 : vector<2x128xf32>
    %230 = math.tanh %229 : vector<2x128xf32>
    %231 = arith.mulf %226, %230 : vector<2x128xf32>
    %232 = vector.extract_strided_slice %24 {offsets = [6, 0], sizes = [2, 512], strides = [1, 1]} : vector<16x512xf32> to vector<2x512xf32>
    %cst_68 = arith.constant dense<0.000000e+00> : vector<2x512xf32>
    %233 = tpu.matmul %203, %47, %cst_68 {dimension_numbers = #tpu.dot_dimension_numbers<[1], [0], [0], [1], [0, 0, 1, 1], [], []>} : vector<2x128xf32>, vector<128x512xf32>, vector<2x512xf32> -> vector<2x512xf32>
    %234 = arith.addf %232, %233 : vector<2x512xf32>
    %235 = vector.extract_strided_slice %234 {offsets = [0, 0], sizes = [2, 128], strides = [1, 1]} : vector<2x512xf32> to vector<2x128xf32>
    %236 = arith.negf %235 : vector<2x128xf32>
    %237 = math.exp %236 : vector<2x128xf32>
    %cst_69 = arith.constant 1.000000e+00 : f32
    %238 = vector.broadcast %cst_69 : f32 to vector<2x128xf32>
    %239 = arith.addf %238, %237 : vector<2x128xf32>
    %240 = arith.divf %238, %239 : vector<2x128xf32>
    %241 = vector.extract_strided_slice %234 {offsets = [0, 128], sizes = [2, 128], strides = [1, 1]} : vector<2x512xf32> to vector<2x128xf32>
    %242 = arith.negf %241 : vector<2x128xf32>
    %243 = math.exp %242 : vector<2x128xf32>
    %cst_70 = arith.constant 1.000000e+00 : f32
    %244 = vector.broadcast %cst_70 : f32 to vector<2x128xf32>
    %245 = arith.addf %244, %243 : vector<2x128xf32>
    %246 = arith.divf %244, %245 : vector<2x128xf32>
    %247 = vector.extract_strided_slice %234 {offsets = [0, 256], sizes = [2, 128], strides = [1, 1]} : vector<2x512xf32> to vector<2x128xf32>
    %248 = math.tanh %247 : vector<2x128xf32>
    %249 = vector.extract_strided_slice %234 {offsets = [0, 384], sizes = [2, 128], strides = [1, 1]} : vector<2x512xf32> to vector<2x128xf32>
    %250 = arith.negf %249 : vector<2x128xf32>
    %251 = math.exp %250 : vector<2x128xf32>
    %cst_71 = arith.constant 1.000000e+00 : f32
    %252 = vector.broadcast %cst_71 : f32 to vector<2x128xf32>
    %253 = arith.addf %252, %251 : vector<2x128xf32>
    %254 = arith.divf %252, %253 : vector<2x128xf32>
    %255 = arith.mulf %246, %201 : vector<2x128xf32>
    %256 = arith.mulf %240, %248 : vector<2x128xf32>
    %257 = arith.addf %255, %256 : vector<2x128xf32>
    %258 = math.tanh %257 : vector<2x128xf32>
    %259 = arith.mulf %254, %258 : vector<2x128xf32>
    %260 = vector.extract_strided_slice %31 {offsets = [8, 0], sizes = [2, 512], strides = [1, 1]} : vector<16x512xf32> to vector<2x512xf32>
    %cst_72 = arith.constant dense<0.000000e+00> : vector<2x512xf32>
    %261 = tpu.matmul %231, %49, %cst_72 {dimension_numbers = #tpu.dot_dimension_numbers<[1], [0], [0], [1], [0, 0, 1, 1], [], []>} : vector<2x128xf32>, vector<128x512xf32>, vector<2x512xf32> -> vector<2x512xf32>
    %262 = arith.addf %260, %261 : vector<2x512xf32>
    %263 = vector.extract_strided_slice %262 {offsets = [0, 0], sizes = [2, 128], strides = [1, 1]} : vector<2x512xf32> to vector<2x128xf32>
    %264 = arith.negf %263 : vector<2x128xf32>
    %265 = math.exp %264 : vector<2x128xf32>
    %cst_73 = arith.constant 1.000000e+00 : f32
    %266 = vector.broadcast %cst_73 : f32 to vector<2x128xf32>
    %267 = arith.addf %266, %265 : vector<2x128xf32>
    %268 = arith.divf %266, %267 : vector<2x128xf32>
    %269 = vector.extract_strided_slice %262 {offsets = [0, 128], sizes = [2, 128], strides = [1, 1]} : vector<2x512xf32> to vector<2x128xf32>
    %270 = arith.negf %269 : vector<2x128xf32>
    %271 = math.exp %270 : vector<2x128xf32>
    %cst_74 = arith.constant 1.000000e+00 : f32
    %272 = vector.broadcast %cst_74 : f32 to vector<2x128xf32>
    %273 = arith.addf %272, %271 : vector<2x128xf32>
    %274 = arith.divf %272, %273 : vector<2x128xf32>
    %275 = vector.extract_strided_slice %262 {offsets = [0, 256], sizes = [2, 128], strides = [1, 1]} : vector<2x512xf32> to vector<2x128xf32>
    %276 = math.tanh %275 : vector<2x128xf32>
    %277 = vector.extract_strided_slice %262 {offsets = [0, 384], sizes = [2, 128], strides = [1, 1]} : vector<2x512xf32> to vector<2x128xf32>
    %278 = arith.negf %277 : vector<2x128xf32>
    %279 = math.exp %278 : vector<2x128xf32>
    %cst_75 = arith.constant 1.000000e+00 : f32
    %280 = vector.broadcast %cst_75 : f32 to vector<2x128xf32>
    %281 = arith.addf %280, %279 : vector<2x128xf32>
    %282 = arith.divf %280, %281 : vector<2x128xf32>
    %283 = arith.mulf %274, %229 : vector<2x128xf32>
    %284 = arith.mulf %268, %276 : vector<2x128xf32>
    %285 = arith.addf %283, %284 : vector<2x128xf32>
    %286 = math.tanh %285 : vector<2x128xf32>
    %287 = arith.mulf %282, %286 : vector<2x128xf32>
    %288 = vector.extract_strided_slice %24 {offsets = [8, 0], sizes = [2, 512], strides = [1, 1]} : vector<16x512xf32> to vector<2x512xf32>
    %cst_76 = arith.constant dense<0.000000e+00> : vector<2x512xf32>
    %289 = tpu.matmul %259, %47, %cst_76 {dimension_numbers = #tpu.dot_dimension_numbers<[1], [0], [0], [1], [0, 0, 1, 1], [], []>} : vector<2x128xf32>, vector<128x512xf32>, vector<2x512xf32> -> vector<2x512xf32>
    %290 = arith.addf %288, %289 : vector<2x512xf32>
    %291 = vector.extract_strided_slice %290 {offsets = [0, 0], sizes = [2, 128], strides = [1, 1]} : vector<2x512xf32> to vector<2x128xf32>
    %292 = arith.negf %291 : vector<2x128xf32>
    %293 = math.exp %292 : vector<2x128xf32>
    %cst_77 = arith.constant 1.000000e+00 : f32
    %294 = vector.broadcast %cst_77 : f32 to vector<2x128xf32>
    %295 = arith.addf %294, %293 : vector<2x128xf32>
    %296 = arith.divf %294, %295 : vector<2x128xf32>
    %297 = vector.extract_strided_slice %290 {offsets = [0, 128], sizes = [2, 128], strides = [1, 1]} : vector<2x512xf32> to vector<2x128xf32>
    %298 = arith.negf %297 : vector<2x128xf32>
    %299 = math.exp %298 : vector<2x128xf32>
    %cst_78 = arith.constant 1.000000e+00 : f32
    %300 = vector.broadcast %cst_78 : f32 to vector<2x128xf32>
    %301 = arith.addf %300, %299 : vector<2x128xf32>
    %302 = arith.divf %300, %301 : vector<2x128xf32>
    %303 = vector.extract_strided_slice %290 {offsets = [0, 256], sizes = [2, 128], strides = [1, 1]} : vector<2x512xf32> to vector<2x128xf32>
    %304 = math.tanh %303 : vector<2x128xf32>
    %305 = vector.extract_strided_slice %290 {offsets = [0, 384], sizes = [2, 128], strides = [1, 1]} : vector<2x512xf32> to vector<2x128xf32>
    %306 = arith.negf %305 : vector<2x128xf32>
    %307 = math.exp %306 : vector<2x128xf32>
    %cst_79 = arith.constant 1.000000e+00 : f32
    %308 = vector.broadcast %cst_79 : f32 to vector<2x128xf32>
    %309 = arith.addf %308, %307 : vector<2x128xf32>
    %310 = arith.divf %308, %309 : vector<2x128xf32>
    %311 = arith.mulf %302, %257 : vector<2x128xf32>
    %312 = arith.mulf %296, %304 : vector<2x128xf32>
    %313 = arith.addf %311, %312 : vector<2x128xf32>
    %314 = math.tanh %313 : vector<2x128xf32>
    %315 = arith.mulf %310, %314 : vector<2x128xf32>
    %316 = vector.extract_strided_slice %31 {offsets = [6, 0], sizes = [2, 512], strides = [1, 1]} : vector<16x512xf32> to vector<2x512xf32>
    %cst_80 = arith.constant dense<0.000000e+00> : vector<2x512xf32>
    %317 = tpu.matmul %287, %49, %cst_80 {dimension_numbers = #tpu.dot_dimension_numbers<[1], [0], [0], [1], [0, 0, 1, 1], [], []>} : vector<2x128xf32>, vector<128x512xf32>, vector<2x512xf32> -> vector<2x512xf32>
    %318 = arith.addf %316, %317 : vector<2x512xf32>
    %319 = vector.extract_strided_slice %318 {offsets = [0, 0], sizes = [2, 128], strides = [1, 1]} : vector<2x512xf32> to vector<2x128xf32>
    %320 = arith.negf %319 : vector<2x128xf32>
    %321 = math.exp %320 : vector<2x128xf32>
    %cst_81 = arith.constant 1.000000e+00 : f32
    %322 = vector.broadcast %cst_81 : f32 to vector<2x128xf32>
    %323 = arith.addf %322, %321 : vector<2x128xf32>
    %324 = arith.divf %322, %323 : vector<2x128xf32>
    %325 = vector.extract_strided_slice %318 {offsets = [0, 128], sizes = [2, 128], strides = [1, 1]} : vector<2x512xf32> to vector<2x128xf32>
    %326 = arith.negf %325 : vector<2x128xf32>
    %327 = math.exp %326 : vector<2x128xf32>
    %cst_82 = arith.constant 1.000000e+00 : f32
    %328 = vector.broadcast %cst_82 : f32 to vector<2x128xf32>
    %329 = arith.addf %328, %327 : vector<2x128xf32>
    %330 = arith.divf %328, %329 : vector<2x128xf32>
    %331 = vector.extract_strided_slice %318 {offsets = [0, 256], sizes = [2, 128], strides = [1, 1]} : vector<2x512xf32> to vector<2x128xf32>
    %332 = math.tanh %331 : vector<2x128xf32>
    %333 = vector.extract_strided_slice %318 {offsets = [0, 384], sizes = [2, 128], strides = [1, 1]} : vector<2x512xf32> to vector<2x128xf32>
    %334 = arith.negf %333 : vector<2x128xf32>
    %335 = math.exp %334 : vector<2x128xf32>
    %cst_83 = arith.constant 1.000000e+00 : f32
    %336 = vector.broadcast %cst_83 : f32 to vector<2x128xf32>
    %337 = arith.addf %336, %335 : vector<2x128xf32>
    %338 = arith.divf %336, %337 : vector<2x128xf32>
    %339 = arith.mulf %330, %285 : vector<2x128xf32>
    %340 = arith.mulf %324, %332 : vector<2x128xf32>
    %341 = arith.addf %339, %340 : vector<2x128xf32>
    %342 = math.tanh %341 : vector<2x128xf32>
    %343 = arith.mulf %338, %342 : vector<2x128xf32>
    %344 = vector.extract_strided_slice %24 {offsets = [10, 0], sizes = [2, 512], strides = [1, 1]} : vector<16x512xf32> to vector<2x512xf32>
    %cst_84 = arith.constant dense<0.000000e+00> : vector<2x512xf32>
    %345 = tpu.matmul %315, %47, %cst_84 {dimension_numbers = #tpu.dot_dimension_numbers<[1], [0], [0], [1], [0, 0, 1, 1], [], []>} : vector<2x128xf32>, vector<128x512xf32>, vector<2x512xf32> -> vector<2x512xf32>
    %346 = arith.addf %344, %345 : vector<2x512xf32>
    %347 = vector.extract_strided_slice %346 {offsets = [0, 0], sizes = [2, 128], strides = [1, 1]} : vector<2x512xf32> to vector<2x128xf32>
    %348 = arith.negf %347 : vector<2x128xf32>
    %349 = math.exp %348 : vector<2x128xf32>
    %cst_85 = arith.constant 1.000000e+00 : f32
    %350 = vector.broadcast %cst_85 : f32 to vector<2x128xf32>
    %351 = arith.addf %350, %349 : vector<2x128xf32>
    %352 = arith.divf %350, %351 : vector<2x128xf32>
    %353 = vector.extract_strided_slice %346 {offsets = [0, 128], sizes = [2, 128], strides = [1, 1]} : vector<2x512xf32> to vector<2x128xf32>
    %354 = arith.negf %353 : vector<2x128xf32>
    %355 = math.exp %354 : vector<2x128xf32>
    %cst_86 = arith.constant 1.000000e+00 : f32
    %356 = vector.broadcast %cst_86 : f32 to vector<2x128xf32>
    %357 = arith.addf %356, %355 : vector<2x128xf32>
    %358 = arith.divf %356, %357 : vector<2x128xf32>
    %359 = vector.extract_strided_slice %346 {offsets = [0, 256], sizes = [2, 128], strides = [1, 1]} : vector<2x512xf32> to vector<2x128xf32>
    %360 = math.tanh %359 : vector<2x128xf32>
    %361 = vector.extract_strided_slice %346 {offsets = [0, 384], sizes = [2, 128], strides = [1, 1]} : vector<2x512xf32> to vector<2x128xf32>
    %362 = arith.negf %361 : vector<2x128xf32>
    %363 = math.exp %362 : vector<2x128xf32>
    %cst_87 = arith.constant 1.000000e+00 : f32
    %364 = vector.broadcast %cst_87 : f32 to vector<2x128xf32>
    %365 = arith.addf %364, %363 : vector<2x128xf32>
    %366 = arith.divf %364, %365 : vector<2x128xf32>
    %367 = arith.mulf %358, %313 : vector<2x128xf32>
    %368 = arith.mulf %352, %360 : vector<2x128xf32>
    %369 = arith.addf %367, %368 : vector<2x128xf32>
    %370 = math.tanh %369 : vector<2x128xf32>
    %371 = arith.mulf %366, %370 : vector<2x128xf32>
    %372 = vector.extract_strided_slice %31 {offsets = [4, 0], sizes = [2, 512], strides = [1, 1]} : vector<16x512xf32> to vector<2x512xf32>
    %cst_88 = arith.constant dense<0.000000e+00> : vector<2x512xf32>
    %373 = tpu.matmul %343, %49, %cst_88 {dimension_numbers = #tpu.dot_dimension_numbers<[1], [0], [0], [1], [0, 0, 1, 1], [], []>} : vector<2x128xf32>, vector<128x512xf32>, vector<2x512xf32> -> vector<2x512xf32>
    %374 = arith.addf %372, %373 : vector<2x512xf32>
    %375 = vector.extract_strided_slice %374 {offsets = [0, 0], sizes = [2, 128], strides = [1, 1]} : vector<2x512xf32> to vector<2x128xf32>
    %376 = arith.negf %375 : vector<2x128xf32>
    %377 = math.exp %376 : vector<2x128xf32>
    %cst_89 = arith.constant 1.000000e+00 : f32
    %378 = vector.broadcast %cst_89 : f32 to vector<2x128xf32>
    %379 = arith.addf %378, %377 : vector<2x128xf32>
    %380 = arith.divf %378, %379 : vector<2x128xf32>
    %381 = vector.extract_strided_slice %374 {offsets = [0, 128], sizes = [2, 128], strides = [1, 1]} : vector<2x512xf32> to vector<2x128xf32>
    %382 = arith.negf %381 : vector<2x128xf32>
    %383 = math.exp %382 : vector<2x128xf32>
    %cst_90 = arith.constant 1.000000e+00 : f32
    %384 = vector.broadcast %cst_90 : f32 to vector<2x128xf32>
    %385 = arith.addf %384, %383 : vector<2x128xf32>
    %386 = arith.divf %384, %385 : vector<2x128xf32>
    %387 = vector.extract_strided_slice %374 {offsets = [0, 256], sizes = [2, 128], strides = [1, 1]} : vector<2x512xf32> to vector<2x128xf32>
    %388 = math.tanh %387 : vector<2x128xf32>
    %389 = vector.extract_strided_slice %374 {offsets = [0, 384], sizes = [2, 128], strides = [1, 1]} : vector<2x512xf32> to vector<2x128xf32>
    %390 = arith.negf %389 : vector<2x128xf32>
    %391 = math.exp %390 : vector<2x128xf32>
    %cst_91 = arith.constant 1.000000e+00 : f32
    %392 = vector.broadcast %cst_91 : f32 to vector<2x128xf32>
    %393 = arith.addf %392, %391 : vector<2x128xf32>
    %394 = arith.divf %392, %393 : vector<2x128xf32>
    %395 = arith.mulf %386, %341 : vector<2x128xf32>
    %396 = arith.mulf %380, %388 : vector<2x128xf32>
    %397 = arith.addf %395, %396 : vector<2x128xf32>
    %398 = math.tanh %397 : vector<2x128xf32>
    %399 = arith.mulf %394, %398 : vector<2x128xf32>
    %400 = vector.extract_strided_slice %24 {offsets = [12, 0], sizes = [2, 512], strides = [1, 1]} : vector<16x512xf32> to vector<2x512xf32>
    %cst_92 = arith.constant dense<0.000000e+00> : vector<2x512xf32>
    %401 = tpu.matmul %371, %47, %cst_92 {dimension_numbers = #tpu.dot_dimension_numbers<[1], [0], [0], [1], [0, 0, 1, 1], [], []>} : vector<2x128xf32>, vector<128x512xf32>, vector<2x512xf32> -> vector<2x512xf32>
    %402 = arith.addf %400, %401 : vector<2x512xf32>
    %403 = vector.extract_strided_slice %402 {offsets = [0, 0], sizes = [2, 128], strides = [1, 1]} : vector<2x512xf32> to vector<2x128xf32>
    %404 = arith.negf %403 : vector<2x128xf32>
    %405 = math.exp %404 : vector<2x128xf32>
    %cst_93 = arith.constant 1.000000e+00 : f32
    %406 = vector.broadcast %cst_93 : f32 to vector<2x128xf32>
    %407 = arith.addf %406, %405 : vector<2x128xf32>
    %408 = arith.divf %406, %407 : vector<2x128xf32>
    %409 = vector.extract_strided_slice %402 {offsets = [0, 128], sizes = [2, 128], strides = [1, 1]} : vector<2x512xf32> to vector<2x128xf32>
    %410 = arith.negf %409 : vector<2x128xf32>
    %411 = math.exp %410 : vector<2x128xf32>
    %cst_94 = arith.constant 1.000000e+00 : f32
    %412 = vector.broadcast %cst_94 : f32 to vector<2x128xf32>
    %413 = arith.addf %412, %411 : vector<2x128xf32>
    %414 = arith.divf %412, %413 : vector<2x128xf32>
    %415 = vector.extract_strided_slice %402 {offsets = [0, 256], sizes = [2, 128], strides = [1, 1]} : vector<2x512xf32> to vector<2x128xf32>
    %416 = math.tanh %415 : vector<2x128xf32>
    %417 = vector.extract_strided_slice %402 {offsets = [0, 384], sizes = [2, 128], strides = [1, 1]} : vector<2x512xf32> to vector<2x128xf32>
    %418 = arith.negf %417 : vector<2x128xf32>
    %419 = math.exp %418 : vector<2x128xf32>
    %cst_95 = arith.constant 1.000000e+00 : f32
    %420 = vector.broadcast %cst_95 : f32 to vector<2x128xf32>
    %421 = arith.addf %420, %419 : vector<2x128xf32>
    %422 = arith.divf %420, %421 : vector<2x128xf32>
    %423 = arith.mulf %414, %369 : vector<2x128xf32>
    %424 = arith.mulf %408, %416 : vector<2x128xf32>
    %425 = arith.addf %423, %424 : vector<2x128xf32>
    %426 = math.tanh %425 : vector<2x128xf32>
    %427 = arith.mulf %422, %426 : vector<2x128xf32>
    %428 = vector.extract_strided_slice %31 {offsets = [2, 0], sizes = [2, 512], strides = [1, 1]} : vector<16x512xf32> to vector<2x512xf32>
    %cst_96 = arith.constant dense<0.000000e+00> : vector<2x512xf32>
    %429 = tpu.matmul %399, %49, %cst_96 {dimension_numbers = #tpu.dot_dimension_numbers<[1], [0], [0], [1], [0, 0, 1, 1], [], []>} : vector<2x128xf32>, vector<128x512xf32>, vector<2x512xf32> -> vector<2x512xf32>
    %430 = arith.addf %428, %429 : vector<2x512xf32>
    %431 = vector.extract_strided_slice %430 {offsets = [0, 0], sizes = [2, 128], strides = [1, 1]} : vector<2x512xf32> to vector<2x128xf32>
    %432 = arith.negf %431 : vector<2x128xf32>
    %433 = math.exp %432 : vector<2x128xf32>
    %cst_97 = arith.constant 1.000000e+00 : f32
    %434 = vector.broadcast %cst_97 : f32 to vector<2x128xf32>
    %435 = arith.addf %434, %433 : vector<2x128xf32>
    %436 = arith.divf %434, %435 : vector<2x128xf32>
    %437 = vector.extract_strided_slice %430 {offsets = [0, 128], sizes = [2, 128], strides = [1, 1]} : vector<2x512xf32> to vector<2x128xf32>
    %438 = arith.negf %437 : vector<2x128xf32>
    %439 = math.exp %438 : vector<2x128xf32>
    %cst_98 = arith.constant 1.000000e+00 : f32
    %440 = vector.broadcast %cst_98 : f32 to vector<2x128xf32>
    %441 = arith.addf %440, %439 : vector<2x128xf32>
    %442 = arith.divf %440, %441 : vector<2x128xf32>
    %443 = vector.extract_strided_slice %430 {offsets = [0, 256], sizes = [2, 128], strides = [1, 1]} : vector<2x512xf32> to vector<2x128xf32>
    %444 = math.tanh %443 : vector<2x128xf32>
    %445 = vector.extract_strided_slice %430 {offsets = [0, 384], sizes = [2, 128], strides = [1, 1]} : vector<2x512xf32> to vector<2x128xf32>
    %446 = arith.negf %445 : vector<2x128xf32>
    %447 = math.exp %446 : vector<2x128xf32>
    %cst_99 = arith.constant 1.000000e+00 : f32
    %448 = vector.broadcast %cst_99 : f32 to vector<2x128xf32>
    %449 = arith.addf %448, %447 : vector<2x128xf32>
    %450 = arith.divf %448, %449 : vector<2x128xf32>
    %451 = arith.mulf %442, %397 : vector<2x128xf32>
    %452 = arith.mulf %436, %444 : vector<2x128xf32>
    %453 = arith.addf %451, %452 : vector<2x128xf32>
    %454 = math.tanh %453 : vector<2x128xf32>
    %455 = arith.mulf %450, %454 : vector<2x128xf32>
    %456 = vector.extract_strided_slice %24 {offsets = [14, 0], sizes = [2, 512], strides = [1, 1]} : vector<16x512xf32> to vector<2x512xf32>
    %cst_100 = arith.constant dense<0.000000e+00> : vector<2x512xf32>
    %457 = tpu.matmul %427, %47, %cst_100 {dimension_numbers = #tpu.dot_dimension_numbers<[1], [0], [0], [1], [0, 0, 1, 1], [], []>} : vector<2x128xf32>, vector<128x512xf32>, vector<2x512xf32> -> vector<2x512xf32>
    %458 = arith.addf %456, %457 : vector<2x512xf32>
    %459 = vector.extract_strided_slice %458 {offsets = [0, 0], sizes = [2, 128], strides = [1, 1]} : vector<2x512xf32> to vector<2x128xf32>
    %460 = arith.negf %459 : vector<2x128xf32>
    %461 = math.exp %460 : vector<2x128xf32>
    %cst_101 = arith.constant 1.000000e+00 : f32
    %462 = vector.broadcast %cst_101 : f32 to vector<2x128xf32>
    %463 = arith.addf %462, %461 : vector<2x128xf32>
    %464 = arith.divf %462, %463 : vector<2x128xf32>
    %465 = vector.extract_strided_slice %458 {offsets = [0, 128], sizes = [2, 128], strides = [1, 1]} : vector<2x512xf32> to vector<2x128xf32>
    %466 = arith.negf %465 : vector<2x128xf32>
    %467 = math.exp %466 : vector<2x128xf32>
    %cst_102 = arith.constant 1.000000e+00 : f32
    %468 = vector.broadcast %cst_102 : f32 to vector<2x128xf32>
    %469 = arith.addf %468, %467 : vector<2x128xf32>
    %470 = arith.divf %468, %469 : vector<2x128xf32>
    %471 = vector.extract_strided_slice %458 {offsets = [0, 256], sizes = [2, 128], strides = [1, 1]} : vector<2x512xf32> to vector<2x128xf32>
    %472 = math.tanh %471 : vector<2x128xf32>
    %473 = vector.extract_strided_slice %458 {offsets = [0, 384], sizes = [2, 128], strides = [1, 1]} : vector<2x512xf32> to vector<2x128xf32>
    %474 = arith.negf %473 : vector<2x128xf32>
    %475 = math.exp %474 : vector<2x128xf32>
    %cst_103 = arith.constant 1.000000e+00 : f32
    %476 = vector.broadcast %cst_103 : f32 to vector<2x128xf32>
    %477 = arith.addf %476, %475 : vector<2x128xf32>
    %478 = arith.divf %476, %477 : vector<2x128xf32>
    %479 = arith.mulf %470, %425 : vector<2x128xf32>
    %480 = arith.mulf %464, %472 : vector<2x128xf32>
    %481 = arith.addf %479, %480 : vector<2x128xf32>
    %482 = math.tanh %481 : vector<2x128xf32>
    %483 = arith.mulf %478, %482 : vector<2x128xf32>
    %484 = vector.extract_strided_slice %31 {offsets = [0, 0], sizes = [2, 512], strides = [1, 1]} : vector<16x512xf32> to vector<2x512xf32>
    %cst_104 = arith.constant dense<0.000000e+00> : vector<2x512xf32>
    %485 = tpu.matmul %455, %49, %cst_104 {dimension_numbers = #tpu.dot_dimension_numbers<[1], [0], [0], [1], [0, 0, 1, 1], [], []>} : vector<2x128xf32>, vector<128x512xf32>, vector<2x512xf32> -> vector<2x512xf32>
    %486 = arith.addf %484, %485 : vector<2x512xf32>
    %487 = vector.extract_strided_slice %486 {offsets = [0, 0], sizes = [2, 128], strides = [1, 1]} : vector<2x512xf32> to vector<2x128xf32>
    %488 = arith.negf %487 : vector<2x128xf32>
    %489 = math.exp %488 : vector<2x128xf32>
    %cst_105 = arith.constant 1.000000e+00 : f32
    %490 = vector.broadcast %cst_105 : f32 to vector<2x128xf32>
    %491 = arith.addf %490, %489 : vector<2x128xf32>
    %492 = arith.divf %490, %491 : vector<2x128xf32>
    %493 = vector.extract_strided_slice %486 {offsets = [0, 128], sizes = [2, 128], strides = [1, 1]} : vector<2x512xf32> to vector<2x128xf32>
    %494 = arith.negf %493 : vector<2x128xf32>
    %495 = math.exp %494 : vector<2x128xf32>
    %cst_106 = arith.constant 1.000000e+00 : f32
    %496 = vector.broadcast %cst_106 : f32 to vector<2x128xf32>
    %497 = arith.addf %496, %495 : vector<2x128xf32>
    %498 = arith.divf %496, %497 : vector<2x128xf32>
    %499 = vector.extract_strided_slice %486 {offsets = [0, 256], sizes = [2, 128], strides = [1, 1]} : vector<2x512xf32> to vector<2x128xf32>
    %500 = math.tanh %499 : vector<2x128xf32>
    %501 = vector.extract_strided_slice %486 {offsets = [0, 384], sizes = [2, 128], strides = [1, 1]} : vector<2x512xf32> to vector<2x128xf32>
    %502 = arith.negf %501 : vector<2x128xf32>
    %503 = math.exp %502 : vector<2x128xf32>
    %cst_107 = arith.constant 1.000000e+00 : f32
    %504 = vector.broadcast %cst_107 : f32 to vector<2x128xf32>
    %505 = arith.addf %504, %503 : vector<2x128xf32>
    %506 = arith.divf %504, %505 : vector<2x128xf32>
    %507 = arith.mulf %498, %453 : vector<2x128xf32>
    %508 = arith.mulf %492, %500 : vector<2x128xf32>
    %509 = arith.addf %507, %508 : vector<2x128xf32>
    %510 = math.tanh %509 : vector<2x128xf32>
    %511 = arith.mulf %506, %510 : vector<2x128xf32>
    %512 = vector.extract_strided_slice %38 {offsets = [0, 0], sizes = [2, 512], strides = [1, 1]} : vector<16x512xf32> to vector<2x512xf32>
    %cst_108 = arith.constant dense<0.000000e+00> : vector<2x512xf32>
    %513 = tpu.matmul %483, %51, %cst_108 {dimension_numbers = #tpu.dot_dimension_numbers<[1], [0], [0], [1], [0, 0, 1, 1], [], []>} : vector<2x128xf32>, vector<128x512xf32>, vector<2x512xf32> -> vector<2x512xf32>
    %514 = arith.addf %512, %513 : vector<2x512xf32>
    %515 = vector.extract_strided_slice %514 {offsets = [0, 0], sizes = [2, 128], strides = [1, 1]} : vector<2x512xf32> to vector<2x128xf32>
    %516 = arith.negf %515 : vector<2x128xf32>
    %517 = math.exp %516 : vector<2x128xf32>
    %cst_109 = arith.constant 1.000000e+00 : f32
    %518 = vector.broadcast %cst_109 : f32 to vector<2x128xf32>
    %519 = arith.addf %518, %517 : vector<2x128xf32>
    %520 = arith.divf %518, %519 : vector<2x128xf32>
    %521 = vector.extract_strided_slice %514 {offsets = [0, 128], sizes = [2, 128], strides = [1, 1]} : vector<2x512xf32> to vector<2x128xf32>
    %522 = arith.negf %521 : vector<2x128xf32>
    %523 = math.exp %522 : vector<2x128xf32>
    %cst_110 = arith.constant 1.000000e+00 : f32
    %524 = vector.broadcast %cst_110 : f32 to vector<2x128xf32>
    %525 = arith.addf %524, %523 : vector<2x128xf32>
    %526 = arith.divf %524, %525 : vector<2x128xf32>
    %527 = vector.extract_strided_slice %514 {offsets = [0, 256], sizes = [2, 128], strides = [1, 1]} : vector<2x512xf32> to vector<2x128xf32>
    %528 = math.tanh %527 : vector<2x128xf32>
    %529 = vector.extract_strided_slice %514 {offsets = [0, 384], sizes = [2, 128], strides = [1, 1]} : vector<2x512xf32> to vector<2x128xf32>
    %530 = arith.negf %529 : vector<2x128xf32>
    %531 = math.exp %530 : vector<2x128xf32>
    %cst_111 = arith.constant 1.000000e+00 : f32
    %532 = vector.broadcast %cst_111 : f32 to vector<2x128xf32>
    %533 = arith.addf %532, %531 : vector<2x128xf32>
    %534 = arith.divf %532, %533 : vector<2x128xf32>
    %535 = arith.mulf %526, %481 : vector<2x128xf32>
    %536 = arith.mulf %520, %528 : vector<2x128xf32>
    %537 = arith.addf %535, %536 : vector<2x128xf32>
    %538 = math.tanh %537 : vector<2x128xf32>
    %539 = arith.mulf %534, %538 : vector<2x128xf32>
    %540 = vector.extract_strided_slice %45 {offsets = [14, 0], sizes = [2, 512], strides = [1, 1]} : vector<16x512xf32> to vector<2x512xf32>
    %cst_112 = arith.constant dense<0.000000e+00> : vector<2x512xf32>
    %541 = tpu.matmul %511, %53, %cst_112 {dimension_numbers = #tpu.dot_dimension_numbers<[1], [0], [0], [1], [0, 0, 1, 1], [], []>} : vector<2x128xf32>, vector<128x512xf32>, vector<2x512xf32> -> vector<2x512xf32>
    %542 = arith.addf %540, %541 : vector<2x512xf32>
    %543 = vector.extract_strided_slice %542 {offsets = [0, 0], sizes = [2, 128], strides = [1, 1]} : vector<2x512xf32> to vector<2x128xf32>
    %544 = arith.negf %543 : vector<2x128xf32>
    %545 = math.exp %544 : vector<2x128xf32>
    %cst_113 = arith.constant 1.000000e+00 : f32
    %546 = vector.broadcast %cst_113 : f32 to vector<2x128xf32>
    %547 = arith.addf %546, %545 : vector<2x128xf32>
    %548 = arith.divf %546, %547 : vector<2x128xf32>
    %549 = vector.extract_strided_slice %542 {offsets = [0, 128], sizes = [2, 128], strides = [1, 1]} : vector<2x512xf32> to vector<2x128xf32>
    %550 = arith.negf %549 : vector<2x128xf32>
    %551 = math.exp %550 : vector<2x128xf32>
    %cst_114 = arith.constant 1.000000e+00 : f32
    %552 = vector.broadcast %cst_114 : f32 to vector<2x128xf32>
    %553 = arith.addf %552, %551 : vector<2x128xf32>
    %554 = arith.divf %552, %553 : vector<2x128xf32>
    %555 = vector.extract_strided_slice %542 {offsets = [0, 256], sizes = [2, 128], strides = [1, 1]} : vector<2x512xf32> to vector<2x128xf32>
    %556 = math.tanh %555 : vector<2x128xf32>
    %557 = vector.extract_strided_slice %542 {offsets = [0, 384], sizes = [2, 128], strides = [1, 1]} : vector<2x512xf32> to vector<2x128xf32>
    %558 = arith.negf %557 : vector<2x128xf32>
    %559 = math.exp %558 : vector<2x128xf32>
    %cst_115 = arith.constant 1.000000e+00 : f32
    %560 = vector.broadcast %cst_115 : f32 to vector<2x128xf32>
    %561 = arith.addf %560, %559 : vector<2x128xf32>
    %562 = arith.divf %560, %561 : vector<2x128xf32>
    %563 = arith.mulf %554, %509 : vector<2x128xf32>
    %564 = arith.mulf %548, %556 : vector<2x128xf32>
    %565 = arith.addf %563, %564 : vector<2x128xf32>
    %566 = math.tanh %565 : vector<2x128xf32>
    %567 = arith.mulf %562, %566 : vector<2x128xf32>
    %568 = vector.extract_strided_slice %38 {offsets = [2, 0], sizes = [2, 512], strides = [1, 1]} : vector<16x512xf32> to vector<2x512xf32>
    %cst_116 = arith.constant dense<0.000000e+00> : vector<2x512xf32>
    %569 = tpu.matmul %539, %51, %cst_116 {dimension_numbers = #tpu.dot_dimension_numbers<[1], [0], [0], [1], [0, 0, 1, 1], [], []>} : vector<2x128xf32>, vector<128x512xf32>, vector<2x512xf32> -> vector<2x512xf32>
    %570 = arith.addf %568, %569 : vector<2x512xf32>
    %571 = vector.extract_strided_slice %570 {offsets = [0, 0], sizes = [2, 128], strides = [1, 1]} : vector<2x512xf32> to vector<2x128xf32>
    %572 = arith.negf %571 : vector<2x128xf32>
    %573 = math.exp %572 : vector<2x128xf32>
    %cst_117 = arith.constant 1.000000e+00 : f32
    %574 = vector.broadcast %cst_117 : f32 to vector<2x128xf32>
    %575 = arith.addf %574, %573 : vector<2x128xf32>
    %576 = arith.divf %574, %575 : vector<2x128xf32>
    %577 = vector.extract_strided_slice %570 {offsets = [0, 128], sizes = [2, 128], strides = [1, 1]} : vector<2x512xf32> to vector<2x128xf32>
    %578 = arith.negf %577 : vector<2x128xf32>
    %579 = math.exp %578 : vector<2x128xf32>
    %cst_118 = arith.constant 1.000000e+00 : f32
    %580 = vector.broadcast %cst_118 : f32 to vector<2x128xf32>
    %581 = arith.addf %580, %579 : vector<2x128xf32>
    %582 = arith.divf %580, %581 : vector<2x128xf32>
    %583 = vector.extract_strided_slice %570 {offsets = [0, 256], sizes = [2, 128], strides = [1, 1]} : vector<2x512xf32> to vector<2x128xf32>
    %584 = math.tanh %583 : vector<2x128xf32>
    %585 = vector.extract_strided_slice %570 {offsets = [0, 384], sizes = [2, 128], strides = [1, 1]} : vector<2x512xf32> to vector<2x128xf32>
    %586 = arith.negf %585 : vector<2x128xf32>
    %587 = math.exp %586 : vector<2x128xf32>
    %cst_119 = arith.constant 1.000000e+00 : f32
    %588 = vector.broadcast %cst_119 : f32 to vector<2x128xf32>
    %589 = arith.addf %588, %587 : vector<2x128xf32>
    %590 = arith.divf %588, %589 : vector<2x128xf32>
    %591 = arith.mulf %582, %537 : vector<2x128xf32>
    %592 = arith.mulf %576, %584 : vector<2x128xf32>
    %593 = arith.addf %591, %592 : vector<2x128xf32>
    %594 = math.tanh %593 : vector<2x128xf32>
    %595 = arith.mulf %590, %594 : vector<2x128xf32>
    %596 = vector.extract_strided_slice %45 {offsets = [12, 0], sizes = [2, 512], strides = [1, 1]} : vector<16x512xf32> to vector<2x512xf32>
    %cst_120 = arith.constant dense<0.000000e+00> : vector<2x512xf32>
    %597 = tpu.matmul %567, %53, %cst_120 {dimension_numbers = #tpu.dot_dimension_numbers<[1], [0], [0], [1], [0, 0, 1, 1], [], []>} : vector<2x128xf32>, vector<128x512xf32>, vector<2x512xf32> -> vector<2x512xf32>
    %598 = arith.addf %596, %597 : vector<2x512xf32>
    %599 = vector.extract_strided_slice %598 {offsets = [0, 0], sizes = [2, 128], strides = [1, 1]} : vector<2x512xf32> to vector<2x128xf32>
    %600 = arith.negf %599 : vector<2x128xf32>
    %601 = math.exp %600 : vector<2x128xf32>
    %cst_121 = arith.constant 1.000000e+00 : f32
    %602 = vector.broadcast %cst_121 : f32 to vector<2x128xf32>
    %603 = arith.addf %602, %601 : vector<2x128xf32>
    %604 = arith.divf %602, %603 : vector<2x128xf32>
    %605 = vector.extract_strided_slice %598 {offsets = [0, 128], sizes = [2, 128], strides = [1, 1]} : vector<2x512xf32> to vector<2x128xf32>
    %606 = arith.negf %605 : vector<2x128xf32>
    %607 = math.exp %606 : vector<2x128xf32>
    %cst_122 = arith.constant 1.000000e+00 : f32
    %608 = vector.broadcast %cst_122 : f32 to vector<2x128xf32>
    %609 = arith.addf %608, %607 : vector<2x128xf32>
    %610 = arith.divf %608, %609 : vector<2x128xf32>
    %611 = vector.extract_strided_slice %598 {offsets = [0, 256], sizes = [2, 128], strides = [1, 1]} : vector<2x512xf32> to vector<2x128xf32>
    %612 = math.tanh %611 : vector<2x128xf32>
    %613 = vector.extract_strided_slice %598 {offsets = [0, 384], sizes = [2, 128], strides = [1, 1]} : vector<2x512xf32> to vector<2x128xf32>
    %614 = arith.negf %613 : vector<2x128xf32>
    %615 = math.exp %614 : vector<2x128xf32>
    %cst_123 = arith.constant 1.000000e+00 : f32
    %616 = vector.broadcast %cst_123 : f32 to vector<2x128xf32>
    %617 = arith.addf %616, %615 : vector<2x128xf32>
    %618 = arith.divf %616, %617 : vector<2x128xf32>
    %619 = arith.mulf %610, %565 : vector<2x128xf32>
    %620 = arith.mulf %604, %612 : vector<2x128xf32>
    %621 = arith.addf %619, %620 : vector<2x128xf32>
    %622 = math.tanh %621 : vector<2x128xf32>
    %623 = arith.mulf %618, %622 : vector<2x128xf32>
    %624 = vector.extract_strided_slice %38 {offsets = [4, 0], sizes = [2, 512], strides = [1, 1]} : vector<16x512xf32> to vector<2x512xf32>
    %cst_124 = arith.constant dense<0.000000e+00> : vector<2x512xf32>
    %625 = tpu.matmul %595, %51, %cst_124 {dimension_numbers = #tpu.dot_dimension_numbers<[1], [0], [0], [1], [0, 0, 1, 1], [], []>} : vector<2x128xf32>, vector<128x512xf32>, vector<2x512xf32> -> vector<2x512xf32>
    %626 = arith.addf %624, %625 : vector<2x512xf32>
    %627 = vector.extract_strided_slice %626 {offsets = [0, 0], sizes = [2, 128], strides = [1, 1]} : vector<2x512xf32> to vector<2x128xf32>
    %628 = arith.negf %627 : vector<2x128xf32>
    %629 = math.exp %628 : vector<2x128xf32>
    %cst_125 = arith.constant 1.000000e+00 : f32
    %630 = vector.broadcast %cst_125 : f32 to vector<2x128xf32>
    %631 = arith.addf %630, %629 : vector<2x128xf32>
    %632 = arith.divf %630, %631 : vector<2x128xf32>
    %633 = vector.extract_strided_slice %626 {offsets = [0, 128], sizes = [2, 128], strides = [1, 1]} : vector<2x512xf32> to vector<2x128xf32>
    %634 = arith.negf %633 : vector<2x128xf32>
    %635 = math.exp %634 : vector<2x128xf32>
    %cst_126 = arith.constant 1.000000e+00 : f32
    %636 = vector.broadcast %cst_126 : f32 to vector<2x128xf32>
    %637 = arith.addf %636, %635 : vector<2x128xf32>
    %638 = arith.divf %636, %637 : vector<2x128xf32>
    %639 = vector.extract_strided_slice %626 {offsets = [0, 256], sizes = [2, 128], strides = [1, 1]} : vector<2x512xf32> to vector<2x128xf32>
    %640 = math.tanh %639 : vector<2x128xf32>
    %641 = vector.extract_strided_slice %626 {offsets = [0, 384], sizes = [2, 128], strides = [1, 1]} : vector<2x512xf32> to vector<2x128xf32>
    %642 = arith.negf %641 : vector<2x128xf32>
    %643 = math.exp %642 : vector<2x128xf32>
    %cst_127 = arith.constant 1.000000e+00 : f32
    %644 = vector.broadcast %cst_127 : f32 to vector<2x128xf32>
    %645 = arith.addf %644, %643 : vector<2x128xf32>
    %646 = arith.divf %644, %645 : vector<2x128xf32>
    %647 = arith.mulf %638, %593 : vector<2x128xf32>
    %648 = arith.mulf %632, %640 : vector<2x128xf32>
    %649 = arith.addf %647, %648 : vector<2x128xf32>
    %650 = math.tanh %649 : vector<2x128xf32>
    %651 = arith.mulf %646, %650 : vector<2x128xf32>
    %652 = vector.extract_strided_slice %45 {offsets = [10, 0], sizes = [2, 512], strides = [1, 1]} : vector<16x512xf32> to vector<2x512xf32>
    %cst_128 = arith.constant dense<0.000000e+00> : vector<2x512xf32>
    %653 = tpu.matmul %623, %53, %cst_128 {dimension_numbers = #tpu.dot_dimension_numbers<[1], [0], [0], [1], [0, 0, 1, 1], [], []>} : vector<2x128xf32>, vector<128x512xf32>, vector<2x512xf32> -> vector<2x512xf32>
    %654 = arith.addf %652, %653 : vector<2x512xf32>
    %655 = vector.extract_strided_slice %654 {offsets = [0, 0], sizes = [2, 128], strides = [1, 1]} : vector<2x512xf32> to vector<2x128xf32>
    %656 = arith.negf %655 : vector<2x128xf32>
    %657 = math.exp %656 : vector<2x128xf32>
    %cst_129 = arith.constant 1.000000e+00 : f32
    %658 = vector.broadcast %cst_129 : f32 to vector<2x128xf32>
    %659 = arith.addf %658, %657 : vector<2x128xf32>
    %660 = arith.divf %658, %659 : vector<2x128xf32>
    %661 = vector.extract_strided_slice %654 {offsets = [0, 128], sizes = [2, 128], strides = [1, 1]} : vector<2x512xf32> to vector<2x128xf32>
    %662 = arith.negf %661 : vector<2x128xf32>
    %663 = math.exp %662 : vector<2x128xf32>
    %cst_130 = arith.constant 1.000000e+00 : f32
    %664 = vector.broadcast %cst_130 : f32 to vector<2x128xf32>
    %665 = arith.addf %664, %663 : vector<2x128xf32>
    %666 = arith.divf %664, %665 : vector<2x128xf32>
    %667 = vector.extract_strided_slice %654 {offsets = [0, 256], sizes = [2, 128], strides = [1, 1]} : vector<2x512xf32> to vector<2x128xf32>
    %668 = math.tanh %667 : vector<2x128xf32>
    %669 = vector.extract_strided_slice %654 {offsets = [0, 384], sizes = [2, 128], strides = [1, 1]} : vector<2x512xf32> to vector<2x128xf32>
    %670 = arith.negf %669 : vector<2x128xf32>
    %671 = math.exp %670 : vector<2x128xf32>
    %cst_131 = arith.constant 1.000000e+00 : f32
    %672 = vector.broadcast %cst_131 : f32 to vector<2x128xf32>
    %673 = arith.addf %672, %671 : vector<2x128xf32>
    %674 = arith.divf %672, %673 : vector<2x128xf32>
    %675 = arith.mulf %666, %621 : vector<2x128xf32>
    %676 = arith.mulf %660, %668 : vector<2x128xf32>
    %677 = arith.addf %675, %676 : vector<2x128xf32>
    %678 = math.tanh %677 : vector<2x128xf32>
    %679 = arith.mulf %674, %678 : vector<2x128xf32>
    %680 = vector.extract_strided_slice %38 {offsets = [6, 0], sizes = [2, 512], strides = [1, 1]} : vector<16x512xf32> to vector<2x512xf32>
    %cst_132 = arith.constant dense<0.000000e+00> : vector<2x512xf32>
    %681 = tpu.matmul %651, %51, %cst_132 {dimension_numbers = #tpu.dot_dimension_numbers<[1], [0], [0], [1], [0, 0, 1, 1], [], []>} : vector<2x128xf32>, vector<128x512xf32>, vector<2x512xf32> -> vector<2x512xf32>
    %682 = arith.addf %680, %681 : vector<2x512xf32>
    %683 = vector.extract_strided_slice %682 {offsets = [0, 0], sizes = [2, 128], strides = [1, 1]} : vector<2x512xf32> to vector<2x128xf32>
    %684 = arith.negf %683 : vector<2x128xf32>
    %685 = math.exp %684 : vector<2x128xf32>
    %cst_133 = arith.constant 1.000000e+00 : f32
    %686 = vector.broadcast %cst_133 : f32 to vector<2x128xf32>
    %687 = arith.addf %686, %685 : vector<2x128xf32>
    %688 = arith.divf %686, %687 : vector<2x128xf32>
    %689 = vector.extract_strided_slice %682 {offsets = [0, 128], sizes = [2, 128], strides = [1, 1]} : vector<2x512xf32> to vector<2x128xf32>
    %690 = arith.negf %689 : vector<2x128xf32>
    %691 = math.exp %690 : vector<2x128xf32>
    %cst_134 = arith.constant 1.000000e+00 : f32
    %692 = vector.broadcast %cst_134 : f32 to vector<2x128xf32>
    %693 = arith.addf %692, %691 : vector<2x128xf32>
    %694 = arith.divf %692, %693 : vector<2x128xf32>
    %695 = vector.extract_strided_slice %682 {offsets = [0, 256], sizes = [2, 128], strides = [1, 1]} : vector<2x512xf32> to vector<2x128xf32>
    %696 = math.tanh %695 : vector<2x128xf32>
    %697 = vector.extract_strided_slice %682 {offsets = [0, 384], sizes = [2, 128], strides = [1, 1]} : vector<2x512xf32> to vector<2x128xf32>
    %698 = arith.negf %697 : vector<2x128xf32>
    %699 = math.exp %698 : vector<2x128xf32>
    %cst_135 = arith.constant 1.000000e+00 : f32
    %700 = vector.broadcast %cst_135 : f32 to vector<2x128xf32>
    %701 = arith.addf %700, %699 : vector<2x128xf32>
    %702 = arith.divf %700, %701 : vector<2x128xf32>
    %703 = arith.mulf %694, %649 : vector<2x128xf32>
    %704 = arith.mulf %688, %696 : vector<2x128xf32>
    %705 = arith.addf %703, %704 : vector<2x128xf32>
    %706 = math.tanh %705 : vector<2x128xf32>
    %707 = arith.mulf %702, %706 : vector<2x128xf32>
    %708 = vector.extract_strided_slice %45 {offsets = [8, 0], sizes = [2, 512], strides = [1, 1]} : vector<16x512xf32> to vector<2x512xf32>
    %cst_136 = arith.constant dense<0.000000e+00> : vector<2x512xf32>
    %709 = tpu.matmul %679, %53, %cst_136 {dimension_numbers = #tpu.dot_dimension_numbers<[1], [0], [0], [1], [0, 0, 1, 1], [], []>} : vector<2x128xf32>, vector<128x512xf32>, vector<2x512xf32> -> vector<2x512xf32>
    %710 = arith.addf %708, %709 : vector<2x512xf32>
    %711 = vector.extract_strided_slice %710 {offsets = [0, 0], sizes = [2, 128], strides = [1, 1]} : vector<2x512xf32> to vector<2x128xf32>
    %712 = arith.negf %711 : vector<2x128xf32>
    %713 = math.exp %712 : vector<2x128xf32>
    %cst_137 = arith.constant 1.000000e+00 : f32
    %714 = vector.broadcast %cst_137 : f32 to vector<2x128xf32>
    %715 = arith.addf %714, %713 : vector<2x128xf32>
    %716 = arith.divf %714, %715 : vector<2x128xf32>
    %717 = vector.extract_strided_slice %710 {offsets = [0, 128], sizes = [2, 128], strides = [1, 1]} : vector<2x512xf32> to vector<2x128xf32>
    %718 = arith.negf %717 : vector<2x128xf32>
    %719 = math.exp %718 : vector<2x128xf32>
    %cst_138 = arith.constant 1.000000e+00 : f32
    %720 = vector.broadcast %cst_138 : f32 to vector<2x128xf32>
    %721 = arith.addf %720, %719 : vector<2x128xf32>
    %722 = arith.divf %720, %721 : vector<2x128xf32>
    %723 = vector.extract_strided_slice %710 {offsets = [0, 256], sizes = [2, 128], strides = [1, 1]} : vector<2x512xf32> to vector<2x128xf32>
    %724 = math.tanh %723 : vector<2x128xf32>
    %725 = vector.extract_strided_slice %710 {offsets = [0, 384], sizes = [2, 128], strides = [1, 1]} : vector<2x512xf32> to vector<2x128xf32>
    %726 = arith.negf %725 : vector<2x128xf32>
    %727 = math.exp %726 : vector<2x128xf32>
    %cst_139 = arith.constant 1.000000e+00 : f32
    %728 = vector.broadcast %cst_139 : f32 to vector<2x128xf32>
    %729 = arith.addf %728, %727 : vector<2x128xf32>
    %730 = arith.divf %728, %729 : vector<2x128xf32>
    %731 = arith.mulf %722, %677 : vector<2x128xf32>
    %732 = arith.mulf %716, %724 : vector<2x128xf32>
    %733 = arith.addf %731, %732 : vector<2x128xf32>
    %734 = math.tanh %733 : vector<2x128xf32>
    %735 = arith.mulf %730, %734 : vector<2x128xf32>
    %736 = vector.extract_strided_slice %38 {offsets = [8, 0], sizes = [2, 512], strides = [1, 1]} : vector<16x512xf32> to vector<2x512xf32>
    %cst_140 = arith.constant dense<0.000000e+00> : vector<2x512xf32>
    %737 = tpu.matmul %707, %51, %cst_140 {dimension_numbers = #tpu.dot_dimension_numbers<[1], [0], [0], [1], [0, 0, 1, 1], [], []>} : vector<2x128xf32>, vector<128x512xf32>, vector<2x512xf32> -> vector<2x512xf32>
    %738 = arith.addf %736, %737 : vector<2x512xf32>
    %739 = vector.extract_strided_slice %738 {offsets = [0, 0], sizes = [2, 128], strides = [1, 1]} : vector<2x512xf32> to vector<2x128xf32>
    %740 = arith.negf %739 : vector<2x128xf32>
    %741 = math.exp %740 : vector<2x128xf32>
    %cst_141 = arith.constant 1.000000e+00 : f32
    %742 = vector.broadcast %cst_141 : f32 to vector<2x128xf32>
    %743 = arith.addf %742, %741 : vector<2x128xf32>
    %744 = arith.divf %742, %743 : vector<2x128xf32>
    %745 = vector.extract_strided_slice %738 {offsets = [0, 128], sizes = [2, 128], strides = [1, 1]} : vector<2x512xf32> to vector<2x128xf32>
    %746 = arith.negf %745 : vector<2x128xf32>
    %747 = math.exp %746 : vector<2x128xf32>
    %cst_142 = arith.constant 1.000000e+00 : f32
    %748 = vector.broadcast %cst_142 : f32 to vector<2x128xf32>
    %749 = arith.addf %748, %747 : vector<2x128xf32>
    %750 = arith.divf %748, %749 : vector<2x128xf32>
    %751 = vector.extract_strided_slice %738 {offsets = [0, 256], sizes = [2, 128], strides = [1, 1]} : vector<2x512xf32> to vector<2x128xf32>
    %752 = math.tanh %751 : vector<2x128xf32>
    %753 = vector.extract_strided_slice %738 {offsets = [0, 384], sizes = [2, 128], strides = [1, 1]} : vector<2x512xf32> to vector<2x128xf32>
    %754 = arith.negf %753 : vector<2x128xf32>
    %755 = math.exp %754 : vector<2x128xf32>
    %cst_143 = arith.constant 1.000000e+00 : f32
    %756 = vector.broadcast %cst_143 : f32 to vector<2x128xf32>
    %757 = arith.addf %756, %755 : vector<2x128xf32>
    %758 = arith.divf %756, %757 : vector<2x128xf32>
    %759 = arith.mulf %750, %705 : vector<2x128xf32>
    %760 = arith.mulf %744, %752 : vector<2x128xf32>
    %761 = arith.addf %759, %760 : vector<2x128xf32>
    %762 = math.tanh %761 : vector<2x128xf32>
    %763 = arith.mulf %758, %762 : vector<2x128xf32>
    %764 = vector.extract_strided_slice %45 {offsets = [6, 0], sizes = [2, 512], strides = [1, 1]} : vector<16x512xf32> to vector<2x512xf32>
    %cst_144 = arith.constant dense<0.000000e+00> : vector<2x512xf32>
    %765 = tpu.matmul %735, %53, %cst_144 {dimension_numbers = #tpu.dot_dimension_numbers<[1], [0], [0], [1], [0, 0, 1, 1], [], []>} : vector<2x128xf32>, vector<128x512xf32>, vector<2x512xf32> -> vector<2x512xf32>
    %766 = arith.addf %764, %765 : vector<2x512xf32>
    %767 = vector.extract_strided_slice %766 {offsets = [0, 0], sizes = [2, 128], strides = [1, 1]} : vector<2x512xf32> to vector<2x128xf32>
    %768 = arith.negf %767 : vector<2x128xf32>
    %769 = math.exp %768 : vector<2x128xf32>
    %cst_145 = arith.constant 1.000000e+00 : f32
    %770 = vector.broadcast %cst_145 : f32 to vector<2x128xf32>
    %771 = arith.addf %770, %769 : vector<2x128xf32>
    %772 = arith.divf %770, %771 : vector<2x128xf32>
    %773 = vector.extract_strided_slice %766 {offsets = [0, 128], sizes = [2, 128], strides = [1, 1]} : vector<2x512xf32> to vector<2x128xf32>
    %774 = arith.negf %773 : vector<2x128xf32>
    %775 = math.exp %774 : vector<2x128xf32>
    %cst_146 = arith.constant 1.000000e+00 : f32
    %776 = vector.broadcast %cst_146 : f32 to vector<2x128xf32>
    %777 = arith.addf %776, %775 : vector<2x128xf32>
    %778 = arith.divf %776, %777 : vector<2x128xf32>
    %779 = vector.extract_strided_slice %766 {offsets = [0, 256], sizes = [2, 128], strides = [1, 1]} : vector<2x512xf32> to vector<2x128xf32>
    %780 = math.tanh %779 : vector<2x128xf32>
    %781 = vector.extract_strided_slice %766 {offsets = [0, 384], sizes = [2, 128], strides = [1, 1]} : vector<2x512xf32> to vector<2x128xf32>
    %782 = arith.negf %781 : vector<2x128xf32>
    %783 = math.exp %782 : vector<2x128xf32>
    %cst_147 = arith.constant 1.000000e+00 : f32
    %784 = vector.broadcast %cst_147 : f32 to vector<2x128xf32>
    %785 = arith.addf %784, %783 : vector<2x128xf32>
    %786 = arith.divf %784, %785 : vector<2x128xf32>
    %787 = arith.mulf %778, %733 : vector<2x128xf32>
    %788 = arith.mulf %772, %780 : vector<2x128xf32>
    %789 = arith.addf %787, %788 : vector<2x128xf32>
    %790 = math.tanh %789 : vector<2x128xf32>
    %791 = arith.mulf %786, %790 : vector<2x128xf32>
    %792 = vector.extract_strided_slice %38 {offsets = [10, 0], sizes = [2, 512], strides = [1, 1]} : vector<16x512xf32> to vector<2x512xf32>
    %cst_148 = arith.constant dense<0.000000e+00> : vector<2x512xf32>
    %793 = tpu.matmul %763, %51, %cst_148 {dimension_numbers = #tpu.dot_dimension_numbers<[1], [0], [0], [1], [0, 0, 1, 1], [], []>} : vector<2x128xf32>, vector<128x512xf32>, vector<2x512xf32> -> vector<2x512xf32>
    %794 = arith.addf %792, %793 : vector<2x512xf32>
    %795 = vector.extract_strided_slice %794 {offsets = [0, 0], sizes = [2, 128], strides = [1, 1]} : vector<2x512xf32> to vector<2x128xf32>
    %796 = arith.negf %795 : vector<2x128xf32>
    %797 = math.exp %796 : vector<2x128xf32>
    %cst_149 = arith.constant 1.000000e+00 : f32
    %798 = vector.broadcast %cst_149 : f32 to vector<2x128xf32>
    %799 = arith.addf %798, %797 : vector<2x128xf32>
    %800 = arith.divf %798, %799 : vector<2x128xf32>
    %801 = vector.extract_strided_slice %794 {offsets = [0, 128], sizes = [2, 128], strides = [1, 1]} : vector<2x512xf32> to vector<2x128xf32>
    %802 = arith.negf %801 : vector<2x128xf32>
    %803 = math.exp %802 : vector<2x128xf32>
    %cst_150 = arith.constant 1.000000e+00 : f32
    %804 = vector.broadcast %cst_150 : f32 to vector<2x128xf32>
    %805 = arith.addf %804, %803 : vector<2x128xf32>
    %806 = arith.divf %804, %805 : vector<2x128xf32>
    %807 = vector.extract_strided_slice %794 {offsets = [0, 256], sizes = [2, 128], strides = [1, 1]} : vector<2x512xf32> to vector<2x128xf32>
    %808 = math.tanh %807 : vector<2x128xf32>
    %809 = vector.extract_strided_slice %794 {offsets = [0, 384], sizes = [2, 128], strides = [1, 1]} : vector<2x512xf32> to vector<2x128xf32>
    %810 = arith.negf %809 : vector<2x128xf32>
    %811 = math.exp %810 : vector<2x128xf32>
    %cst_151 = arith.constant 1.000000e+00 : f32
    %812 = vector.broadcast %cst_151 : f32 to vector<2x128xf32>
    %813 = arith.addf %812, %811 : vector<2x128xf32>
    %814 = arith.divf %812, %813 : vector<2x128xf32>
    %815 = arith.mulf %806, %761 : vector<2x128xf32>
    %816 = arith.mulf %800, %808 : vector<2x128xf32>
    %817 = arith.addf %815, %816 : vector<2x128xf32>
    %818 = math.tanh %817 : vector<2x128xf32>
    %819 = arith.mulf %814, %818 : vector<2x128xf32>
    %820 = vector.extract_strided_slice %45 {offsets = [4, 0], sizes = [2, 512], strides = [1, 1]} : vector<16x512xf32> to vector<2x512xf32>
    %cst_152 = arith.constant dense<0.000000e+00> : vector<2x512xf32>
    %821 = tpu.matmul %791, %53, %cst_152 {dimension_numbers = #tpu.dot_dimension_numbers<[1], [0], [0], [1], [0, 0, 1, 1], [], []>} : vector<2x128xf32>, vector<128x512xf32>, vector<2x512xf32> -> vector<2x512xf32>
    %822 = arith.addf %820, %821 : vector<2x512xf32>
    %823 = vector.extract_strided_slice %822 {offsets = [0, 0], sizes = [2, 128], strides = [1, 1]} : vector<2x512xf32> to vector<2x128xf32>
    %824 = arith.negf %823 : vector<2x128xf32>
    %825 = math.exp %824 : vector<2x128xf32>
    %cst_153 = arith.constant 1.000000e+00 : f32
    %826 = vector.broadcast %cst_153 : f32 to vector<2x128xf32>
    %827 = arith.addf %826, %825 : vector<2x128xf32>
    %828 = arith.divf %826, %827 : vector<2x128xf32>
    %829 = vector.extract_strided_slice %822 {offsets = [0, 128], sizes = [2, 128], strides = [1, 1]} : vector<2x512xf32> to vector<2x128xf32>
    %830 = arith.negf %829 : vector<2x128xf32>
    %831 = math.exp %830 : vector<2x128xf32>
    %cst_154 = arith.constant 1.000000e+00 : f32
    %832 = vector.broadcast %cst_154 : f32 to vector<2x128xf32>
    %833 = arith.addf %832, %831 : vector<2x128xf32>
    %834 = arith.divf %832, %833 : vector<2x128xf32>
    %835 = vector.extract_strided_slice %822 {offsets = [0, 256], sizes = [2, 128], strides = [1, 1]} : vector<2x512xf32> to vector<2x128xf32>
    %836 = math.tanh %835 : vector<2x128xf32>
    %837 = vector.extract_strided_slice %822 {offsets = [0, 384], sizes = [2, 128], strides = [1, 1]} : vector<2x512xf32> to vector<2x128xf32>
    %838 = arith.negf %837 : vector<2x128xf32>
    %839 = math.exp %838 : vector<2x128xf32>
    %cst_155 = arith.constant 1.000000e+00 : f32
    %840 = vector.broadcast %cst_155 : f32 to vector<2x128xf32>
    %841 = arith.addf %840, %839 : vector<2x128xf32>
    %842 = arith.divf %840, %841 : vector<2x128xf32>
    %843 = arith.mulf %834, %789 : vector<2x128xf32>
    %844 = arith.mulf %828, %836 : vector<2x128xf32>
    %845 = arith.addf %843, %844 : vector<2x128xf32>
    %846 = math.tanh %845 : vector<2x128xf32>
    %847 = arith.mulf %842, %846 : vector<2x128xf32>
    %848 = vector.extract_strided_slice %38 {offsets = [12, 0], sizes = [2, 512], strides = [1, 1]} : vector<16x512xf32> to vector<2x512xf32>
    %cst_156 = arith.constant dense<0.000000e+00> : vector<2x512xf32>
    %849 = tpu.matmul %819, %51, %cst_156 {dimension_numbers = #tpu.dot_dimension_numbers<[1], [0], [0], [1], [0, 0, 1, 1], [], []>} : vector<2x128xf32>, vector<128x512xf32>, vector<2x512xf32> -> vector<2x512xf32>
    %850 = arith.addf %848, %849 : vector<2x512xf32>
    %851 = vector.extract_strided_slice %850 {offsets = [0, 0], sizes = [2, 128], strides = [1, 1]} : vector<2x512xf32> to vector<2x128xf32>
    %852 = arith.negf %851 : vector<2x128xf32>
    %853 = math.exp %852 : vector<2x128xf32>
    %cst_157 = arith.constant 1.000000e+00 : f32
    %854 = vector.broadcast %cst_157 : f32 to vector<2x128xf32>
    %855 = arith.addf %854, %853 : vector<2x128xf32>
    %856 = arith.divf %854, %855 : vector<2x128xf32>
    %857 = vector.extract_strided_slice %850 {offsets = [0, 128], sizes = [2, 128], strides = [1, 1]} : vector<2x512xf32> to vector<2x128xf32>
    %858 = arith.negf %857 : vector<2x128xf32>
    %859 = math.exp %858 : vector<2x128xf32>
    %cst_158 = arith.constant 1.000000e+00 : f32
    %860 = vector.broadcast %cst_158 : f32 to vector<2x128xf32>
    %861 = arith.addf %860, %859 : vector<2x128xf32>
    %862 = arith.divf %860, %861 : vector<2x128xf32>
    %863 = vector.extract_strided_slice %850 {offsets = [0, 256], sizes = [2, 128], strides = [1, 1]} : vector<2x512xf32> to vector<2x128xf32>
    %864 = math.tanh %863 : vector<2x128xf32>
    %865 = vector.extract_strided_slice %850 {offsets = [0, 384], sizes = [2, 128], strides = [1, 1]} : vector<2x512xf32> to vector<2x128xf32>
    %866 = arith.negf %865 : vector<2x128xf32>
    %867 = math.exp %866 : vector<2x128xf32>
    %cst_159 = arith.constant 1.000000e+00 : f32
    %868 = vector.broadcast %cst_159 : f32 to vector<2x128xf32>
    %869 = arith.addf %868, %867 : vector<2x128xf32>
    %870 = arith.divf %868, %869 : vector<2x128xf32>
    %871 = arith.mulf %862, %817 : vector<2x128xf32>
    %872 = arith.mulf %856, %864 : vector<2x128xf32>
    %873 = arith.addf %871, %872 : vector<2x128xf32>
    %874 = math.tanh %873 : vector<2x128xf32>
    %875 = arith.mulf %870, %874 : vector<2x128xf32>
    %876 = vector.extract_strided_slice %45 {offsets = [2, 0], sizes = [2, 512], strides = [1, 1]} : vector<16x512xf32> to vector<2x512xf32>
    %cst_160 = arith.constant dense<0.000000e+00> : vector<2x512xf32>
    %877 = tpu.matmul %847, %53, %cst_160 {dimension_numbers = #tpu.dot_dimension_numbers<[1], [0], [0], [1], [0, 0, 1, 1], [], []>} : vector<2x128xf32>, vector<128x512xf32>, vector<2x512xf32> -> vector<2x512xf32>
    %878 = arith.addf %876, %877 : vector<2x512xf32>
    %879 = vector.extract_strided_slice %878 {offsets = [0, 0], sizes = [2, 128], strides = [1, 1]} : vector<2x512xf32> to vector<2x128xf32>
    %880 = arith.negf %879 : vector<2x128xf32>
    %881 = math.exp %880 : vector<2x128xf32>
    %cst_161 = arith.constant 1.000000e+00 : f32
    %882 = vector.broadcast %cst_161 : f32 to vector<2x128xf32>
    %883 = arith.addf %882, %881 : vector<2x128xf32>
    %884 = arith.divf %882, %883 : vector<2x128xf32>
    %885 = vector.extract_strided_slice %878 {offsets = [0, 128], sizes = [2, 128], strides = [1, 1]} : vector<2x512xf32> to vector<2x128xf32>
    %886 = arith.negf %885 : vector<2x128xf32>
    %887 = math.exp %886 : vector<2x128xf32>
    %cst_162 = arith.constant 1.000000e+00 : f32
    %888 = vector.broadcast %cst_162 : f32 to vector<2x128xf32>
    %889 = arith.addf %888, %887 : vector<2x128xf32>
    %890 = arith.divf %888, %889 : vector<2x128xf32>
    %891 = vector.extract_strided_slice %878 {offsets = [0, 256], sizes = [2, 128], strides = [1, 1]} : vector<2x512xf32> to vector<2x128xf32>
    %892 = math.tanh %891 : vector<2x128xf32>
    %893 = vector.extract_strided_slice %878 {offsets = [0, 384], sizes = [2, 128], strides = [1, 1]} : vector<2x512xf32> to vector<2x128xf32>
    %894 = arith.negf %893 : vector<2x128xf32>
    %895 = math.exp %894 : vector<2x128xf32>
    %cst_163 = arith.constant 1.000000e+00 : f32
    %896 = vector.broadcast %cst_163 : f32 to vector<2x128xf32>
    %897 = arith.addf %896, %895 : vector<2x128xf32>
    %898 = arith.divf %896, %897 : vector<2x128xf32>
    %899 = arith.mulf %890, %845 : vector<2x128xf32>
    %900 = arith.mulf %884, %892 : vector<2x128xf32>
    %901 = arith.addf %899, %900 : vector<2x128xf32>
    %902 = math.tanh %901 : vector<2x128xf32>
    %903 = arith.mulf %898, %902 : vector<2x128xf32>
    %904 = vector.extract_strided_slice %38 {offsets = [14, 0], sizes = [2, 512], strides = [1, 1]} : vector<16x512xf32> to vector<2x512xf32>
    %cst_164 = arith.constant dense<0.000000e+00> : vector<2x512xf32>
    %905 = tpu.matmul %875, %51, %cst_164 {dimension_numbers = #tpu.dot_dimension_numbers<[1], [0], [0], [1], [0, 0, 1, 1], [], []>} : vector<2x128xf32>, vector<128x512xf32>, vector<2x512xf32> -> vector<2x512xf32>
    %906 = arith.addf %904, %905 : vector<2x512xf32>
    %907 = vector.extract_strided_slice %906 {offsets = [0, 0], sizes = [2, 128], strides = [1, 1]} : vector<2x512xf32> to vector<2x128xf32>
    %908 = arith.negf %907 : vector<2x128xf32>
    %909 = math.exp %908 : vector<2x128xf32>
    %cst_165 = arith.constant 1.000000e+00 : f32
    %910 = vector.broadcast %cst_165 : f32 to vector<2x128xf32>
    %911 = arith.addf %910, %909 : vector<2x128xf32>
    %912 = arith.divf %910, %911 : vector<2x128xf32>
    %913 = vector.extract_strided_slice %906 {offsets = [0, 128], sizes = [2, 128], strides = [1, 1]} : vector<2x512xf32> to vector<2x128xf32>
    %914 = arith.negf %913 : vector<2x128xf32>
    %915 = math.exp %914 : vector<2x128xf32>
    %cst_166 = arith.constant 1.000000e+00 : f32
    %916 = vector.broadcast %cst_166 : f32 to vector<2x128xf32>
    %917 = arith.addf %916, %915 : vector<2x128xf32>
    %918 = arith.divf %916, %917 : vector<2x128xf32>
    %919 = vector.extract_strided_slice %906 {offsets = [0, 256], sizes = [2, 128], strides = [1, 1]} : vector<2x512xf32> to vector<2x128xf32>
    %920 = math.tanh %919 : vector<2x128xf32>
    %921 = vector.extract_strided_slice %906 {offsets = [0, 384], sizes = [2, 128], strides = [1, 1]} : vector<2x512xf32> to vector<2x128xf32>
    %922 = arith.negf %921 : vector<2x128xf32>
    %923 = math.exp %922 : vector<2x128xf32>
    %cst_167 = arith.constant 1.000000e+00 : f32
    %924 = vector.broadcast %cst_167 : f32 to vector<2x128xf32>
    %925 = arith.addf %924, %923 : vector<2x128xf32>
    %926 = arith.divf %924, %925 : vector<2x128xf32>
    %927 = arith.mulf %918, %873 : vector<2x128xf32>
    %928 = arith.mulf %912, %920 : vector<2x128xf32>
    %929 = arith.addf %927, %928 : vector<2x128xf32>
    %930 = math.tanh %929 : vector<2x128xf32>
    %931 = arith.mulf %926, %930 : vector<2x128xf32>
    %932 = vector.extract_strided_slice %45 {offsets = [0, 0], sizes = [2, 512], strides = [1, 1]} : vector<16x512xf32> to vector<2x512xf32>
    %cst_168 = arith.constant dense<0.000000e+00> : vector<2x512xf32>
    %933 = tpu.matmul %903, %53, %cst_168 {dimension_numbers = #tpu.dot_dimension_numbers<[1], [0], [0], [1], [0, 0, 1, 1], [], []>} : vector<2x128xf32>, vector<128x512xf32>, vector<2x512xf32> -> vector<2x512xf32>
    %934 = arith.addf %932, %933 : vector<2x512xf32>
    %935 = vector.extract_strided_slice %934 {offsets = [0, 0], sizes = [2, 128], strides = [1, 1]} : vector<2x512xf32> to vector<2x128xf32>
    %936 = arith.negf %935 : vector<2x128xf32>
    %937 = math.exp %936 : vector<2x128xf32>
    %cst_169 = arith.constant 1.000000e+00 : f32
    %938 = vector.broadcast %cst_169 : f32 to vector<2x128xf32>
    %939 = arith.addf %938, %937 : vector<2x128xf32>
    %940 = arith.divf %938, %939 : vector<2x128xf32>
    %941 = vector.extract_strided_slice %934 {offsets = [0, 128], sizes = [2, 128], strides = [1, 1]} : vector<2x512xf32> to vector<2x128xf32>
    %942 = arith.negf %941 : vector<2x128xf32>
    %943 = math.exp %942 : vector<2x128xf32>
    %cst_170 = arith.constant 1.000000e+00 : f32
    %944 = vector.broadcast %cst_170 : f32 to vector<2x128xf32>
    %945 = arith.addf %944, %943 : vector<2x128xf32>
    %946 = arith.divf %944, %945 : vector<2x128xf32>
    %947 = vector.extract_strided_slice %934 {offsets = [0, 256], sizes = [2, 128], strides = [1, 1]} : vector<2x512xf32> to vector<2x128xf32>
    %948 = math.tanh %947 : vector<2x128xf32>
    %949 = vector.extract_strided_slice %934 {offsets = [0, 384], sizes = [2, 128], strides = [1, 1]} : vector<2x512xf32> to vector<2x128xf32>
    %950 = arith.negf %949 : vector<2x128xf32>
    %951 = math.exp %950 : vector<2x128xf32>
    %cst_171 = arith.constant 1.000000e+00 : f32
    %952 = vector.broadcast %cst_171 : f32 to vector<2x128xf32>
    %953 = arith.addf %952, %951 : vector<2x128xf32>
    %954 = arith.divf %952, %953 : vector<2x128xf32>
    %955 = arith.mulf %946, %901 : vector<2x128xf32>
    %956 = arith.mulf %940, %948 : vector<2x128xf32>
    %957 = arith.addf %955, %956 : vector<2x128xf32>
    %958 = math.tanh %957 : vector<2x128xf32>
    %959 = arith.mulf %954, %958 : vector<2x128xf32>
    %960 = tpu.concatenate %539, %959, %595, %903, %651, %847, %707, %791, %763, %735, %819, %679, %875, %623, %931, %567 in 1 : vector<2x128xf32>, vector<2x128xf32>, vector<2x128xf32>, vector<2x128xf32>, vector<2x128xf32>, vector<2x128xf32>, vector<2x128xf32>, vector<2x128xf32>, vector<2x128xf32>, vector<2x128xf32>, vector<2x128xf32>, vector<2x128xf32>, vector<2x128xf32>, vector<2x128xf32>, vector<2x128xf32>, vector<2x128xf32> -> vector<2x2048xf32>
    %961 = arith.truncf %960 : vector<2x2048xf32> to vector<2x2048xbf16>
    %c0_172 = arith.constant 0 : index
    %c0_173 = arith.constant 0 : index
    %962 = vector.load %arg6[%c0_172, %c0_173] : memref<2048x256xbf16, #tpu.memory_space<vmem>>, vector<2048x256xbf16>
    %cst_174 = arith.constant dense<0.000000e+00> : vector<2x256xf32>
    %963 = tpu.matmul %961, %962, %cst_174 {dimension_numbers = #tpu.dot_dimension_numbers<[1], [0], [0], [1], [0, 0, 1, 1], [], []>} : vector<2x2048xbf16>, vector<2048x256xbf16>, vector<2x256xf32> -> vector<2x256xf32>
    %c0_175 = arith.constant 0 : index
    %c0_176 = arith.constant 0 : index
    %964 = vector.load %arg7[%c0_175, %c0_176] : memref<1x256xf32, #tpu.memory_space<vmem>>, vector<1x256xf32>
    %965 = vector.broadcast %964 : vector<1x256xf32> to vector<2x256xf32>
    %966 = arith.addf %963, %965 : vector<2x256xf32>
    %cst_177 = arith.constant 0.000000e+00 : f32
    %967 = vector.broadcast %cst_177 : f32 to vector<2x256xf32>
    %968 = arith.maximumf %966, %967 : vector<2x256xf32>
    %969 = arith.truncf %968 : vector<2x256xf32> to vector<2x256xbf16>
    %c0_178 = arith.constant 0 : index
    %c0_179 = arith.constant 0 : index
    %970 = vector.load %arg8[%c0_178, %c0_179] : memref<256x128xbf16, #tpu.memory_space<vmem>>, vector<256x128xbf16>
    %cst_180 = arith.constant dense<0.000000e+00> : vector<2x128xf32>
    %971 = tpu.matmul %969, %970, %cst_180 {dimension_numbers = #tpu.dot_dimension_numbers<[1], [0], [0], [1], [0, 0, 1, 1], [], []>} : vector<2x256xbf16>, vector<256x128xbf16>, vector<2x128xf32> -> vector<2x128xf32>
    %c0_181 = arith.constant 0 : index
    %c0_182 = arith.constant 0 : index
    %972 = vector.load %arg9[%c0_181, %c0_182] : memref<1x128xf32, #tpu.memory_space<vmem>>, vector<1x128xf32>
    %973 = vector.broadcast %972 : vector<1x128xf32> to vector<2x128xf32>
    %974 = arith.addf %971, %973 : vector<2x128xf32>
    %cst_183 = arith.constant 0.000000e+00 : f32
    %975 = vector.broadcast %cst_183 : f32 to vector<2x128xf32>
    %976 = arith.maximumf %974, %975 : vector<2x128xf32>
    %977 = arith.truncf %976 : vector<2x128xf32> to vector<2x128xbf16>
    %c0_184 = arith.constant 0 : index
    %c0_185 = arith.constant 0 : index
    %978 = vector.load %arg10[%c0_184, %c0_185] : memref<128x64xbf16, #tpu.memory_space<vmem>>, vector<128x64xbf16>
    %cst_186 = arith.constant dense<0.000000e+00> : vector<2x64xf32>
    %979 = tpu.matmul %977, %978, %cst_186 {dimension_numbers = #tpu.dot_dimension_numbers<[1], [0], [0], [1], [0, 0, 1, 1], [], []>} : vector<2x128xbf16>, vector<128x64xbf16>, vector<2x64xf32> -> vector<2x64xf32>
    %c0_187 = arith.constant 0 : index
    %c0_188 = arith.constant 0 : index
    %980 = vector.load %arg11[%c0_187, %c0_188] : memref<1x64xf32, #tpu.memory_space<vmem>>, vector<1x64xf32>
    %981 = vector.broadcast %980 : vector<1x64xf32> to vector<2x64xf32>
    %982 = arith.addf %979, %981 : vector<2x64xf32>
    %cst_189 = arith.constant 0.000000e+00 : f32
    %983 = vector.broadcast %cst_189 : f32 to vector<2x64xf32>
    %984 = arith.maximumf %982, %983 : vector<2x64xf32>
    %985 = arith.truncf %984 : vector<2x64xf32> to vector<2x64xbf16>
    %c0_190 = arith.constant 0 : index
    %c0_191 = arith.constant 0 : index
    %986 = vector.load %arg12[%c0_190, %c0_191] : memref<64x32xbf16, #tpu.memory_space<vmem>>, vector<64x32xbf16>
    %cst_192 = arith.constant dense<0.000000e+00> : vector<2x32xf32>
    %987 = tpu.matmul %985, %986, %cst_192 {dimension_numbers = #tpu.dot_dimension_numbers<[1], [0], [0], [1], [0, 0, 1, 1], [], []>} : vector<2x64xbf16>, vector<64x32xbf16>, vector<2x32xf32> -> vector<2x32xf32>
    %c0_193 = arith.constant 0 : index
    %c0_194 = arith.constant 0 : index
    %988 = vector.load %arg13[%c0_193, %c0_194] : memref<1x32xf32, #tpu.memory_space<vmem>>, vector<1x32xf32>
    %989 = vector.broadcast %988 : vector<1x32xf32> to vector<2x32xf32>
    %990 = arith.addf %987, %989 : vector<2x32xf32>
    %cst_195 = arith.constant 0.000000e+00 : f32
    %991 = vector.broadcast %cst_195 : f32 to vector<2x32xf32>
    %992 = arith.maximumf %990, %991 : vector<2x32xf32>
    %993 = arith.truncf %992 : vector<2x32xf32> to vector<2x32xbf16>
    %c0_196 = arith.constant 0 : index
    %c0_197 = arith.constant 0 : index
    %994 = vector.load %arg14[%c0_196, %c0_197] : memref<32x16xbf16, #tpu.memory_space<vmem>>, vector<32x16xbf16>
    %cst_198 = arith.constant dense<0.000000e+00> : vector<2x16xf32>
    %995 = tpu.matmul %993, %994, %cst_198 {dimension_numbers = #tpu.dot_dimension_numbers<[1], [0], [0], [1], [0, 0, 1, 1], [], []>} : vector<2x32xbf16>, vector<32x16xbf16>, vector<2x16xf32> -> vector<2x16xf32>
    %c0_199 = arith.constant 0 : index
    %c0_200 = arith.constant 0 : index
    %996 = vector.load %arg15[%c0_199, %c0_200] : memref<1x16xf32, #tpu.memory_space<vmem>>, vector<1x16xf32>
    %997 = vector.broadcast %996 : vector<1x16xf32> to vector<2x16xf32>
    %998 = arith.addf %995, %997 : vector<2x16xf32>
    %cst_201 = arith.constant 0.000000e+00 : f32
    %999 = vector.broadcast %cst_201 : f32 to vector<2x16xf32>
    %1000 = arith.maximumf %998, %999 : vector<2x16xf32>
    %1001 = arith.truncf %1000 : vector<2x16xf32> to vector<2x16xbf16>
    %c0_202 = arith.constant 0 : index
    %c0_203 = arith.constant 0 : index
    %1002 = vector.load %arg16[%c0_202, %c0_203] : memref<16x5xbf16, #tpu.memory_space<vmem>>, vector<16x5xbf16>
    %cst_204 = arith.constant dense<0.000000e+00> : vector<2x5xf32>
    %1003 = tpu.matmul %1001, %1002, %cst_204 {dimension_numbers = #tpu.dot_dimension_numbers<[1], [0], [0], [1], [0, 0, 1, 1], [], []>} : vector<2x16xbf16>, vector<16x5xbf16>, vector<2x5xf32> -> vector<2x5xf32>
    %c0_205 = arith.constant 0 : index
    %c0_206 = arith.constant 0 : index
    %1004 = vector.load %arg17[%c0_205, %c0_206] : memref<1x5xf32, #tpu.memory_space<vmem>>, vector<1x5xf32>
    %1005 = vector.broadcast %1004 : vector<1x5xf32> to vector<2x5xf32>
    %1006 = arith.addf %1003, %1005 : vector<2x5xf32>
    %cst_207 = arith.constant dense<0xFF800000> : vector<2xf32>
    %1007 = vector.multi_reduction <maximumf>, %1006, %cst_207 [1] : vector<2x5xf32> to vector<2xf32>
    %1008 = vector.shape_cast %1007 : vector<2xf32> to vector<2x1xf32>
    %1009 = vector.broadcast %1008 : vector<2x1xf32> to vector<2x5xf32>
    %1010 = arith.subf %1006, %1009 : vector<2x5xf32>
    %1011 = math.exp %1010 : vector<2x5xf32>
    %cst_208 = arith.constant dense<0.000000e+00> : vector<2xf32>
    %1012 = vector.multi_reduction <add>, %1011, %cst_208 [1] : vector<2x5xf32> to vector<2xf32>
    %1013 = vector.shape_cast %1012 : vector<2xf32> to vector<2x1xf32>
    %1014 = vector.broadcast %1013 : vector<2x1xf32> to vector<2x5xf32>
    %1015 = arith.divf %1011, %1014 : vector<2x5xf32>
    %c0_209 = arith.constant 0 : index
    %c0_210 = arith.constant 0 : index
    %1016 = vector.load %arg18[%c0_209, %c0_210] : memref<2x5xf32, #tpu.memory_space<vmem>>, vector<2x5xf32>
    tpu.vector_store %arg18[%c0_209, %c0_210], %1015 {strides = array<i32>} : memref<2x5xf32, #tpu.memory_space<vmem>>, vector<2x5xf32>,
    return
  }
}

</mosaic_0001>

<bundles_post_ra>
// kernel: transducer_gru_forward.1
= control target key start
LH: loop header
LB: loop body
LE: loop exit
PB: predicated region body
PF: predicated region fallthrough
CT: control target
= control target key end

     0   :  { %s15534_s0 = inlined_call_operand.vmem [shape: f32[2,8,16], index: 0, kind: input, shape index: {}]   ;;  %s15535_s1 = inlined_call_operand.vmem [shape: f32[2,2,128], index: 1, kind: input, shape index: {}]   ;;  %s15536_s2 = inlined_call_operand.vmem [shape: f32[2,2,128], index: 2, kind: input, shape index: {}]   ;;  %s15537_s3 = inlined_call_operand.hbm [shape: f32[4,16,512], index: 3, kind: input, shape index: {}]   ;;  %s15538_s4 = inlined_call_operand.hbm [shape: f32[4,128,512], index: 4, kind: input, shape index: {}]   ;;  %s15539_s5 = inlined_call_operand.vmem [shape: f32[4,1,512], index: 5, kind: input, shape index: {}]   ;;  %s15540_s6 = inlined_call_operand.hbm [shape: bf16[2048,256], index: 6, kind: input, shape index: {}]   ;;  %s15541_s7 = inlined_call_operand.vmem [shape: f32[1,256], index: 7, kind: input, shape index: {}]   ;;  %s15542_s8 = inlined_call_operand.vmem [shape: bf16[256,128], index: 8, kind: input, shape index: {}]   ;;  %s15543_s9 = inlined_call_operand.hbm [shape: f32[1,128], index: 9, kind: input, shape index: {}]   ;;  %s15544_s10 = inlined_call_operand.vmem [shape: bf16[128,64], index: 10, kind: input, shape index: {}]   ;;  %s15545_s11 = inlined_call_operand.hbm [shape: f32[1,64], index: 11, kind: input, shape index: {}]   ;;  %s15546_s12 = inlined_call_operand.vmem [shape: bf16[64,32], index: 12, kind: input, shape index: {}]   ;;  %s15547_s13 = inlined_call_operand.hbm [shape: f32[1,32], index: 13, kind: input, shape index: {}]   ;;  %s15548_s14 = inlined_call_operand.vmem [shape: bf16[32,16], index: 14, kind: input, shape index: {}]   ;;  %s15549_s15 = inlined_call_operand.vmem [shape: f32[1,16], index: 15, kind: input, shape index: {}]   ;;  %s15550_s16 = inlined_call_operand.vmem [shape: bf16[16,5], index: 16, kind: input, shape index: {}]   ;;  %s15551_s17 = inlined_call_operand.vmem [shape: f32[1,5], index: 17, kind: input, shape index: {}]   ;;  %s15552_s18 = inlined_call_operand.hbm [shape: f32[2,5], index: 18, kind: output, shape index: {}]  }
   0x1   :  { %15767 = sst [smem:[#allocation88_spill]] %s15534_s0 }
   0x2   :  { %15768 = sst [smem:[#allocation89_spill]] %s15535_s1 }
   0x3   :  { %15769 = sst [smem:[#allocation90_spill]] %s15536_s2 }
   0x4   :  { %23 = vsyncpa [#allocation3], 0 }
   0x5   :  { %24 = vsyncpa [#allocation6], 0 }
   0x6   :  { %25 = vsyncpa [#allocation9], 0 }
   0x7   :  { %26 = vsyncpa [#allocation12], 0 }
   0x8   :  { %27 = vsyncpa [#allocation4], 0  ;;  %s13245_s27 = smov [#allocation5]   ;;  %s13246_s29 = smov [#allocation8]  }
   0x9   :  { %s51_s28 = sshll.u32 %s13245_s27, 4  ;;  %s82_s30 = sshll.u32 %s13246_s29, 4  ;;  %s52_s28 = int_to_ptr.vmem [resolvable:$true] %s51_s28  ;;  %s13353_s30 = int_to_ptr.vmem [resolvable:$true] %s82_s30 }
   0xa   :  { %s13081_s1 = scalar_lea.hbm %s15538_s4, 32768 }
   0xb   :  { %p13082_p0 = scmp.ne.s32.totalorder %s15538_s4, %s13081_s1  ;;  %p13085_p1 = scmp.lt.u32.totalorder %s13081_s1, %s15538_s4 }
   0xd   :  { %p13087_p2 = pnand %p13085_p1, %p13082_p0 }
   0xf   :  { %13090 = shalt.err (!%p13087_p2)
}
  0x10   :  { %s13091_s23 = scalar_lea.vmem %s52_s28, 32768  ;;  %p13096_p4 = scmp.lt.s32.totalorder %s52_s28, %s52_s28 }
  0x11   :  { %p13092_p3 = scmp.ne.s32.totalorder %s52_s28, %s13091_s23  ;;  %p13097_p5 = scmp.lt.s32.totalorder %s13091_s23, %s13091_s23 }
  0x13   :  { %p13098_p6 = por %p13097_p5, %p13096_p4 }
  0x15   :  { %p13099_p7 = pnand %p13098_p6, %p13092_p3 }
  0x17   :  { %13102 = shalt.err (!%p13099_p7)
}
  0x18   :  { %s13247_s24 = smov 512   ;;  %s13248_s25 = smov 32  }
  0x19   :  { %57 = dma.hbm_to_vmem [thread:$0]  %s15538_s4, 32768, %s52_s28, [#allocation6], %s13247_s24, %s13247_s24, %s13248_s25  }
  0x1a   :  { %s13103_s19 = scalar_lea.hbm %s15543_s9, 16 }
  0x1b   :  { %p13104_p8 = scmp.ne.s32.totalorder %s15543_s9, %s13103_s19  ;;  %p13107_p9 = scmp.lt.u32.totalorder %s13103_s19, %s15543_s9 }
  0x1d   :  { %p13109_p10 = pnand %p13107_p9, %p13104_p8 }
  0x1f   :  { %13112 = shalt.err (!%p13109_p10)
}
  0x20   :  { %s13113_s2 = scalar_lea.vmem %s13353_s30, 16  ;;  %s13117_s4 = scalar_lea.vmem %s13353_s30, 32 }
  0x21   :  { %p13114_p11 = scmp.ne.s32.totalorder %s13353_s30, %s13113_s2  ;;  %p13118_p12 = scmp.lt.s32.totalorder %s13353_s30, %s13353_s30 }
  0x22   :  { %p13119_p13 = scmp.lt.s32.totalorder %s13117_s4, %s13113_s2 }
  0x24   :  { %p13120_p0 = por %p13119_p13, %p13118_p12 }
  0x26   :  { %p13121_p1 = pnand %p13120_p0, %p13114_p11 }
  0x28   :  { %13124 = shalt.err (!%p13121_p1)
}
  0x29   :  { %85 = dma.hbm_to_vmem [thread:$0]  %s15543_s9, 16, %s13353_s30, [#allocation9]  }
  0x2a   :  { %s13249_s26 = smov [#allocation2]   ;;  %s13250_s29 = smov [#allocation7]  }
  0x2b   :  { %s39_s27 = sshll.u32 %s13249_s26, 4  ;;  %s65_s0 = sshll.u32 %s13250_s29, 4  ;;  %s40_s27 = int_to_ptr.vmem [resolvable:$true] %s39_s27  ;;  %s13388_s0 = int_to_ptr.vmem [resolvable:$true] %s65_s0 }
  0x2c   :  { %s13125_s20 = scalar_lea.hbm %s15537_s3, 4096 }
  0x2d   :  { %p13126_p2 = scmp.ne.s32.totalorder %s15537_s3, %s13125_s20  ;;  %p13129_p3 = scmp.lt.u32.totalorder %s13125_s20, %s15537_s3 }
  0x2f   :  { %p13131_p4 = pnand %p13129_p3, %p13126_p2 }
  0x31   :  { %13134 = shalt.err (!%p13131_p4)
}
  0x32   :  { %s13135_s9 = scalar_lea.vmem %s40_s27, 4096  ;;  %p13140_p6 = scmp.lt.s32.totalorder %s40_s27, %s40_s27 }
  0x33   :  { %p13136_p5 = scmp.ne.s32.totalorder %s40_s27, %s13135_s9  ;;  %p13141_p7 = scmp.lt.s32.totalorder %s13135_s9, %s13135_s9 }
  0x35   :  { %p13142_p8 = por %p13141_p7, %p13140_p6 }
  0x37   :  { %p13143_p9 = pnand %p13142_p8, %p13136_p5 }
  0x39   :  { %13146 = shalt.err (!%p13143_p9)
}
  0x3a   :  { %45 = dma.hbm_to_vmem [thread:$0]  %s15537_s3, 4096, %s40_s27, [#allocation3], %s13247_s24, %s13247_s24, %s13248_s25  }
  0x3b   :  { %s13147_s29 = scalar_lea.hbm %s15540_s6, 32768 }
  0x3c   :  { %p13148_p10 = scmp.ne.s32.totalorder %s15540_s6, %s13147_s29  ;;  %p13151_p11 = scmp.lt.u32.totalorder %s13147_s29, %s15540_s6 }
  0x3e   :  { %p13153_p12 = pnand %p13151_p11, %p13148_p10 }
  0x40   :  { %13156 = shalt.err (!%p13153_p12)
}
  0x41   :  { %s13157_s22 = scalar_lea.vmem %s13388_s0, 32768  ;;  %p13162_p0 = scmp.lt.s32.totalorder %s13388_s0, %s13388_s0 }
  0x42   :  { %p13158_p13 = scmp.ne.s32.totalorder %s13388_s0, %s13157_s22  ;;  %p13163_p1 = scmp.lt.s32.totalorder %s13157_s22, %s13157_s22 }
  0x44   :  { %p13164_p2 = por %p13163_p1, %p13162_p0 }
  0x46   :  { %p13165_p3 = pnand %p13164_p2, %p13158_p13 }
  0x48   :  { %13168 = shalt.err (!%p13165_p3)
}
  0x49   :  { %s13251_s3 = smov 128   ;;  %s13252_s24 = smov 8  }
  0x4a   :  { %71 = dma.hbm_to_vmem [thread:$0]  %s15540_s6, 32768, %s13388_s0, [#allocation6], %s13251_s3, %s13251_s3, %s13252_s24  }
  0x4b   :  { %s13253_s2 = smov [#allocation10]   ;;  %s13254_s9 = smov [#allocation11]  }
  0x4c   :  { %s94_s4 = sshll.u32 %s13253_s2, 4  ;;  %s106_s30 = sshll.u32 %s13254_s9, 4  ;;  %s95_s4 = int_to_ptr.vmem [resolvable:$true] %s94_s4  ;;  %s107_s30 = int_to_ptr.vmem [resolvable:$true] %s106_s30 }
  0x4d   :  { %s13169_s26 = scalar_lea.hbm %s15545_s11, 16 }
  0x4e   :  { %p13170_p4 = scmp.ne.s32.totalorder %s15545_s11, %s13169_s26  ;;  %p13173_p5 = scmp.lt.u32.totalorder %s13169_s26, %s15545_s11 }
  0x50   :  { %p13175_p6 = pnand %p13173_p5, %p13170_p4 }
  0x52   :  { %13178 = shalt.err (!%p13175_p6)
}
  0x53   :  { %s13179_s6 = scalar_lea.vmem %s95_s4, 16  ;;  %s13183_s0 = scalar_lea.vmem %s95_s4, 32 }
  0x54   :  { %p13180_p7 = scmp.ne.s32.totalorder %s95_s4, %s13179_s6  ;;  %p13184_p8 = scmp.lt.s32.totalorder %s95_s4, %s95_s4 }
  0x55   :  { %p13185_p9 = scmp.lt.s32.totalorder %s13183_s0, %s13179_s6 }
  0x57   :  { %p13186_p10 = por %p13185_p9, %p13184_p8 }
  0x59   :  { %p13187_p11 = pnand %p13186_p10, %p13180_p7 }
  0x5b   :  { %13190 = shalt.err (!%p13187_p11)
}
  0x5c   :  { %97 = dma.hbm_to_vmem [thread:$0]  %s15545_s11, 16, %s95_s4, [#allocation9]  }
  0x5d   :  { %s13191_s25 = scalar_lea.hbm %s15547_s13, 16 }
  0x5e   :  { %p13192_p12 = scmp.ne.s32.totalorder %s15547_s13, %s13191_s25  ;;  %p13195_p13 = scmp.lt.u32.totalorder %s13191_s25, %s15547_s13 }
  0x60   :  { %p13197_p0 = pnand %p13195_p13, %p13192_p12 }
  0x62   :  { %13200 = shalt.err (!%p13197_p0)
}
  0x63   :  { %s13201_s23 = scalar_lea.vmem %s107_s30, 16  ;;  %s13205_s26 = scalar_lea.vmem %s107_s30, 32 }
  0x64   :  { %p13202_p1 = scmp.ne.s32.totalorder %s107_s30, %s13201_s23  ;;  %p13206_p2 = scmp.lt.s32.totalorder %s107_s30, %s107_s30 }
  0x65   :  { %p13207_p3 = scmp.lt.s32.totalorder %s13205_s26, %s13201_s23 }
  0x67   :  { %p13208_p4 = por %p13207_p3, %p13206_p2 }
  0x69   :  { %p13209_p5 = pnand %p13208_p4, %p13202_p1 }
  0x6b   :  { %13212 = shalt.err (!%p13209_p5)
}
  0x6c   :  { %109 = dma.hbm_to_vmem [thread:$0]  %s15547_s13, 16, %s107_s30, [#allocation12]  }
  0x6d   :  { %13235 = dma.done.wait [#allocation3], 4096  }
  0x6e   :  { %13236 = vsyncadd [#allocation3], 4294963200 }
  0x6f   :  { %13237 = dma.done.wait [#allocation6], 65536  }
  0x70   :  { %13238 = vsyncadd [#allocation6], 4294901760 }
  0x71   :  { %13239 = dma.done.wait [#allocation9], 32  }
  0x72   :  { %13240 = vsyncadd [#allocation9], 4294967264 }
  0x73   :  { %13241 = dma.done.wait [#allocation12], 16  }
  0x74   :  { %13242 = vsyncadd [#allocation12], 4294967280  ;;  %v15556_v0 = vmov 0.0   ;;  %v185_v1 = vld [vmem:[#allocation2 + $0x8] sm:$0xff]  ;;  %vm142_vm0 = vcmask 1041409   ;;  %vm147_vm1 = vcmask 1043459  }
  0x75   :  { %285 = vmatprep.mubr.f32.mxu1 %v15556_v0  ;;  %657 = vmatprep.mubr.f32.mxu0 %v15556_v0  ;;  %v189_v2 = vld [vmem:[#allocation2 + $0x28] sm:$0xff]  ;;  %vm152_vm2 = vcmask 1045509   ;;  %v184_v6 = vld [vmem:[#allocation2] sm:$0xff]  ;;  %vm157_vm3 = vcmask 1047559   ;;  %vm175_vm4 = vcmask 1041408   ;;  %vm177_vm5 = vcmask 1043456  }
  0x76   :  { %v563_v3 = vld [vmem:[#allocation2 + $0x88] sm:$0xff]  ;;  %v10029_v4 = vpack.c.bf16 %v189_v2, %v185_v1  ;;  %v188_v7 = vld [vmem:[#allocation2 + $0x20] sm:$0xff]  ;;  %s15770_s29 = sld [smem:[#allocation88_spill]]  ;;  %vm179_vm6 = vcmask 1045504   ;;  %vm214_vm7 = vcmask 130048   ;;  %v187_v18 = vld [vmem:[#allocation2 + $0x18] sm:$0xff] }
  0x77   :  { %v567_v5 = vld [vmem:[#allocation2 + $0xa8] sm:$0xff]  ;;  %v10031_v9 = vpack.c.bf16 %v188_v7, %v184_v6  ;;  %v562_v10 = vld [vmem:[#allocation2 + $0x80] sm:$0xff]  ;;  %v191_v19 = vld [vmem:[#allocation2 + $0x38] sm:$0xff]  ;;  %s15786_s0 = sld [smem:[#allocation89_spill]]  ;;  %s15842_s11 = sld [smem:[#allocation90_spill]]  ;;  %vm13256_vm8 = vmmov 0  }
  0x78   :  { %v10045_v8 = vpack.c.bf16 %v567_v5, %v563_v3  ;;  %v566_v11 = vld [vmem:[#allocation2 + $0xa0] sm:$0xff]  ;;  %10030 = vmatprep.subr.bf16.mxu1 %v10029_v4  ;;  %v186_v24 = vld [vmem:[#allocation2 + $0x10] sm:$0xff]  ;;  %v10033_v26 = vpack.c.bf16 %v191_v19, %v187_v18  ;;  %v749_v28 = vld [vmem:[#allocation2 + $0xc8] sm:$0xff]  ;;  %vm9328_vm9 = vcmask 523264   ;;  %vm9397_vm10 = vcmask 261120  }
  0x79   :  { %v10047_v13 = vpack.c.bf16 %v566_v11, %v562_v10  ;;  %10032 = vmatpush1.bf16.msra.mxu1 %v10031_v9  ;;  %v190_v25 = vld [vmem:[#allocation2 + $0x30] sm:$0xff]  ;;  %v753_v29 = vld [vmem:[#allocation2 + $0xe8] sm:$0xff]  ;;  %v748_v32 = vld [vmem:[#allocation2 + $0xc0] sm:$0xff]  ;;  %vm9501_vm11 = vcmask 33792  }
  0x7a   :  { %10046 = vmatprep.subr.bf16.mxu0 %v10045_v8  ;;  %v10035_v27 = vpack.c.bf16 %v190_v25, %v186_v24  ;;  %v752_v37 = vld [vmem:[#allocation2 + $0xe0] sm:$0xff]  ;;  %v934_v38 = vld [vmem:[#allocation5 + $0x8] sm:$0xff]  ;;  %10034 = vmatprep.subr.bf16.mxu1 %v10033_v26  ;;  %v10053_v41 = vpack.c.bf16 %v753_v29, %v749_v28  ;;  %v379_v4 = vld [vmem:[#allocation2 + $0x58] sm:$0xff] }
  0x7b   :  { %10048 = vmatpush1.bf16.msra.mxu0 %v10047_v13  ;;  %v938_v39 = vld [vmem:[#allocation5 + $0x28] sm:$0xff]  ;;  %v10055_v52 = vpack.c.bf16 %v752_v37, %v748_v32  ;;  %v933_v59 = vld [vmem:[#allocation5] sm:$0xff]  ;;  %v383_v5 = vld [vmem:[#allocation2 + $0x78] sm:$0xff] }
  0x7c   :  { %v137_v12 = vld [vmem:[%s15770_s29] sm:$0xff]  ;;  %v138_v14 = vld [vmem:[%s15770_s29 + $0x8] sm:$0xff]  ;;  %10054 = vmatprep.subr.bf16.mxu0 %v10053_v41  ;;  %v13464_v53 = vpack.c.bf16 %v938_v39, %v934_v38  ;;  %v10041_v13 = vpack.c.bf16 %v383_v5, %v379_v4  ;;  %v378_v18 = vld [vmem:[#allocation2 + $0x50] sm:$0xff] }
  0x7d   :  { %v145_v15 = vrot.slane %v137_v12, 7  ;;  %v150_v16 = vrot.slane %v137_v12, 6  ;;  %v155_v17 = vrot.slane %v137_v12, 5  ;;  %v141_v20 = vrot.slane %v138_v14, 7  ;;  %v377_v44 = vld [vmem:[#allocation2 + $0x48] sm:$0xff]  ;;  %v937_v61 = vld [vmem:[#allocation5 + $0x20] sm:$0xff] }
  0x7e   :  { %v146_v21 = vrot.slane %v138_v14, 6  ;;  %v151_v22 = vrot.slane %v138_v14, 5  ;;  %v156_v23 = vrot.slane %v138_v14, 4  ;;  %v160_v30 = vrot.slane %v137_v12, 4  ;;  %v381_v45 = vld [vmem:[#allocation2 + $0x68] sm:$0xff]  ;;  %15771 = vst [vmem:[#allocation19_spill] sm:$0xff] %v13464_v53 }
  0x7f   :  { %v161_v31 = vrot.slane %v138_v14, 3  ;;  %v143_v33 = vsel %vm142_vm0, %v141_v20, %v137_v12  ;;  %v164_v43 = vrot.slane %v137_v12, 3  ;;  %v165_v47 = vrot.slane %v138_v14, 2  ;;  %v376_v62 = vld [vmem:[#allocation2 + $0x40] sm:$0xff]  ;;  %v942_v2 = vld [vmem:[#allocation5 + $0x48] sm:$0xff]  ;;  %v382_v19 = vld [vmem:[#allocation2 + $0x70] sm:$0xff] }
  0x80   :  { %v148_v34 = vsel %vm147_vm1, %v146_v21, %v145_v15  ;;  %v153_v35 = vsel %vm152_vm2, %v151_v22, %v150_v16  ;;  %v158_v36 = vsel %vm157_vm3, %v156_v23, %v155_v17  ;;  %v168_v48 = vrot.slane %v137_v12, 2  ;;  %v380_v63 = vld [vmem:[#allocation2 + $0x60] sm:$0xff]  ;;  %v946_v3 = vld [vmem:[#allocation5 + $0x68] sm:$0xff]  ;;  %v565_v22 = vld [vmem:[#allocation2 + $0x98] sm:$0xff] }
  0x81   :  { %v176_v40 = vsel %vm175_vm4, %v143_v33, %v148_v34  ;;  %v162_v42 = vsel %vm142_vm0, %v161_v31, %v160_v30  ;;  %v169_v49 = vrot.slane %v138_v14, 1  ;;  %v172_v51 = vrot.slane %v137_v12, 1  ;;  %v941_v9 = vld [vmem:[#allocation5 + $0x40] sm:$0xff]  ;;  %v950_v11 = vld [vmem:[#allocation5 + $0x88] sm:$0xff]  ;;  %v569_v23 = vld [vmem:[#allocation2 + $0xb8] sm:$0xff] }
  0x82   :  { %v178_v46 = vsel %vm177_vm5, %v176_v40, %v153_v35  ;;  %v166_v54 = vsel %vm147_vm1, %v165_v47, %v164_v43  ;;  %v10037_v56 = vpack.c.bf16 %v381_v45, %v377_v44  ;;  %v13487_v6 = vpack.c.bf16 %v937_v61, %v933_v59  ;;  %v945_v10 = vld [vmem:[#allocation5 + $0x60] sm:$0xff]  ;;  %v954_v12 = vld [vmem:[#allocation5 + $0xa8] sm:$0xff]  ;;  %v568_v37 = vld [vmem:[#allocation2 + $0xb0] sm:$0xff] }
  0x83   :  { %v13462_v50 = vsel %vm179_vm6, %v178_v46, %v158_v36  ;;  %v170_v55 = vsel %vm152_vm2, %v169_v49, %v168_v48  ;;  %v173_v57 = vsel %vm157_vm3, %v138_v14, %v172_v51  ;;  %v181_v58 = vsel %vm175_vm4, %v162_v42, %v166_v54  ;;  %v949_v15 = vld [vmem:[#allocation5 + $0x80] sm:$0xff]  ;;  %v958_v20 = vld [vmem:[#allocation5 + $0xc8] sm:$0xff]  ;;  %v564_v36 = vld [vmem:[#allocation2 + $0x90] sm:$0xff] }
  0x84   :  { %9532 = vmatmul.mubr.msk.f32.vlgmr.msra.gmra.mrb[0].mxu1 %vm214_vm7, %v13462_v50  ;;  %9542 = vmatmul.mubr.msk.f32.vlgmr.msra.gmra.mrb[0].mxu0 %vm214_vm7, %v13462_v50  ;;  %v182_v60 = vsel %vm177_vm5, %v181_v58, %v170_v55  ;;  %15772 = vst [vmem:[#allocation20_spill] sm:$0xff] %v13487_v6  ;;  %v10039_v7 = vpack.c.bf16 %v380_v63, %v376_v62  ;;  %v953_v17 = vld [vmem:[#allocation5 + $0xa0] sm:$0xff]  ;;  %v962_v21 = vld [vmem:[#allocation5 + $0xe8] sm:$0xff]  ;;  %v751_v40 = vld [vmem:[#allocation2 + $0xd8] sm:$0xff] }
  0x85   :  { %10036 = vmatpush1.bf16.msra.mxu1 %v10035_v27  ;;  %291 = vmatprep.mubr.f32.mxu1 %v15556_v0  ;;  %v13478_v1 = vsel %vm179_vm6, %v182_v60, %v173_v57  ;;  %v13489_v8 = vpack.c.bf16 %v946_v3, %v942_v2  ;;  %v13496_v14 = vpack.c.bf16 %v945_v10, %v941_v9  ;;  %v957_v27 = vld [vmem:[#allocation5 + $0xc0] sm:$0xff]  ;;  %v966_v29 = vld [vmem:[#allocation5 + $0x108] sm:$0xff]  ;;  %v755_v41 = vld [vmem:[#allocation2 + $0xf8] sm:$0xff] }
  0x86   :  { %663 = vmatprep.mubr.f32.mxu0 %v15556_v0  ;;  %10056 = vmatpush1.bf16.msra.mxu0 %v10055_v52  ;;  %v13500_v16 = vpack.c.bf16 %v954_v12, %v950_v11  ;;  %v13509_v24 = vpack.c.bf16 %v953_v17, %v949_v15  ;;  %v10043_v25 = vpack.c.bf16 %v382_v19, %v378_v18  ;;  %v961_v28 = vld [vmem:[#allocation5 + $0xe0] sm:$0xff]  ;;  %v970_v30 = vld [vmem:[#allocation5 + $0x128] sm:$0xff]  ;;  %v754_v57 = vld [vmem:[#allocation2 + $0xf0] sm:$0xff] }
  0x87   :  { %10062 = vmatprep.subr.bf16.mxu0 %v13464_v53  ;;  %10038 = vmatprep.subr.bf16.mxu1 %v10037_v56  ;;  %15773 = vst [vmem:[#allocation21_spill] sm:$0xff] %v13489_v8  ;;  %15774 = vst [vmem:[#allocation22_spill] sm:$0xff] %v13496_v14  ;;  %v13512_v26 = vpack.c.bf16 %v962_v21, %v958_v20  ;;  %v10049_v31 = vpack.c.bf16 %v569_v23, %v565_v22  ;;  %v965_v33 = vld [vmem:[#allocation5 + $0x100] sm:$0xff]  ;;  %v974_v38 = vld [vmem:[#allocation5 + $0x148] sm:$0xff] }
  0x88   :  { %9533 = vmatmul.mubr.msk.f32.gmra.mrb[2].mxu1 %vm214_vm7, %v13478_v1  ;;  %9543 = vmatmul.mubr.msk.f32.gmra.mrb[2].mxu0 %vm214_vm7, %v13478_v1  ;;  %15775 = vst [vmem:[#allocation23_spill] sm:$0xff] %v13500_v16  ;;  %15776 = vst [vmem:[#allocation24_spill] sm:$0xff] %v13509_v24  ;;  %v13518_v32 = vpack.c.bf16 %v961_v28, %v957_v27  ;;  %v13522_v34 = vpack.c.bf16 %v970_v30, %v966_v29  ;;  %v969_v35 = vld [vmem:[#allocation5 + $0x120] sm:$0xff]  ;;  %v978_v39 = vld [vmem:[#allocation5 + $0x168] sm:$0xff] }
  0x89   :  { %362 = vmatprep.mubr.f32.mxu1 %v15556_v0  ;;  %843 = vmatprep.mubr.f32.mxu0 %v15556_v0  ;;  %15777 = vst [vmem:[#allocation25_spill] sm:$0xff] %v13512_v26  ;;  %v13528_v42 = vpack.c.bf16 %v969_v35, %v965_v33  ;;  %v10051_v43 = vpack.c.bf16 %v568_v37, %v564_v36  ;;  %v973_v45 = vld [vmem:[#allocation5 + $0x140] sm:$0xff]  ;;  %v982_v47 = vld [vmem:[#allocation5 + $0x188] sm:$0xff]  ;;  %v750_v56 = vld [vmem:[#allocation2 + $0xd0] sm:$0xff] }
  0x8a   :  { %15778 = vst [vmem:[#allocation26_spill] sm:$0xff] %v13518_v32  ;;  %15779 = vst [vmem:[#allocation27_spill] sm:$0xff] %v13522_v34  ;;  %v13531_v44 = vpack.c.bf16 %v978_v39, %v974_v38  ;;  %v977_v46 = vld [vmem:[#allocation5 + $0x160] sm:$0xff]  ;;  %v986_v48 = vld [vmem:[#allocation5 + $0x1a8] sm:$0xff]  ;;  %v10057_v49 = vpack.c.bf16 %v755_v41, %v751_v40  ;;  %v10059_v63 = vpack.c.bf16 %v754_v57, %v750_v56 }
  0x8b   :  { %15780 = vst [vmem:[#allocation28_spill] sm:$0xff] %v13528_v42  ;;  %v13536_v51 = vpack.c.bf16 %v977_v46, %v973_v45  ;;  %v981_v52 = vld [vmem:[#allocation5 + $0x180] sm:$0xff]  ;;  %v13540_v54 = vpack.c.bf16 %v986_v48, %v982_v47  ;;  %v990_v58 = vld [vmem:[#allocation5 + $0x1c8] sm:$0xff]  ;;  %v936_v60 = vld [vmem:[#allocation5 + $0x18] sm:$0xff] }
  0x8c   :  { %9534 = vmatmul.mubr.msk.f32.vlgmr.msra.gmra.mrb[4].mxu1 %vm214_vm7, %v13462_v50  ;;  %9547 = vmatmul.mubr.msk.f32.vlgmr.msra.gmra.mrb[4].mxu0 %vm214_vm7, %v13462_v50  ;;  %15781 = vst [vmem:[#allocation29_spill] sm:$0xff] %v13531_v44  ;;  %v985_v55 = vld [vmem:[#allocation5 + $0x1a0] sm:$0xff]  ;;  %v994_v59 = vld [vmem:[#allocation5 + $0x1e8] sm:$0xff]  ;;  %v940_v61 = vld [vmem:[#allocation5 + $0x38] sm:$0xff] }
  0x8d   :  { %10064 = vmatpush1.bf16.msra.mxu0 %v13487_v6  ;;  %10040 = vmatpush1.bf16.msra.mxu1 %v10039_v7  ;;  %15782 = vst [vmem:[#allocation30_spill] sm:$0xff] %v13536_v51  ;;  %15783 = vst [vmem:[#allocation31_spill] sm:$0xff] %v13540_v54  ;;  %v13546_v62 = vpack.c.bf16 %v985_v55, %v981_v52  ;;  %v13549_v2 = vpack.c.bf16 %v994_v59, %v990_v58  ;;  %v989_v3 = vld [vmem:[#allocation5 + $0x1c0] sm:$0xff]  ;;  %v999_v9 = vld [vmem:[#allocation5 + $0x208] sm:$0xff] }
  0x8e   :  { %368 = vmatprep.mubr.f32.mxu1 %v15556_v0  ;;  %10066 = vmatprep.subr.bf16.mxu0 %v13489_v8  ;;  %v993_v4 = vld [vmem:[#allocation5 + $0x1e0] sm:$0xff]  ;;  %v13556_v7 = vpack.c.bf16 %v940_v61, %v936_v60  ;;  %v1003_v10 = vld [vmem:[#allocation5 + $0x228] sm:$0xff]  ;;  %v935_v15 = vld [vmem:[#allocation5 + $0x10] sm:$0xff] }
  0x8f   :  { %10042 = vmatprep.subr.bf16.mxu1 %v10041_v13  ;;  %849 = vmatprep.mubr.f32.mxu0 %v15556_v0  ;;  %15784 = vst [vmem:[#allocation32_spill] sm:$0xff] %v13546_v62  ;;  %15785 = vst [vmem:[#allocation33_spill] sm:$0xff] %v13549_v2  ;;  %v13554_v5 = vld [vmem:[%s15786_s0 + $0x2] sm:$0x3]  ;;  %v13561_v11 = vpack.c.bf16 %v993_v4, %v989_v3  ;;  %v13566_v12 = vld [vmem:[%s15786_s0] sm:$0x3]  ;;  %v13571_v18 = vpack.c.bf16 %v1003_v10, %v999_v9 }
  0x90   :  { %9535 = vmatmul.mubr.msk.f32.gmra.mrb[6].mxu1 %vm214_vm7, %v13478_v1  ;;  %9548 = vmatmul.mubr.msk.f32.gmra.mrb[6].mxu0 %vm214_vm7, %v13478_v1  ;;  %15787 = vst [vmem:[#allocation34_spill] sm:$0xff] %v13556_v7  ;;  %v1198_v13 = vrot.slane %v13554_v5, 7  ;;  %v939_v17 = vld [vmem:[#allocation5 + $0x30] sm:$0xff]  ;;  %v998_v19 = vld [vmem:[#allocation5 + $0x200] sm:$0xff]  ;;  %v944_v21 = vld [vmem:[#allocation5 + $0x58] sm:$0xff] }
  0x91   :  { %10068 = vmatpush1.bf16.msra.mxu0 %v13496_v14  ;;  %471 = vmatprep.mubr.f32.mxu1 %v15556_v0  ;;  %15788 = vst [vmem:[#allocation35_spill] sm:$0xff] %v13561_v11  ;;  %15789 = vst [vmem:[#allocation36_spill] sm:$0xff] %v13571_v18  ;;  %v1002_v20 = vld [vmem:[#allocation5 + $0x220] sm:$0xff]  ;;  %v948_v22 = vld [vmem:[#allocation5 + $0x78] sm:$0xff]  ;;  %v13582_v28 = vpack.c.bf16 %v939_v17, %v935_v15 }
  0x92   :  { %10070 = vmatprep.subr.bf16.mxu0 %v13500_v16  ;;  %1265 = vmatprep.mubr.f32.mxu0 %v15556_v0  ;;  %v1007_v23 = vld [vmem:[#allocation5 + $0x248] sm:$0xff]  ;;  %v13580_v27 = vsel %vm142_vm0, %v1198_v13, %v13566_v12  ;;  %v13584_v29 = vpack.c.bf16 %v1002_v20, %v998_v19  ;;  %v943_v30 = vld [vmem:[#allocation5 + $0x50] sm:$0xff]  ;;  %v13587_v33 = vpack.c.bf16 %v948_v22, %v944_v21  ;;  %v1006_v36 = vld [vmem:[#allocation5 + $0x240] sm:$0xff] }
  0x93   :  { %15790 = vst [vmem:[#allocation37_spill] sm:$0xff] %v13582_v28  ;;  %v1010_v37 = vld [vmem:[#allocation5 + $0x260] sm:$0xff]  ;;  %v952_v38 = vld [vmem:[#allocation5 + $0x98] sm:$0xff]  ;;  %v1015_v40 = vld [vmem:[#allocation5 + $0x288] sm:$0xff] }
  0x94   :  { %9537 = vmatmul.mubr.msk.f32.vlgmr.msra.gmra.mrb[8].mxu1 %vm214_vm7, %v13462_v50  ;;  %15791 = vst [vmem:[#allocation38_spill] sm:$0xff] %v13587_v33  ;;  %v956_v39 = vld [vmem:[#allocation5 + $0xb8] sm:$0xff]  ;;  %v1019_v41 = vld [vmem:[#allocation5 + $0x2a8] sm:$0xff]  ;;  %v13598_v45 = vpack.c.bf16 %v1010_v37, %v1006_v36  ;;  %v951_v46 = vld [vmem:[#allocation5 + $0x90] sm:$0xff] }
  0x95   :  { %10072 = vmatpush1.bf16.msra.mxu0 %v13509_v24  ;;  %10044 = vmatpush1.bf16.msra.mxu1 %v10043_v25  ;;  %v1011_v25 = vld [vmem:[#allocation5 + $0x268] sm:$0xff]  ;;  %v955_v47 = vld [vmem:[#allocation5 + $0xb0] sm:$0xff]  ;;  %v13602_v48 = vpack.c.bf16 %v956_v39, %v952_v38  ;;  %v1014_v52 = vld [vmem:[#allocation5 + $0x280] sm:$0xff] }
  0x96   :  { %477 = vmatprep.mubr.f32.mxu1 %v15556_v0  ;;  %10074 = vmatprep.subr.bf16.mxu0 %v13512_v26  ;;  %v13589_v35 = vpack.c.bf16 %v1011_v25, %v1007_v23  ;;  %v960_v55 = vld [vmem:[#allocation5 + $0xd8] sm:$0xff]  ;;  %v1023_v57 = vld [vmem:[#allocation5 + $0x2c8] sm:$0xff]  ;;  %v959_v59 = vld [vmem:[#allocation5 + $0xd0] sm:$0xff]  ;;  %v13612_v3 = vpack.c.bf16 %v955_v47, %v951_v46 }
  0x97   :  { %10050 = vmatprep.subr.bf16.mxu1 %v10049_v31  ;;  %v947_v31 = vld [vmem:[#allocation5 + $0x70] sm:$0xff]  ;;  %15793 = vst [vmem:[#allocation40_spill] sm:$0xff] %v13602_v48  ;;  %v964_v56 = vld [vmem:[#allocation5 + $0xf8] sm:$0xff]  ;;  %v1027_v58 = vld [vmem:[#allocation5 + $0x2e8] sm:$0xff] }
  0x98   :  { %9538 = vmatmul.mubr.msk.f32.gmra.mrb[10].mxu1 %vm214_vm7, %v13478_v1  ;;  %v963_v60 = vld [vmem:[#allocation5 + $0xf0] sm:$0xff]  ;;  %v1022_v61 = vld [vmem:[#allocation5 + $0x2c0] sm:$0xff]  ;;  %15794 = vst [vmem:[#allocation41_spill] sm:$0xff] %v13612_v3  ;;  %v968_v9 = vld [vmem:[#allocation5 + $0x118] sm:$0xff]  ;;  %v13618_v17 = vpack.c.bf16 %v964_v56, %v960_v55  ;;  %v13620_v19 = vpack.c.bf16 %v1027_v58, %v1023_v57 }
  0x99   :  { %10076 = vmatpush1.bf16.msra.mxu0 %v13518_v32  ;;  %548 = vmatprep.mubr.f32.mxu1 %v15556_v0  ;;  %v972_v10 = vld [vmem:[#allocation5 + $0x138] sm:$0xff]  ;;  %v1031_v13 = vld [vmem:[#allocation5 + $0x308] sm:$0xff]  ;;  %v971_v20 = vld [vmem:[#allocation5 + $0x130] sm:$0xff]  ;;  %v13625_v23 = vpack.c.bf16 %v963_v60, %v959_v59 }
  0x9a   :  { %10078 = vmatprep.subr.bf16.mxu0 %v13522_v34  ;;  %v1035_v15 = vld [vmem:[#allocation5 + $0x328] sm:$0xff]  ;;  %15795 = vst [vmem:[#allocation42_spill] sm:$0xff] %v13618_v17  ;;  %v1030_v21 = vld [vmem:[#allocation5 + $0x300] sm:$0xff]  ;;  %v13631_v38 = vpack.c.bf16 %v972_v10, %v968_v9  ;;  %v984_v55 = vld [vmem:[#allocation5 + $0x198] sm:$0xff] }
  0x9b   :  { %v1034_v22 = vld [vmem:[#allocation5 + $0x320] sm:$0xff]  ;;  %15796 = vst [vmem:[#allocation43_spill] sm:$0xff] %v13625_v23  ;;  %v1039_v36 = vld [vmem:[#allocation5 + $0x348] sm:$0xff]  ;;  %v13633_v39 = vpack.c.bf16 %v1035_v15, %v1031_v13  ;;  %v988_v56 = vld [vmem:[#allocation5 + $0x1b8] sm:$0xff] }
  0x9c   :  { %9539 = vmatmul.mubr.msk.f32.vlgmr.msra.gmra.mrb[12].mxu1 %vm214_vm7, %v13462_v50  ;;  %v1043_v37 = vld [vmem:[#allocation5 + $0x368] sm:$0xff]  ;;  %15797 = vst [vmem:[#allocation44_spill] sm:$0xff] %v13631_v38  ;;  %v1038_v46 = vld [vmem:[#allocation5 + $0x340] sm:$0xff] }
  0x9d   :  { %10080 = vmatpush1.bf16.msra.mxu0 %v13528_v42  ;;  %10052 = vmatpush1.bf16.msra.mxu1 %v10051_v43  ;;  %v13596_v43 = vpack.c.bf16 %v947_v31, %v943_v30  ;;  %v976_v30 = vld [vmem:[#allocation5 + $0x158] sm:$0xff]  ;;  %v1042_v47 = vld [vmem:[#allocation5 + $0x360] sm:$0xff]  ;;  %v1047_v57 = vld [vmem:[#allocation5 + $0x388] sm:$0xff]  ;;  %v13645_v60 = vpack.c.bf16 %v1043_v37, %v1039_v36 }
  0x9e   :  { %554 = vmatprep.mubr.f32.mxu1 %v15556_v0  ;;  %10082 = vmatprep.subr.bf16.mxu0 %v13531_v44  ;;  %v980_v31 = vld [vmem:[#allocation5 + $0x178] sm:$0xff]  ;;  %v1051_v58 = vld [vmem:[#allocation5 + $0x3a8] sm:$0xff]  ;;  %v1046_v9 = vld [vmem:[#allocation5 + $0x380] sm:$0xff]  ;;  %v13651_v15 = vpack.c.bf16 %v1042_v47, %v1038_v46 }
  0x9f   :  { %10058 = vmatprep.subr.bf16.mxu1 %v10057_v49  ;;  %15792 = vst [vmem:[#allocation39_spill] sm:$0xff] %v13596_v43  ;;  %v13604_v49 = vpack.c.bf16 %v1019_v41, %v1015_v40  ;;  %v975_v40 = vld [vmem:[#allocation5 + $0x150] sm:$0xff]  ;;  %v13643_v59 = vpack.c.bf16 %v980_v31, %v976_v30  ;;  %v1050_v10 = vld [vmem:[#allocation5 + $0x3a0] sm:$0xff]  ;;  %v13655_v30 = vpack.c.bf16 %v988_v56, %v984_v55  ;;  %v1001_v46 = vld [vmem:[#allocation5 + $0x218] sm:$0xff] }
  0xa0   :  { %9540 = vmatmul.mubr.msk.f32.gmra.mrb[14].mxu1 %vm214_vm7, %v13478_v1  ;;  %v979_v41 = vld [vmem:[#allocation5 + $0x170] sm:$0xff]  ;;  %15802 = vst [vmem:[#allocation49_spill] sm:$0xff] %v13651_v15  ;;  %v13657_v31 = vpack.c.bf16 %v1051_v58, %v1047_v57  ;;  %v1005_v47 = vld [vmem:[#allocation5 + $0x238] sm:$0xff] }
  0xa1   :  { %10084 = vmatpush1.bf16.msra.mxu0 %v13536_v51  ;;  %734 = vmatprep.mubr.f32.mxu1 %v15556_v0  ;;  %15800 = vst [vmem:[#allocation47_spill] sm:$0xff] %v13643_v59  ;;  %v13649_v13 = vpack.c.bf16 %v979_v41, %v975_v40  ;;  %15803 = vst [vmem:[#allocation50_spill] sm:$0xff] %v13655_v30  ;;  %v991_v36 = vld [vmem:[#allocation5 + $0x1d0] sm:$0xff]  ;;  %v13663_v41 = vpack.c.bf16 %v1050_v10, %v1046_v9  ;;  %v1376_v9 = vrot.slane %v13566_v12, 1  ;;  %v1009_v10 = vld [vmem:[#allocation5 + $0x258] sm:$0xff] }
  0xa2   :  { %10086 = vmatprep.subr.bf16.mxu0 %v13540_v54  ;;  %v995_v37 = vld [vmem:[#allocation5 + $0x1f0] sm:$0xff]  ;;  %v1017_v12 = vld [vmem:[#allocation5 + $0x298] sm:$0xff] }
  0xa3   :  { %15801 = vst [vmem:[#allocation48_spill] sm:$0xff] %v13649_v13  ;;  %v1000_v57 = vld [vmem:[#allocation5 + $0x210] sm:$0xff] }
  0xa4   :  { %9544 = vmatmul.mubr.msk.f32.vlgmr.msra.gmra.mrb[16].mxu1 %vm214_vm7, %v13462_v50  ;;  %v1004_v58 = vld [vmem:[#allocation5 + $0x230] sm:$0xff] }
  0xa5   :  { %10088 = vmatpush1.bf16.msra.mxu0 %v13546_v62  ;;  %10060 = vmatpush1.bf16.msra.mxu1 %v10059_v63  ;;  %v1026_v63 = vld [vmem:[#allocation5 + $0x2e0] sm:$0xff] }
  0xa6   :  { %740 = vmatprep.mubr.f32.mxu1 %v15556_v0  ;;  %10090 = vmatprep.subr.bf16.mxu0 %v13549_v2  ;;  %v13627_v25 = vpack.c.bf16 %v1026_v63, %v1022_v61  ;;  %v983_v61 = vld [vmem:[#allocation5 + $0x190] sm:$0xff] }
  0xa7   :  { %10094 = vmatprep.subr.bf16.mxu1 %v13556_v7  ;;  %v987_v63 = vld [vmem:[#allocation5 + $0x1b0] sm:$0xff] }
  0xa8   :  { %9545 = vmatmul.mubr.msk.f32.gmra.mrb[18].mxu1 %vm214_vm7, %v13478_v1  ;;  %v13661_v40 = vpack.c.bf16 %v987_v63, %v983_v61  ;;  %v13673_v61 = vpack.c.bf16 %v995_v37, %v991_v36  ;;  %v1016_v37 = vld [vmem:[#allocation5 + $0x290] sm:$0xff] }
  0xa9   :  { %10092 = vmatpush1.bf16.msra.mxu0 %v13561_v11  ;;  %920 = vmatprep.mubr.f32.mxu1 %v15556_v0 }
  0xaa   :  { %10126 = vmatprep.subr.bf16.mxu0 %v13571_v18  ;;  %15804 = vst [vmem:[#allocation51_spill] sm:$0xff] %v13661_v40  ;;  %15806 = vst [vmem:[#allocation53_spill] sm:$0xff] %v13673_v61 }
  0xac   :  { %1266 = vmatmul.mubr.f32.vlgmr.msra.gmra.mrb[8].mxu0 %v13580_v27  ;;  %9549 = vmatmul.mubr.msk.f32.vlgmr.msra.gmra.mrb[20].mxu1 %vm214_vm7, %v13462_v50  ;;  %v1018_v50 = vld [vmem:[#allocation5 + $0x2a0] sm:$0xff] }
  0xad   :  { %10096 = vmatpush1.bf16.msra.mxu1 %v13582_v28  ;;  %10128 = vmatpush1.bf16.msra.mxu0 %v13584_v29  ;;  %v13614_v4 = vpack.c.bf16 %v1018_v50, %v1014_v52  ;;  %v13639_v50 = vpack.c.bf16 %v1034_v22, %v1030_v21  ;;  %v1055_v21 = vld [vmem:[#allocation5 + $0x3c8] sm:$0xff] }
  0xae   :  { %10098 = vmatprep.subr.bf16.mxu1 %v13587_v33  ;;  %10130 = vmatprep.subr.bf16.mxu0 %v13589_v35  ;;  %v1059_v22 = vld [vmem:[#allocation5 + $0x3e8] sm:$0xff] }
  0xaf   :  { %926 = vmatprep.mubr.f32.mxu1 %v15556_v0  ;;  %1443 = vmatprep.mubr.f32.mxu0 %v15556_v0  ;;  %15799 = vst [vmem:[#allocation46_spill] sm:$0xff] %v13639_v50  ;;  %v13669_v56 = vpack.c.bf16 %v1059_v22, %v1055_v21  ;;  %v1012_v21 = vld [vmem:[#allocation5 + $0x270] sm:$0xff]  ;;  %v1021_v22 = vld [vmem:[#allocation5 + $0x2b8] sm:$0xff] }
  0xb0   :  { %9550 = vmatmul.mubr.msk.f32.gmra.mrb[22].mxu1 %vm214_vm7, %v13478_v1  ;;  %v967_v1 = vld [vmem:[#allocation5 + $0x110] sm:$0xff] }
  0xb1   :  { %10100 = vmatpush1.bf16.msra.mxu1 %v13596_v43  ;;  %10132 = vmatpush1.bf16.msra.mxu0 %v13598_v45  ;;  %v13637_v52 = vpack.c.bf16 %v971_v20, %v967_v1  ;;  %v992_v1 = vld [vmem:[#allocation5 + $0x1d8] sm:$0xff] }
  0xb2   :  { %10102 = vmatprep.subr.bf16.mxu1 %v13602_v48  ;;  %10134 = vmatprep.subr.bf16.mxu0 %v13604_v49  ;;  %v996_v20 = vld [vmem:[#allocation5 + $0x1f8] sm:$0xff] }
  0xb3   :  { %1336 = vmatprep.mubr.f32.mxu1 %v15556_v0  ;;  %15798 = vst [vmem:[#allocation45_spill] sm:$0xff] %v13637_v52  ;;  %v1054_v0 = vld [vmem:[#allocation5 + $0x3c0] sm:$0xff]  ;;  %v13667_v55 = vpack.c.bf16 %v996_v20, %v992_v1  ;;  %v13680_v1 = vpack.c.bf16 %v1005_v47, %v1001_v46  ;;  %v1008_v20 = vld [vmem:[#allocation5 + $0x250] sm:$0xff]  ;;  %v1025_v47 = vld [vmem:[#allocation5 + $0x2d8] sm:$0xff] }
  0xb4   :  { %v1020_v46 = vld [vmem:[#allocation5 + $0x2b0] sm:$0xff] }
  0xb5   :  { %10104 = vmatpush1.bf16.msra.mxu1 %v13612_v3  ;;  %10136 = vmatpush1.bf16.msra.mxu0 %v13614_v4  ;;  %15805 = vst [vmem:[#allocation52_spill] sm:$0xff] %v13667_v55  ;;  %15808 = vst [vmem:[#allocation55_spill] sm:$0xff] %v13680_v1 }
  0xb6   :  { %10106 = vmatprep.subr.bf16.mxu1 %v13618_v17  ;;  %10138 = vmatprep.subr.bf16.mxu0 %v13620_v19 }
  0xb9   :  { %10108 = vmatpush1.bf16.msra.mxu1 %v13625_v23  ;;  %10140 = vmatpush1.bf16.msra.mxu0 %v13627_v25 }
  0xba   :  { %10110 = vmatprep.subr.bf16.mxu1 %v13631_v38  ;;  %10142 = vmatprep.subr.bf16.mxu0 %v13633_v39 }
  0xbd   :  { %10112 = vmatpush1.bf16.msra.mxu1 %v13637_v52  ;;  %10144 = vmatpush1.bf16.msra.mxu0 %v13639_v50  ;;  %v1058_v50 = vld [vmem:[#allocation5 + $0x3e0] sm:$0xff] }
  0xbe   :  { %10114 = vmatprep.subr.bf16.mxu1 %v13643_v59  ;;  %10146 = vmatprep.subr.bf16.mxu0 %v13645_v60  ;;  %v13675_v63 = vpack.c.bf16 %v1058_v50, %v1054_v0  ;;  %v13686_v0 = vsel %vm142_vm0, %v13554_v5, %v1376_v9  ;;  %v13688_v50 = vpack.c.bf16 %v1004_v58, %v1000_v57  ;;  %v1029_v57 = vld [vmem:[#allocation5 + $0x2f8] sm:$0xff]  ;;  %v15809_v58 = vmov 0.0   ;;  %v1028_v9 = vld [vmem:[#allocation5 + $0x2f0] sm:$0xff] }
  0xbf   :  { %v13697_v5 = vpack.c.bf16 %v1012_v21, %v1008_v20  ;;  %v1033_v20 = vld [vmem:[#allocation5 + $0x318] sm:$0xff] }
  0xc0   :  { %15807 = vst [vmem:[#allocation54_spill] sm:$0xff] %v13675_v63  ;;  %v1037_v21 = vld [vmem:[#allocation5 + $0x338] sm:$0xff] }
  0xc1   :  { %10116 = vmatpush1.bf16.msra.mxu1 %v13649_v13  ;;  %10148 = vmatpush1.bf16.msra.mxu0 %v13651_v15  ;;  %v1013_v15 = vld [vmem:[#allocation5 + $0x278] sm:$0xff] }
  0xc2   :  { %10118 = vmatprep.subr.bf16.mxu1 %v13655_v30  ;;  %10150 = vmatprep.subr.bf16.mxu0 %v13657_v31  ;;  %v13691_v36 = vpack.c.bf16 %v1013_v15, %v1009_v10  ;;  %v13701_v15 = vpack.c.bf16 %v1021_v22, %v1017_v12  ;;  %v13707_v10 = vpack.c.bf16 %v1020_v46, %v1016_v37  ;;  %v1032_v12 = vld [vmem:[#allocation5 + $0x310] sm:$0xff] }
  0xc3   :  { %v1036_v22 = vld [vmem:[#allocation5 + $0x330] sm:$0xff]  ;;  %v13718_v37 = vpack.c.bf16 %v1037_v21, %v1033_v20 }
  0xc4   :  { %v1040_v46 = vld [vmem:[#allocation5 + $0x350] sm:$0xff] }
  0xc5   :  { %10120 = vmatpush1.bf16.msra.mxu1 %v13661_v40  ;;  %10152 = vmatpush1.bf16.msra.mxu0 %v13663_v41  ;;  %v1052_v20 = vld [vmem:[#allocation5 + $0x3b0] sm:$0xff] }
  0xc6   :  { %10122 = vmatprep.subr.bf16.mxu1 %v13667_v55  ;;  %10154 = vmatprep.subr.bf16.mxu0 %v13669_v56 }
  0xc9   :  { %10124 = vmatpush1.bf16.msra.mxu1 %v13673_v61  ;;  %10156 = vmatpush1.bf16.msra.mxu0 %v13675_v63  ;;  %v1045_v63 = vld [vmem:[#allocation5 + $0x378] sm:$0xff] }
  0xca   :  { %10158 = vmatprep.subr.bf16.mxu1 %v13680_v1  ;;  %10190 = vmatprep.subr.bf16.mxu0 %v13464_v53  ;;  %v13710_v53 = vpack.c.bf16 %v1029_v57, %v1025_v47  ;;  %v1044_v47 = vld [vmem:[#allocation5 + $0x370] sm:$0xff]  ;;  %v13723_v57 = vpack.c.bf16 %v1036_v22, %v1032_v12 }
  0xcb   :  { %v13731_v21 = vpack.c.bf16 %v1044_v47, %v1040_v46 }
  0xcc   :  { %1337 = vmatmul.mubr.f32.vlgmr.msra.gmra.mrb[24].mxu1 %v13580_v27  ;;  %1444 = vmatmul.mubr.f32.vlgmr.msra.gmra.mrb[10].mxu0 %v13686_v0  ;;  %v1024_v27 = vld [vmem:[#allocation5 + $0x2d0] sm:$0xff] }
  0xcd   :  { %10160 = vmatpush1.bf16.msra.mxu1 %v13688_v50  ;;  %1514 = vmatprep.mubr.f32.mxu1 %v15809_v58 }
  0xce   :  { %10162 = vmatprep.subr.bf16.mxu1 %v13691_v36  ;;  %10192 = vmatpush1.bf16.msra.mxu0 %v13487_v6  ;;  %v1041_v6 = vld [vmem:[#allocation5 + $0x358] sm:$0xff] }
  0xcf   :  { %10194 = vmatprep.subr.bf16.mxu0 %v13489_v8  ;;  %1629 = vmatprep.mubr.f32.mxu0 %v15809_v58  ;;  %v13715_v8 = vpack.c.bf16 %v1028_v9, %v1024_v27  ;;  %v13726_v27 = vpack.c.bf16 %v1045_v63, %v1041_v6  ;;  %v1048_v9 = vld [vmem:[#allocation5 + $0x390] sm:$0xff] }
  0xd0   :  { %v1056_v6 = vld [vmem:[#allocation5 + $0x3d0] sm:$0xff]  ;;  %v13739_v22 = vpack.c.bf16 %v1052_v20, %v1048_v9  ;;  %v9541_v20 = vld [vmem:[%s15539_s5 + $0x8] sm:$0xf] }
  0xd1   :  { %10164 = vmatpush1.bf16.msra.mxu1 %v13697_v5  ;;  %v1060_v63 = vld [vmem:[#allocation5 + $0x3f0] sm:$0xff] }
  0xd2   :  { %10166 = vmatprep.subr.bf16.mxu1 %v13701_v15  ;;  %10196 = vmatpush1.bf16.msra.mxu0 %v13496_v14  ;;  %v1053_v14 = vld [vmem:[#allocation5 + $0x3b8] sm:$0xff] }
  0xd3   :  { %10198 = vmatprep.subr.bf16.mxu0 %v13500_v16  ;;  %v1049_v16 = vld [vmem:[#allocation5 + $0x398] sm:$0xff] }
  0xd4   :  { %v13734_v12 = vpack.c.bf16 %v1053_v14, %v1049_v16  ;;  %v13747_v14 = vpack.c.bf16 %v1060_v63, %v1056_v6  ;;  %v194_v16 = vlaneseq }
  0xd5   :  { %10168 = vmatpush1.bf16.msra.mxu1 %v13707_v10 }
  0xd6   :  { %10170 = vmatprep.subr.bf16.mxu1 %v13710_v53  ;;  %10200 = vmatpush1.bf16.msra.mxu0 %v13509_v24  ;;  %v1061_v24 = vld [vmem:[#allocation5 + $0x3f8] sm:$0xff]  ;;  %15810 = vst [vmem:[#allocation56_spill] sm:$0xff] %v13747_v14 }
  0xd7   :  { %10202 = vmatprep.subr.bf16.mxu0 %v13512_v26  ;;  %v1057_v26 = vld [vmem:[#allocation5 + $0x3d8] sm:$0xff] }
  0xd8   :  { %v13742_v46 = vpack.c.bf16 %v1061_v24, %v1057_v26  ;;  %v195_v24 = vshrl.u32 %v194_v16, 7  ;;  %v192_v26 = vld [vmem:[%s15539_s5] sm:$0xf]  ;;  %v9546_v16 = vld [vmem:[%s15539_s5 + $0xc] sm:$0xf] }
  0xd9   :  { %10172 = vmatpush1.bf16.msra.mxu1 %v13715_v8 }
  0xda   :  { %10174 = vmatprep.subr.bf16.mxu1 %v13718_v37  ;;  %10204 = vmatpush1.bf16.msra.mxu0 %v13518_v32  ;;  %v13781_v9 = vsub.s32 1, %v195_v24 }
  0xdb   :  { %10206 = vmatprep.subr.bf16.mxu0 %v13522_v34 }
  0xdc   :  { %15812 = vst [vmem:[#allocation58_spill] sm:$0xff] %v13781_v9 }
  0xdd   :  { %10176 = vmatpush1.bf16.msra.mxu1 %v13723_v57 }
  0xde   :  { %10178 = vmatprep.subr.bf16.mxu1 %v13726_v27  ;;  %10208 = vmatpush1.bf16.msra.mxu0 %v13528_v42 }
  0xdf   :  { %10210 = vmatprep.subr.bf16.mxu0 %v13531_v44  ;;  %v204_v44 = vsub.s32 2, %v195_v24 }
  0xe1   :  { %10180 = vmatpush1.bf16.msra.mxu1 %v13731_v21 }
  0xe2   :  { %10182 = vmatprep.subr.bf16.mxu1 %v13734_v12  ;;  %10212 = vmatpush1.bf16.msra.mxu0 %v13536_v51 }
  0xe3   :  { %10214 = vmatprep.subr.bf16.mxu0 %v13540_v54 }
  0xe5   :  { %10184 = vmatpush1.bf16.msra.mxu1 %v13739_v22 }
  0xe6   :  { %10186 = vmatprep.subr.bf16.mxu1 %v13742_v46  ;;  %10216 = vmatpush1.bf16.msra.mxu0 %v13546_v62 }
  0xe7   :  { %10218 = vmatprep.subr.bf16.mxu0 %v13549_v2 }
  0xe9   :  { %10188 = vmatpush1.bf16.msra.mxu1 %v13747_v14 }
  0xea   :  { %10222 = vmatprep.subr.bf16.mxu1 %v13556_v7  ;;  %10220 = vmatpush1.bf16.msra.mxu0 %v13561_v11  ;;  %v13802_v11 = vrot.slane %v192_v26, %v13781_v9 }
  0xeb   :  { %10254 = vmatprep.subr.bf16.mxu0 %v13571_v18 }
  0xec   :  { %1515 = vmatmul.mubr.f32.vlgmr.msra.gmra.mrb[26].mxu1 %v13686_v0  ;;  %v13777_v0 = vsub.s32 0, %v195_v24 }
  0xed   :  { %10224 = vmatpush1.bf16.msra.mxu1 %v13582_v28  ;;  %1700 = vmatprep.mubr.f32.mxu1 %v15809_v58 }
  0xee   :  { %10226 = vmatprep.subr.bf16.mxu1 %v13587_v33  ;;  %15811 = vst [vmem:[#allocation57_spill] sm:$0xff] %v13777_v0  ;;  %v13796_v18 = vrot.slane %v192_v26, %v13777_v0  ;;  %v13814_v54 = vrot.slane %v9546_v16, %v13777_v0 }
  0xf0   :  { %15819 = vst [vmem:[#allocation65_spill] sm:$0xff] %v13814_v54 }
  0xf1   :  { %10228 = vmatpush1.bf16.msra.mxu1 %v13596_v43 }
  0xf2   :  { %10230 = vmatprep.subr.bf16.mxu1 %v13602_v48 }
  0xf5   :  { %10232 = vmatpush1.bf16.msra.mxu1 %v13612_v3 }
  0xf6   :  { %10234 = vmatprep.subr.bf16.mxu1 %v13618_v17 }
  0xf9   :  { %10236 = vmatpush1.bf16.msra.mxu1 %v13625_v23 }
  0xfa   :  { %10238 = vmatprep.subr.bf16.mxu1 %v13631_v38 }
  0xfd   :  { %10240 = vmatpush1.bf16.msra.mxu1 %v13637_v52 }
  0xfe   :  { %10242 = vmatprep.subr.bf16.mxu1 %v13643_v59  ;;  %v13823_v59 = vrot.slane %v9546_v16, %v13781_v9 }
 0x100   :  { %15822 = vst [vmem:[#allocation68_spill] sm:$0xff] %v13823_v59 }
 0x101   :  { %10244 = vmatpush1.bf16.msra.mxu1 %v13649_v13 }
 0x102   :  { %10246 = vmatprep.subr.bf16.mxu1 %v13655_v30 }
 0x105   :  { %10248 = vmatpush1.bf16.msra.mxu1 %v13661_v40 }
 0x106   :  { %10250 = vmatprep.subr.bf16.mxu1 %v13667_v55 }
 0x109   :  { %10252 = vmatpush1.bf16.msra.mxu1 %v13673_v61  ;;  %v13799_v61 = vrot.slane %v9541_v20, %v13777_v0 }
 0x10a   :  { %10286 = vmatprep.subr.bf16.mxu1 %v13680_v1 }
 0x10b   :  { %15815 = vst [vmem:[#allocation61_spill] sm:$0xff] %v13799_v61 }
 0x157   :  { %v13779_v47 = vpop.f32.mrb[0].mxu1  ;;  %v13786_v6 = vpop.f32.mrb[0].mxu0 }
 0x158   :  { %15813 = vst [vmem:[#allocation59_spill] sm:$0xff] %v13786_v6  ;;  %v13788_v63 = vpop.f32.mrb[1].mxu1  ;;  %v13790_v1 = vpop.f32.mrb[1].mxu0  ;;  %v13805_v6 = vrot.slane %v9541_v20, %v13781_v9 }
 0x159   :  { %15814 = vst [vmem:[#allocation60_spill] sm:$0xff] %v13790_v1 }
 0x15a   :  { %15816 = vst [vmem:[#allocation62_spill] sm:$0xff] %v13805_v6 }
 0x15b   :  { %v293_v55 = vpop.f32.mrb[2].mxu1  ;;  %v665_v2 = vpop.f32.mrb[2].mxu0 }
 0x15c   :  { %v13808_v1 = vadd.f32 %v293_v55, %v13796_v18  ;;  %v295_v40 = vpop.f32.mrb[3].mxu1  ;;  %v13811_v62 = vadd.f32 %v665_v2, %v13799_v61  ;;  %v667_v30 = vpop.f32.mrb[3].mxu0 }
 0x15d   :  { %v13817_v13 = vadd.f32 %v295_v40, %v13802_v11  ;;  %v13820_v51 = vadd.f32 %v667_v30, %v13805_v6  ;;  %v9536_v40 = vld [vmem:[%s15539_s5 + $0x4] sm:$0xf] }
 0x15e   :  { %15817 = vst [vmem:[#allocation63_spill] sm:$0xff] %v13808_v1  ;;  %15818 = vst [vmem:[#allocation64_spill] sm:$0xff] %v13811_v62  ;;  %v208_v1 = vsub.s32 3, %v195_v24  ;;  %v13843_v34 = vrot.slane %v9536_v40, %v13777_v0 }
 0x15f   :  { %15820 = vst [vmem:[#allocation66_spill] sm:$0xff] %v13817_v13  ;;  %15821 = vst [vmem:[#allocation67_spill] sm:$0xff] %v13820_v51  ;;  %v13825_v55 = vpop.f32.mrb[4].mxu1  ;;  %v845_v52 = vpop.f32.mrb[4].mxu0  ;;  %v205_v51 = vrot.slane %v192_v26, %v204_v44 }
 0x160   :  { %v13827_v2 = vpop.f32.mrb[5].mxu1  ;;  %v13830_v62 = vadd.f32 %v845_v52, %v13814_v54  ;;  %v847_v61 = vpop.f32.mrb[5].mxu0  ;;  %v209_v6 = vrot.slane %v192_v26, %v208_v1  ;;  %v13850_v54 = vrot.slane %v9536_v40, %v13781_v9  ;;  %v13860_v0 = vrot.slane %v9536_v40, %v208_v1 }
 0x161   :  { %v13836_v30 = vadd.f32 %v847_v61, %v13823_v59 }
 0x162   :  { %15823 = vst [vmem:[#allocation69_spill] sm:$0xff] %v13830_v62 }
 0x163   :  { %15824 = vst [vmem:[#allocation70_spill] sm:$0xff] %v13836_v30  ;;  %v370_v13 = vpop.f32.mrb[6].mxu1  ;;  %v13838_v42 = vpop.f32.mrb[6].mxu0 }
 0x164   :  { %15825 = vst [vmem:[#allocation71_spill] sm:$0xff] %v13838_v42  ;;  %v13840_v24 = vadd.f32 %v370_v13, %v205_v51  ;;  %v372_v38 = vpop.f32.mrb[7].mxu1  ;;  %v13845_v52 = vpop.f32.mrb[7].mxu0 }
 0x165   :  { %15827 = vst [vmem:[#allocation73_spill] sm:$0xff] %v13845_v52  ;;  %v13847_v62 = vadd.f32 %v372_v38, %v209_v6 }
 0x166   :  { %15826 = vst [vmem:[#allocation72_spill] sm:$0xff] %v13840_v24  ;;  %v13858_v24 = vrot.slane %v9536_v40, %v204_v44 }
 0x167   :  { %15828 = vst [vmem:[#allocation74_spill] sm:$0xff] %v13847_v62  ;;  %v473_v61 = vpop.f32.mrb[8].mxu1 }
 0x168   :  { %v13853_v30 = vadd.f32 %v473_v61, %v13843_v34  ;;  %v475_v26 = vpop.f32.mrb[9].mxu1 }
 0x169   :  { %v13856_v59 = vadd.f32 %v475_v26, %v13850_v54  ;;  %v584_v26 = vrot.slane %v9541_v20, %v204_v44 }
 0x16a   :  { %15829 = vst [vmem:[#allocation75_spill] sm:$0xff] %v13853_v30 }
 0x16b   :  { %15830 = vst [vmem:[#allocation76_spill] sm:$0xff] %v13856_v59  ;;  %v479_v13 = vpop.f32.mrb[10].mxu1  ;;  %v588_v59 = vrot.slane %v9541_v20, %v208_v1 }
 0x16c   :  { %v481_v42 = vpop.f32.mrb[11].mxu1 }
 0x16f   :  { %v550_v52 = vpop.f32.mrb[12].mxu1 }
 0x170   :  { %v13863_v38 = vadd.f32 %v550_v52, %v13858_v24  ;;  %v552_v9 = vpop.f32.mrb[13].mxu1 }
 0x171   :  { %v13866_v62 = vadd.f32 %v552_v9, %v13860_v0  ;;  %v774_v9 = vrot.slane %v9546_v16, %v208_v1 }
 0x172   :  { %15831 = vst [vmem:[#allocation77_spill] sm:$0xff] %v13863_v38  ;;  %v770_v38 = vrot.slane %v9546_v16, %v204_v44 }
 0x173   :  { %15832 = vst [vmem:[#allocation78_spill] sm:$0xff] %v13866_v62  ;;  %v13868_v61 = vpop.f32.mrb[14].mxu1 }
 0x174   :  { %v13870_v30 = vpop.f32.mrb[15].mxu1 }
 0x177   :  { %v736_v23 = vpop.f32.mrb[16].mxu1 }
 0x178   :  { %v13872_v32 = vadd.f32 %v736_v23, %v584_v26  ;;  %v738_v17 = vpop.f32.mrb[17].mxu1 }
 0x179   :  { %v13874_v40 = vadd.f32 %v738_v17, %v588_v59 }
 0x17a   :  { %15833 = vst [vmem:[#allocation79_spill] sm:$0xff] %v13872_v32 }
 0x17b   :  { %15834 = vst [vmem:[#allocation80_spill] sm:$0xff] %v13874_v40  ;;  %v742_v3 = vpop.f32.mrb[18].mxu1  ;;  %v15869_v40 = vld [vmem:[#allocation30_spill] sm:$0xff] }
 0x17c   :  { %v13876_v48 = vadd.f32 %v742_v3, %v584_v26  ;;  %v744_v52 = vpop.f32.mrb[19].mxu1  ;;  %v13888_v3 = vadd.f32 %v13788_v63, %v13802_v11  ;;  %v13899_v11 = vadd.f32 %v13825_v55, %v205_v51  ;;  %v13902_v63 = vadd.f32 %v13827_v2, %v209_v6 }
 0x17d   :  { %v13878_v43 = vadd.f32 %v744_v52, %v588_v59  ;;  %v13894_v59 = vadd.f32 %v13779_v47, %v13796_v18  ;;  %v13912_v2 = vadd.f32 %v479_v13, %v13843_v34 }
 0x17e   :  { %15835 = vst [vmem:[#allocation81_spill] sm:$0xff] %v13876_v48  ;;  %15841 = vst [vmem:[#allocation87_spill] sm:$0xff] %v13899_v11  ;;  %v15865_v48 = vld [vmem:[#allocation28_spill] sm:$0xff] }
 0x17f   :  { %15836 = vst [vmem:[#allocation82_spill] sm:$0xff] %v13878_v43  ;;  %v1267_v62 = vpop.f32.mrb[8].mxu0  ;;  %v922_v33 = vpop.f32.mrb[20].mxu1  ;;  %v15866_v43 = vld [vmem:[#allocation45_spill] sm:$0xff] }
 0x180   :  { %v13880_v28 = vadd.f32 %v922_v33, %v770_v38  ;;  %v1269_v7 = vpop.f32.mrb[9].mxu0  ;;  %v924_v20 = vpop.f32.mrb[21].mxu1  ;;  %v1343_v1 = vadd.f32 %v1267_v62, %v13894_v59 }
 0x181   :  { %v13882_v14 = vadd.f32 %v924_v20, %v774_v9  ;;  %v1344_v33 = vadd.f32 %v1269_v7, %v13888_v3 }
 0x182   :  { %15837 = vst [vmem:[#allocation83_spill] sm:$0xff] %v13880_v28  ;;  %v9551_v26 = vmul.f32 -1.442695, %v1343_v1  ;;  %v13915_v1 = vadd.f32 %v481_v42, %v13850_v54 }
 0x183   :  { %15838 = vst [vmem:[#allocation84_spill] sm:$0xff] %v13882_v14  ;;  %v928_v23 = vpop.f32.mrb[22].mxu1  ;;  %v9552_v16 = vmul.f32 -1.442695, %v1344_v33  ;;  %v13909_v33 = vld [vmem:[%s15842_s11 + $0x2] sm:$0x3] }
 0x184   :  { %v13884_v32 = vadd.f32 %v928_v23, %v770_v38  ;;  %v930_v17 = vpop.f32.mrb[23].mxu1 }
 0x185   :  { %v13890_v44 = vadd.f32 %v930_v17, %v774_v9  ;;  %12565 = vpow2.f32 %v9552_v16  ;;  %v1368_v16 = vrot.slane %v13909_v33, 7 }
 0x186   :  { %15839 = vst [vmem:[#allocation85_spill] sm:$0xff] %v13884_v32  ;;  %12567 = vpow2.f32 %v9551_v26  ;;  %v1194_v26 = vld [vmem:[%s15842_s11] sm:$0x3]  ;;  %v15867_v32 = vld [vmem:[#allocation29_spill] sm:$0xff] }
 0x187   :  { %15840 = vst [vmem:[#allocation86_spill] sm:$0xff] %v13890_v44  ;;  %v15868_v44 = vld [vmem:[#allocation47_spill] sm:$0xff] }
 0x18f   :  { %v12566_v38 = vpop.eup %12565 }
 0x190   :  { %v12568_v52 = vpop.eup %12567  ;;  %v1356_v20 = vadd.f32 1.0, %v12566_v38 }
 0x191   :  { %v1350_v23 = vadd.f32 1.0, %v12568_v52 }
 0x192   :  { %12569 = vrcp.f32 %v1356_v20 }
 0x193   :  { %12571 = vrcp.f32 %v1350_v23  ;;  %v1369_v23 = vsel %vm142_vm0, %v1368_v16, %v1194_v26 }
 0x19c   :  { %v12570_v20 = vpop.eup %12569 }
 0x19f   :  { %v1338_v18 = vpop.f32.mrb[24].mxu1  ;;  %v1445_v47 = vpop.f32.mrb[10].mxu0 }
 0x1a0   :  { %v1345_v7 = vadd.f32 %v1338_v18, %v13899_v11  ;;  %v1340_v62 = vpop.f32.mrb[25].mxu1  ;;  %v1447_v9 = vpop.f32.mrb[11].mxu0  ;;  %v1525_v51 = vrot.slane %v1445_v47, 2 }
 0x1a1   :  { %v1346_v17 = vadd.f32 %v1340_v62, %v13902_v63  ;;  %v1526_v6 = vrot.slane %v1447_v9, 2  ;;  %v12572_v18 = vpop.eup %12571 }
 0x1a2   :  { %12573 = vtanh.f32 %v1345_v7  ;;  %v1533_v38 = vadd.f32 %v1525_v51, %v13912_v2  ;;  %v1371_v7 = vmul.f32 %v12570_v20, %v1369_v23 }
 0x1a3   :  { %v9553_v55 = vmul.f32 -1.442695, %v1346_v17  ;;  %v1534_v52 = vadd.f32 %v1526_v6, %v13915_v1 }
 0x1a4   :  { %v9554_v34 = vmul.f32 -1.442695, %v1533_v38 }
 0x1a5   :  { %12575 = vpow2.f32 %v9553_v55  ;;  %v9555_v47 = vmul.f32 -1.442695, %v1534_v52  ;;  %v13929_v52 = vadd.f32 %v13868_v61, %v13858_v24 }
 0x1a6   :  { %12577 = vpow2.f32 %v9554_v34 }
 0x1a7   :  { %12579 = vpow2.f32 %v9555_v47 }
 0x1ac   :  { %v12574_v13 = vpop.eup %12573 }
 0x1ad   :  { %v1372_v42 = vmul.f32 %v12574_v13, %v12572_v18  ;;  %v13935_v18 = vadd.f32 %v13870_v30, %v13860_v0  ;;  %v1557_v30 = vrot.slane %v13909_v33, 2 }
 0x1af   :  { %v12576_v54 = vpop.eup %12575  ;;  %v13924_v62 = vadd.f32 %v1372_v42, %v1371_v7  ;;  %v15843_v42 = vld [vmem:[#allocation46_spill] sm:$0xff] }
 0x1b0   :  { %v1363_v9 = vadd.f32 1.0, %v12576_v54  ;;  %v12578_v17 = vpop.eup %12577 }
 0x1b1   :  { %12581 = vtanh.f32 %v13924_v62  ;;  %v12580_v51 = vpop.eup %12579  ;;  %v1540_v38 = vadd.f32 1.0, %v12578_v17 }
 0x1b2   :  { %12583 = vrcp.f32 %v1363_v9  ;;  %v1546_v28 = vadd.f32 1.0, %v12580_v51  ;;  %v15844_v51 = vld [vmem:[#allocation49_spill] sm:$0xff] }
 0x1b4   :  { %12585 = vrcp.f32 %v1546_v28  ;;  %v1556_v28 = vrot.slane %v1194_v26, 3 }
 0x1b5   :  { %12587 = vrcp.f32 %v1540_v38  ;;  %v15847_v38 = vld [vmem:[#allocation19_spill] sm:$0xff] }
 0x1b6   :  { %v1558_v61 = vsel %vm157_vm3, %v1557_v30, %v1556_v28  ;;  %v15851_v28 = vld [vmem:[#allocation21_spill] sm:$0xff]  ;;  %v15852_v30 = vld [vmem:[#allocation38_spill] sm:$0xff] }
 0x1bb   :  { %v12582_v55 = vpop.eup %12581 }
 0x1bc   :  { %v12584_v6 = vpop.eup %12583 }
 0x1bd   :  { %v1375_v16 = vmul.f32 %v12584_v6, %v12582_v55  ;;  %v15845_v55 = vld [vmem:[#allocation54_spill] sm:$0xff]  ;;  %v15846_v6 = vld [vmem:[#allocation56_spill] sm:$0xff] }
 0x1be   :  { %v12586_v24 = vpop.eup %12585 }
 0x1bf   :  { %v1516_v14 = vpop.f32.mrb[26].mxu1  ;;  %1630 = vmatmul.mubr.f32.vlgmr.msra.gmra.mrb[12].mxu0 %v1375_v16  ;;  %1701 = vmatmul.mubr.f32.vlgmr.msra.gmra.mrb[28].mxu1 %v1375_v16  ;;  %v12588_v47 = vpop.eup %12587  ;;  %v1560_v26 = vmul.f32 %v12586_v24, %v1558_v61  ;;  %v15853_v24 = vld [vmem:[#allocation22_spill] sm:$0xff]  ;;  %v15854_v61 = vld [vmem:[#allocation39_spill] sm:$0xff] }
 0x1c0   :  { %v1527_v20 = vrot.slane %v1516_v14, 2  ;;  %v1518_v23 = vpop.f32.mrb[27].mxu1  ;;  %10256 = vmatpush1.bf16.msra.mxu0 %v13584_v29  ;;  %10288 = vmatpush1.bf16.msra.mxu1 %v13688_v50 }
 0x1c1   :  { %v1528_v34 = vrot.slane %v1518_v23, 2  ;;  %10258 = vmatprep.subr.bf16.mxu0 %v13589_v35  ;;  %10290 = vmatprep.subr.bf16.mxu1 %v13691_v36 }
 0x1c2   :  { %v1535_v13 = vadd.f32 %v1527_v20, %v13929_v52  ;;  %1817 = vmatprep.mubr.f32.mxu0 %v15809_v58  ;;  %1888 = vmatprep.mubr.f32.mxu1 %v15809_v58  ;;  %v15848_v20 = vld [vmem:[#allocation34_spill] sm:$0xff] }
 0x1c3   :  { %v1536_v14 = vadd.f32 %v1528_v34, %v13935_v18 }
 0x1c4   :  { %12589 = vtanh.f32 %v1535_v13  ;;  %10260 = vmatpush1.bf16.msra.mxu0 %v13598_v45  ;;  %10292 = vmatpush1.bf16.msra.mxu1 %v13697_v5 }
 0x1c5   :  { %v9556_v0 = vmul.f32 -1.442695, %v1536_v14  ;;  %10262 = vmatprep.subr.bf16.mxu0 %v13604_v49  ;;  %10294 = vmatprep.subr.bf16.mxu1 %v13701_v15  ;;  %v15849_v14 = vld [vmem:[#allocation20_spill] sm:$0xff] }
 0x1c7   :  { %12591 = vpow2.f32 %v9556_v0  ;;  %v15850_v0 = vld [vmem:[#allocation37_spill] sm:$0xff] }
 0x1c8   :  { %10264 = vmatpush1.bf16.msra.mxu0 %v13614_v4  ;;  %10296 = vmatpush1.bf16.msra.mxu1 %v13707_v10 }
 0x1c9   :  { %10266 = vmatprep.subr.bf16.mxu0 %v13620_v19  ;;  %10298 = vmatprep.subr.bf16.mxu1 %v13710_v53 }
 0x1cc   :  { %10268 = vmatpush1.bf16.msra.mxu0 %v13627_v25  ;;  %10300 = vmatpush1.bf16.msra.mxu1 %v13715_v8 }
 0x1cd   :  { %10270 = vmatprep.subr.bf16.mxu0 %v13633_v39  ;;  %10302 = vmatprep.subr.bf16.mxu1 %v13718_v37 }
 0x1ce   :  { %v12590_v33 = vpop.eup %12589 }
 0x1cf   :  { %v1561_v7 = vmul.f32 %v12590_v33, %v12588_v47  ;;  %v15855_v47 = vld [vmem:[#allocation23_spill] sm:$0xff]  ;;  %v15856_v33 = vld [vmem:[#allocation40_spill] sm:$0xff] }
 0x1d0   :  { %10272 = vmatpush1.bf16.msra.mxu0 %v15843_v42  ;;  %10304 = vmatpush1.bf16.msra.mxu1 %v13723_v57 }
 0x1d1   :  { %v12592_v54 = vpop.eup %12591  ;;  %v13959_v9 = vadd.f32 %v1561_v7, %v1560_v26  ;;  %10274 = vmatprep.subr.bf16.mxu0 %v13645_v60  ;;  %10306 = vmatprep.subr.bf16.mxu1 %v13726_v27  ;;  %v15857_v26 = vld [vmem:[#allocation24_spill] sm:$0xff]  ;;  %v15858_v7 = vld [vmem:[#allocation41_spill] sm:$0xff] }
 0x1d2   :  { %v1553_v17 = vadd.f32 1.0, %v12592_v54  ;;  %v15859_v54 = vld [vmem:[#allocation25_spill] sm:$0xff] }
 0x1d3   :  { %12593 = vtanh.f32 %v13959_v9 }
 0x1d4   :  { %12595 = vrcp.f32 %v1553_v17  ;;  %10276 = vmatpush1.bf16.msra.mxu0 %v15844_v51  ;;  %10308 = vmatpush1.bf16.msra.mxu1 %v13731_v21  ;;  %v15860_v17 = vld [vmem:[#allocation42_spill] sm:$0xff] }
 0x1d5   :  { %10278 = vmatprep.subr.bf16.mxu0 %v13657_v31  ;;  %10310 = vmatprep.subr.bf16.mxu1 %v13734_v12 }
 0x1d8   :  { %10280 = vmatpush1.bf16.msra.mxu0 %v13663_v41  ;;  %10312 = vmatpush1.bf16.msra.mxu1 %v13739_v22 }
 0x1d9   :  { %10282 = vmatprep.subr.bf16.mxu0 %v13669_v56  ;;  %10314 = vmatprep.subr.bf16.mxu1 %v13742_v46 }
 0x1dc   :  { %10284 = vmatpush1.bf16.msra.mxu0 %v15845_v55  ;;  %10316 = vmatpush1.bf16.msra.mxu1 %v15846_v6 }
 0x1dd   :  { %v12594_v16 = vpop.eup %12593  ;;  %10318 = vmatprep.subr.bf16.mxu0 %v15847_v38  ;;  %10350 = vmatprep.subr.bf16.mxu1 %v15848_v20 }
 0x1de   :  { %v12596_v23 = vpop.eup %12595 }
 0x1df   :  { %v1564_v34 = vmul.f32 %v12596_v23, %v12594_v16  ;;  %v15861_v16 = vld [vmem:[#allocation26_spill] sm:$0xff]  ;;  %v15862_v23 = vld [vmem:[#allocation43_spill] sm:$0xff] }
 0x1e1   :  { %v1751_v13 = vrot.slane %v1564_v34, 6  ;;  %v15863_v34 = vld [vmem:[#allocation27_spill] sm:$0xff] }
 0x1e3   :  { %1818 = vmatmul.mubr.f32.vlgmr.msra.gmra.mrb[14].mxu0 %v1751_v13  ;;  %1889 = vmatmul.mubr.f32.vlgmr.msra.gmra.mrb[30].mxu1 %v1751_v13  ;;  %v15864_v13 = vld [vmem:[#allocation44_spill] sm:$0xff] }
 0x1e4   :  { %10320 = vmatpush1.bf16.msra.mxu0 %v15849_v14  ;;  %10352 = vmatpush1.bf16.msra.mxu1 %v15850_v0 }
 0x1e5   :  { %10322 = vmatprep.subr.bf16.mxu0 %v15851_v28  ;;  %10354 = vmatprep.subr.bf16.mxu1 %v15852_v30 }
 0x1e6   :  { %2005 = vmatprep.mubr.f32.mxu0 %v15809_v58  ;;  %2076 = vmatprep.mubr.f32.mxu1 %v15809_v58 }
 0x1e8   :  { %10324 = vmatpush1.bf16.msra.mxu0 %v15853_v24  ;;  %10356 = vmatpush1.bf16.msra.mxu1 %v15854_v61 }
 0x1e9   :  { %10326 = vmatprep.subr.bf16.mxu0 %v15855_v47  ;;  %10358 = vmatprep.subr.bf16.mxu1 %v15856_v33 }
 0x1ec   :  { %10328 = vmatpush1.bf16.msra.mxu0 %v15857_v26  ;;  %10360 = vmatpush1.bf16.msra.mxu1 %v15858_v7 }
 0x1ed   :  { %10330 = vmatprep.subr.bf16.mxu0 %v15859_v54  ;;  %10362 = vmatprep.subr.bf16.mxu1 %v15860_v17  ;;  %v15870_v54 = vld [vmem:[#allocation48_spill] sm:$0xff]  ;;  %v15871_v17 = vld [vmem:[#allocation31_spill] sm:$0xff] }
 0x1f0   :  { %10332 = vmatpush1.bf16.msra.mxu0 %v15861_v16  ;;  %10364 = vmatpush1.bf16.msra.mxu1 %v15862_v23  ;;  %v15872_v16 = vld [vmem:[#allocation50_spill] sm:$0xff]  ;;  %v15873_v23 = vld [vmem:[#allocation32_spill] sm:$0xff] }
 0x1f1   :  { %10334 = vmatprep.subr.bf16.mxu0 %v15863_v34  ;;  %10366 = vmatprep.subr.bf16.mxu1 %v15864_v13  ;;  %v15874_v34 = vld [vmem:[#allocation51_spill] sm:$0xff]  ;;  %v15875_v13 = vld [vmem:[#allocation33_spill] sm:$0xff] }
 0x1f4   :  { %10336 = vmatpush1.bf16.msra.mxu0 %v15865_v48  ;;  %10368 = vmatpush1.bf16.msra.mxu1 %v15866_v43  ;;  %v15876_v48 = vld [vmem:[#allocation52_spill] sm:$0xff]  ;;  %v15877_v43 = vld [vmem:[#allocation35_spill] sm:$0xff] }
 0x1f5   :  { %10338 = vmatprep.subr.bf16.mxu0 %v15867_v32  ;;  %10370 = vmatprep.subr.bf16.mxu1 %v15868_v44  ;;  %v15878_v32 = vld [vmem:[#allocation53_spill] sm:$0xff]  ;;  %v15879_v44 = vld [vmem:[#allocation36_spill] sm:$0xff] }
 0x1f8   :  { %10340 = vmatpush1.bf16.msra.mxu0 %v15869_v40  ;;  %10372 = vmatpush1.bf16.msra.mxu1 %v15870_v54  ;;  %v15880_v40 = vld [vmem:[#allocation55_spill] sm:$0xff] }
 0x1f9   :  { %10342 = vmatprep.subr.bf16.mxu0 %v15871_v17  ;;  %10374 = vmatprep.subr.bf16.mxu1 %v15872_v16 }
 0x1fc   :  { %10344 = vmatpush1.bf16.msra.mxu0 %v15873_v23  ;;  %10376 = vmatpush1.bf16.msra.mxu1 %v15874_v34 }
 0x1fd   :  { %10346 = vmatprep.subr.bf16.mxu0 %v15875_v13  ;;  %10378 = vmatprep.subr.bf16.mxu1 %v15876_v48 }
 0x200   :  { %10348 = vmatpush1.bf16.msra.mxu0 %v15877_v43  ;;  %10380 = vmatpush1.bf16.msra.mxu1 %v15878_v32 }
 0x201   :  { %10382 = vmatprep.subr.bf16.mxu0 %v15879_v44  ;;  %10414 = vmatprep.subr.bf16.mxu1 %v15880_v40 }
 0x292   :  { %v1631_v54 = vpop.f32.mrb[12].mxu0  ;;  %v1702_v17 = vpop.f32.mrb[28].mxu1 }
 0x293   :  { %v1711_v7 = vrot.slane %v1631_v54, 6  ;;  %v1633_v16 = vpop.f32.mrb[13].mxu0  ;;  %v1704_v26 = vpop.f32.mrb[29].mxu1  ;;  %v1713_v44 = vrot.slane %v1702_v17, 6 }
 0x294   :  { %v1712_v23 = vrot.slane %v1633_v16, 6  ;;  %v1714_v47 = vrot.slane %v1704_v26, 6 }
 0x295   :  { %v1719_v34 = vadd.f32 %v1711_v7, %v13894_v59  ;;  %v1721_v40 = vadd.f32 %v1713_v44, %v13899_v11 }
 0x296   :  { %v1720_v13 = vadd.f32 %v1712_v23, %v13888_v3  ;;  %v1722_v32 = vadd.f32 %v1714_v47, %v13902_v63 }
 0x297   :  { %v9557_v33 = vmul.f32 -1.442695, %v1719_v34 }
 0x298   :  { %v9558_v48 = vmul.f32 -1.442695, %v1720_v13  ;;  %v9559_v43 = vmul.f32 -1.442695, %v1722_v32 }
 0x299   :  { %12597 = vpow2.f32 %v9557_v33  ;;  %v1743_v33 = vrot.slane %v13924_v62, 6 }
 0x29a   :  { %12599 = vpow2.f32 %v9558_v48 }
 0x29b   :  { %12601 = vpow2.f32 %v9559_v43 }
 0x29c   :  { %12603 = vtanh.f32 %v1721_v40 }
 0x2a3   :  { %v12598_v61 = vpop.eup %12597 }
 0x2a4   :  { %v12600_v54 = vpop.eup %12599  ;;  %v1726_v24 = vadd.f32 1.0, %v12598_v61 }
 0x2a5   :  { %v1732_v16 = vadd.f32 1.0, %v12600_v54  ;;  %v12602_v7 = vpop.eup %12601 }
 0x2a6   :  { %12605 = vrcp.f32 %v1726_v24  ;;  %v12604_v23 = vpop.eup %12603  ;;  %v1739_v47 = vadd.f32 1.0, %v12602_v7 }
 0x2a7   :  { %12607 = vrcp.f32 %v1732_v16 }
 0x2a8   :  { %12609 = vrcp.f32 %v1739_v47 }
 0x2b0   :  { %v12606_v34 = vpop.eup %12605 }
 0x2b1   :  { %v12608_v48 = vpop.eup %12607  ;;  %v1746_v26 = vmul.f32 %v12606_v34, %v12604_v23 }
 0x2b2   :  { %v1745_v17 = vmul.f32 %v12608_v48, %v1743_v33  ;;  %v12610_v7 = vpop.eup %12609 }
 0x2b4   :  { %v14015_v32 = vadd.f32 %v1746_v26, %v1745_v17 }
 0x2b6   :  { %v1819_v44 = vpop.f32.mrb[14].mxu0  ;;  %v1890_v13 = vpop.f32.mrb[30].mxu1  ;;  %12611 = vtanh.f32 %v14015_v32 }
 0x2b7   :  { %v1899_v43 = vrot.slane %v1819_v44, 4  ;;  %v1821_v40 = vpop.f32.mrb[15].mxu0  ;;  %v1892_v24 = vpop.f32.mrb[31].mxu1  ;;  %v1901_v48 = vrot.slane %v1890_v13, 4 }
 0x2b8   :  { %v1900_v61 = vrot.slane %v1821_v40, 4  ;;  %v1902_v23 = vrot.slane %v1892_v24, 4 }
 0x2b9   :  { %v1907_v54 = vadd.f32 %v1899_v43, %v13912_v2  ;;  %v1909_v44 = vadd.f32 %v1901_v48, %v13929_v52 }
 0x2ba   :  { %v1908_v16 = vadd.f32 %v1900_v61, %v13915_v1  ;;  %v1910_v33 = vadd.f32 %v1902_v23, %v13935_v18 }
 0x2bb   :  { %v9560_v62 = vmul.f32 -1.442695, %v1907_v54 }
 0x2bc   :  { %v9561_v11 = vmul.f32 -1.442695, %v1908_v16  ;;  %v9562_v17 = vmul.f32 -1.442695, %v1910_v33  ;;  %v1931_v16 = vrot.slane %v13959_v9, 2 }
 0x2bd   :  { %12613 = vpow2.f32 %v9560_v62 }
 0x2be   :  { %12615 = vpow2.f32 %v9561_v11 }
 0x2bf   :  { %12617 = vpow2.f32 %v9562_v17  ;;  %v15881_v17 = vld [vmem:[#allocation22_spill] sm:$0xff] }
 0x2c0   :  { %v12612_v34 = vpop.eup %12611  ;;  %12619 = vtanh.f32 %v1909_v44  ;;  %v15882_v44 = vld [vmem:[#allocation39_spill] sm:$0xff] }
 0x2c1   :  { %v1749_v26 = vmul.f32 %v12612_v34, %v12610_v7 }
 0x2c3   :  { %v1939_v47 = vrot.slane %v1749_v26, 2 }
 0x2c5   :  { %2006 = vmatmul.mubr.f32.vlgmr.msra.gmra.mrb[16].mxu0 %v1939_v47  ;;  %2077 = vmatmul.mubr.f32.vlgmr.msra.gmra.mrb[32].mxu1 %v1939_v47 }
 0x2c6   :  { %10384 = vmatpush1.bf16.msra.mxu0 %v13584_v29  ;;  %10416 = vmatpush1.bf16.msra.mxu1 %v13688_v50 }
 0x2c7   :  { %v12614_v43 = vpop.eup %12613  ;;  %10386 = vmatprep.subr.bf16.mxu0 %v13589_v35  ;;  %10418 = vmatprep.subr.bf16.mxu1 %v13691_v36 }
 0x2c8   :  { %v12616_v11 = vpop.eup %12615  ;;  %v1914_v40 = vadd.f32 1.0, %v12614_v43  ;;  %2193 = vmatprep.mubr.f32.mxu0 %v15809_v58  ;;  %2264 = vmatprep.mubr.f32.mxu1 %v15809_v58  ;;  %v15883_v43 = vld [vmem:[#allocation23_spill] sm:$0xff] }
 0x2c9   :  { %v1920_v13 = vadd.f32 1.0, %v12616_v11  ;;  %v12618_v24 = vpop.eup %12617  ;;  %v15884_v11 = vld [vmem:[#allocation40_spill] sm:$0xff] }
 0x2ca   :  { %12621 = vrcp.f32 %v1914_v40  ;;  %10388 = vmatpush1.bf16.msra.mxu0 %v13598_v45  ;;  %10420 = vmatpush1.bf16.msra.mxu1 %v13697_v5  ;;  %v12620_v61 = vpop.eup %12619  ;;  %v1927_v7 = vadd.f32 1.0, %v12618_v24  ;;  %v15885_v40 = vld [vmem:[#allocation24_spill] sm:$0xff]  ;;  %v15887_v24 = vld [vmem:[#allocation25_spill] sm:$0xff] }
 0x2cb   :  { %12623 = vrcp.f32 %v1920_v13  ;;  %10390 = vmatprep.subr.bf16.mxu0 %v13604_v49  ;;  %10422 = vmatprep.subr.bf16.mxu1 %v13701_v15  ;;  %v15886_v13 = vld [vmem:[#allocation41_spill] sm:$0xff] }
 0x2cc   :  { %12625 = vrcp.f32 %v1927_v7  ;;  %v15893_v7 = vld [vmem:[#allocation28_spill] sm:$0xff] }
 0x2ce   :  { %10392 = vmatpush1.bf16.msra.mxu0 %v13614_v4  ;;  %10424 = vmatpush1.bf16.msra.mxu1 %v13707_v10 }
 0x2cf   :  { %10394 = vmatprep.subr.bf16.mxu0 %v13620_v19  ;;  %10426 = vmatprep.subr.bf16.mxu1 %v13710_v53 }
 0x2d2   :  { %10396 = vmatpush1.bf16.msra.mxu0 %v13627_v25  ;;  %10428 = vmatpush1.bf16.msra.mxu1 %v13715_v8 }
 0x2d3   :  { %10398 = vmatprep.subr.bf16.mxu0 %v13633_v39  ;;  %10430 = vmatprep.subr.bf16.mxu1 %v13718_v37 }
 0x2d4   :  { %v12622_v54 = vpop.eup %12621 }
 0x2d5   :  { %v12624_v62 = vpop.eup %12623  ;;  %v1934_v23 = vmul.f32 %v12622_v54, %v12620_v61  ;;  %v15888_v61 = vld [vmem:[#allocation42_spill] sm:$0xff] }
 0x2d6   :  { %v1933_v34 = vmul.f32 %v12624_v62, %v1931_v16  ;;  %10400 = vmatpush1.bf16.msra.mxu0 %v15843_v42  ;;  %10432 = vmatpush1.bf16.msra.mxu1 %v13723_v57  ;;  %v12626_v9 = vpop.eup %12625  ;;  %v15889_v54 = vld [vmem:[#allocation26_spill] sm:$0xff]  ;;  %v15890_v16 = vld [vmem:[#allocation43_spill] sm:$0xff] }
 0x2d7   :  { %10402 = vmatprep.subr.bf16.mxu0 %v13645_v60  ;;  %10434 = vmatprep.subr.bf16.mxu1 %v13726_v27  ;;  %v15891_v62 = vld [vmem:[#allocation27_spill] sm:$0xff] }
 0x2d8   :  { %v14045_v33 = vadd.f32 %v1934_v23, %v1933_v34  ;;  %v15892_v23 = vld [vmem:[#allocation44_spill] sm:$0xff]  ;;  %v15894_v34 = vld [vmem:[#allocation45_spill] sm:$0xff] }
 0x2da   :  { %10404 = vmatpush1.bf16.msra.mxu0 %v15844_v51  ;;  %10436 = vmatpush1.bf16.msra.mxu1 %v13731_v21  ;;  %12627 = vtanh.f32 %v14045_v33 }
 0x2db   :  { %10406 = vmatprep.subr.bf16.mxu0 %v13657_v31  ;;  %10438 = vmatprep.subr.bf16.mxu1 %v13734_v12 }
 0x2de   :  { %10408 = vmatpush1.bf16.msra.mxu0 %v13663_v41  ;;  %10440 = vmatpush1.bf16.msra.mxu1 %v13739_v22 }
 0x2df   :  { %10410 = vmatprep.subr.bf16.mxu0 %v13669_v56  ;;  %10442 = vmatprep.subr.bf16.mxu1 %v13742_v46 }
 0x2e2   :  { %10412 = vmatpush1.bf16.msra.mxu0 %v15845_v55  ;;  %10444 = vmatpush1.bf16.msra.mxu1 %v15846_v6 }
 0x2e3   :  { %10446 = vmatprep.subr.bf16.mxu0 %v15847_v38  ;;  %10478 = vmatprep.subr.bf16.mxu1 %v15848_v20 }
 0x2e4   :  { %v12628_v48 = vpop.eup %12627 }
 0x2e5   :  { %v1937_v26 = vmul.f32 %v12628_v48, %v12626_v9  ;;  %v15895_v9 = vld [vmem:[#allocation29_spill] sm:$0xff]  ;;  %v15896_v48 = vld [vmem:[#allocation47_spill] sm:$0xff] }
 0x2e7   :  { %v2127_v47 = vrot.slane %v1937_v26, 4  ;;  %v15897_v26 = vld [vmem:[#allocation30_spill] sm:$0xff] }
 0x2e9   :  { %2194 = vmatmul.mubr.f32.vlgmr.msra.gmra.mrb[18].mxu0 %v2127_v47  ;;  %2265 = vmatmul.mubr.f32.vlgmr.msra.gmra.mrb[34].mxu1 %v2127_v47  ;;  %v15898_v47 = vld [vmem:[#allocation48_spill] sm:$0xff] }
 0x2ea   :  { %10448 = vmatpush1.bf16.msra.mxu0 %v15849_v14  ;;  %10480 = vmatpush1.bf16.msra.mxu1 %v15850_v0 }
 0x2eb   :  { %10450 = vmatprep.subr.bf16.mxu0 %v15851_v28  ;;  %10482 = vmatprep.subr.bf16.mxu1 %v15852_v30 }
 0x2ec   :  { %2381 = vmatprep.mubr.f32.mxu0 %v15809_v58  ;;  %2452 = vmatprep.mubr.f32.mxu1 %v15809_v58 }
 0x2ee   :  { %10452 = vmatpush1.bf16.msra.mxu0 %v15881_v17  ;;  %10484 = vmatpush1.bf16.msra.mxu1 %v15882_v44 }
 0x2ef   :  { %10454 = vmatprep.subr.bf16.mxu0 %v15883_v43  ;;  %10486 = vmatprep.subr.bf16.mxu1 %v15884_v11 }
 0x2f2   :  { %10456 = vmatpush1.bf16.msra.mxu0 %v15885_v40  ;;  %10488 = vmatpush1.bf16.msra.mxu1 %v15886_v13 }
 0x2f3   :  { %10458 = vmatprep.subr.bf16.mxu0 %v15887_v24  ;;  %10490 = vmatprep.subr.bf16.mxu1 %v15888_v61  ;;  %v15899_v61 = vld [vmem:[#allocation31_spill] sm:$0xff] }
 0x2f6   :  { %10460 = vmatpush1.bf16.msra.mxu0 %v15889_v54  ;;  %10492 = vmatpush1.bf16.msra.mxu1 %v15890_v16  ;;  %v15900_v54 = vld [vmem:[#allocation50_spill] sm:$0xff]  ;;  %v15901_v16 = vld [vmem:[#allocation32_spill] sm:$0xff] }
 0x2f7   :  { %10462 = vmatprep.subr.bf16.mxu0 %v15891_v62  ;;  %10494 = vmatprep.subr.bf16.mxu1 %v15892_v23  ;;  %v15902_v62 = vld [vmem:[#allocation51_spill] sm:$0xff]  ;;  %v15903_v23 = vld [vmem:[#allocation33_spill] sm:$0xff] }
 0x2fa   :  { %10464 = vmatpush1.bf16.msra.mxu0 %v15893_v7  ;;  %10496 = vmatpush1.bf16.msra.mxu1 %v15894_v34  ;;  %v15904_v7 = vld [vmem:[#allocation52_spill] sm:$0xff]  ;;  %v15905_v34 = vld [vmem:[#allocation35_spill] sm:$0xff] }
 0x2fb   :  { %10466 = vmatprep.subr.bf16.mxu0 %v15895_v9  ;;  %10498 = vmatprep.subr.bf16.mxu1 %v15896_v48  ;;  %v15906_v9 = vld [vmem:[#allocation53_spill] sm:$0xff]  ;;  %v15907_v48 = vld [vmem:[#allocation36_spill] sm:$0xff] }
 0x2fe   :  { %10468 = vmatpush1.bf16.msra.mxu0 %v15897_v26  ;;  %10500 = vmatpush1.bf16.msra.mxu1 %v15898_v47  ;;  %v15908_v26 = vld [vmem:[#allocation55_spill] sm:$0xff] }
 0x2ff   :  { %10470 = vmatprep.subr.bf16.mxu0 %v15899_v61  ;;  %10502 = vmatprep.subr.bf16.mxu1 %v15900_v54 }
 0x302   :  { %10472 = vmatpush1.bf16.msra.mxu0 %v15901_v16  ;;  %10504 = vmatpush1.bf16.msra.mxu1 %v15902_v62 }
 0x303   :  { %10474 = vmatprep.subr.bf16.mxu0 %v15903_v23  ;;  %10506 = vmatprep.subr.bf16.mxu1 %v15904_v7 }
 0x306   :  { %10476 = vmatpush1.bf16.msra.mxu0 %v15905_v34  ;;  %10508 = vmatpush1.bf16.msra.mxu1 %v15906_v9 }
 0x307   :  { %10510 = vmatprep.subr.bf16.mxu0 %v15907_v48  ;;  %10542 = vmatprep.subr.bf16.mxu1 %v15908_v26  ;;  %v15909_v26 = vld [vmem:[#allocation87_spill] sm:$0xff] }
 0x398   :  { %v2007_v47 = vpop.f32.mrb[16].mxu0  ;;  %v2078_v61 = vpop.f32.mrb[32].mxu1 }
 0x399   :  { %v2087_v24 = vrot.slane %v2007_v47, 4  ;;  %v2009_v54 = vpop.f32.mrb[17].mxu0  ;;  %v2080_v13 = vpop.f32.mrb[33].mxu1  ;;  %v2089_v48 = vrot.slane %v2078_v61, 4 }
 0x39a   :  { %v2088_v16 = vrot.slane %v2009_v54, 4  ;;  %v2090_v11 = vrot.slane %v2080_v13, 4 }
 0x39b   :  { %v2095_v62 = vadd.f32 %v2087_v24, %v13894_v59  ;;  %v2097_v43 = vadd.f32 %v2089_v48, %v15909_v26 }
 0x39c   :  { %v2096_v23 = vadd.f32 %v2088_v16, %v13888_v3  ;;  %v2098_v9 = vadd.f32 %v2090_v11, %v13902_v63 }
 0x39d   :  { %v9563_v40 = vmul.f32 -1.442695, %v2095_v62 }
 0x39e   :  { %v9564_v7 = vmul.f32 -1.442695, %v2096_v23  ;;  %v9565_v34 = vmul.f32 -1.442695, %v2098_v9 }
 0x39f   :  { %12629 = vpow2.f32 %v9563_v40  ;;  %v2119_v40 = vrot.slane %v14015_v32, 6 }
 0x3a0   :  { %12631 = vpow2.f32 %v9564_v7 }
 0x3a1   :  { %12633 = vpow2.f32 %v9565_v34 }
 0x3a2   :  { %12635 = vtanh.f32 %v2097_v43 }
 0x3a9   :  { %v12630_v44 = vpop.eup %12629 }
 0x3aa   :  { %v12632_v47 = vpop.eup %12631  ;;  %v2102_v17 = vadd.f32 1.0, %v12630_v44 }
 0x3ab   :  { %v2108_v54 = vadd.f32 1.0, %v12632_v47  ;;  %v12634_v24 = vpop.eup %12633 }
 0x3ac   :  { %12637 = vrcp.f32 %v2102_v17  ;;  %v12636_v16 = vpop.eup %12635  ;;  %v2115_v11 = vadd.f32 1.0, %v12634_v24 }
 0x3ad   :  { %12639 = vrcp.f32 %v2108_v54 }
 0x3ae   :  { %12641 = vrcp.f32 %v2115_v11 }
 0x3b6   :  { %v12638_v62 = vpop.eup %12637 }
 0x3b7   :  { %v12640_v13 = vpop.eup %12639  ;;  %v2122_v23 = vmul.f32 %v12638_v62, %v12636_v16 }
 0x3b8   :  { %v2121_v61 = vmul.f32 %v12640_v13, %v2119_v40  ;;  %v12642_v24 = vpop.eup %12641 }
 0x3ba   :  { %v14099_v7 = vadd.f32 %v2122_v23, %v2121_v61 }
 0x3bc   :  { %v2195_v9 = vpop.f32.mrb[18].mxu0  ;;  %v2266_v48 = vpop.f32.mrb[34].mxu1  ;;  %12643 = vtanh.f32 %v14099_v7 }
 0x3bd   :  { %v2275_v44 = vrot.slane %v2195_v9, 6  ;;  %v2197_v43 = vpop.f32.mrb[19].mxu0  ;;  %v2268_v17 = vpop.f32.mrb[35].mxu1  ;;  %v2277_v13 = vrot.slane %v2266_v48, 6 }
 0x3be   :  { %v2276_v34 = vrot.slane %v2197_v43, 6  ;;  %v2278_v16 = vrot.slane %v2268_v17, 6 }
 0x3bf   :  { %v2283_v47 = vadd.f32 %v2275_v44, %v13912_v2  ;;  %v2285_v9 = vadd.f32 %v2277_v13, %v13929_v52 }
 0x3c0   :  { %v2284_v54 = vadd.f32 %v2276_v34, %v13915_v1  ;;  %v2286_v40 = vadd.f32 %v2278_v16, %v13935_v18 }
 0x3c1   :  { %v9566_v32 = vmul.f32 -1.442695, %v2283_v47 }
 0x3c2   :  { %v9567_v26 = vmul.f32 -1.442695, %v2284_v54  ;;  %v9568_v61 = vmul.f32 -1.442695, %v2286_v40  ;;  %v2307_v54 = vrot.slane %v14045_v33, 2 }
 0x3c3   :  { %12645 = vpow2.f32 %v9566_v32 }
 0x3c4   :  { %12647 = vpow2.f32 %v9567_v26 }
 0x3c5   :  { %12649 = vpow2.f32 %v9568_v61  ;;  %v15910_v61 = vld [vmem:[#allocation22_spill] sm:$0xff] }
 0x3c6   :  { %v12644_v62 = vpop.eup %12643  ;;  %12651 = vtanh.f32 %v2285_v9  ;;  %v15911_v9 = vld [vmem:[#allocation39_spill] sm:$0xff] }
 0x3c7   :  { %v2125_v23 = vmul.f32 %v12644_v62, %v12642_v24 }
 0x3c9   :  { %v2315_v11 = vrot.slane %v2125_v23, 4 }
 0x3cb   :  { %2382 = vmatmul.mubr.f32.vlgmr.msra.gmra.mrb[20].mxu0 %v2315_v11  ;;  %2453 = vmatmul.mubr.f32.vlgmr.msra.gmra.mrb[36].mxu1 %v2315_v11 }
 0x3cc   :  { %10512 = vmatpush1.bf16.msra.mxu0 %v13584_v29  ;;  %10544 = vmatpush1.bf16.msra.mxu1 %v13688_v50 }
 0x3cd   :  { %v12646_v44 = vpop.eup %12645  ;;  %10514 = vmatprep.subr.bf16.mxu0 %v13589_v35  ;;  %10546 = vmatprep.subr.bf16.mxu1 %v13691_v36 }
 0x3ce   :  { %v12648_v26 = vpop.eup %12647  ;;  %v2290_v43 = vadd.f32 1.0, %v12646_v44  ;;  %2569 = vmatprep.mubr.f32.mxu0 %v15809_v58  ;;  %2640 = vmatprep.mubr.f32.mxu1 %v15809_v58  ;;  %v15912_v44 = vld [vmem:[#allocation23_spill] sm:$0xff] }
 0x3cf   :  { %v2296_v48 = vadd.f32 1.0, %v12648_v26  ;;  %v12650_v17 = vpop.eup %12649  ;;  %v15913_v26 = vld [vmem:[#allocation40_spill] sm:$0xff] }
 0x3d0   :  { %12653 = vrcp.f32 %v2290_v43  ;;  %10516 = vmatpush1.bf16.msra.mxu0 %v13598_v45  ;;  %10548 = vmatpush1.bf16.msra.mxu1 %v13697_v5  ;;  %v12652_v34 = vpop.eup %12651  ;;  %v2303_v24 = vadd.f32 1.0, %v12650_v17  ;;  %v15914_v43 = vld [vmem:[#allocation24_spill] sm:$0xff]  ;;  %v15916_v17 = vld [vmem:[#allocation25_spill] sm:$0xff] }
 0x3d1   :  { %12655 = vrcp.f32 %v2296_v48  ;;  %10518 = vmatprep.subr.bf16.mxu0 %v13604_v49  ;;  %10550 = vmatprep.subr.bf16.mxu1 %v13701_v15  ;;  %v15915_v48 = vld [vmem:[#allocation41_spill] sm:$0xff] }
 0x3d2   :  { %12657 = vrcp.f32 %v2303_v24  ;;  %v15922_v24 = vld [vmem:[#allocation28_spill] sm:$0xff] }
 0x3d4   :  { %10520 = vmatpush1.bf16.msra.mxu0 %v13614_v4  ;;  %10552 = vmatpush1.bf16.msra.mxu1 %v13707_v10 }
 0x3d5   :  { %10522 = vmatprep.subr.bf16.mxu0 %v13620_v19  ;;  %10554 = vmatprep.subr.bf16.mxu1 %v13710_v53 }
 0x3d8   :  { %10524 = vmatpush1.bf16.msra.mxu0 %v13627_v25  ;;  %10556 = vmatpush1.bf16.msra.mxu1 %v13715_v8 }
 0x3d9   :  { %10526 = vmatprep.subr.bf16.mxu0 %v13633_v39  ;;  %10558 = vmatprep.subr.bf16.mxu1 %v13718_v37 }
 0x3da   :  { %v12654_v47 = vpop.eup %12653 }
 0x3db   :  { %v12656_v32 = vpop.eup %12655  ;;  %v2310_v16 = vmul.f32 %v12654_v47, %v12652_v34  ;;  %v15917_v34 = vld [vmem:[#allocation42_spill] sm:$0xff] }
 0x3dc   :  { %v2309_v62 = vmul.f32 %v12656_v32, %v2307_v54  ;;  %10528 = vmatpush1.bf16.msra.mxu0 %v15843_v42  ;;  %10560 = vmatpush1.bf16.msra.mxu1 %v13723_v57  ;;  %v12658_v33 = vpop.eup %12657  ;;  %v15918_v47 = vld [vmem:[#allocation26_spill] sm:$0xff]  ;;  %v15919_v54 = vld [vmem:[#allocation43_spill] sm:$0xff] }
 0x3dd   :  { %10530 = vmatprep.subr.bf16.mxu0 %v13645_v60  ;;  %10562 = vmatprep.subr.bf16.mxu1 %v13726_v27  ;;  %v15920_v32 = vld [vmem:[#allocation27_spill] sm:$0xff] }
 0x3de   :  { %v14129_v40 = vadd.f32 %v2310_v16, %v2309_v62  ;;  %v15921_v16 = vld [vmem:[#allocation44_spill] sm:$0xff]  ;;  %v15923_v62 = vld [vmem:[#allocation45_spill] sm:$0xff] }
 0x3e0   :  { %10532 = vmatpush1.bf16.msra.mxu0 %v15844_v51  ;;  %10564 = vmatpush1.bf16.msra.mxu1 %v13731_v21  ;;  %12659 = vtanh.f32 %v14129_v40 }
 0x3e1   :  { %10534 = vmatprep.subr.bf16.mxu0 %v13657_v31  ;;  %10566 = vmatprep.subr.bf16.mxu1 %v13734_v12 }
 0x3e4   :  { %10536 = vmatpush1.bf16.msra.mxu0 %v13663_v41  ;;  %10568 = vmatpush1.bf16.msra.mxu1 %v13739_v22 }
 0x3e5   :  { %10538 = vmatprep.subr.bf16.mxu0 %v13669_v56  ;;  %10570 = vmatprep.subr.bf16.mxu1 %v13742_v46 }
 0x3e8   :  { %10540 = vmatpush1.bf16.msra.mxu0 %v15845_v55  ;;  %10572 = vmatpush1.bf16.msra.mxu1 %v15846_v6 }
 0x3e9   :  { %10574 = vmatprep.subr.bf16.mxu0 %v15847_v38  ;;  %10606 = vmatprep.subr.bf16.mxu1 %v15848_v20 }
 0x3ea   :  { %v12660_v13 = vpop.eup %12659 }
 0x3eb   :  { %v2313_v23 = vmul.f32 %v12660_v13, %v12658_v33  ;;  %v15924_v33 = vld [vmem:[#allocation29_spill] sm:$0xff]  ;;  %v15925_v13 = vld [vmem:[#allocation47_spill] sm:$0xff] }
 0x3ed   :  { %v2503_v11 = vrot.slane %v2313_v23, 2  ;;  %v15926_v23 = vld [vmem:[#allocation30_spill] sm:$0xff] }
 0x3ef   :  { %2570 = vmatmul.mubr.f32.vlgmr.msra.gmra.mrb[22].mxu0 %v2503_v11  ;;  %2641 = vmatmul.mubr.f32.vlgmr.msra.gmra.mrb[38].mxu1 %v2503_v11  ;;  %v15927_v11 = vld [vmem:[#allocation48_spill] sm:$0xff] }
 0x3f0   :  { %10576 = vmatpush1.bf16.msra.mxu0 %v15849_v14  ;;  %10608 = vmatpush1.bf16.msra.mxu1 %v15850_v0 }
 0x3f1   :  { %10578 = vmatprep.subr.bf16.mxu0 %v15851_v28  ;;  %10610 = vmatprep.subr.bf16.mxu1 %v15852_v30 }
 0x3f2   :  { %2745 = vmatprep.mubr.f32.mxu0 %v15809_v58  ;;  %2816 = vmatprep.mubr.f32.mxu1 %v15809_v58 }
 0x3f4   :  { %10580 = vmatpush1.bf16.msra.mxu0 %v15910_v61  ;;  %10612 = vmatpush1.bf16.msra.mxu1 %v15911_v9 }
 0x3f5   :  { %10582 = vmatprep.subr.bf16.mxu0 %v15912_v44  ;;  %10614 = vmatprep.subr.bf16.mxu1 %v15913_v26 }
 0x3f8   :  { %10584 = vmatpush1.bf16.msra.mxu0 %v15914_v43  ;;  %10616 = vmatpush1.bf16.msra.mxu1 %v15915_v48 }
 0x3f9   :  { %10586 = vmatprep.subr.bf16.mxu0 %v15916_v17  ;;  %10618 = vmatprep.subr.bf16.mxu1 %v15917_v34  ;;  %v15928_v34 = vld [vmem:[#allocation31_spill] sm:$0xff] }
 0x3fc   :  { %10588 = vmatpush1.bf16.msra.mxu0 %v15918_v47  ;;  %10620 = vmatpush1.bf16.msra.mxu1 %v15919_v54  ;;  %v15929_v47 = vld [vmem:[#allocation50_spill] sm:$0xff]  ;;  %v15930_v54 = vld [vmem:[#allocation32_spill] sm:$0xff] }
 0x3fd   :  { %10590 = vmatprep.subr.bf16.mxu0 %v15920_v32  ;;  %10622 = vmatprep.subr.bf16.mxu1 %v15921_v16  ;;  %v15931_v32 = vld [vmem:[#allocation51_spill] sm:$0xff]  ;;  %v15932_v16 = vld [vmem:[#allocation33_spill] sm:$0xff] }
 0x400   :  { %10592 = vmatpush1.bf16.msra.mxu0 %v15922_v24  ;;  %10624 = vmatpush1.bf16.msra.mxu1 %v15923_v62  ;;  %v15933_v24 = vld [vmem:[#allocation52_spill] sm:$0xff]  ;;  %v15934_v62 = vld [vmem:[#allocation35_spill] sm:$0xff] }
 0x401   :  { %10594 = vmatprep.subr.bf16.mxu0 %v15924_v33  ;;  %10626 = vmatprep.subr.bf16.mxu1 %v15925_v13  ;;  %v15935_v33 = vld [vmem:[#allocation53_spill] sm:$0xff]  ;;  %v15936_v13 = vld [vmem:[#allocation36_spill] sm:$0xff] }
 0x404   :  { %10596 = vmatpush1.bf16.msra.mxu0 %v15926_v23  ;;  %10628 = vmatpush1.bf16.msra.mxu1 %v15927_v11  ;;  %v15937_v23 = vld [vmem:[#allocation55_spill] sm:$0xff] }
 0x405   :  { %10598 = vmatprep.subr.bf16.mxu0 %v15928_v34  ;;  %10630 = vmatprep.subr.bf16.mxu1 %v15929_v47 }
 0x408   :  { %10600 = vmatpush1.bf16.msra.mxu0 %v15930_v54  ;;  %10632 = vmatpush1.bf16.msra.mxu1 %v15931_v32 }
 0x409   :  { %10602 = vmatprep.subr.bf16.mxu0 %v15932_v16  ;;  %10634 = vmatprep.subr.bf16.mxu1 %v15933_v24 }
 0x40c   :  { %10604 = vmatpush1.bf16.msra.mxu0 %v15934_v62  ;;  %10636 = vmatpush1.bf16.msra.mxu1 %v15935_v33 }
 0x40d   :  { %10638 = vmatprep.subr.bf16.mxu0 %v15936_v13  ;;  %10670 = vmatprep.subr.bf16.mxu1 %v15937_v23  ;;  %v15938_v23 = vld [vmem:[#allocation87_spill] sm:$0xff] }
 0x49e   :  { %v2383_v11 = vpop.f32.mrb[20].mxu0  ;;  %v2454_v34 = vpop.f32.mrb[36].mxu1 }
 0x49f   :  { %v2463_v17 = vrot.slane %v2383_v11, 2  ;;  %v2385_v47 = vpop.f32.mrb[21].mxu0  ;;  %v2456_v48 = vpop.f32.mrb[37].mxu1  ;;  %v2465_v13 = vrot.slane %v2454_v34, 2 }
 0x4a0   :  { %v2464_v54 = vrot.slane %v2385_v47, 2  ;;  %v2466_v26 = vrot.slane %v2456_v48, 2 }
 0x4a1   :  { %v2471_v32 = vadd.f32 %v2463_v17, %v13894_v59  ;;  %v2473_v44 = vadd.f32 %v2465_v13, %v15938_v23 }
 0x4a2   :  { %v2472_v16 = vadd.f32 %v2464_v54, %v13888_v3  ;;  %v2474_v33 = vadd.f32 %v2466_v26, %v13902_v63 }
 0x4a3   :  { %v9569_v43 = vmul.f32 -1.442695, %v2471_v32 }
 0x4a4   :  { %v9570_v24 = vmul.f32 -1.442695, %v2472_v16  ;;  %v9571_v62 = vmul.f32 -1.442695, %v2474_v33 }
 0x4a5   :  { %12661 = vpow2.f32 %v9569_v43  ;;  %v2495_v43 = vrot.slane %v14099_v7, 6 }
 0x4a6   :  { %12663 = vpow2.f32 %v9570_v24 }
 0x4a7   :  { %12665 = vpow2.f32 %v9571_v62 }
 0x4a8   :  { %12667 = vtanh.f32 %v2473_v44 }
 0x4af   :  { %v12662_v9 = vpop.eup %12661 }
 0x4b0   :  { %v12664_v11 = vpop.eup %12663  ;;  %v2478_v61 = vadd.f32 1.0, %v12662_v9 }
 0x4b1   :  { %v2484_v47 = vadd.f32 1.0, %v12664_v11  ;;  %v12666_v3 = vpop.eup %12665 }
 0x4b2   :  { %12669 = vrcp.f32 %v2478_v61  ;;  %v12668_v59 = vpop.eup %12667  ;;  %v2491_v63 = vadd.f32 1.0, %v12666_v3 }
 0x4b3   :  { %12671 = vrcp.f32 %v2484_v47 }
 0x4b4   :  { %12673 = vrcp.f32 %v2491_v63 }
 0x4bc   :  { %v12670_v17 = vpop.eup %12669 }
 0x4bd   :  { %v12672_v48 = vpop.eup %12671  ;;  %v2498_v54 = vmul.f32 %v12670_v17, %v12668_v59 }
 0x4be   :  { %v2497_v26 = vmul.f32 %v12672_v48, %v2495_v43  ;;  %v12674_v13 = vpop.eup %12673 }
 0x4c0   :  { %v14183_v34 = vadd.f32 %v2498_v54, %v2497_v26  ;;  %v2671_v54 = vrot.slane %v14129_v40, 2 }
 0x4c2   :  { %v2571_v32 = vpop.f32.mrb[22].mxu0  ;;  %v2642_v16 = vpop.f32.mrb[38].mxu1  ;;  %12675 = vtanh.f32 %v14183_v34 }
 0x4c3   :  { %v2647_v9 = vadd.f32 %v2571_v32, %v13912_v2  ;;  %v2573_v61 = vpop.f32.mrb[23].mxu0  ;;  %v2644_v44 = vpop.f32.mrb[39].mxu1  ;;  %v2649_v3 = vadd.f32 %v2642_v16, %v13929_v52 }
 0x4c4   :  { %v2648_v24 = vadd.f32 %v2573_v61, %v13915_v1  ;;  %v2650_v7 = vadd.f32 %v2644_v44, %v13935_v18 }
 0x4c5   :  { %v9572_v62 = vmul.f32 -1.442695, %v2647_v9 }
 0x4c6   :  { %v9573_v33 = vmul.f32 -1.442695, %v2648_v24  ;;  %v9574_v47 = vmul.f32 -1.442695, %v2650_v7  ;;  %v15939_v24 = vld [vmem:[#allocation22_spill] sm:$0xff]  ;;  %v15942_v7 = vld [vmem:[#allocation40_spill] sm:$0xff] }
 0x4c7   :  { %12677 = vpow2.f32 %v9572_v62  ;;  %v15940_v62 = vld [vmem:[#allocation39_spill] sm:$0xff] }
 0x4c8   :  { %12679 = vpow2.f32 %v9573_v33  ;;  %v15941_v33 = vld [vmem:[#allocation23_spill] sm:$0xff] }
 0x4c9   :  { %12681 = vpow2.f32 %v9574_v47  ;;  %v15946_v47 = vld [vmem:[#allocation42_spill] sm:$0xff] }
 0x4ca   :  { %12683 = vtanh.f32 %v2649_v3  ;;  %v15947_v3 = vld [vmem:[#allocation26_spill] sm:$0xff] }
 0x4cc   :  { %v12676_v23 = vpop.eup %12675 }
 0x4cd   :  { %v2501_v11 = vmul.f32 %v12676_v23, %v12674_v13  ;;  %v15943_v13 = vld [vmem:[#allocation24_spill] sm:$0xff]  ;;  %v15944_v23 = vld [vmem:[#allocation41_spill] sm:$0xff] }
 0x4cf   :  { %v2679_v59 = vrot.slane %v2501_v11, 6  ;;  %v15945_v11 = vld [vmem:[#allocation25_spill] sm:$0xff] }
 0x4d1   :  { %v12678_v17 = vpop.eup %12677  ;;  %2746 = vmatmul.mubr.f32.vlgmr.msra.gmra.mrb[24].mxu0 %v2679_v59  ;;  %2817 = vmatmul.mubr.f32.vlgmr.msra.gmra.mrb[40].mxu1 %v2679_v59  ;;  %v15948_v59 = vld [vmem:[#allocation43_spill] sm:$0xff] }
 0x4d2   :  { %v12680_v2 = vpop.eup %12679  ;;  %v2654_v43 = vadd.f32 1.0, %v12678_v17  ;;  %10640 = vmatpush1.bf16.msra.mxu0 %v13584_v29  ;;  %10672 = vmatpush1.bf16.msra.mxu1 %v13688_v50  ;;  %v15949_v17 = vld [vmem:[#allocation27_spill] sm:$0xff] }
 0x4d3   :  { %v2660_v1 = vadd.f32 1.0, %v12680_v2  ;;  %10642 = vmatprep.subr.bf16.mxu0 %v13589_v35  ;;  %10674 = vmatprep.subr.bf16.mxu1 %v13691_v36  ;;  %v12682_v52 = vpop.eup %12681  ;;  %v15950_v2 = vld [vmem:[#allocation44_spill] sm:$0xff] }
 0x4d4   :  { %12685 = vrcp.f32 %v2654_v43  ;;  %2918 = vmatprep.mubr.f32.mxu0 %v15809_v58  ;;  %2989 = vmatprep.mubr.f32.mxu1 %v15809_v58  ;;  %v12684_v18 = vpop.eup %12683  ;;  %v2667_v32 = vadd.f32 1.0, %v12682_v52  ;;  %v15951_v43 = vld [vmem:[#allocation28_spill] sm:$0xff]  ;;  %v15953_v52 = vld [vmem:[#allocation29_spill] sm:$0xff] }
 0x4d5   :  { %12687 = vrcp.f32 %v2660_v1  ;;  %v15952_v1 = vld [vmem:[#allocation45_spill] sm:$0xff] }
 0x4d6   :  { %10644 = vmatpush1.bf16.msra.mxu0 %v13598_v45  ;;  %10676 = vmatpush1.bf16.msra.mxu1 %v13697_v5  ;;  %12689 = vrcp.f32 %v2667_v32  ;;  %v15959_v32 = vld [vmem:[#allocation32_spill] sm:$0xff] }
 0x4d7   :  { %10646 = vmatprep.subr.bf16.mxu0 %v13604_v49  ;;  %10678 = vmatprep.subr.bf16.mxu1 %v13701_v15 }
 0x4da   :  { %10648 = vmatpush1.bf16.msra.mxu0 %v13614_v4  ;;  %10680 = vmatpush1.bf16.msra.mxu1 %v13707_v10 }
 0x4db   :  { %10650 = vmatprep.subr.bf16.mxu0 %v13620_v19  ;;  %10682 = vmatprep.subr.bf16.mxu1 %v13710_v53 }
 0x4de   :  { %v12686_v48 = vpop.eup %12685  ;;  %10652 = vmatpush1.bf16.msra.mxu0 %v13627_v25  ;;  %10684 = vmatpush1.bf16.msra.mxu1 %v13715_v8 }
 0x4df   :  { %v12688_v63 = vpop.eup %12687  ;;  %v2674_v26 = vmul.f32 %v12686_v48, %v12684_v18  ;;  %10654 = vmatprep.subr.bf16.mxu0 %v13633_v39  ;;  %10686 = vmatprep.subr.bf16.mxu1 %v13718_v37  ;;  %v15954_v18 = vld [vmem:[#allocation47_spill] sm:$0xff]  ;;  %v15955_v48 = vld [vmem:[#allocation30_spill] sm:$0xff] }
 0x4e0   :  { %v2673_v16 = vmul.f32 %v12688_v63, %v2671_v54  ;;  %v12690_v40 = vpop.eup %12689  ;;  %v15956_v54 = vld [vmem:[#allocation48_spill] sm:$0xff]  ;;  %v15957_v63 = vld [vmem:[#allocation31_spill] sm:$0xff] }
 0x4e2   :  { %v14209_v9 = vadd.f32 %v2674_v26, %v2673_v16  ;;  %10656 = vmatpush1.bf16.msra.mxu0 %v15843_v42  ;;  %10688 = vmatpush1.bf16.msra.mxu1 %v13723_v57  ;;  %v15958_v26 = vld [vmem:[#allocation50_spill] sm:$0xff]  ;;  %v15960_v16 = vld [vmem:[#allocation51_spill] sm:$0xff] }
 0x4e3   :  { %10658 = vmatprep.subr.bf16.mxu0 %v13645_v60  ;;  %10690 = vmatprep.subr.bf16.mxu1 %v13726_v27 }
 0x4e4   :  { %12691 = vtanh.f32 %v14209_v9 }
 0x4e6   :  { %10660 = vmatpush1.bf16.msra.mxu0 %v15844_v51  ;;  %10692 = vmatpush1.bf16.msra.mxu1 %v13731_v21 }
 0x4e7   :  { %10662 = vmatprep.subr.bf16.mxu0 %v13657_v31  ;;  %10694 = vmatprep.subr.bf16.mxu1 %v13734_v12 }
 0x4ea   :  { %10664 = vmatpush1.bf16.msra.mxu0 %v13663_v41  ;;  %10696 = vmatpush1.bf16.msra.mxu1 %v13739_v22 }
 0x4eb   :  { %10666 = vmatprep.subr.bf16.mxu0 %v13669_v56  ;;  %10698 = vmatprep.subr.bf16.mxu1 %v13742_v46 }
 0x4ee   :  { %v12692_v61 = vpop.eup %12691  ;;  %10668 = vmatpush1.bf16.msra.mxu0 %v15845_v55  ;;  %10700 = vmatpush1.bf16.msra.mxu1 %v15846_v6 }
 0x4ef   :  { %v2677_v44 = vmul.f32 %v12692_v61, %v12690_v40  ;;  %10702 = vmatprep.subr.bf16.mxu0 %v15847_v38  ;;  %10734 = vmatprep.subr.bf16.mxu1 %v15848_v20  ;;  %v15961_v40 = vld [vmem:[#allocation33_spill] sm:$0xff]  ;;  %v15962_v61 = vld [vmem:[#allocation52_spill] sm:$0xff] }
 0x4f1   :  { %2919 = vmatmul.mubr.f32.vlgmr.msra.gmra.mrb[26].mxu0 %v2677_v44  ;;  %2990 = vmatmul.mubr.f32.vlgmr.msra.gmra.mrb[42].mxu1 %v2677_v44  ;;  %v15963_v44 = vld [vmem:[#allocation35_spill] sm:$0xff] }
 0x4f2   :  { %10704 = vmatpush1.bf16.msra.mxu0 %v15849_v14  ;;  %10736 = vmatpush1.bf16.msra.mxu1 %v15850_v0 }
 0x4f3   :  { %10706 = vmatprep.subr.bf16.mxu0 %v15851_v28  ;;  %10738 = vmatprep.subr.bf16.mxu1 %v15852_v30 }
 0x4f4   :  { %3103 = vmatprep.mubr.f32.mxu0 %v15809_v58  ;;  %3174 = vmatprep.mubr.f32.mxu1 %v15809_v58 }
 0x4f6   :  { %10708 = vmatpush1.bf16.msra.mxu0 %v15939_v24  ;;  %10740 = vmatpush1.bf16.msra.mxu1 %v15940_v62 }
 0x4f7   :  { %10710 = vmatprep.subr.bf16.mxu0 %v15941_v33  ;;  %10742 = vmatprep.subr.bf16.mxu1 %v15942_v7 }
 0x4fa   :  { %10712 = vmatpush1.bf16.msra.mxu0 %v15943_v13  ;;  %10744 = vmatpush1.bf16.msra.mxu1 %v15944_v23 }
 0x4fb   :  { %10714 = vmatprep.subr.bf16.mxu0 %v15945_v11  ;;  %10746 = vmatprep.subr.bf16.mxu1 %v15946_v47 }
 0x4fe   :  { %10716 = vmatpush1.bf16.msra.mxu0 %v15947_v3  ;;  %10748 = vmatpush1.bf16.msra.mxu1 %v15948_v59 }
 0x4ff   :  { %10718 = vmatprep.subr.bf16.mxu0 %v15949_v17  ;;  %10750 = vmatprep.subr.bf16.mxu1 %v15950_v2  ;;  %v15968_v2 = vld [vmem:[#allocation66_spill] sm:$0xff] }
 0x502   :  { %10720 = vmatpush1.bf16.msra.mxu0 %v15951_v43  ;;  %10752 = vmatpush1.bf16.msra.mxu1 %v15952_v1  ;;  %v15967_v1 = vld [vmem:[#allocation63_spill] sm:$0xff] }
 0x503   :  { %10722 = vmatprep.subr.bf16.mxu0 %v15953_v52  ;;  %10754 = vmatprep.subr.bf16.mxu1 %v15954_v18  ;;  %v15964_v52 = vld [vmem:[#allocation53_spill] sm:$0xff]  ;;  %v15965_v18 = vld [vmem:[#allocation36_spill] sm:$0xff] }
 0x506   :  { %10724 = vmatpush1.bf16.msra.mxu0 %v15955_v48  ;;  %10756 = vmatpush1.bf16.msra.mxu1 %v15956_v54  ;;  %v15966_v48 = vld [vmem:[#allocation55_spill] sm:$0xff] }
 0x507   :  { %10726 = vmatprep.subr.bf16.mxu0 %v15957_v63  ;;  %10758 = vmatprep.subr.bf16.mxu1 %v15958_v26 }
 0x50a   :  { %10728 = vmatpush1.bf16.msra.mxu0 %v15959_v32  ;;  %10760 = vmatpush1.bf16.msra.mxu1 %v15960_v16 }
 0x50b   :  { %10730 = vmatprep.subr.bf16.mxu0 %v15961_v40  ;;  %10762 = vmatprep.subr.bf16.mxu1 %v15962_v61  ;;  %v15969_v61 = vld [vmem:[#allocation74_spill] sm:$0xff] }
 0x50e   :  { %10732 = vmatpush1.bf16.msra.mxu0 %v15963_v44  ;;  %10764 = vmatpush1.bf16.msra.mxu1 %v15964_v52  ;;  %v15970_v52 = vld [vmem:[#allocation72_spill] sm:$0xff] }
 0x50f   :  { %10766 = vmatprep.subr.bf16.mxu0 %v15965_v18  ;;  %10798 = vmatprep.subr.bf16.mxu1 %v15966_v48 }
 0x5a4   :  { %v2747_v54 = vpop.f32.mrb[24].mxu0  ;;  %v2818_v63 = vpop.f32.mrb[40].mxu1 }
 0x5a5   :  { %v2823_v26 = vadd.f32 %v2747_v54, %v15967_v1  ;;  %v2749_v43 = vpop.f32.mrb[25].mxu0  ;;  %v2820_v32 = vpop.f32.mrb[41].mxu1  ;;  %v2825_v3 = vadd.f32 %v2818_v63, %v15970_v52 }
 0x5a6   :  { %v2824_v16 = vadd.f32 %v2749_v43, %v15968_v2  ;;  %v2826_v44 = vadd.f32 %v2820_v32, %v15969_v61  ;;  %v15972_v61 = vld [vmem:[#allocation76_spill] sm:$0xff] }
 0x5a7   :  { %v9575_v17 = vmul.f32 -1.442695, %v2823_v26  ;;  %v2847_v26 = vrot.slane %v14183_v34, 6 }
 0x5a8   :  { %v9576_v40 = vmul.f32 -1.442695, %v2824_v16  ;;  %v9577_v59 = vmul.f32 -1.442695, %v2826_v44 }
 0x5a9   :  { %12693 = vpow2.f32 %v9575_v17 }
 0x5aa   :  { %12695 = vpow2.f32 %v9576_v40 }
 0x5ab   :  { %12697 = vpow2.f32 %v9577_v59 }
 0x5ac   :  { %12699 = vtanh.f32 %v2825_v3 }
 0x5b3   :  { %v12694_v18 = vpop.eup %12693 }
 0x5b4   :  { %v12696_v47 = vpop.eup %12695  ;;  %v2830_v48 = vadd.f32 1.0, %v12694_v18 }
 0x5b5   :  { %v2836_v11 = vadd.f32 1.0, %v12696_v47  ;;  %v12698_v54 = vpop.eup %12697 }
 0x5b6   :  { %12701 = vrcp.f32 %v2830_v48  ;;  %v12700_v1 = vpop.eup %12699  ;;  %v2843_v40 = vadd.f32 1.0, %v12698_v54  ;;  %v15973_v54 = vld [vmem:[#allocation78_spill] sm:$0xff] }
 0x5b7   :  { %12703 = vrcp.f32 %v2836_v11  ;;  %v15971_v11 = vld [vmem:[#allocation75_spill] sm:$0xff] }
 0x5b8   :  { %12705 = vrcp.f32 %v2843_v40 }
 0x5c0   :  { %v12702_v43 = vpop.eup %12701 }
 0x5c1   :  { %v12704_v17 = vpop.eup %12703  ;;  %v2850_v16 = vmul.f32 %v12702_v43, %v12700_v1 }
 0x5c2   :  { %v2849_v32 = vmul.f32 %v12704_v17, %v2847_v26  ;;  %v12706_v26 = vpop.eup %12705 }
 0x5c4   :  { %v14267_v44 = vadd.f32 %v2850_v16, %v2849_v32  ;;  %v2920_v63 = vpop.f32.mrb[26].mxu0  ;;  %v2991_v52 = vpop.f32.mrb[42].mxu1 }
 0x5c5   :  { %v3000_v18 = vrot.slane %v2920_v63, 2  ;;  %v2922_v59 = vpop.f32.mrb[27].mxu0  ;;  %v2993_v3 = vpop.f32.mrb[43].mxu1  ;;  %v3002_v17 = vrot.slane %v2991_v52, 2  ;;  %v15974_v63 = vld [vmem:[#allocation77_spill] sm:$0xff] }
 0x5c6   :  { %v3001_v47 = vrot.slane %v2922_v59, 2  ;;  %12707 = vtanh.f32 %v14267_v44  ;;  %v3003_v1 = vrot.slane %v2993_v3, 2 }
 0x5c7   :  { %v3008_v48 = vadd.f32 %v3000_v18, %v15971_v11  ;;  %v3010_v59 = vadd.f32 %v3002_v17, %v15974_v63 }
 0x5c8   :  { %v3009_v2 = vadd.f32 %v3001_v47, %v15972_v61  ;;  %v3011_v43 = vadd.f32 %v3003_v1, %v15973_v54 }
 0x5c9   :  { %v9578_v34 = vmul.f32 -1.442695, %v3008_v48 }
 0x5ca   :  { %v9579_v23 = vmul.f32 -1.442695, %v3009_v2  ;;  %v9580_v32 = vmul.f32 -1.442695, %v3011_v43 }
 0x5cb   :  { %12709 = vpow2.f32 %v9578_v34  ;;  %v3032_v34 = vrot.slane %v14209_v9, 2 }
 0x5cc   :  { %12711 = vpow2.f32 %v9579_v23 }
 0x5cd   :  { %12713 = vpow2.f32 %v9580_v32 }
 0x5ce   :  { %12715 = vtanh.f32 %v3010_v59 }
 0x5d0   :  { %v12708_v16 = vpop.eup %12707 }
 0x5d1   :  { %v2853_v40 = vmul.f32 %v12708_v16, %v12706_v26 }
 0x5d3   :  { %3104 = vmatmul.mubr.f32.vlgmr.msra.gmra.mrb[28].mxu0 %v2853_v40  ;;  %3175 = vmatmul.mubr.f32.vlgmr.msra.gmra.mrb[44].mxu1 %v2853_v40 }
 0x5d4   :  { %10768 = vmatpush1.bf16.msra.mxu0 %v13584_v29  ;;  %10800 = vmatpush1.bf16.msra.mxu1 %v13688_v50 }
 0x5d5   :  { %v12710_v18 = vpop.eup %12709  ;;  %10770 = vmatprep.subr.bf16.mxu0 %v13589_v35  ;;  %10802 = vmatprep.subr.bf16.mxu1 %v13691_v36 }
 0x5d6   :  { %v12712_v23 = vpop.eup %12711  ;;  %v3015_v2 = vadd.f32 1.0, %v12710_v18  ;;  %3291 = vmatprep.mubr.f32.mxu0 %v15809_v58  ;;  %3362 = vmatprep.mubr.f32.mxu1 %v15809_v58  ;;  %v15975_v18 = vld [vmem:[#allocation41_spill] sm:$0xff] }
 0x5d7   :  { %v3021_v52 = vadd.f32 1.0, %v12712_v23  ;;  %v12714_v3 = vpop.eup %12713  ;;  %v15976_v23 = vld [vmem:[#allocation25_spill] sm:$0xff] }
 0x5d8   :  { %12717 = vrcp.f32 %v3015_v2  ;;  %10772 = vmatpush1.bf16.msra.mxu0 %v13598_v45  ;;  %10804 = vmatpush1.bf16.msra.mxu1 %v13697_v5  ;;  %v12716_v47 = vpop.eup %12715  ;;  %v3028_v26 = vadd.f32 1.0, %v12714_v3  ;;  %v15977_v2 = vld [vmem:[#allocation42_spill] sm:$0xff]  ;;  %v15979_v3 = vld [vmem:[#allocation43_spill] sm:$0xff] }
 0x5d9   :  { %12719 = vrcp.f32 %v3021_v52  ;;  %10774 = vmatprep.subr.bf16.mxu0 %v13604_v49  ;;  %10806 = vmatprep.subr.bf16.mxu1 %v13701_v15  ;;  %v15978_v52 = vld [vmem:[#allocation26_spill] sm:$0xff] }
 0x5da   :  { %12721 = vrcp.f32 %v3028_v26  ;;  %v15985_v26 = vld [vmem:[#allocation47_spill] sm:$0xff] }
 0x5dc   :  { %10776 = vmatpush1.bf16.msra.mxu0 %v13614_v4  ;;  %10808 = vmatpush1.bf16.msra.mxu1 %v13707_v10 }
 0x5dd   :  { %10778 = vmatprep.subr.bf16.mxu0 %v13620_v19  ;;  %10810 = vmatprep.subr.bf16.mxu1 %v13710_v53 }
 0x5e0   :  { %10780 = vmatpush1.bf16.msra.mxu0 %v13627_v25  ;;  %10812 = vmatpush1.bf16.msra.mxu1 %v13715_v8 }
 0x5e1   :  { %10782 = vmatprep.subr.bf16.mxu0 %v13633_v39  ;;  %10814 = vmatprep.subr.bf16.mxu1 %v13718_v37 }
 0x5e2   :  { %v12718_v48 = vpop.eup %12717 }
 0x5e3   :  { %v12720_v1 = vpop.eup %12719  ;;  %v3035_v43 = vmul.f32 %v12718_v48, %v12716_v47  ;;  %v15980_v47 = vld [vmem:[#allocation27_spill] sm:$0xff]  ;;  %v15981_v48 = vld [vmem:[#allocation44_spill] sm:$0xff] }
 0x5e4   :  { %v3034_v17 = vmul.f32 %v12720_v1, %v3032_v34  ;;  %10784 = vmatpush1.bf16.msra.mxu0 %v15843_v42  ;;  %10816 = vmatpush1.bf16.msra.mxu1 %v13723_v57  ;;  %v12722_v9 = vpop.eup %12721  ;;  %v15982_v34 = vld [vmem:[#allocation28_spill] sm:$0xff]  ;;  %v15983_v1 = vld [vmem:[#allocation45_spill] sm:$0xff] }
 0x5e5   :  { %10786 = vmatprep.subr.bf16.mxu0 %v13645_v60  ;;  %10818 = vmatprep.subr.bf16.mxu1 %v13726_v27 }
 0x5e6   :  { %v14297_v16 = vadd.f32 %v3035_v43, %v3034_v17  ;;  %v15984_v43 = vld [vmem:[#allocation29_spill] sm:$0xff]  ;;  %v15986_v17 = vld [vmem:[#allocation30_spill] sm:$0xff] }
 0x5e8   :  { %10788 = vmatpush1.bf16.msra.mxu0 %v15844_v51  ;;  %10820 = vmatpush1.bf16.msra.mxu1 %v13731_v21  ;;  %12723 = vtanh.f32 %v14297_v16 }
 0x5e9   :  { %10790 = vmatprep.subr.bf16.mxu0 %v13657_v31  ;;  %10822 = vmatprep.subr.bf16.mxu1 %v13734_v12 }
 0x5ec   :  { %10792 = vmatpush1.bf16.msra.mxu0 %v13663_v41  ;;  %10824 = vmatpush1.bf16.msra.mxu1 %v13739_v22 }
 0x5ed   :  { %10794 = vmatprep.subr.bf16.mxu0 %v13669_v56  ;;  %10826 = vmatprep.subr.bf16.mxu1 %v13742_v46 }
 0x5f0   :  { %10796 = vmatpush1.bf16.msra.mxu0 %v15845_v55  ;;  %10828 = vmatpush1.bf16.msra.mxu1 %v15846_v6 }
 0x5f1   :  { %10830 = vmatprep.subr.bf16.mxu0 %v15847_v38  ;;  %10862 = vmatprep.subr.bf16.mxu1 %v15848_v20 }
 0x5f2   :  { %v12724_v40 = vpop.eup %12723 }
 0x5f3   :  { %v3038_v32 = vmul.f32 %v12724_v40, %v12722_v9  ;;  %v15987_v9 = vld [vmem:[#allocation48_spill] sm:$0xff]  ;;  %v15988_v40 = vld [vmem:[#allocation31_spill] sm:$0xff] }
 0x5f5   :  { %v3225_v59 = vrot.slane %v3038_v32, 6  ;;  %v15989_v32 = vld [vmem:[#allocation50_spill] sm:$0xff] }
 0x5f7   :  { %3292 = vmatmul.mubr.f32.vlgmr.msra.gmra.mrb[30].mxu0 %v3225_v59  ;;  %3363 = vmatmul.mubr.f32.vlgmr.msra.gmra.mrb[46].mxu1 %v3225_v59  ;;  %v15990_v59 = vld [vmem:[#allocation32_spill] sm:$0xff] }
 0x5f8   :  { %10832 = vmatpush1.bf16.msra.mxu0 %v15849_v14  ;;  %10864 = vmatpush1.bf16.msra.mxu1 %v15850_v0 }
 0x5f9   :  { %10834 = vmatprep.subr.bf16.mxu0 %v15851_v28  ;;  %10866 = vmatprep.subr.bf16.mxu1 %v15852_v30 }
 0x5fa   :  { %3479 = vmatprep.mubr.f32.mxu0 %v15809_v58  ;;  %3550 = vmatprep.mubr.f32.mxu1 %v15809_v58 }
 0x5fc   :  { %10836 = vmatpush1.bf16.msra.mxu0 %v15939_v24  ;;  %10868 = vmatpush1.bf16.msra.mxu1 %v15940_v62 }
 0x5fd   :  { %10838 = vmatprep.subr.bf16.mxu0 %v15941_v33  ;;  %10870 = vmatprep.subr.bf16.mxu1 %v15942_v7 }
 0x600   :  { %10840 = vmatpush1.bf16.msra.mxu0 %v15943_v13  ;;  %10872 = vmatpush1.bf16.msra.mxu1 %v15975_v18 }
 0x601   :  { %10842 = vmatprep.subr.bf16.mxu0 %v15976_v23  ;;  %10874 = vmatprep.subr.bf16.mxu1 %v15977_v2  ;;  %v15998_v2 = vld [vmem:[#allocation63_spill] sm:$0xff]  ;;  %v15999_v23 = vld [vmem:[#allocation66_spill] sm:$0xff] }
 0x604   :  { %10844 = vmatpush1.bf16.msra.mxu0 %v15978_v52  ;;  %10876 = vmatpush1.bf16.msra.mxu1 %v15979_v3 }
 0x605   :  { %10846 = vmatprep.subr.bf16.mxu0 %v15980_v47  ;;  %10878 = vmatprep.subr.bf16.mxu1 %v15981_v48  ;;  %v15991_v47 = vld [vmem:[#allocation51_spill] sm:$0xff]  ;;  %v15992_v48 = vld [vmem:[#allocation33_spill] sm:$0xff] }
 0x608   :  { %10848 = vmatpush1.bf16.msra.mxu0 %v15982_v34  ;;  %10880 = vmatpush1.bf16.msra.mxu1 %v15983_v1  ;;  %v15993_v34 = vld [vmem:[#allocation52_spill] sm:$0xff]  ;;  %v15994_v1 = vld [vmem:[#allocation35_spill] sm:$0xff] }
 0x609   :  { %10850 = vmatprep.subr.bf16.mxu0 %v15984_v43  ;;  %10882 = vmatprep.subr.bf16.mxu1 %v15985_v26  ;;  %v15995_v43 = vld [vmem:[#allocation53_spill] sm:$0xff]  ;;  %v15996_v26 = vld [vmem:[#allocation36_spill] sm:$0xff] }
 0x60c   :  { %10852 = vmatpush1.bf16.msra.mxu0 %v15986_v17  ;;  %10884 = vmatpush1.bf16.msra.mxu1 %v15987_v9  ;;  %v15997_v17 = vld [vmem:[#allocation55_spill] sm:$0xff] }
 0x60d   :  { %10854 = vmatprep.subr.bf16.mxu0 %v15988_v40  ;;  %10886 = vmatprep.subr.bf16.mxu1 %v15989_v32 }
 0x610   :  { %10856 = vmatpush1.bf16.msra.mxu0 %v15990_v59  ;;  %10888 = vmatpush1.bf16.msra.mxu1 %v15991_v47 }
 0x611   :  { %10858 = vmatprep.subr.bf16.mxu0 %v15992_v48  ;;  %10890 = vmatprep.subr.bf16.mxu1 %v15993_v34 }
 0x614   :  { %10860 = vmatpush1.bf16.msra.mxu0 %v15994_v1  ;;  %10892 = vmatpush1.bf16.msra.mxu1 %v15995_v43  ;;  %v16000_v43 = vld [vmem:[#allocation74_spill] sm:$0xff] }
 0x615   :  { %10894 = vmatprep.subr.bf16.mxu0 %v15996_v26  ;;  %10926 = vmatprep.subr.bf16.mxu1 %v15997_v17  ;;  %v16001_v17 = vld [vmem:[#allocation72_spill] sm:$0xff] }
 0x6a6   :  { %v3105_v9 = vpop.f32.mrb[28].mxu0  ;;  %v3176_v40 = vpop.f32.mrb[44].mxu1 }
 0x6a7   :  { %v3185_v3 = vrot.slane %v3105_v9, 6  ;;  %v3107_v32 = vpop.f32.mrb[29].mxu0  ;;  %v3178_v52 = vpop.f32.mrb[45].mxu1  ;;  %v3187_v26 = vrot.slane %v3176_v40, 6 }
 0x6a8   :  { %v3186_v59 = vrot.slane %v3107_v32, 6  ;;  %v3188_v13 = vrot.slane %v3178_v52, 6 }
 0x6a9   :  { %v3193_v47 = vadd.f32 %v3185_v3, %v15998_v2  ;;  %v3195_v33 = vadd.f32 %v3187_v26, %v16001_v17 }
 0x6aa   :  { %v3194_v48 = vadd.f32 %v3186_v59, %v15999_v23  ;;  %v3196_v1 = vadd.f32 %v3188_v13, %v16000_v43 }
 0x6ab   :  { %v9581_v18 = vmul.f32 -1.442695, %v3193_v47 }
 0x6ac   :  { %v9582_v34 = vmul.f32 -1.442695, %v3194_v48  ;;  %v9583_v7 = vmul.f32 -1.442695, %v3196_v1 }
 0x6ad   :  { %12725 = vpow2.f32 %v9581_v18  ;;  %v3217_v18 = vrot.slane %v14267_v44, 6 }
 0x6ae   :  { %12727 = vpow2.f32 %v9582_v34 }
 0x6af   :  { %12729 = vpow2.f32 %v9583_v7 }
 0x6b0   :  { %12731 = vtanh.f32 %v3195_v33 }
 0x6b7   :  { %v12726_v62 = vpop.eup %12725 }
 0x6b8   :  { %v12728_v9 = vpop.eup %12727  ;;  %v3200_v24 = vadd.f32 1.0, %v12726_v62 }
 0x6b9   :  { %v3206_v32 = vadd.f32 1.0, %v12728_v9  ;;  %v12730_v3 = vpop.eup %12729 }
 0x6ba   :  { %12733 = vrcp.f32 %v3200_v24  ;;  %v12732_v47 = vpop.eup %12731  ;;  %v3213_v13 = vadd.f32 1.0, %v12730_v3 }
 0x6bb   :  { %12735 = vrcp.f32 %v3206_v32 }
 0x6bc   :  { %12737 = vrcp.f32 %v3213_v13 }
 0x6c4   :  { %v12734_v48 = vpop.eup %12733 }
 0x6c5   :  { %v12736_v52 = vpop.eup %12735  ;;  %v3220_v34 = vmul.f32 %v12734_v48, %v12732_v47 }
 0x6c6   :  { %v3219_v40 = vmul.f32 %v12736_v52, %v3217_v18  ;;  %v12738_v3 = vpop.eup %12737 }
 0x6c8   :  { %v14351_v1 = vadd.f32 %v3220_v34, %v3219_v40 }
 0x6ca   :  { %v3293_v26 = vpop.f32.mrb[30].mxu0  ;;  %v3364_v59 = vpop.f32.mrb[46].mxu1  ;;  %12739 = vtanh.f32 %v14351_v1 }
 0x6cb   :  { %v3373_v62 = vrot.slane %v3293_v26, 4  ;;  %v3295_v33 = vpop.f32.mrb[31].mxu0  ;;  %v3366_v24 = vpop.f32.mrb[47].mxu1  ;;  %v3375_v52 = vrot.slane %v3364_v59, 4 }
 0x6cc   :  { %v3374_v7 = vrot.slane %v3295_v33, 4  ;;  %v3376_v47 = vrot.slane %v3366_v24, 4 }
 0x6cd   :  { %v3381_v9 = vadd.f32 %v3373_v62, %v15971_v11  ;;  %v3383_v26 = vadd.f32 %v3375_v52, %v15974_v63 }
 0x6ce   :  { %v3382_v32 = vadd.f32 %v3374_v7, %v15972_v61  ;;  %v3384_v18 = vadd.f32 %v3376_v47, %v15973_v54 }
 0x6cf   :  { %v9584_v44 = vmul.f32 -1.442695, %v3381_v9 }
 0x6d0   :  { %v9585_v17 = vmul.f32 -1.442695, %v3382_v32  ;;  %v9586_v40 = vmul.f32 -1.442695, %v3384_v18  ;;  %v3405_v32 = vrot.slane %v14297_v16, 2 }
 0x6d1   :  { %12741 = vpow2.f32 %v9584_v44 }
 0x6d2   :  { %12743 = vpow2.f32 %v9585_v17 }
 0x6d3   :  { %12745 = vpow2.f32 %v9586_v40  ;;  %v16004_v40 = vld [vmem:[#allocation23_spill] sm:$0xff] }
 0x6d4   :  { %v12740_v48 = vpop.eup %12739  ;;  %12747 = vtanh.f32 %v3383_v26  ;;  %v16005_v26 = vld [vmem:[#allocation40_spill] sm:$0xff] }
 0x6d5   :  { %v3223_v34 = vmul.f32 %v12740_v48, %v12738_v3 }
 0x6d7   :  { %v3413_v13 = vrot.slane %v3223_v34, 2 }
 0x6d9   :  { %3480 = vmatmul.mubr.f32.vlgmr.msra.gmra.mrb[32].mxu0 %v3413_v13  ;;  %3551 = vmatmul.mubr.f32.vlgmr.msra.gmra.mrb[48].mxu1 %v3413_v13 }
 0x6da   :  { %10896 = vmatpush1.bf16.msra.mxu0 %v13584_v29  ;;  %10928 = vmatpush1.bf16.msra.mxu1 %v13688_v50 }
 0x6db   :  { %v12742_v62 = vpop.eup %12741  ;;  %10898 = vmatprep.subr.bf16.mxu0 %v13589_v35  ;;  %10930 = vmatprep.subr.bf16.mxu1 %v13691_v36 }
 0x6dc   :  { %v12744_v17 = vpop.eup %12743  ;;  %v3388_v33 = vadd.f32 1.0, %v12742_v62  ;;  %3667 = vmatprep.mubr.f32.mxu0 %v15809_v58  ;;  %3738 = vmatprep.mubr.f32.mxu1 %v15809_v58  ;;  %v16006_v62 = vld [vmem:[#allocation24_spill] sm:$0xff] }
 0x6dd   :  { %v3394_v59 = vadd.f32 1.0, %v12744_v17  ;;  %v12746_v24 = vpop.eup %12745  ;;  %v16011_v17 = vld [vmem:[#allocation43_spill] sm:$0xff] }
 0x6de   :  { %12749 = vrcp.f32 %v3388_v33  ;;  %10900 = vmatpush1.bf16.msra.mxu0 %v13598_v45  ;;  %10932 = vmatpush1.bf16.msra.mxu1 %v13697_v5  ;;  %v12748_v7 = vpop.eup %12747  ;;  %v3401_v3 = vadd.f32 1.0, %v12746_v24  ;;  %v16012_v33 = vld [vmem:[#allocation27_spill] sm:$0xff]  ;;  %v16014_v24 = vld [vmem:[#allocation28_spill] sm:$0xff] }
 0x6df   :  { %12751 = vrcp.f32 %v3394_v59  ;;  %10902 = vmatprep.subr.bf16.mxu0 %v13604_v49  ;;  %10934 = vmatprep.subr.bf16.mxu1 %v13701_v15  ;;  %v16013_v59 = vld [vmem:[#allocation44_spill] sm:$0xff] }
 0x6e0   :  { %12753 = vrcp.f32 %v3401_v3  ;;  %v16020_v3 = vld [vmem:[#allocation31_spill] sm:$0xff] }
 0x6e2   :  { %10904 = vmatpush1.bf16.msra.mxu0 %v13614_v4  ;;  %10936 = vmatpush1.bf16.msra.mxu1 %v13707_v10 }
 0x6e3   :  { %10906 = vmatprep.subr.bf16.mxu0 %v13620_v19  ;;  %10938 = vmatprep.subr.bf16.mxu1 %v13710_v53 }
 0x6e6   :  { %10908 = vmatpush1.bf16.msra.mxu0 %v13627_v25  ;;  %10940 = vmatpush1.bf16.msra.mxu1 %v13715_v8 }
 0x6e7   :  { %10910 = vmatprep.subr.bf16.mxu0 %v13633_v39  ;;  %10942 = vmatprep.subr.bf16.mxu1 %v13718_v37 }
 0x6e8   :  { %v12750_v9 = vpop.eup %12749 }
 0x6e9   :  { %v12752_v44 = vpop.eup %12751  ;;  %v3408_v47 = vmul.f32 %v12750_v9, %v12748_v7  ;;  %v16015_v7 = vld [vmem:[#allocation45_spill] sm:$0xff] }
 0x6ea   :  { %v3407_v48 = vmul.f32 %v12752_v44, %v3405_v32  ;;  %10912 = vmatpush1.bf16.msra.mxu0 %v15843_v42  ;;  %10944 = vmatpush1.bf16.msra.mxu1 %v13723_v57  ;;  %v12754_v16 = vpop.eup %12753  ;;  %v16016_v9 = vld [vmem:[#allocation29_spill] sm:$0xff]  ;;  %v16017_v32 = vld [vmem:[#allocation47_spill] sm:$0xff]  ;;  %v16018_v44 = vld [vmem:[#allocation30_spill] sm:$0xff] }
 0x6eb   :  { %10914 = vmatprep.subr.bf16.mxu0 %v13645_v60  ;;  %10946 = vmatprep.subr.bf16.mxu1 %v13726_v27 }
 0x6ec   :  { %v14381_v18 = vadd.f32 %v3408_v47, %v3407_v48  ;;  %v16019_v47 = vld [vmem:[#allocation48_spill] sm:$0xff]  ;;  %v16021_v48 = vld [vmem:[#allocation50_spill] sm:$0xff] }
 0x6ee   :  { %10916 = vmatpush1.bf16.msra.mxu0 %v15844_v51  ;;  %10948 = vmatpush1.bf16.msra.mxu1 %v13731_v21  ;;  %12755 = vtanh.f32 %v14381_v18 }
 0x6ef   :  { %10918 = vmatprep.subr.bf16.mxu0 %v13657_v31  ;;  %10950 = vmatprep.subr.bf16.mxu1 %v13734_v12 }
 0x6f2   :  { %10920 = vmatpush1.bf16.msra.mxu0 %v13663_v41  ;;  %10952 = vmatpush1.bf16.msra.mxu1 %v13739_v22 }
 0x6f3   :  { %10922 = vmatprep.subr.bf16.mxu0 %v13669_v56  ;;  %10954 = vmatprep.subr.bf16.mxu1 %v13742_v46 }
 0x6f6   :  { %10924 = vmatpush1.bf16.msra.mxu0 %v15845_v55  ;;  %10956 = vmatpush1.bf16.msra.mxu1 %v15846_v6 }
 0x6f7   :  { %10958 = vmatprep.subr.bf16.mxu0 %v15847_v38  ;;  %10990 = vmatprep.subr.bf16.mxu1 %v15848_v20  ;;  %v16002_v38 = vld [vmem:[#allocation22_spill] sm:$0xff]  ;;  %v16003_v20 = vld [vmem:[#allocation39_spill] sm:$0xff] }
 0x6f8   :  { %v12756_v52 = vpop.eup %12755 }
 0x6f9   :  { %v3411_v34 = vmul.f32 %v12756_v52, %v12754_v16  ;;  %v16022_v16 = vld [vmem:[#allocation32_spill] sm:$0xff]  ;;  %v16023_v52 = vld [vmem:[#allocation51_spill] sm:$0xff] }
 0x6fb   :  { %v3601_v13 = vrot.slane %v3411_v34, 4  ;;  %v16024_v34 = vld [vmem:[#allocation33_spill] sm:$0xff] }
 0x6fd   :  { %3668 = vmatmul.mubr.f32.vlgmr.msra.gmra.mrb[34].mxu0 %v3601_v13  ;;  %3739 = vmatmul.mubr.f32.vlgmr.msra.gmra.mrb[50].mxu1 %v3601_v13  ;;  %v16025_v13 = vld [vmem:[#allocation52_spill] sm:$0xff] }
 0x6fe   :  { %10960 = vmatpush1.bf16.msra.mxu0 %v15849_v14  ;;  %10992 = vmatpush1.bf16.msra.mxu1 %v15850_v0  ;;  %v16007_v14 = vld [vmem:[#allocation41_spill] sm:$0xff] }
 0x6ff   :  { %10962 = vmatprep.subr.bf16.mxu0 %v15851_v28  ;;  %10994 = vmatprep.subr.bf16.mxu1 %v15852_v30  ;;  %v16008_v0 = vld [vmem:[#allocation25_spill] sm:$0xff]  ;;  %v16009_v28 = vld [vmem:[#allocation42_spill] sm:$0xff] }
 0x700   :  { %3855 = vmatprep.mubr.f32.mxu0 %v15809_v58  ;;  %3926 = vmatprep.mubr.f32.mxu1 %v15809_v58  ;;  %v16010_v30 = vld [vmem:[#allocation26_spill] sm:$0xff] }
 0x702   :  { %10964 = vmatpush1.bf16.msra.mxu0 %v16002_v38  ;;  %10996 = vmatpush1.bf16.msra.mxu1 %v16003_v20  ;;  %v16026_v38 = vld [vmem:[#allocation35_spill] sm:$0xff]  ;;  %v16027_v20 = vld [vmem:[#allocation53_spill] sm:$0xff] }
 0x703   :  { %10966 = vmatprep.subr.bf16.mxu0 %v16004_v40  ;;  %10998 = vmatprep.subr.bf16.mxu1 %v16005_v26  ;;  %v16028_v40 = vld [vmem:[#allocation36_spill] sm:$0xff]  ;;  %v16029_v26 = vld [vmem:[#allocation55_spill] sm:$0xff] }
 0x706   :  { %10968 = vmatpush1.bf16.msra.mxu0 %v16006_v62  ;;  %11000 = vmatpush1.bf16.msra.mxu1 %v16007_v14 }
 0x707   :  { %10970 = vmatprep.subr.bf16.mxu0 %v16008_v0  ;;  %11002 = vmatprep.subr.bf16.mxu1 %v16009_v28 }
 0x70a   :  { %10972 = vmatpush1.bf16.msra.mxu0 %v16010_v30  ;;  %11004 = vmatpush1.bf16.msra.mxu1 %v16011_v17 }
 0x70b   :  { %10974 = vmatprep.subr.bf16.mxu0 %v16012_v33  ;;  %11006 = vmatprep.subr.bf16.mxu1 %v16013_v59 }
 0x70e   :  { %10976 = vmatpush1.bf16.msra.mxu0 %v16014_v24  ;;  %11008 = vmatpush1.bf16.msra.mxu1 %v16015_v7 }
 0x70f   :  { %10978 = vmatprep.subr.bf16.mxu0 %v16016_v9  ;;  %11010 = vmatprep.subr.bf16.mxu1 %v16017_v32 }
 0x712   :  { %10980 = vmatpush1.bf16.msra.mxu0 %v16018_v44  ;;  %11012 = vmatpush1.bf16.msra.mxu1 %v16019_v47 }
 0x713   :  { %10982 = vmatprep.subr.bf16.mxu0 %v16020_v3  ;;  %11014 = vmatprep.subr.bf16.mxu1 %v16021_v48  ;;  %v16030_v3 = vld [vmem:[#allocation72_spill] sm:$0xff] }
 0x716   :  { %10984 = vmatpush1.bf16.msra.mxu0 %v16022_v16  ;;  %11016 = vmatpush1.bf16.msra.mxu1 %v16023_v52 }
 0x717   :  { %10986 = vmatprep.subr.bf16.mxu0 %v16024_v34  ;;  %11018 = vmatprep.subr.bf16.mxu1 %v16025_v13 }
 0x71a   :  { %10988 = vmatpush1.bf16.msra.mxu0 %v16026_v38  ;;  %11020 = vmatpush1.bf16.msra.mxu1 %v16027_v20 }
 0x71b   :  { %11022 = vmatprep.subr.bf16.mxu0 %v16028_v40  ;;  %11054 = vmatprep.subr.bf16.mxu1 %v16029_v26  ;;  %v3593_v26 = vrot.slane %v14351_v1, 6 }
 0x7ac   :  { %v3481_v62 = vpop.f32.mrb[32].mxu0  ;;  %v3552_v14 = vpop.f32.mrb[48].mxu1 }
 0x7ad   :  { %v3561_v0 = vrot.slane %v3481_v62, 4  ;;  %v3483_v28 = vpop.f32.mrb[33].mxu0  ;;  %v3554_v30 = vpop.f32.mrb[49].mxu1  ;;  %v3563_v44 = vrot.slane %v3552_v14, 4 }
 0x7ae   :  { %v3562_v17 = vrot.slane %v3483_v28, 4  ;;  %v3564_v9 = vrot.slane %v3554_v30, 4 }
 0x7af   :  { %v3569_v33 = vadd.f32 %v3561_v0, %v15998_v2  ;;  %v3571_v48 = vadd.f32 %v3563_v44, %v16030_v3 }
 0x7b0   :  { %v3570_v59 = vadd.f32 %v3562_v17, %v15999_v23  ;;  %v3572_v32 = vadd.f32 %v3564_v9, %v16000_v43 }
 0x7b1   :  { %v9587_v24 = vmul.f32 -1.442695, %v3569_v33 }
 0x7b2   :  { %v9588_v7 = vmul.f32 -1.442695, %v3570_v59  ;;  %v9589_v47 = vmul.f32 -1.442695, %v3572_v32 }
 0x7b3   :  { %12757 = vpow2.f32 %v9587_v24 }
 0x7b4   :  { %12759 = vpow2.f32 %v9588_v7 }
 0x7b5   :  { %12761 = vpow2.f32 %v9589_v47 }
 0x7b6   :  { %12763 = vtanh.f32 %v3571_v48 }
 0x7bd   :  { %v12758_v16 = vpop.eup %12757 }
 0x7be   :  { %v12760_v52 = vpop.eup %12759  ;;  %v3576_v34 = vadd.f32 1.0, %v12758_v16 }
 0x7bf   :  { %v3582_v13 = vadd.f32 1.0, %v12760_v52  ;;  %v12762_v38 = vpop.eup %12761 }
 0x7c0   :  { %12765 = vrcp.f32 %v3576_v34  ;;  %v12764_v20 = vpop.eup %12763  ;;  %v3589_v28 = vadd.f32 1.0, %v12762_v38 }
 0x7c1   :  { %12767 = vrcp.f32 %v3582_v13 }
 0x7c2   :  { %12769 = vrcp.f32 %v3589_v28 }
 0x7ca   :  { %v12766_v40 = vpop.eup %12765 }
 0x7cb   :  { %v12768_v62 = vpop.eup %12767  ;;  %v3596_v0 = vmul.f32 %v12766_v40, %v12764_v20 }
 0x7cc   :  { %v3595_v14 = vmul.f32 %v12768_v62, %v3593_v26  ;;  %v12770_v16 = vpop.eup %12769 }
 0x7ce   :  { %v14435_v30 = vadd.f32 %v3596_v0, %v3595_v14 }
 0x7d0   :  { %v3669_v17 = vpop.f32.mrb[34].mxu0  ;;  %v3740_v33 = vpop.f32.mrb[50].mxu1  ;;  %12771 = vtanh.f32 %v14435_v30 }
 0x7d1   :  { %v3749_v59 = vrot.slane %v3669_v17, 6  ;;  %v3671_v24 = vpop.f32.mrb[35].mxu0  ;;  %v3742_v7 = vpop.f32.mrb[51].mxu1  ;;  %v3751_v13 = vrot.slane %v3740_v33, 6  ;;  %v1075_v17 = vld [vmem:[#allocation5 + $0x460] sm:$0xff] }
 0x7d2   :  { %v3750_v9 = vrot.slane %v3671_v24, 6  ;;  %v3752_v48 = vrot.slane %v3742_v7, 6  ;;  %v1073_v24 = vld [vmem:[#allocation5 + $0x450] sm:$0xff] }
 0x7d3   :  { %v3757_v32 = vadd.f32 %v3749_v59, %v15971_v11  ;;  %v3759_v26 = vadd.f32 %v3751_v13, %v15974_v63  ;;  %v1077_v7 = vld [vmem:[#allocation5 + $0x470] sm:$0xff] }
 0x7d4   :  { %v3758_v44 = vadd.f32 %v3750_v9, %v15972_v61  ;;  %v3760_v34 = vadd.f32 %v3752_v48, %v15973_v54  ;;  %v14499_v9 = vpack.c.bf16 %v1077_v7, %v1073_v24  ;;  %v1086_v48 = vld [vmem:[#allocation5 + $0x4b8] sm:$0xff] }
 0x7d5   :  { %v9590_v1 = vmul.f32 -1.442695, %v3757_v32  ;;  %v1080_v32 = vld [vmem:[#allocation5 + $0x488] sm:$0xff] }
 0x7d6   :  { %v9591_v47 = vmul.f32 -1.442695, %v3758_v44  ;;  %v9592_v40 = vmul.f32 -1.442695, %v3760_v34  ;;  %16032 = vst [vmem:[#allocation49_spill] sm:$0xff] %v14499_v9  ;;  %v1084_v44 = vld [vmem:[#allocation5 + $0x4a8] sm:$0xff] }
 0x7d7   :  { %12773 = vpow2.f32 %v9590_v1  ;;  %v1082_v1 = vld [vmem:[#allocation5 + $0x498] sm:$0xff] }
 0x7d8   :  { %12775 = vpow2.f32 %v9591_v47  ;;  %v14504_v47 = vpack.c.bf16 %v1084_v44, %v1080_v32  ;;  %v14506_v34 = vpack.c.bf16 %v1086_v48, %v1082_v1  ;;  %v1105_v32 = vld [vmem:[#allocation5 + $0x550] sm:$0xff]  ;;  %v1112_v48 = vld [vmem:[#allocation5 + $0x588] sm:$0xff] }
 0x7d9   :  { %12777 = vpow2.f32 %v9592_v40  ;;  %v1109_v44 = vld [vmem:[#allocation5 + $0x570] sm:$0xff] }
 0x7da   :  { %v12772_v52 = vpop.eup %12771  ;;  %12779 = vtanh.f32 %v3759_v26  ;;  %16033 = vst [vmem:[#allocation54_spill] sm:$0xff] %v14504_v47  ;;  %16034 = vst [vmem:[#allocation56_spill] sm:$0xff] %v14506_v34  ;;  %v1088_v26 = vld [vmem:[#allocation5 + $0x4c8] sm:$0xff]  ;;  %v14547_v1 = vpack.c.bf16 %v1109_v44, %v1105_v32  ;;  %v1135_v44 = vld [vmem:[#allocation5 + $0x638] sm:$0xff] }
 0x7db   :  { %v3599_v38 = vmul.f32 %v12772_v52, %v12770_v16  ;;  %v1079_v16 = vld [vmem:[#allocation5 + $0x480] sm:$0xff] }
 0x7dc   :  { %v1083_v52 = vld [vmem:[#allocation5 + $0x4a0] sm:$0xff]  ;;  %16048 = vst [vmem:[#allocation74_spill] sm:$0xff] %v14547_v1 }
 0x7dd   :  { %v3789_v20 = vrot.slane %v3599_v38, 4  ;;  %v14508_v13 = vpack.c.bf16 %v1083_v52, %v1079_v16  ;;  %v1081_v38 = vld [vmem:[#allocation5 + $0x490] sm:$0xff]  ;;  %v1116_v16 = vld [vmem:[#allocation5 + $0x5a8] sm:$0xff]  ;;  %v1114_v52 = vld [vmem:[#allocation5 + $0x598] sm:$0xff] }
 0x7df   :  { %3856 = vmatmul.mubr.f32.vlgmr.msra.gmra.mrb[36].mxu0 %v3789_v20  ;;  %3927 = vmatmul.mubr.f32.vlgmr.msra.gmra.mrb[52].mxu1 %v3789_v20  ;;  %16035 = vst [vmem:[#allocation19_spill] sm:$0xff] %v14508_v13  ;;  %v1085_v20 = vld [vmem:[#allocation5 + $0x4b0] sm:$0xff] }
 0x7e0   :  { %11024 = vmatpush1.bf16.msra.mxu0 %v13584_v29  ;;  %11056 = vmatpush1.bf16.msra.mxu1 %v13688_v50  ;;  %v14511_v40 = vpack.c.bf16 %v1085_v20, %v1081_v38  ;;  %v14552_v38 = vpack.c.bf16 %v1116_v16, %v1112_v48  ;;  %v1118_v20 = vld [vmem:[#allocation5 + $0x5b8] sm:$0xff] }
 0x7e1   :  { %v12774_v62 = vpop.eup %12773  ;;  %11026 = vmatprep.subr.bf16.mxu0 %v13589_v35  ;;  %11058 = vmatprep.subr.bf16.mxu1 %v13691_v36 }
 0x7e2   :  { %v12776_v0 = vpop.eup %12775  ;;  %v3764_v28 = vadd.f32 1.0, %v12774_v62  ;;  %4043 = vmatprep.mubr.f32.mxu0 %v15809_v58  ;;  %4114 = vmatprep.mubr.f32.mxu1 %v15809_v58  ;;  %16036 = vst [vmem:[#allocation34_spill] sm:$0xff] %v14511_v40  ;;  %v1092_v62 = vld [vmem:[#allocation5 + $0x4e8] sm:$0xff]  ;;  %16049 = vst [vmem:[#allocation22_spill] sm:$0xff] %v14552_v38 }
 0x7e3   :  { %v3770_v14 = vadd.f32 1.0, %v12776_v0  ;;  %v12778_v29 = vpop.eup %12777  ;;  %v1090_v0 = vld [vmem:[#allocation5 + $0x4d8] sm:$0xff] }
 0x7e4   :  { %12781 = vrcp.f32 %v3764_v28  ;;  %11028 = vmatpush1.bf16.msra.mxu0 %v13598_v45  ;;  %11060 = vmatpush1.bf16.msra.mxu1 %v13697_v5  ;;  %v12780_v35 = vpop.eup %12779  ;;  %v3777_v36 = vadd.f32 1.0, %v12778_v29  ;;  %v14516_v28 = vpack.c.bf16 %v1092_v62, %v1088_v26  ;;  %v1087_v29 = vld [vmem:[#allocation5 + $0x4c0] sm:$0xff] }
 0x7e5   :  { %12783 = vrcp.f32 %v3770_v14  ;;  %11030 = vmatprep.subr.bf16.mxu0 %v13604_v49  ;;  %11062 = vmatprep.subr.bf16.mxu1 %v13701_v15  ;;  %v3781_v49 = vrot.slane %v14381_v18, 2  ;;  %v1070_v15 = vld [vmem:[#allocation5 + $0x438] sm:$0xff]  ;;  %v1071_v18 = vld [vmem:[#allocation5 + $0x440] sm:$0xff] }
 0x7e6   :  { %12785 = vrcp.f32 %v3777_v36  ;;  %v14496_v59 = vpack.c.bf16 %v1075_v17, %v1071_v18  ;;  %16037 = vst [vmem:[#allocation20_spill] sm:$0xff] %v14516_v28  ;;  %v1094_v14 = vld [vmem:[#allocation5 + $0x4f8] sm:$0xff]  ;;  %v1103_v18 = vld [vmem:[#allocation5 + $0x540] sm:$0xff] }
 0x7e7   :  { %v1107_v17 = vld [vmem:[#allocation5 + $0x560] sm:$0xff] }
 0x7e8   :  { %11032 = vmatpush1.bf16.msra.mxu0 %v13614_v4  ;;  %11064 = vmatpush1.bf16.msra.mxu1 %v13707_v10  ;;  %v1063_v10 = vld [vmem:[#allocation5 + $0x400] sm:$0xff]  ;;  %16031 = vst [vmem:[#allocation46_spill] sm:$0xff] %v14496_v59  ;;  %v14544_v7 = vpack.c.bf16 %v1107_v17, %v1103_v18  ;;  %v1133_v18 = vld [vmem:[#allocation5 + $0x628] sm:$0xff]  ;;  %v1131_v17 = vld [vmem:[#allocation5 + $0x618] sm:$0xff] }
 0x7e9   :  { %11034 = vmatprep.subr.bf16.mxu0 %v13620_v19  ;;  %11066 = vmatprep.subr.bf16.mxu1 %v13710_v53  ;;  %v1111_v26 = vld [vmem:[#allocation5 + $0x580] sm:$0xff]  ;;  %v14578_v48 = vpack.c.bf16 %v1135_v44, %v1131_v17 }
 0x7ea   :  { %16047 = vst [vmem:[#allocation66_spill] sm:$0xff] %v14544_v7  ;;  %v1115_v62 = vld [vmem:[#allocation5 + $0x5a0] sm:$0xff] }
 0x7eb   :  { %16058 = vst [vmem:[#allocation43_spill] sm:$0xff] %v14578_v48 }
 0x7ec   :  { %11036 = vmatpush1.bf16.msra.mxu0 %v13627_v25  ;;  %11068 = vmatpush1.bf16.msra.mxu1 %v13715_v8 }
 0x7ed   :  { %11038 = vmatprep.subr.bf16.mxu0 %v13633_v39  ;;  %11070 = vmatprep.subr.bf16.mxu1 %v13718_v37  ;;  %v1067_v37 = vld [vmem:[#allocation5 + $0x420] sm:$0xff] }
 0x7ee   :  { %v12782_v45 = vpop.eup %12781 }
 0x7ef   :  { %v12784_v4 = vpop.eup %12783  ;;  %v3784_v50 = vmul.f32 %v12782_v45, %v12780_v35  ;;  %v1091_v35 = vld [vmem:[#allocation5 + $0x4e0] sm:$0xff]  ;;  %v14518_v45 = vpack.c.bf16 %v1094_v14, %v1090_v0  ;;  %v14554_v0 = vpack.c.bf16 %v1118_v20, %v1114_v52  ;;  %v14556_v14 = vpack.c.bf16 %v1115_v62, %v1111_v26 }
 0x7f0   :  { %v3783_v5 = vmul.f32 %v12784_v4, %v3781_v49  ;;  %11040 = vmatpush1.bf16.msra.mxu0 %v15843_v42  ;;  %11072 = vmatpush1.bf16.msra.mxu1 %v13723_v57  ;;  %v12786_v8 = vpop.eup %12785  ;;  %v1076_v42 = vld [vmem:[#allocation5 + $0x468] sm:$0xff]  ;;  %v14520_v49 = vpack.c.bf16 %v1091_v35, %v1087_v29  ;;  %v1089_v4 = vld [vmem:[#allocation5 + $0x4d0] sm:$0xff] }
 0x7f1   :  { %11042 = vmatprep.subr.bf16.mxu0 %v13645_v60  ;;  %11074 = vmatprep.subr.bf16.mxu1 %v13726_v27  ;;  %v1064_v60 = vld [vmem:[#allocation5 + $0x408] sm:$0xff]  ;;  %v14484_v27 = vpack.c.bf16 %v1067_v37, %v1063_v10  ;;  %16038 = vst [vmem:[#allocation37_spill] sm:$0xff] %v14518_v45  ;;  %v1097_v10 = vld [vmem:[#allocation5 + $0x510] sm:$0xff]  ;;  %16050 = vst [vmem:[#allocation39_spill] sm:$0xff] %v14554_v0 }
 0x7f2   :  { %v14465_v53 = vadd.f32 %v3784_v50, %v3783_v5  ;;  %16039 = vst [vmem:[#allocation21_spill] sm:$0xff] %v14520_v49  ;;  %v1093_v50 = vld [vmem:[#allocation5 + $0x4f0] sm:$0xff]  ;;  %v1096_v5 = vld [vmem:[#allocation5 + $0x508] sm:$0xff]  ;;  %16051 = vst [vmem:[#allocation23_spill] sm:$0xff] %v14556_v14 }
 0x7f3   :  { %v14523_v36 = vpack.c.bf16 %v1093_v50, %v1089_v4  ;;  %v1101_v37 = vld [vmem:[#allocation5 + $0x530] sm:$0xff]  ;;  %v1120_v50 = vld [vmem:[#allocation5 + $0x5c8] sm:$0xff] }
 0x7f4   :  { %11044 = vmatpush1.bf16.msra.mxu0 %v15844_v51  ;;  %11076 = vmatpush1.bf16.msra.mxu1 %v13731_v21  ;;  %12787 = vtanh.f32 %v14465_v53  ;;  %v1065_v21 = vld [vmem:[#allocation5 + $0x410] sm:$0xff]  ;;  %v1074_v51 = vld [vmem:[#allocation5 + $0x458] sm:$0xff] }
 0x7f5   :  { %11046 = vmatprep.subr.bf16.mxu0 %v13657_v31  ;;  %11078 = vmatprep.subr.bf16.mxu1 %v13734_v12  ;;  %v1068_v31 = vld [vmem:[#allocation5 + $0x428] sm:$0xff]  ;;  %v1069_v12 = vld [vmem:[#allocation5 + $0x430] sm:$0xff]  ;;  %16040 = vst [vmem:[#allocation38_spill] sm:$0xff] %v14523_v36 }
 0x7f6   :  { %v1113_v29 = vld [vmem:[#allocation5 + $0x590] sm:$0xff] }
 0x7f7   :  { %v1117_v35 = vld [vmem:[#allocation5 + $0x5b0] sm:$0xff] }
 0x7f8   :  { %11048 = vmatpush1.bf16.msra.mxu0 %v13663_v41  ;;  %11080 = vmatpush1.bf16.msra.mxu1 %v13739_v22  ;;  %v1066_v41 = vld [vmem:[#allocation5 + $0x418] sm:$0xff]  ;;  %v14487_v22 = vpack.c.bf16 %v1069_v12, %v1065_v21  ;;  %v14535_v21 = vpack.c.bf16 %v1101_v37, %v1097_v10  ;;  %v1104_v12 = vld [vmem:[#allocation5 + $0x548] sm:$0xff]  ;;  %v14559_v4 = vpack.c.bf16 %v1117_v35, %v1113_v29 }
 0x7f9   :  { %11050 = vmatprep.subr.bf16.mxu0 %v13669_v56  ;;  %11082 = vmatprep.subr.bf16.mxu1 %v13742_v46  ;;  %v14480_v56 = vpack.c.bf16 %v1068_v31, %v1064_v60  ;;  %v14482_v57 = vpack.c.bf16 %v1070_v15, %v1066_v41  ;;  %v1072_v46 = vld [vmem:[#allocation5 + $0x448] sm:$0xff]  ;;  %v1095_v60 = vld [vmem:[#allocation5 + $0x500] sm:$0xff] }
 0x7fa   :  { %v1099_v31 = vld [vmem:[#allocation5 + $0x520] sm:$0xff]  ;;  %16044 = vst [vmem:[#allocation78_spill] sm:$0xff] %v14535_v21  ;;  %16052 = vst [vmem:[#allocation40_spill] sm:$0xff] %v14559_v4 }
 0x7fb   :  { %v14532_v15 = vpack.c.bf16 %v1099_v31, %v1095_v60  ;;  %v1119_v60 = vld [vmem:[#allocation5 + $0x5c0] sm:$0xff] }
 0x7fc   :  { %11052 = vmatpush1.bf16.msra.mxu0 %v15845_v55  ;;  %11084 = vmatpush1.bf16.msra.mxu1 %v15846_v6  ;;  %v14492_v55 = vpack.c.bf16 %v1076_v42, %v1072_v46  ;;  %v1078_v6 = vld [vmem:[#allocation5 + $0x478] sm:$0xff]  ;;  %v1108_v46 = vld [vmem:[#allocation5 + $0x568] sm:$0xff]  ;;  %v1123_v31 = vld [vmem:[#allocation5 + $0x5e0] sm:$0xff] }
 0x7fd   :  { %11086 = vmatprep.subr.bf16.mxu0 %v14480_v56  ;;  %11118 = vmatprep.subr.bf16.mxu1 %v14482_v57  ;;  %v14494_v33 = vpack.c.bf16 %v1078_v6, %v1074_v51  ;;  %16043 = vst [vmem:[#allocation76_spill] sm:$0xff] %v14532_v15  ;;  %v1106_v42 = vld [vmem:[#allocation5 + $0x558] sm:$0xff]  ;;  %v14540_v51 = vpack.c.bf16 %v1108_v46, %v1104_v12  ;;  %v1121_v12 = vld [vmem:[#allocation5 + $0x5d0] sm:$0xff] }
 0x7fe   :  { %v12788_v19 = vpop.eup %12787  ;;  %v1110_v6 = vld [vmem:[#allocation5 + $0x578] sm:$0xff]  ;;  %v14568_v37 = vpack.c.bf16 %v1123_v31, %v1119_v60  ;;  %v1125_v46 = vld [vmem:[#allocation5 + $0x5f0] sm:$0xff] }
 0x7ff   :  { %v3787_v25 = vmul.f32 %v12788_v19, %v12786_v8  ;;  %v1100_v8 = vld [vmem:[#allocation5 + $0x528] sm:$0xff]  ;;  %v1098_v19 = vld [vmem:[#allocation5 + $0x518] sm:$0xff]  ;;  %16045 = vst [vmem:[#allocation77_spill] sm:$0xff] %v14540_v51  ;;  %v14542_v24 = vpack.c.bf16 %v1110_v6, %v1106_v42  ;;  %v14571_v42 = vpack.c.bf16 %v1125_v46, %v1121_v12 }
 0x800   :  { %16055 = vst [vmem:[#allocation25_spill] sm:$0xff] %v14568_v37  ;;  %v1129_v6 = vld [vmem:[#allocation5 + $0x608] sm:$0xff] }
 0x801   :  { %v3977_v39 = vrot.slane %v3787_v25, 2  ;;  %v14528_v25 = vpack.c.bf16 %v1100_v8, %v1096_v5  ;;  %16046 = vst [vmem:[#allocation63_spill] sm:$0xff] %v14542_v24  ;;  %v1124_v5 = vld [vmem:[#allocation5 + $0x5e8] sm:$0xff]  ;;  %v1122_v8 = vld [vmem:[#allocation5 + $0x5d8] sm:$0xff]  ;;  %16056 = vst [vmem:[#allocation42_spill] sm:$0xff] %v14571_v42  ;;  %v14576_v32 = vpack.c.bf16 %v1133_v18, %v1129_v6 }
 0x803   :  { %4044 = vmatmul.mubr.f32.vlgmr.msra.gmra.mrb[38].mxu0 %v3977_v39  ;;  %4115 = vmatmul.mubr.f32.vlgmr.msra.gmra.mrb[54].mxu1 %v3977_v39  ;;  %16041 = vst [vmem:[#allocation87_spill] sm:$0xff] %v14528_v25  ;;  %v1102_v39 = vld [vmem:[#allocation5 + $0x538] sm:$0xff]  ;;  %16057 = vst [vmem:[#allocation26_spill] sm:$0xff] %v14576_v32 }
 0x804   :  { %4219 = vmatprep.mubr.f32.mxu0 %v15809_v58  ;;  %4290 = vmatprep.mubr.f32.mxu1 %v15809_v58  ;;  %v14530_v41 = vpack.c.bf16 %v1102_v39, %v1098_v19  ;;  %v14564_v19 = vpack.c.bf16 %v1124_v5, %v1120_v50  ;;  %v1126_v39 = vld [vmem:[#allocation5 + $0x5f8] sm:$0xff] }
 0x805   :  { %11088 = vmatpush1.bf16.msra.mxu0 %v14484_v27  ;;  %11120 = vmatpush1.bf16.msra.mxu1 %v14487_v22  ;;  %v14566_v10 = vpack.c.bf16 %v1126_v39, %v1122_v8 }
 0x806   :  { %11090 = vmatprep.subr.bf16.mxu0 %v14492_v55  ;;  %11122 = vmatprep.subr.bf16.mxu1 %v14494_v33  ;;  %16042 = vst [vmem:[#allocation75_spill] sm:$0xff] %v14530_v41  ;;  %16053 = vst [vmem:[#allocation24_spill] sm:$0xff] %v14564_v19 }
 0x807   :  { %16054 = vst [vmem:[#allocation41_spill] sm:$0xff] %v14566_v10 }
 0x809   :  { %11092 = vmatpush1.bf16.msra.mxu0 %v14496_v59  ;;  %11124 = vmatpush1.bf16.msra.mxu1 %v14499_v9 }
 0x80a   :  { %11094 = vmatprep.subr.bf16.mxu0 %v14504_v47  ;;  %11126 = vmatprep.subr.bf16.mxu1 %v14506_v34 }
 0x80d   :  { %11096 = vmatpush1.bf16.msra.mxu0 %v14508_v13  ;;  %11128 = vmatpush1.bf16.msra.mxu1 %v14511_v40 }
 0x80e   :  { %11098 = vmatprep.subr.bf16.mxu0 %v14516_v28  ;;  %11130 = vmatprep.subr.bf16.mxu1 %v14518_v45 }
 0x811   :  { %11100 = vmatpush1.bf16.msra.mxu0 %v14520_v49  ;;  %11132 = vmatpush1.bf16.msra.mxu1 %v14523_v36 }
 0x812   :  { %11102 = vmatprep.subr.bf16.mxu0 %v14528_v25  ;;  %11134 = vmatprep.subr.bf16.mxu1 %v14530_v41 }
 0x815   :  { %11104 = vmatpush1.bf16.msra.mxu0 %v14532_v15  ;;  %11136 = vmatpush1.bf16.msra.mxu1 %v14535_v21 }
 0x816   :  { %11106 = vmatprep.subr.bf16.mxu0 %v14540_v51  ;;  %11138 = vmatprep.subr.bf16.mxu1 %v14542_v24 }
 0x819   :  { %11108 = vmatpush1.bf16.msra.mxu0 %v14544_v7  ;;  %11140 = vmatpush1.bf16.msra.mxu1 %v14547_v1 }
 0x81a   :  { %11110 = vmatprep.subr.bf16.mxu0 %v14552_v38  ;;  %11142 = vmatprep.subr.bf16.mxu1 %v14554_v0 }
 0x81d   :  { %11112 = vmatpush1.bf16.msra.mxu0 %v14556_v14  ;;  %11144 = vmatpush1.bf16.msra.mxu1 %v14559_v4 }
 0x81e   :  { %11114 = vmatprep.subr.bf16.mxu0 %v14564_v19  ;;  %11146 = vmatprep.subr.bf16.mxu1 %v14566_v10 }
 0x821   :  { %11116 = vmatpush1.bf16.msra.mxu0 %v14568_v37  ;;  %11148 = vmatpush1.bf16.msra.mxu1 %v14571_v42 }
 0x822   :  { %11150 = vmatprep.subr.bf16.mxu0 %v14576_v32  ;;  %11182 = vmatprep.subr.bf16.mxu1 %v14578_v48 }
 0x8b2   :  { %v3857_v16 = vpop.f32.mrb[36].mxu0  ;;  %v3928_v52 = vpop.f32.mrb[52].mxu1 }
 0x8b3   :  { %v3937_v20 = vrot.slane %v3857_v16, 2  ;;  %v3859_v26 = vpop.f32.mrb[37].mxu0  ;;  %v3930_v62 = vpop.f32.mrb[53].mxu1  ;;  %v3939_v31 = vrot.slane %v3928_v52, 2 }
 0x8b4   :  { %v3938_v29 = vrot.slane %v3859_v26, 2  ;;  %v3940_v39 = vrot.slane %v3930_v62, 2 }
 0x8b5   :  { %v3945_v35 = vadd.f32 %v3937_v20, %v15998_v2  ;;  %v3947_v46 = vadd.f32 %v3939_v31, %v16030_v3  ;;  %v3969_v20 = vrot.slane %v14435_v30, 6 }
 0x8b6   :  { %v3946_v50 = vadd.f32 %v3938_v29, %v15999_v23  ;;  %v3948_v60 = vadd.f32 %v3940_v39, %v16000_v43 }
 0x8b7   :  { %v9593_v5 = vmul.f32 -1.442695, %v3945_v35 }
 0x8b8   :  { %v9594_v8 = vmul.f32 -1.442695, %v3946_v50  ;;  %v9595_v12 = vmul.f32 -1.442695, %v3948_v60 }
 0x8b9   :  { %12789 = vpow2.f32 %v9593_v5 }
 0x8ba   :  { %12791 = vpow2.f32 %v9594_v8 }
 0x8bb   :  { %12793 = vpow2.f32 %v9595_v12  ;;  %v1128_v12 = vld [vmem:[#allocation5 + $0x600] sm:$0xff] }
 0x8bc   :  { %12795 = vtanh.f32 %v3947_v46  ;;  %v1132_v46 = vld [vmem:[#allocation5 + $0x620] sm:$0xff] }
 0x8c3   :  { %v12790_v6 = vpop.eup %12789 }
 0x8c4   :  { %v12792_v18 = vpop.eup %12791  ;;  %v3952_v17 = vadd.f32 1.0, %v12790_v6 }
 0x8c5   :  { %v3958_v44 = vadd.f32 1.0, %v12792_v18  ;;  %v12794_v23 = vpop.eup %12793  ;;  %v1130_v18 = vld [vmem:[#allocation5 + $0x610] sm:$0xff] }
 0x8c6   :  { %12797 = vrcp.f32 %v3952_v17  ;;  %v12796_v2 = vpop.eup %12795  ;;  %v3965_v43 = vadd.f32 1.0, %v12794_v23  ;;  %v1134_v17 = vld [vmem:[#allocation5 + $0x630] sm:$0xff] }
 0x8c7   :  { %12799 = vrcp.f32 %v3958_v44  ;;  %v1137_v44 = vld [vmem:[#allocation5 + $0x648] sm:$0xff] }
 0x8c8   :  { %12801 = vrcp.f32 %v3965_v43  ;;  %v1136_v43 = vld [vmem:[#allocation5 + $0x640] sm:$0xff] }
 0x8d0   :  { %v12798_v16 = vpop.eup %12797 }
 0x8d1   :  { %v12800_v26 = vpop.eup %12799  ;;  %v3972_v62 = vmul.f32 %v12798_v16, %v12796_v2  ;;  %v1141_v2 = vld [vmem:[#allocation5 + $0x668] sm:$0xff]  ;;  %v1139_v16 = vld [vmem:[#allocation5 + $0x658] sm:$0xff] }
 0x8d2   :  { %v3971_v52 = vmul.f32 %v12800_v26, %v3969_v20  ;;  %v12802_v6 = vpop.eup %12801 }
 0x8d4   :  { %v14587_v29 = vadd.f32 %v3972_v62, %v3971_v52  ;;  %v14593_v62 = vpack.c.bf16 %v1132_v46, %v1128_v12  ;;  %v1140_v52 = vld [vmem:[#allocation5 + $0x660] sm:$0xff] }
 0x8d6   :  { %16059 = vst [vmem:[#allocation27_spill] sm:$0xff] %v14587_v29  ;;  %v4045_v3 = vpop.f32.mrb[38].mxu0  ;;  %v4116_v35 = vpop.f32.mrb[54].mxu1  ;;  %12803 = vtanh.f32 %v14587_v29  ;;  %v1147_v29 = vld [vmem:[#allocation5 + $0x698] sm:$0xff] }
 0x8d7   :  { %v4121_v50 = vadd.f32 %v4045_v3, %v15971_v11  ;;  %v4047_v5 = vpop.f32.mrb[39].mxu0  ;;  %v4118_v8 = vpop.f32.mrb[55].mxu1  ;;  %v1143_v11 = vld [vmem:[#allocation5 + $0x678] sm:$0xff] }
 0x8d8   :  { %v4122_v39 = vadd.f32 %v4047_v5, %v15972_v61  ;;  %v4124_v30 = vadd.f32 %v4118_v8, %v15973_v54  ;;  %v14595_v61 = vpack.c.bf16 %v1134_v17, %v1130_v18  ;;  %v4123_v54 = vadd.f32 %v4116_v35, %v15974_v63  ;;  %v1138_v8 = vld [vmem:[#allocation5 + $0x650] sm:$0xff]  ;;  %v1144_v18 = vld [vmem:[#allocation5 + $0x680] sm:$0xff] }
 0x8d9   :  { %v9596_v60 = vmul.f32 -1.442695, %v4121_v50  ;;  %v14598_v50 = vpack.c.bf16 %v1141_v2, %v1137_v44  ;;  %v14600_v5 = vpack.c.bf16 %v1143_v11, %v1139_v16  ;;  %v14604_v63 = vpack.c.bf16 %v1140_v52, %v1136_v43  ;;  %v1148_v17 = vld [vmem:[#allocation5 + $0x6a0] sm:$0xff]  ;;  %v1146_v16 = vld [vmem:[#allocation5 + $0x690] sm:$0xff]  ;;  %v1155_v43 = vld [vmem:[#allocation5 + $0x6d8] sm:$0xff] }
 0x8da   :  { %v9597_v31 = vmul.f32 -1.442695, %v4122_v39  ;;  %v9598_v26 = vmul.f32 -1.442695, %v4124_v30  ;;  %v1142_v39 = vld [vmem:[#allocation5 + $0x670] sm:$0xff]  ;;  %v1159_v52 = vld [vmem:[#allocation5 + $0x6f8] sm:$0xff] }
 0x8db   :  { %12805 = vpow2.f32 %v9596_v60  ;;  %16060 = vst [vmem:[#allocation44_spill] sm:$0xff] %v14598_v50  ;;  %16061 = vst [vmem:[#allocation28_spill] sm:$0xff] %v14600_v5  ;;  %v1145_v60 = vld [vmem:[#allocation5 + $0x688] sm:$0xff]  ;;  %v14606_v35 = vpack.c.bf16 %v1142_v39, %v1138_v8  ;;  %v1150_v11 = vld [vmem:[#allocation5 + $0x6b0] sm:$0xff] }
 0x8dc   :  { %12807 = vpow2.f32 %v9597_v31  ;;  %v1149_v31 = vld [vmem:[#allocation5 + $0x6a8] sm:$0xff]  ;;  %16062 = vst [vmem:[#allocation45_spill] sm:$0xff] %v14604_v63  ;;  %v1156_v8 = vld [vmem:[#allocation5 + $0x6e0] sm:$0xff] }
 0x8dd   :  { %12809 = vpow2.f32 %v9598_v26  ;;  %16063 = vst [vmem:[#allocation29_spill] sm:$0xff] %v14606_v35  ;;  %v1157_v26 = vld [vmem:[#allocation5 + $0x6e8] sm:$0xff] }
 0x8de   :  { %12811 = vtanh.f32 %v4123_v54  ;;  %v14618_v54 = vpack.c.bf16 %v1148_v17, %v1144_v18 }
 0x8e0   :  { %v12804_v23 = vpop.eup %12803  ;;  %16066 = vst [vmem:[#allocation48_spill] sm:$0xff] %v14618_v54 }
 0x8e1   :  { %v3975_v20 = vmul.f32 %v12804_v23, %v12802_v6  ;;  %v1151_v6 = vld [vmem:[#allocation5 + $0x6b8] sm:$0xff]  ;;  %v14610_v23 = vpack.c.bf16 %v1149_v31, %v1145_v60  ;;  %v14626_v60 = vpack.c.bf16 %v1159_v52, %v1155_v43  ;;  %v1154_v31 = vld [vmem:[#allocation5 + $0x6d0] sm:$0xff] }
 0x8e2   :  { %v14612_v2 = vpack.c.bf16 %v1151_v6, %v1147_v29  ;;  %v14620_v29 = vpack.c.bf16 %v1150_v11, %v1146_v16  ;;  %v1158_v6 = vld [vmem:[#allocation5 + $0x6f0] sm:$0xff]  ;;  %v1160_v16 = vld [vmem:[#allocation5 + $0x700] sm:$0xff] }
 0x8e3   :  { %v4153_v3 = vrot.slane %v3975_v20, 6  ;;  %16064 = vst [vmem:[#allocation47_spill] sm:$0xff] %v14610_v23  ;;  %v1153_v20 = vld [vmem:[#allocation5 + $0x6c8] sm:$0xff]  ;;  %16069 = vst [vmem:[#allocation32_spill] sm:$0xff] %v14626_v60  ;;  %v14632_v17 = vpack.c.bf16 %v1158_v6, %v1154_v31  ;;  %v1164_v11 = vld [vmem:[#allocation5 + $0x720] sm:$0xff]  ;;  %v4145_v6 = vrot.slane %v14465_v53, 2 }
 0x8e4   :  { %16065 = vst [vmem:[#allocation30_spill] sm:$0xff] %v14612_v2  ;;  %16067 = vst [vmem:[#allocation31_spill] sm:$0xff] %v14620_v29  ;;  %v14624_v39 = vpack.c.bf16 %v1157_v26, %v1153_v20  ;;  %v1162_v43 = vld [vmem:[#allocation5 + $0x710] sm:$0xff] }
 0x8e5   :  { %v12806_v30 = vpop.eup %12805  ;;  %4220 = vmatmul.mubr.f32.vlgmr.msra.gmra.mrb[40].mxu0 %v4153_v3  ;;  %4291 = vmatmul.mubr.f32.vlgmr.msra.gmra.mrb[56].mxu1 %v4153_v3  ;;  %v1152_v3 = vld [vmem:[#allocation5 + $0x6c0] sm:$0xff]  ;;  %16071 = vst [vmem:[#allocation33_spill] sm:$0xff] %v14632_v17  ;;  %v1166_v52 = vld [vmem:[#allocation5 + $0x730] sm:$0xff] }
 0x8e6   :  { %v12808_v12 = vpop.eup %12807  ;;  %v4128_v46 = vadd.f32 1.0, %v12806_v30  ;;  %11152 = vmatpush1.bf16.msra.mxu0 %v14593_v62  ;;  %11184 = vmatpush1.bf16.msra.mxu1 %v14595_v61  ;;  %16068 = vst [vmem:[#allocation50_spill] sm:$0xff] %v14624_v39  ;;  %v1161_v30 = vld [vmem:[#allocation5 + $0x708] sm:$0xff]  ;;  %v14630_v18 = vpack.c.bf16 %v1156_v8, %v1152_v3  ;;  %v1175_v3 = vld [vmem:[#allocation5 + $0x778] sm:$0xff] }
 0x8e7   :  { %v4134_v44 = vadd.f32 1.0, %v12808_v12  ;;  %11154 = vmatprep.subr.bf16.mxu0 %v14598_v50  ;;  %11186 = vmatprep.subr.bf16.mxu1 %v14600_v5  ;;  %v1165_v12 = vld [vmem:[#allocation5 + $0x728] sm:$0xff]  ;;  %v1174_v5 = vld [vmem:[#allocation5 + $0x770] sm:$0xff] }
 0x8e8   :  { %12813 = vrcp.f32 %v4128_v46  ;;  %4392 = vmatprep.mubr.f32.mxu0 %v15809_v58  ;;  %4463 = vmatprep.mubr.f32.mxu1 %v15809_v58  ;;  %v1163_v46 = vld [vmem:[#allocation5 + $0x718] sm:$0xff]  ;;  %16070 = vst [vmem:[#allocation51_spill] sm:$0xff] %v14630_v18  ;;  %v14636_v20 = vpack.c.bf16 %v1165_v12, %v1161_v30  ;;  %v14645_v30 = vpack.c.bf16 %v1166_v52, %v1162_v43  ;;  %v1168_v12 = vld [vmem:[#allocation5 + $0x740] sm:$0xff] }
 0x8e9   :  { %12815 = vrcp.f32 %v4134_v44  ;;  %v1167_v44 = vld [vmem:[#allocation5 + $0x738] sm:$0xff] }
 0x8ea   :  { %11156 = vmatpush1.bf16.msra.mxu0 %v14604_v63  ;;  %11188 = vmatpush1.bf16.msra.mxu1 %v14606_v35  ;;  %v14638_v26 = vpack.c.bf16 %v1167_v44, %v1163_v46  ;;  %v1172_v46 = vld [vmem:[#allocation5 + $0x760] sm:$0xff]  ;;  %v1179_v43 = vld [vmem:[#allocation5 + $0x798] sm:$0xff] }
 0x8eb   :  { %11158 = vmatprep.subr.bf16.mxu0 %v14610_v23  ;;  %11190 = vmatprep.subr.bf16.mxu1 %v14612_v2  ;;  %v1169_v2 = vld [vmem:[#allocation5 + $0x748] sm:$0xff]  ;;  %v1183_v52 = vld [vmem:[#allocation5 + $0x7b8] sm:$0xff] }
 0x8ec   :  { %v1173_v23 = vld [vmem:[#allocation5 + $0x768] sm:$0xff] }
 0x8ed   :  { %v14649_v63 = vpack.c.bf16 %v1173_v23, %v1169_v2  ;;  %v1176_v23 = vld [vmem:[#allocation5 + $0x780] sm:$0xff] }
 0x8ee   :  { %11160 = vmatpush1.bf16.msra.mxu0 %v14618_v54  ;;  %11192 = vmatpush1.bf16.msra.mxu1 %v14620_v29  ;;  %v12810_v54 = vpop.eup %12809  ;;  %v1171_v29 = vld [vmem:[#allocation5 + $0x758] sm:$0xff]  ;;  %v1180_v2 = vld [vmem:[#allocation5 + $0x7a0] sm:$0xff] }
 0x8ef   :  { %11162 = vmatprep.subr.bf16.mxu0 %v14624_v39  ;;  %11194 = vmatprep.subr.bf16.mxu1 %v14626_v60  ;;  %v12812_v8 = vpop.eup %12811  ;;  %v14643_v60 = vpack.c.bf16 %v1164_v11, %v1160_v16  ;;  %v4141_v35 = vadd.f32 1.0, %v12810_v54  ;;  %v14651_v53 = vpack.c.bf16 %v1175_v3, %v1171_v29  ;;  %v1181_v11 = vld [vmem:[#allocation5 + $0x7a8] sm:$0xff]  ;;  %v14657_v54 = vpack.c.bf16 %v1172_v46, %v1168_v12  ;;  %v1191_v12 = vld [vmem:[#allocation5 + $0x7f8] sm:$0xff] }
 0x8f0   :  { %v14665_v3 = vpack.c.bf16 %v1183_v52, %v1179_v43  ;;  %v1186_v43 = vld [vmem:[#allocation5 + $0x7d0] sm:$0xff] }
 0x8f1   :  { %12817 = vrcp.f32 %v4141_v35  ;;  %v1190_v52 = vld [vmem:[#allocation5 + $0x7f0] sm:$0xff] }
 0x8f2   :  { %v12814_v31 = vpop.eup %12813  ;;  %11164 = vmatpush1.bf16.msra.mxu0 %v14630_v18  ;;  %11196 = vmatpush1.bf16.msra.mxu1 %v14632_v17  ;;  %v1170_v18 = vld [vmem:[#allocation5 + $0x750] sm:$0xff]  ;;  %v1177_v17 = vld [vmem:[#allocation5 + $0x788] sm:$0xff] }
 0x8f3   :  { %v12816_v44 = vpop.eup %12815  ;;  %v4148_v39 = vmul.f32 %v12814_v31, %v12812_v8  ;;  %11166 = vmatprep.subr.bf16.mxu0 %v14636_v20  ;;  %11198 = vmatprep.subr.bf16.mxu1 %v14638_v26  ;;  %v14659_v8 = vpack.c.bf16 %v1174_v5, %v1170_v18  ;;  %v14663_v29 = vpack.c.bf16 %v1181_v11, %v1177_v17  ;;  %v1182_v31 = vld [vmem:[#allocation5 + $0x7b0] sm:$0xff]  ;;  %v1184_v18 = vld [vmem:[#allocation5 + $0x7c0] sm:$0xff] }
 0x8f4   :  { %v4147_v16 = vmul.f32 %v12816_v44, %v4145_v6  ;;  %v1185_v6 = vld [vmem:[#allocation5 + $0x7c8] sm:$0xff]  ;;  %v14670_v5 = vpack.c.bf16 %v1180_v2, %v1176_v23  ;;  %v1188_v11 = vld [vmem:[#allocation5 + $0x7e0] sm:$0xff]  ;;  %v14684_v2 = vpack.c.bf16 %v1190_v52, %v1186_v43 }
 0x8f5   :  { %v1189_v44 = vld [vmem:[#allocation5 + $0x7e8] sm:$0xff]  ;;  %v14682_v23 = vpack.c.bf16 %v1188_v11, %v1184_v18  ;;  %v16075_v18 = vld [vmem:[#allocation62_spill] sm:$0xff]  ;;  %v16076_v11 = vld [vmem:[#allocation60_spill] sm:$0xff] }
 0x8f6   :  { %v14653_v50 = vadd.f32 %v4148_v39, %v4147_v16  ;;  %11168 = vmatpush1.bf16.msra.mxu0 %v14643_v60  ;;  %11200 = vmatpush1.bf16.msra.mxu1 %v14645_v30  ;;  %v1178_v39 = vld [vmem:[#allocation5 + $0x790] sm:$0xff]  ;;  %v1187_v16 = vld [vmem:[#allocation5 + $0x7d8] sm:$0xff]  ;;  %v14676_v17 = vpack.c.bf16 %v1189_v44, %v1185_v6  ;;  %v14732_v43 = vadd.f32 %v16076_v11, %v16075_v18 }
 0x8f7   :  { %11170 = vmatprep.subr.bf16.mxu0 %v14649_v63  ;;  %11202 = vmatprep.subr.bf16.mxu1 %v14651_v53  ;;  %v14672_v35 = vpack.c.bf16 %v1182_v31, %v1178_v39  ;;  %v14678_v46 = vpack.c.bf16 %v1191_v12, %v1187_v16  ;;  %v16072_v44 = vld [vmem:[#allocation61_spill] sm:$0xff]  ;;  %v16073_v16 = vld [vmem:[#allocation59_spill] sm:$0xff] }
 0x8f8   :  { %12819 = vtanh.f32 %v14653_v50  ;;  %v14728_v12 = vadd.f32 %v16073_v16, %v16072_v44  ;;  %16077 = vst [vmem:[#allocation35_spill] sm:$0xff] %v14732_v43  ;;  %v16079_v16 = vld [vmem:[#allocation79_spill] sm:$0xff] }
 0x8fa   :  { %11172 = vmatpush1.bf16.msra.mxu0 %v14657_v54  ;;  %11204 = vmatpush1.bf16.msra.mxu1 %v14659_v8  ;;  %16074 = vst [vmem:[#allocation52_spill] sm:$0xff] %v14728_v12 }
 0x8fb   :  { %11174 = vmatprep.subr.bf16.mxu0 %v14663_v29  ;;  %11206 = vmatprep.subr.bf16.mxu1 %v14665_v3  ;;  %v12818_v39 = vpop.eup %12817 }
 0x8fe   :  { %11176 = vmatpush1.bf16.msra.mxu0 %v14670_v5  ;;  %11208 = vmatpush1.bf16.msra.mxu1 %v14672_v35 }
 0x8ff   :  { %11178 = vmatprep.subr.bf16.mxu0 %v14676_v17  ;;  %11210 = vmatprep.subr.bf16.mxu1 %v14678_v46 }
 0x902   :  { %v12820_v31 = vpop.eup %12819  ;;  %11180 = vmatpush1.bf16.msra.mxu0 %v14682_v23  ;;  %11212 = vmatpush1.bf16.msra.mxu1 %v14684_v2 }
 0x903   :  { %v4151_v6 = vmul.f32 %v12820_v31, %v12818_v39  ;;  %11214 = vmatprep.subr.bf16.mxu0 %v14480_v56  ;;  %11246 = vmatprep.subr.bf16.mxu1 %v14482_v57 }
 0x905   :  { %4393 = vmatmul.mubr.f32.vlgmr.msra.gmra.mrb[42].mxu0 %v4151_v6  ;;  %4464 = vmatmul.mubr.f32.vlgmr.msra.gmra.mrb[58].mxu1 %v4151_v6 }
 0x906   :  { %11216 = vmatpush1.bf16.msra.mxu0 %v14484_v27  ;;  %11248 = vmatpush1.bf16.msra.mxu1 %v14487_v22 }
 0x907   :  { %11218 = vmatprep.subr.bf16.mxu0 %v14492_v55  ;;  %11250 = vmatprep.subr.bf16.mxu1 %v14494_v33 }
 0x908   :  { %4577 = vmatprep.mubr.f32.mxu0 %v15809_v58  ;;  %4648 = vmatprep.mubr.f32.mxu1 %v15809_v58 }
 0x90a   :  { %11220 = vmatpush1.bf16.msra.mxu0 %v14496_v59  ;;  %11252 = vmatpush1.bf16.msra.mxu1 %v14499_v9 }
 0x90b   :  { %11222 = vmatprep.subr.bf16.mxu0 %v14504_v47  ;;  %11254 = vmatprep.subr.bf16.mxu1 %v14506_v34 }
 0x90e   :  { %11224 = vmatpush1.bf16.msra.mxu0 %v14508_v13  ;;  %11256 = vmatpush1.bf16.msra.mxu1 %v14511_v40 }
 0x90f   :  { %11226 = vmatprep.subr.bf16.mxu0 %v14516_v28  ;;  %11258 = vmatprep.subr.bf16.mxu1 %v14518_v45 }
 0x912   :  { %11228 = vmatpush1.bf16.msra.mxu0 %v14520_v49  ;;  %11260 = vmatpush1.bf16.msra.mxu1 %v14523_v36 }
 0x913   :  { %11230 = vmatprep.subr.bf16.mxu0 %v14528_v25  ;;  %11262 = vmatprep.subr.bf16.mxu1 %v14530_v41 }
 0x916   :  { %11232 = vmatpush1.bf16.msra.mxu0 %v14532_v15  ;;  %11264 = vmatpush1.bf16.msra.mxu1 %v14535_v21 }
 0x917   :  { %11234 = vmatprep.subr.bf16.mxu0 %v14540_v51  ;;  %11266 = vmatprep.subr.bf16.mxu1 %v14542_v24 }
 0x91a   :  { %11236 = vmatpush1.bf16.msra.mxu0 %v14544_v7  ;;  %11268 = vmatpush1.bf16.msra.mxu1 %v14547_v1 }
 0x91b   :  { %11238 = vmatprep.subr.bf16.mxu0 %v14552_v38  ;;  %11270 = vmatprep.subr.bf16.mxu1 %v14554_v0  ;;  %v16084_v38 = vld [vmem:[#allocation73_spill] sm:$0xff] }
 0x91e   :  { %11240 = vmatpush1.bf16.msra.mxu0 %v14556_v14  ;;  %11272 = vmatpush1.bf16.msra.mxu1 %v14559_v4 }
 0x91f   :  { %11242 = vmatprep.subr.bf16.mxu0 %v14564_v19  ;;  %11274 = vmatprep.subr.bf16.mxu1 %v14566_v10 }
 0x922   :  { %11244 = vmatpush1.bf16.msra.mxu0 %v14568_v37  ;;  %11276 = vmatpush1.bf16.msra.mxu1 %v14571_v42 }
 0x923   :  { %11278 = vmatprep.subr.bf16.mxu0 %v14576_v32  ;;  %11310 = vmatprep.subr.bf16.mxu1 %v14578_v48  ;;  %v16078_v48 = vld [vmem:[#allocation80_spill] sm:$0xff] }
 0x9b8   :  { %v4221_v52 = vpop.f32.mrb[40].mxu0  ;;  %v4292_v39 = vpop.f32.mrb[56].mxu1 }
 0x9b9   :  { %v4297_v31 = vadd.f32 %v4221_v52, %v14728_v12  ;;  %v4223_v6 = vpop.f32.mrb[41].mxu0  ;;  %v4294_v37 = vpop.f32.mrb[57].mxu1  ;;  %v4299_v4 = vadd.f32 %v4292_v39, %v16079_v16 }
 0x9ba   :  { %v4298_v42 = vadd.f32 %v4223_v6, %v14732_v43  ;;  %v4300_v19 = vadd.f32 %v4294_v37, %v16078_v48  ;;  %v16081_v48 = vld [vmem:[#allocation65_spill] sm:$0xff] }
 0x9bb   :  { %v9599_v10 = vmul.f32 -1.442695, %v4297_v31  ;;  %v16080_v31 = vld [vmem:[#allocation27_spill] sm:$0xff] }
 0x9bc   :  { %v9600_v32 = vmul.f32 -1.442695, %v4298_v42  ;;  %v9601_v44 = vmul.f32 -1.442695, %v4300_v19  ;;  %v4321_v42 = vrot.slane %v16080_v31, 6 }
 0x9bd   :  { %12821 = vpow2.f32 %v9599_v10 }
 0x9be   :  { %12823 = vpow2.f32 %v9600_v32 }
 0x9bf   :  { %12825 = vpow2.f32 %v9601_v44 }
 0x9c0   :  { %12827 = vtanh.f32 %v4299_v4 }
 0x9c7   :  { %v12822_v14 = vpop.eup %12821 }
 0x9c8   :  { %v12824_v18 = vpop.eup %12823  ;;  %v4304_v11 = vadd.f32 1.0, %v12822_v14  ;;  %v16082_v14 = vld [vmem:[#allocation71_spill] sm:$0xff] }
 0x9c9   :  { %v4310_v0 = vadd.f32 1.0, %v12824_v18  ;;  %v12826_v52 = vpop.eup %12825  ;;  %v14743_v44 = vadd.f32 %v16082_v14, %v16081_v48  ;;  %v16085_v48 = vld [vmem:[#allocation86_spill] sm:$0xff] }
 0x9ca   :  { %12829 = vrcp.f32 %v4304_v11  ;;  %v12828_v12 = vpop.eup %12827  ;;  %v4317_v43 = vadd.f32 1.0, %v12826_v52  ;;  %v16083_v11 = vld [vmem:[#allocation68_spill] sm:$0xff] }
 0x9cb   :  { %12831 = vrcp.f32 %v4310_v0  ;;  %v14747_v1 = vadd.f32 %v16084_v38, %v16083_v11 }
 0x9cc   :  { %12833 = vrcp.f32 %v4317_v43 }
 0x9d4   :  { %v12830_v6 = vpop.eup %12829 }
 0x9d5   :  { %v12832_v10 = vpop.eup %12831  ;;  %v4324_v32 = vmul.f32 %v12830_v6, %v12828_v12 }
 0x9d6   :  { %v4323_v37 = vmul.f32 %v12832_v10, %v4321_v42 }
 0x9d8   :  { %v14739_v19 = vadd.f32 %v4324_v32, %v4323_v37  ;;  %v4394_v39 = vpop.f32.mrb[42].mxu0  ;;  %v4465_v16 = vpop.f32.mrb[58].mxu1 }
 0x9d9   :  { %v4474_v4 = vrot.slane %v4394_v39, 2  ;;  %v4396_v0 = vpop.f32.mrb[43].mxu0  ;;  %v4467_v18 = vpop.f32.mrb[59].mxu1  ;;  %v4476_v37 = vrot.slane %v4465_v16, 2 }
 0x9da   :  { %v4475_v31 = vrot.slane %v4396_v0, 2  ;;  %12835 = vtanh.f32 %v14739_v19  ;;  %v4477_v10 = vrot.slane %v4467_v18, 2  ;;  %v12834_v32 = vpop.eup %12833  ;;  %v16087_v0 = vld [vmem:[#allocation85_spill] sm:$0xff]  ;;  %v16088_v18 = vld [vmem:[#allocation44_spill] sm:$0xff] }
 0x9db   :  { %v4482_v12 = vadd.f32 %v4474_v4, %v14743_v44  ;;  %v4484_v11 = vadd.f32 %v4476_v37, %v16087_v0  ;;  %v16095_v37 = vld [vmem:[#allocation31_spill] sm:$0xff] }
 0x9dc   :  { %v4483_v52 = vadd.f32 %v4475_v31, %v14747_v1  ;;  %v4485_v43 = vadd.f32 %v4477_v10, %v16085_v48  ;;  %v16089_v31 = vld [vmem:[#allocation28_spill] sm:$0xff]  ;;  %v16092_v10 = vld [vmem:[#allocation47_spill] sm:$0xff] }
 0x9dd   :  { %v9602_v6 = vmul.f32 -1.442695, %v4482_v12 }
 0x9de   :  { %v9603_v42 = vmul.f32 -1.442695, %v4483_v52  ;;  %v9604_v38 = vmul.f32 -1.442695, %v4485_v43  ;;  %v16093_v43 = vld [vmem:[#allocation30_spill] sm:$0xff] }
 0x9df   :  { %12837 = vpow2.f32 %v9602_v6  ;;  %v16090_v6 = vld [vmem:[#allocation45_spill] sm:$0xff] }
 0x9e0   :  { %12839 = vpow2.f32 %v9603_v42  ;;  %v16091_v42 = vld [vmem:[#allocation29_spill] sm:$0xff] }
 0x9e1   :  { %12841 = vpow2.f32 %v9604_v38  ;;  %v16097_v38 = vld [vmem:[#allocation32_spill] sm:$0xff] }
 0x9e2   :  { %12843 = vtanh.f32 %v4484_v11 }
 0x9e4   :  { %v12836_v39 = vpop.eup %12835 }
 0x9e5   :  { %v14753_v14 = vmul.f32 %v12836_v39, %v12834_v32  ;;  %v16094_v32 = vld [vmem:[#allocation48_spill] sm:$0xff]  ;;  %v16096_v39 = vld [vmem:[#allocation50_spill] sm:$0xff] }
 0x9e7   :  { %16086 = vst [vmem:[#allocation53_spill] sm:$0xff] %v14753_v14  ;;  %4578 = vmatmul.mubr.f32.vlgmr.msra.gmra.mrb[44].mxu0 %v14753_v14  ;;  %4649 = vmatmul.mubr.f32.vlgmr.msra.gmra.mrb[60].mxu1 %v14753_v14  ;;  %v4506_v14 = vrot.slane %v14653_v50, 2 }
 0x9e8   :  { %11280 = vmatpush1.bf16.msra.mxu0 %v14593_v62  ;;  %11312 = vmatpush1.bf16.msra.mxu1 %v14595_v61 }
 0x9e9   :  { %v12838_v4 = vpop.eup %12837  ;;  %11282 = vmatprep.subr.bf16.mxu0 %v16088_v18  ;;  %11314 = vmatprep.subr.bf16.mxu1 %v16089_v31 }
 0x9ea   :  { %v12840_v16 = vpop.eup %12839  ;;  %v4489_v12 = vadd.f32 1.0, %v12838_v4  ;;  %4765 = vmatprep.mubr.f32.mxu0 %v15809_v58  ;;  %4836 = vmatprep.mubr.f32.mxu1 %v15809_v58  ;;  %v16098_v4 = vld [vmem:[#allocation51_spill] sm:$0xff] }
 0x9eb   :  { %v4495_v52 = vadd.f32 1.0, %v12840_v16  ;;  %v12842_v11 = vpop.eup %12841  ;;  %v16099_v16 = vld [vmem:[#allocation33_spill] sm:$0xff] }
 0x9ec   :  { %12845 = vrcp.f32 %v4489_v12  ;;  %11284 = vmatpush1.bf16.msra.mxu0 %v16090_v6  ;;  %11316 = vmatpush1.bf16.msra.mxu1 %v16091_v42  ;;  %v12844_v12 = vpop.eup %12843 }
 0x9ed   :  { %12847 = vrcp.f32 %v4495_v52  ;;  %11286 = vmatprep.subr.bf16.mxu0 %v16092_v10  ;;  %11318 = vmatprep.subr.bf16.mxu1 %v16093_v43 }
 0x9f0   :  { %11288 = vmatpush1.bf16.msra.mxu0 %v16094_v32  ;;  %11320 = vmatpush1.bf16.msra.mxu1 %v16095_v37  ;;  %v4502_v37 = vadd.f32 1.0, %v12842_v11  ;;  %v16103_v11 = vld [vmem:[#allocation39_spill] sm:$0xff] }
 0x9f1   :  { %11290 = vmatprep.subr.bf16.mxu0 %v16096_v39  ;;  %11322 = vmatprep.subr.bf16.mxu1 %v16097_v38 }
 0x9f2   :  { %12849 = vrcp.f32 %v4502_v37  ;;  %v16102_v37 = vld [vmem:[#allocation22_spill] sm:$0xff] }
 0x9f4   :  { %11292 = vmatpush1.bf16.msra.mxu0 %v16098_v4  ;;  %11324 = vmatpush1.bf16.msra.mxu1 %v16099_v16 }
 0x9f5   :  { %11294 = vmatprep.subr.bf16.mxu0 %v14636_v20  ;;  %11326 = vmatprep.subr.bf16.mxu1 %v14638_v26 }
 0x9f6   :  { %v12846_v52 = vpop.eup %12845 }
 0x9f7   :  { %v12848_v32 = vpop.eup %12847  ;;  %v4509_v43 = vmul.f32 %v12846_v52, %v12844_v12  ;;  %v16104_v12 = vld [vmem:[#allocation23_spill] sm:$0xff]  ;;  %v16105_v52 = vld [vmem:[#allocation40_spill] sm:$0xff] }
 0x9f8   :  { %v4508_v10 = vmul.f32 %v12848_v32, %v4506_v14  ;;  %11296 = vmatpush1.bf16.msra.mxu0 %v14643_v60  ;;  %11328 = vmatpush1.bf16.msra.mxu1 %v14645_v30  ;;  %v16101_v32 = vld [vmem:[#allocation74_spill] sm:$0xff] }
 0x9f9   :  { %11298 = vmatprep.subr.bf16.mxu0 %v14649_v63  ;;  %11330 = vmatprep.subr.bf16.mxu1 %v14651_v53 }
 0x9fa   :  { %v14781_v16 = vadd.f32 %v4509_v43, %v4508_v10 }
 0x9fc   :  { %11300 = vmatpush1.bf16.msra.mxu0 %v14657_v54  ;;  %11332 = vmatpush1.bf16.msra.mxu1 %v14659_v8  ;;  %12851 = vtanh.f32 %v14781_v16  ;;  %v12850_v50 = vpop.eup %12849 }
 0x9fd   :  { %11302 = vmatprep.subr.bf16.mxu0 %v14663_v29  ;;  %11334 = vmatprep.subr.bf16.mxu1 %v14665_v3 }
 0xa00   :  { %11304 = vmatpush1.bf16.msra.mxu0 %v14670_v5  ;;  %11336 = vmatpush1.bf16.msra.mxu1 %v14672_v35 }
 0xa01   :  { %11306 = vmatprep.subr.bf16.mxu0 %v14676_v17  ;;  %11338 = vmatprep.subr.bf16.mxu1 %v14678_v46 }
 0xa04   :  { %11308 = vmatpush1.bf16.msra.mxu0 %v14682_v23  ;;  %11340 = vmatpush1.bf16.msra.mxu1 %v14684_v2 }
 0xa05   :  { %11342 = vmatprep.subr.bf16.mxu0 %v14480_v56  ;;  %11374 = vmatprep.subr.bf16.mxu1 %v14482_v57 }
 0xa06   :  { %v12852_v14 = vpop.eup %12851 }
 0xa07   :  { %v4512_v10 = vmul.f32 %v12852_v14, %v12850_v50  ;;  %v16106_v50 = vld [vmem:[#allocation24_spill] sm:$0xff]  ;;  %v16107_v14 = vld [vmem:[#allocation41_spill] sm:$0xff] }
 0xa09   :  { %v14796_v43 = vrot.slane %v4512_v10, 6  ;;  %v16108_v10 = vld [vmem:[#allocation25_spill] sm:$0xff] }
 0xa0b   :  { %16100 = vst [vmem:[#allocation36_spill] sm:$0xff] %v14796_v43  ;;  %4766 = vmatmul.mubr.f32.vlgmr.msra.gmra.mrb[46].mxu0 %v14796_v43  ;;  %4837 = vmatmul.mubr.f32.vlgmr.msra.gmra.mrb[62].mxu1 %v14796_v43  ;;  %v16109_v43 = vld [vmem:[#allocation42_spill] sm:$0xff] }
 0xa0c   :  { %11344 = vmatpush1.bf16.msra.mxu0 %v14484_v27  ;;  %11376 = vmatpush1.bf16.msra.mxu1 %v14487_v22 }
 0xa0d   :  { %11346 = vmatprep.subr.bf16.mxu0 %v14492_v55  ;;  %11378 = vmatprep.subr.bf16.mxu1 %v14494_v33 }
 0xa0e   :  { %4953 = vmatprep.mubr.f32.mxu0 %v15809_v58  ;;  %5024 = vmatprep.mubr.f32.mxu1 %v15809_v58 }
 0xa10   :  { %11348 = vmatpush1.bf16.msra.mxu0 %v14496_v59  ;;  %11380 = vmatpush1.bf16.msra.mxu1 %v14499_v9 }
 0xa11   :  { %11350 = vmatprep.subr.bf16.mxu0 %v14504_v47  ;;  %11382 = vmatprep.subr.bf16.mxu1 %v14506_v34 }
 0xa14   :  { %11352 = vmatpush1.bf16.msra.mxu0 %v14508_v13  ;;  %11384 = vmatpush1.bf16.msra.mxu1 %v14511_v40 }
 0xa15   :  { %11354 = vmatprep.subr.bf16.mxu0 %v14516_v28  ;;  %11386 = vmatprep.subr.bf16.mxu1 %v14518_v45 }
 0xa18   :  { %11356 = vmatpush1.bf16.msra.mxu0 %v14520_v49  ;;  %11388 = vmatpush1.bf16.msra.mxu1 %v14523_v36 }
 0xa19   :  { %11358 = vmatprep.subr.bf16.mxu0 %v14528_v25  ;;  %11390 = vmatprep.subr.bf16.mxu1 %v14530_v41  ;;  %v16113_v41 = vld [vmem:[#allocation35_spill] sm:$0xff] }
 0xa1c   :  { %11360 = vmatpush1.bf16.msra.mxu0 %v14532_v15  ;;  %11392 = vmatpush1.bf16.msra.mxu1 %v14535_v21  ;;  %v16112_v15 = vld [vmem:[#allocation52_spill] sm:$0xff] }
 0xa1d   :  { %11362 = vmatprep.subr.bf16.mxu0 %v14540_v51  ;;  %11394 = vmatprep.subr.bf16.mxu1 %v14542_v24  ;;  %v16110_v24 = vld [vmem:[#allocation26_spill] sm:$0xff] }
 0xa20   :  { %11364 = vmatpush1.bf16.msra.mxu0 %v14544_v7  ;;  %11396 = vmatpush1.bf16.msra.mxu1 %v16101_v32  ;;  %v16111_v7 = vld [vmem:[#allocation43_spill] sm:$0xff] }
 0xa21   :  { %11366 = vmatprep.subr.bf16.mxu0 %v16102_v37  ;;  %11398 = vmatprep.subr.bf16.mxu1 %v16103_v11 }
 0xa24   :  { %11368 = vmatpush1.bf16.msra.mxu0 %v16104_v12  ;;  %11400 = vmatpush1.bf16.msra.mxu1 %v16105_v52 }
 0xa25   :  { %11370 = vmatprep.subr.bf16.mxu0 %v16106_v50  ;;  %11402 = vmatprep.subr.bf16.mxu1 %v16107_v14 }
 0xa28   :  { %11372 = vmatpush1.bf16.msra.mxu0 %v16108_v10  ;;  %11404 = vmatpush1.bf16.msra.mxu1 %v16109_v43  ;;  %v16114_v43 = vld [vmem:[#allocation80_spill] sm:$0xff] }
 0xa29   :  { %11406 = vmatprep.subr.bf16.mxu0 %v16110_v24  ;;  %11438 = vmatprep.subr.bf16.mxu1 %v16111_v7  ;;  %v16115_v7 = vld [vmem:[#allocation79_spill] sm:$0xff] }
 0xaba   :  { %v4579_v32 = vpop.f32.mrb[44].mxu0  ;;  %v4650_v37 = vpop.f32.mrb[60].mxu1 }
 0xabb   :  { %v4659_v51 = vrot.slane %v4579_v32, 6  ;;  %v4581_v11 = vpop.f32.mrb[45].mxu0  ;;  %v4652_v21 = vpop.f32.mrb[61].mxu1  ;;  %v4661_v24 = vrot.slane %v4650_v37, 6 }
 0xabc   :  { %v4660_v12 = vrot.slane %v4581_v11, 6  ;;  %v4662_v36 = vrot.slane %v4652_v21, 6 }
 0xabd   :  { %v4667_v52 = vadd.f32 %v4659_v51, %v16112_v15  ;;  %v4669_v45 = vadd.f32 %v4661_v24, %v16115_v7 }
 0xabe   :  { %v4668_v50 = vadd.f32 %v4660_v12, %v16113_v41  ;;  %v4670_v10 = vadd.f32 %v4662_v36, %v16114_v43 }
 0xabf   :  { %v9605_v25 = vmul.f32 -1.442695, %v4667_v52 }
 0xac0   :  { %v9606_v14 = vmul.f32 -1.442695, %v4668_v50  ;;  %v9607_v49 = vmul.f32 -1.442695, %v4670_v10 }
 0xac1   :  { %12853 = vpow2.f32 %v9605_v25  ;;  %v4691_v25 = vrot.slane %v14739_v19, 6 }
 0xac2   :  { %12855 = vpow2.f32 %v9606_v14 }
 0xac3   :  { %12857 = vpow2.f32 %v9607_v49 }
 0xac4   :  { %12859 = vtanh.f32 %v4669_v45 }
 0xacb   :  { %v12854_v28 = vpop.eup %12853 }
 0xacc   :  { %v12856_v32 = vpop.eup %12855  ;;  %v4674_v40 = vadd.f32 1.0, %v12854_v28 }
 0xacd   :  { %v4680_v11 = vadd.f32 1.0, %v12856_v32  ;;  %v12858_v51 = vpop.eup %12857 }
 0xace   :  { %12861 = vrcp.f32 %v4674_v40  ;;  %v12860_v12 = vpop.eup %12859  ;;  %v4687_v36 = vadd.f32 1.0, %v12858_v51 }
 0xacf   :  { %12863 = vrcp.f32 %v4680_v11 }
 0xad0   :  { %12865 = vrcp.f32 %v4687_v36 }
 0xad8   :  { %v12862_v52 = vpop.eup %12861 }
 0xad9   :  { %v12864_v21 = vpop.eup %12863  ;;  %v4694_v50 = vmul.f32 %v12862_v52, %v12860_v12 }
 0xada   :  { %v4693_v37 = vmul.f32 %v12864_v21, %v4691_v25  ;;  %v12866_v51 = vpop.eup %12865 }
 0xadc   :  { %v14839_v14 = vadd.f32 %v4694_v50, %v4693_v37 }
 0xade   :  { %v4767_v24 = vpop.f32.mrb[46].mxu0  ;;  %v4838_v10 = vpop.f32.mrb[62].mxu1  ;;  %12867 = vtanh.f32 %v14839_v14 }
 0xadf   :  { %v4847_v28 = vrot.slane %v4767_v24, 4  ;;  %v4769_v45 = vpop.f32.mrb[47].mxu0  ;;  %v4840_v40 = vpop.f32.mrb[63].mxu1  ;;  %v4849_v21 = vrot.slane %v4838_v10, 4 }
 0xae0   :  { %v4848_v49 = vrot.slane %v4769_v45, 4  ;;  %v4850_v12 = vrot.slane %v4840_v40, 4  ;;  %v16117_v40 = vld [vmem:[#allocation47_spill] sm:$0xff] }
 0xae1   :  { %v4855_v32 = vadd.f32 %v4847_v28, %v14743_v44  ;;  %v4857_v24 = vadd.f32 %v4849_v21, %v16087_v0 }
 0xae2   :  { %v4856_v11 = vadd.f32 %v4848_v49, %v14747_v1  ;;  %v4858_v25 = vadd.f32 %v4850_v12, %v16085_v48  ;;  %v16118_v49 = vld [vmem:[#allocation30_spill] sm:$0xff]  ;;  %v16121_v12 = vld [vmem:[#allocation33_spill] sm:$0xff] }
 0xae3   :  { %v9608_v19 = vmul.f32 -1.442695, %v4855_v32  ;;  %v16119_v32 = vld [vmem:[#allocation48_spill] sm:$0xff] }
 0xae4   :  { %v9609_v7 = vmul.f32 -1.442695, %v4856_v11  ;;  %v9610_v37 = vmul.f32 -1.442695, %v4858_v25  ;;  %v16120_v11 = vld [vmem:[#allocation31_spill] sm:$0xff]  ;;  %v4879_v25 = vrot.slane %v14781_v16, 2 }
 0xae5   :  { %12869 = vpow2.f32 %v9608_v19 }
 0xae6   :  { %12871 = vpow2.f32 %v9609_v7 }
 0xae7   :  { %12873 = vpow2.f32 %v9610_v37 }
 0xae8   :  { %v12868_v52 = vpop.eup %12867  ;;  %12875 = vtanh.f32 %v4857_v24 }
 0xae9   :  { %v4697_v50 = vmul.f32 %v12868_v52, %v12866_v51 }
 0xaeb   :  { %v14845_v36 = vrot.slane %v4697_v50, 2 }
 0xaed   :  { %16116 = vst [vmem:[#allocation55_spill] sm:$0xff] %v14845_v36  ;;  %4954 = vmatmul.mubr.f32.vlgmr.msra.gmra.mrb[48].mxu0 %v14845_v36  ;;  %5025 = vmatmul.mubr.f32.vlgmr.msra.gmra.mrb[64].mxu1 %v14845_v36  ;;  %v16134_v36 = vld [vmem:[#allocation66_spill] sm:$0xff] }
 0xaee   :  { %11408 = vmatpush1.bf16.msra.mxu0 %v14593_v62  ;;  %11440 = vmatpush1.bf16.msra.mxu1 %v14595_v61 }
 0xaef   :  { %v12870_v7 = vpop.eup %12869  ;;  %11410 = vmatprep.subr.bf16.mxu0 %v16088_v18  ;;  %11442 = vmatprep.subr.bf16.mxu1 %v16089_v31 }
 0xaf0   :  { %v12872_v10 = vpop.eup %12871  ;;  %v4862_v28 = vadd.f32 1.0, %v12870_v7  ;;  %5141 = vmatprep.mubr.f32.mxu0 %v15809_v58  ;;  %5212 = vmatprep.mubr.f32.mxu1 %v15809_v58 }
 0xaf1   :  { %v4868_v45 = vadd.f32 1.0, %v12872_v10  ;;  %v12874_v19 = vpop.eup %12873 }
 0xaf2   :  { %12877 = vrcp.f32 %v4862_v28  ;;  %11412 = vmatpush1.bf16.msra.mxu0 %v16090_v6  ;;  %11444 = vmatpush1.bf16.msra.mxu1 %v16091_v42  ;;  %v12876_v51 = vpop.eup %12875  ;;  %v4875_v37 = vadd.f32 1.0, %v12874_v19  ;;  %v16123_v19 = vld [vmem:[#allocation34_spill] sm:$0xff] }
 0xaf3   :  { %12879 = vrcp.f32 %v4868_v45  ;;  %11414 = vmatprep.subr.bf16.mxu0 %v16117_v40  ;;  %11446 = vmatprep.subr.bf16.mxu1 %v16118_v49 }
 0xaf4   :  { %12881 = vrcp.f32 %v4875_v37  ;;  %v16129_v37 = vld [vmem:[#allocation75_spill] sm:$0xff] }
 0xaf6   :  { %11416 = vmatpush1.bf16.msra.mxu0 %v16119_v32  ;;  %11448 = vmatpush1.bf16.msra.mxu1 %v16120_v11 }
 0xaf7   :  { %11418 = vmatprep.subr.bf16.mxu0 %v16096_v39  ;;  %11450 = vmatprep.subr.bf16.mxu1 %v16097_v38 }
 0xafa   :  { %11420 = vmatpush1.bf16.msra.mxu0 %v16098_v4  ;;  %11452 = vmatpush1.bf16.msra.mxu1 %v16121_v12 }
 0xafb   :  { %11422 = vmatprep.subr.bf16.mxu0 %v14636_v20  ;;  %11454 = vmatprep.subr.bf16.mxu1 %v14638_v26 }
 0xafc   :  { %v12878_v52 = vpop.eup %12877 }
 0xafd   :  { %v12880_v21 = vpop.eup %12879  ;;  %v4882_v50 = vmul.f32 %v12878_v52, %v12876_v51  ;;  %v16124_v51 = vld [vmem:[#allocation20_spill] sm:$0xff]  ;;  %v16125_v52 = vld [vmem:[#allocation37_spill] sm:$0xff] }
 0xafe   :  { %v4881_v24 = vmul.f32 %v12880_v21, %v4879_v25  ;;  %11424 = vmatpush1.bf16.msra.mxu0 %v14643_v60  ;;  %11456 = vmatpush1.bf16.msra.mxu1 %v14645_v30  ;;  %v12882_v16 = vpop.eup %12881  ;;  %v16126_v25 = vld [vmem:[#allocation21_spill] sm:$0xff]  ;;  %v16127_v21 = vld [vmem:[#allocation38_spill] sm:$0xff] }
 0xaff   :  { %11426 = vmatprep.subr.bf16.mxu0 %v14649_v63  ;;  %11458 = vmatprep.subr.bf16.mxu1 %v14651_v53 }
 0xb00   :  { %v14873_v7 = vadd.f32 %v4882_v50, %v4881_v24  ;;  %v16128_v50 = vld [vmem:[#allocation87_spill] sm:$0xff]  ;;  %v16130_v24 = vld [vmem:[#allocation76_spill] sm:$0xff] }
 0xb02   :  { %11428 = vmatpush1.bf16.msra.mxu0 %v14657_v54  ;;  %11460 = vmatpush1.bf16.msra.mxu1 %v14659_v8  ;;  %12883 = vtanh.f32 %v14873_v7 }
 0xb03   :  { %11430 = vmatprep.subr.bf16.mxu0 %v14663_v29  ;;  %11462 = vmatprep.subr.bf16.mxu1 %v14665_v3 }
 0xb06   :  { %11432 = vmatpush1.bf16.msra.mxu0 %v14670_v5  ;;  %11464 = vmatpush1.bf16.msra.mxu1 %v14672_v35 }
 0xb07   :  { %11434 = vmatprep.subr.bf16.mxu0 %v14676_v17  ;;  %11466 = vmatprep.subr.bf16.mxu1 %v14678_v46 }
 0xb0a   :  { %11436 = vmatpush1.bf16.msra.mxu0 %v14682_v23  ;;  %11468 = vmatpush1.bf16.msra.mxu1 %v14684_v2 }
 0xb0b   :  { %11470 = vmatprep.subr.bf16.mxu0 %v14480_v56  ;;  %11502 = vmatprep.subr.bf16.mxu1 %v14482_v57 }
 0xb0c   :  { %v12884_v10 = vpop.eup %12883 }
 0xb0d   :  { %v4885_v28 = vmul.f32 %v12884_v10, %v12882_v16  ;;  %v16131_v16 = vld [vmem:[#allocation78_spill] sm:$0xff]  ;;  %v16132_v10 = vld [vmem:[#allocation77_spill] sm:$0xff] }
 0xb0f   :  { %v14888_v45 = vrot.slane %v4885_v28, 4  ;;  %v16133_v28 = vld [vmem:[#allocation63_spill] sm:$0xff] }
 0xb11   :  { %16122 = vst [vmem:[#allocation72_spill] sm:$0xff] %v14888_v45  ;;  %5142 = vmatmul.mubr.f32.vlgmr.msra.gmra.mrb[50].mxu0 %v14888_v45  ;;  %5213 = vmatmul.mubr.f32.vlgmr.msra.gmra.mrb[66].mxu1 %v14888_v45  ;;  %v16135_v45 = vld [vmem:[#allocation74_spill] sm:$0xff] }
 0xb12   :  { %11472 = vmatpush1.bf16.msra.mxu0 %v14484_v27  ;;  %11504 = vmatpush1.bf16.msra.mxu1 %v14487_v22 }
 0xb13   :  { %11474 = vmatprep.subr.bf16.mxu0 %v14492_v55  ;;  %11506 = vmatprep.subr.bf16.mxu1 %v14494_v33 }
 0xb14   :  { %5329 = vmatprep.mubr.f32.mxu0 %v15809_v58  ;;  %5400 = vmatprep.mubr.f32.mxu1 %v15809_v58 }
 0xb16   :  { %11476 = vmatpush1.bf16.msra.mxu0 %v14496_v59  ;;  %11508 = vmatpush1.bf16.msra.mxu1 %v14499_v9 }
 0xb17   :  { %11478 = vmatprep.subr.bf16.mxu0 %v14504_v47  ;;  %11510 = vmatprep.subr.bf16.mxu1 %v14506_v34 }
 0xb1a   :  { %11480 = vmatpush1.bf16.msra.mxu0 %v14508_v13  ;;  %11512 = vmatpush1.bf16.msra.mxu1 %v16123_v19 }
 0xb1b   :  { %11482 = vmatprep.subr.bf16.mxu0 %v16124_v51  ;;  %11514 = vmatprep.subr.bf16.mxu1 %v16125_v52  ;;  %v16136_v52 = vld [vmem:[#allocation22_spill] sm:$0xff] }
 0xb1e   :  { %11484 = vmatpush1.bf16.msra.mxu0 %v16126_v25  ;;  %11516 = vmatpush1.bf16.msra.mxu1 %v16127_v21  ;;  %v16137_v25 = vld [vmem:[#allocation39_spill] sm:$0xff] }
 0xb1f   :  { %11486 = vmatprep.subr.bf16.mxu0 %v16128_v50  ;;  %11518 = vmatprep.subr.bf16.mxu1 %v16129_v37  ;;  %v16138_v21 = vld [vmem:[#allocation23_spill] sm:$0xff]  ;;  %v16139_v50 = vld [vmem:[#allocation40_spill] sm:$0xff] }
 0xb20   :  { %v16140_v37 = vld [vmem:[#allocation24_spill] sm:$0xff] }
 0xb22   :  { %11488 = vmatpush1.bf16.msra.mxu0 %v16130_v24  ;;  %11520 = vmatpush1.bf16.msra.mxu1 %v16131_v16  ;;  %v16141_v24 = vld [vmem:[#allocation41_spill] sm:$0xff] }
 0xb23   :  { %11490 = vmatprep.subr.bf16.mxu0 %v16132_v10  ;;  %11522 = vmatprep.subr.bf16.mxu1 %v16133_v28  ;;  %v16142_v16 = vld [vmem:[#allocation25_spill] sm:$0xff]  ;;  %v16143_v10 = vld [vmem:[#allocation42_spill] sm:$0xff] }
 0xb24   :  { %v16144_v28 = vld [vmem:[#allocation26_spill] sm:$0xff] }
 0xb26   :  { %11492 = vmatpush1.bf16.msra.mxu0 %v16134_v36  ;;  %11524 = vmatpush1.bf16.msra.mxu1 %v16135_v45  ;;  %v16145_v36 = vld [vmem:[#allocation43_spill] sm:$0xff] }
 0xb27   :  { %11494 = vmatprep.subr.bf16.mxu0 %v16136_v52  ;;  %11526 = vmatprep.subr.bf16.mxu1 %v16137_v25 }
 0xb2a   :  { %11496 = vmatpush1.bf16.msra.mxu0 %v16138_v21  ;;  %11528 = vmatpush1.bf16.msra.mxu1 %v16139_v50 }
 0xb2b   :  { %11498 = vmatprep.subr.bf16.mxu0 %v16140_v37  ;;  %11530 = vmatprep.subr.bf16.mxu1 %v16141_v24 }
 0xb2e   :  { %11500 = vmatpush1.bf16.msra.mxu0 %v16142_v16  ;;  %11532 = vmatpush1.bf16.msra.mxu1 %v16143_v10 }
 0xb2f   :  { %11534 = vmatprep.subr.bf16.mxu0 %v16144_v28  ;;  %11566 = vmatprep.subr.bf16.mxu1 %v16145_v36  ;;  %v16146_v36 = vld [vmem:[#allocation79_spill] sm:$0xff] }
 0xbc0   :  { %v4955_v45 = vpop.f32.mrb[48].mxu0  ;;  %v5026_v52 = vpop.f32.mrb[64].mxu1 }
 0xbc1   :  { %v5035_v51 = vrot.slane %v4955_v45, 4  ;;  %v4957_v25 = vpop.f32.mrb[49].mxu0  ;;  %v5028_v19 = vpop.f32.mrb[65].mxu1  ;;  %v5037_v28 = vrot.slane %v5026_v52, 4 }
 0xbc2   :  { %v5036_v21 = vrot.slane %v4957_v25, 4  ;;  %v5038_v34 = vrot.slane %v5028_v19, 4 }
 0xbc3   :  { %v5043_v50 = vadd.f32 %v5035_v51, %v16112_v15  ;;  %v5045_v47 = vadd.f32 %v5037_v28, %v16146_v36 }
 0xbc4   :  { %v5044_v37 = vadd.f32 %v5036_v21, %v16113_v41  ;;  %v5046_v10 = vadd.f32 %v5038_v34, %v16114_v43 }
 0xbc5   :  { %v9611_v13 = vmul.f32 -1.442695, %v5043_v50 }
 0xbc6   :  { %v9612_v24 = vmul.f32 -1.442695, %v5044_v37  ;;  %v9613_v16 = vmul.f32 -1.442695, %v5046_v10 }
 0xbc7   :  { %12885 = vpow2.f32 %v9611_v13  ;;  %v5067_v13 = vrot.slane %v14839_v14, 6 }
 0xbc8   :  { %12887 = vpow2.f32 %v9612_v24 }
 0xbc9   :  { %12889 = vpow2.f32 %v9613_v16 }
 0xbca   :  { %12891 = vtanh.f32 %v5045_v47 }
 0xbd1   :  { %v12886_v9 = vpop.eup %12885 }
 0xbd2   :  { %v12888_v45 = vpop.eup %12887  ;;  %v5050_v59 = vadd.f32 1.0, %v12886_v9 }
 0xbd3   :  { %v5056_v25 = vadd.f32 1.0, %v12888_v45  ;;  %v12890_v51 = vpop.eup %12889 }
 0xbd4   :  { %12893 = vrcp.f32 %v5050_v59  ;;  %v12892_v21 = vpop.eup %12891  ;;  %v5063_v34 = vadd.f32 1.0, %v12890_v51 }
 0xbd5   :  { %12895 = vrcp.f32 %v5056_v25 }
 0xbd6   :  { %12897 = vrcp.f32 %v5063_v34 }
 0xbde   :  { %v12894_v50 = vpop.eup %12893 }
 0xbdf   :  { %v12896_v19 = vpop.eup %12895  ;;  %v5070_v37 = vmul.f32 %v12894_v50, %v12892_v21 }
 0xbe0   :  { %v5069_v52 = vmul.f32 %v12896_v19, %v5067_v13  ;;  %v12898_v51 = vpop.eup %12897 }
 0xbe2   :  { %v14931_v24 = vadd.f32 %v5070_v37, %v5069_v52 }
 0xbe4   :  { %v5143_v10 = vpop.f32.mrb[50].mxu0  ;;  %v5214_v28 = vpop.f32.mrb[66].mxu1  ;;  %12899 = vtanh.f32 %v14931_v24 }
 0xbe5   :  { %v5223_v9 = vrot.slane %v5143_v10, 6  ;;  %v5145_v47 = vpop.f32.mrb[51].mxu0  ;;  %v5216_v59 = vpop.f32.mrb[67].mxu1  ;;  %v5225_v19 = vrot.slane %v5214_v28, 6 }
 0xbe6   :  { %v5224_v16 = vrot.slane %v5145_v47, 6  ;;  %v5226_v21 = vrot.slane %v5216_v59, 6 }
 0xbe7   :  { %v5231_v45 = vadd.f32 %v5223_v9, %v14743_v44  ;;  %v5233_v10 = vadd.f32 %v5225_v19, %v16087_v0 }
 0xbe8   :  { %v5232_v25 = vadd.f32 %v5224_v16, %v14747_v1  ;;  %v5234_v13 = vadd.f32 %v5226_v21, %v16085_v48 }
 0xbe9   :  { %v9614_v14 = vmul.f32 -1.442695, %v5231_v45 }
 0xbea   :  { %v9615_v36 = vmul.f32 -1.442695, %v5232_v25  ;;  %v9616_v52 = vmul.f32 -1.442695, %v5234_v13  ;;  %v5255_v25 = vrot.slane %v14873_v7, 2 }
 0xbeb   :  { %12901 = vpow2.f32 %v9614_v14 }
 0xbec   :  { %12903 = vpow2.f32 %v9615_v36 }
 0xbed   :  { %12905 = vpow2.f32 %v9616_v52 }
 0xbee   :  { %v12900_v50 = vpop.eup %12899  ;;  %12907 = vtanh.f32 %v5233_v10  ;;  %v16149_v10 = vld [vmem:[#allocation46_spill] sm:$0xff] }
 0xbef   :  { %v5073_v37 = vmul.f32 %v12900_v50, %v12898_v51 }
 0xbf1   :  { %v14937_v34 = vrot.slane %v5073_v37, 4 }
 0xbf3   :  { %16147 = vst [vmem:[#allocation61_spill] sm:$0xff] %v14937_v34  ;;  %5330 = vmatmul.mubr.f32.vlgmr.msra.gmra.mrb[52].mxu0 %v14937_v34  ;;  %5401 = vmatmul.mubr.f32.vlgmr.msra.gmra.mrb[68].mxu1 %v14937_v34  ;;  %v16165_v34 = vld [vmem:[#allocation66_spill] sm:$0xff] }
 0xbf4   :  { %11536 = vmatpush1.bf16.msra.mxu0 %v14593_v62  ;;  %11568 = vmatpush1.bf16.msra.mxu1 %v14595_v61 }
 0xbf5   :  { %v12902_v36 = vpop.eup %12901  ;;  %11538 = vmatprep.subr.bf16.mxu0 %v16088_v18  ;;  %11570 = vmatprep.subr.bf16.mxu1 %v16089_v31 }
 0xbf6   :  { %v12904_v28 = vpop.eup %12903  ;;  %v5238_v9 = vadd.f32 1.0, %v12902_v36  ;;  %5517 = vmatprep.mubr.f32.mxu0 %v15809_v58  ;;  %5588 = vmatprep.mubr.f32.mxu1 %v15809_v58  ;;  %v16150_v36 = vld [vmem:[#allocation49_spill] sm:$0xff] }
 0xbf7   :  { %v5244_v47 = vadd.f32 1.0, %v12904_v28  ;;  %v12906_v59 = vpop.eup %12905  ;;  %v16151_v28 = vld [vmem:[#allocation54_spill] sm:$0xff] }
 0xbf8   :  { %12909 = vrcp.f32 %v5238_v9  ;;  %11540 = vmatpush1.bf16.msra.mxu0 %v16090_v6  ;;  %11572 = vmatpush1.bf16.msra.mxu1 %v16091_v42  ;;  %v12908_v16 = vpop.eup %12907  ;;  %v5251_v51 = vadd.f32 1.0, %v12906_v59  ;;  %v16152_v9 = vld [vmem:[#allocation56_spill] sm:$0xff]  ;;  %v16154_v59 = vld [vmem:[#allocation34_spill] sm:$0xff] }
 0xbf9   :  { %12911 = vrcp.f32 %v5244_v47  ;;  %11542 = vmatprep.subr.bf16.mxu0 %v16117_v40  ;;  %11574 = vmatprep.subr.bf16.mxu1 %v16118_v49  ;;  %v16153_v47 = vld [vmem:[#allocation19_spill] sm:$0xff] }
 0xbfa   :  { %12913 = vrcp.f32 %v5251_v51  ;;  %v16160_v51 = vld [vmem:[#allocation75_spill] sm:$0xff] }
 0xbfc   :  { %11544 = vmatpush1.bf16.msra.mxu0 %v16119_v32  ;;  %11576 = vmatpush1.bf16.msra.mxu1 %v16120_v11 }
 0xbfd   :  { %11546 = vmatprep.subr.bf16.mxu0 %v16096_v39  ;;  %11578 = vmatprep.subr.bf16.mxu1 %v16097_v38 }
 0xc00   :  { %11548 = vmatpush1.bf16.msra.mxu0 %v16098_v4  ;;  %11580 = vmatpush1.bf16.msra.mxu1 %v16121_v12 }
 0xc01   :  { %11550 = vmatprep.subr.bf16.mxu0 %v14636_v20  ;;  %11582 = vmatprep.subr.bf16.mxu1 %v14638_v26 }
 0xc02   :  { %v12910_v45 = vpop.eup %12909 }
 0xc03   :  { %v12912_v14 = vpop.eup %12911  ;;  %v5258_v21 = vmul.f32 %v12910_v45, %v12908_v16  ;;  %v16155_v16 = vld [vmem:[#allocation20_spill] sm:$0xff]  ;;  %v16156_v45 = vld [vmem:[#allocation37_spill] sm:$0xff] }
 0xc04   :  { %v5257_v50 = vmul.f32 %v12912_v14, %v5255_v25  ;;  %11552 = vmatpush1.bf16.msra.mxu0 %v14643_v60  ;;  %11584 = vmatpush1.bf16.msra.mxu1 %v14645_v30  ;;  %v12914_v7 = vpop.eup %12913  ;;  %v16157_v25 = vld [vmem:[#allocation21_spill] sm:$0xff]  ;;  %v16158_v14 = vld [vmem:[#allocation38_spill] sm:$0xff] }
 0xc05   :  { %11554 = vmatprep.subr.bf16.mxu0 %v14649_v63  ;;  %11586 = vmatprep.subr.bf16.mxu1 %v14651_v53 }
 0xc06   :  { %v14965_v13 = vadd.f32 %v5258_v21, %v5257_v50  ;;  %v16159_v21 = vld [vmem:[#allocation87_spill] sm:$0xff]  ;;  %v16161_v50 = vld [vmem:[#allocation76_spill] sm:$0xff] }
 0xc08   :  { %11556 = vmatpush1.bf16.msra.mxu0 %v14657_v54  ;;  %11588 = vmatpush1.bf16.msra.mxu1 %v14659_v8  ;;  %12915 = vtanh.f32 %v14965_v13 }
 0xc09   :  { %11558 = vmatprep.subr.bf16.mxu0 %v14663_v29  ;;  %11590 = vmatprep.subr.bf16.mxu1 %v14665_v3 }
 0xc0c   :  { %11560 = vmatpush1.bf16.msra.mxu0 %v14670_v5  ;;  %11592 = vmatpush1.bf16.msra.mxu1 %v14672_v35 }
 0xc0d   :  { %11562 = vmatprep.subr.bf16.mxu0 %v14676_v17  ;;  %11594 = vmatprep.subr.bf16.mxu1 %v14678_v46 }
 0xc10   :  { %11564 = vmatpush1.bf16.msra.mxu0 %v14682_v23  ;;  %11596 = vmatpush1.bf16.msra.mxu1 %v14684_v2 }
 0xc11   :  { %11598 = vmatprep.subr.bf16.mxu0 %v14480_v56  ;;  %11630 = vmatprep.subr.bf16.mxu1 %v14482_v57 }
 0xc12   :  { %v12916_v19 = vpop.eup %12915 }
 0xc13   :  { %v5261_v37 = vmul.f32 %v12916_v19, %v12914_v7  ;;  %v16162_v7 = vld [vmem:[#allocation78_spill] sm:$0xff]  ;;  %v16163_v19 = vld [vmem:[#allocation77_spill] sm:$0xff] }
 0xc15   :  { %v14980_v52 = vrot.slane %v5261_v37, 2  ;;  %v16164_v37 = vld [vmem:[#allocation63_spill] sm:$0xff] }
 0xc17   :  { %16148 = vst [vmem:[#allocation59_spill] sm:$0xff] %v14980_v52  ;;  %5518 = vmatmul.mubr.f32.vlgmr.msra.gmra.mrb[54].mxu0 %v14980_v52  ;;  %5589 = vmatmul.mubr.f32.vlgmr.msra.gmra.mrb[70].mxu1 %v14980_v52  ;;  %v16166_v52 = vld [vmem:[#allocation74_spill] sm:$0xff] }
 0xc18   :  { %11600 = vmatpush1.bf16.msra.mxu0 %v14484_v27  ;;  %11632 = vmatpush1.bf16.msra.mxu1 %v14487_v22 }
 0xc19   :  { %11602 = vmatprep.subr.bf16.mxu0 %v14492_v55  ;;  %11634 = vmatprep.subr.bf16.mxu1 %v14494_v33 }
 0xc1a   :  { %5693 = vmatprep.mubr.f32.mxu0 %v15809_v58  ;;  %5764 = vmatprep.mubr.f32.mxu1 %v15809_v58 }
 0xc1c   :  { %11604 = vmatpush1.bf16.msra.mxu0 %v16149_v10  ;;  %11636 = vmatpush1.bf16.msra.mxu1 %v16150_v36 }
 0xc1d   :  { %11606 = vmatprep.subr.bf16.mxu0 %v16151_v28  ;;  %11638 = vmatprep.subr.bf16.mxu1 %v16152_v9 }
 0xc20   :  { %11608 = vmatpush1.bf16.msra.mxu0 %v16153_v47  ;;  %11640 = vmatpush1.bf16.msra.mxu1 %v16154_v59 }
 0xc21   :  { %11610 = vmatprep.subr.bf16.mxu0 %v16155_v16  ;;  %11642 = vmatprep.subr.bf16.mxu1 %v16156_v45  ;;  %v16167_v45 = vld [vmem:[#allocation22_spill] sm:$0xff] }
 0xc24   :  { %11612 = vmatpush1.bf16.msra.mxu0 %v16157_v25  ;;  %11644 = vmatpush1.bf16.msra.mxu1 %v16158_v14  ;;  %v16168_v25 = vld [vmem:[#allocation39_spill] sm:$0xff] }
 0xc25   :  { %11614 = vmatprep.subr.bf16.mxu0 %v16159_v21  ;;  %11646 = vmatprep.subr.bf16.mxu1 %v16160_v51  ;;  %v16169_v14 = vld [vmem:[#allocation23_spill] sm:$0xff]  ;;  %v16170_v21 = vld [vmem:[#allocation40_spill] sm:$0xff] }
 0xc26   :  { %v16171_v51 = vld [vmem:[#allocation24_spill] sm:$0xff] }
 0xc28   :  { %11616 = vmatpush1.bf16.msra.mxu0 %v16161_v50  ;;  %11648 = vmatpush1.bf16.msra.mxu1 %v16162_v7  ;;  %v16172_v50 = vld [vmem:[#allocation41_spill] sm:$0xff] }
 0xc29   :  { %11618 = vmatprep.subr.bf16.mxu0 %v16163_v19  ;;  %11650 = vmatprep.subr.bf16.mxu1 %v16164_v37  ;;  %v16173_v7 = vld [vmem:[#allocation25_spill] sm:$0xff]  ;;  %v16174_v19 = vld [vmem:[#allocation42_spill] sm:$0xff] }
 0xc2a   :  { %v16175_v37 = vld [vmem:[#allocation26_spill] sm:$0xff] }
 0xc2c   :  { %11620 = vmatpush1.bf16.msra.mxu0 %v16165_v34  ;;  %11652 = vmatpush1.bf16.msra.mxu1 %v16166_v52  ;;  %v16176_v34 = vld [vmem:[#allocation43_spill] sm:$0xff] }
 0xc2d   :  { %11622 = vmatprep.subr.bf16.mxu0 %v16167_v45  ;;  %11654 = vmatprep.subr.bf16.mxu1 %v16168_v25 }
 0xc30   :  { %11624 = vmatpush1.bf16.msra.mxu0 %v16169_v14  ;;  %11656 = vmatpush1.bf16.msra.mxu1 %v16170_v21 }
 0xc31   :  { %11626 = vmatprep.subr.bf16.mxu0 %v16171_v51  ;;  %11658 = vmatprep.subr.bf16.mxu1 %v16172_v50 }
 0xc34   :  { %11628 = vmatpush1.bf16.msra.mxu0 %v16173_v7  ;;  %11660 = vmatpush1.bf16.msra.mxu1 %v16174_v19 }
 0xc35   :  { %11662 = vmatprep.subr.bf16.mxu0 %v16175_v37  ;;  %11694 = vmatprep.subr.bf16.mxu1 %v16176_v34  ;;  %v16177_v34 = vld [vmem:[#allocation79_spill] sm:$0xff] }
 0xcc6   :  { %v5331_v52 = vpop.f32.mrb[52].mxu0  ;;  %v5402_v45 = vpop.f32.mrb[68].mxu1 }
 0xcc7   :  { %v5411_v16 = vrot.slane %v5331_v52, 2  ;;  %v5333_v25 = vpop.f32.mrb[53].mxu0  ;;  %v5404_v59 = vpop.f32.mrb[69].mxu1  ;;  %v5413_v37 = vrot.slane %v5402_v45, 2 }
 0xcc8   :  { %v5412_v14 = vrot.slane %v5333_v25, 2  ;;  %v5414_v9 = vrot.slane %v5404_v59, 2 }
 0xcc9   :  { %v5419_v21 = vadd.f32 %v5411_v16, %v16112_v15  ;;  %v5421_v28 = vadd.f32 %v5413_v37, %v16177_v34 }
 0xcca   :  { %v5420_v51 = vadd.f32 %v5412_v14, %v16113_v41  ;;  %v5422_v19 = vadd.f32 %v5414_v9, %v16114_v43 }
 0xccb   :  { %v9617_v47 = vmul.f32 -1.442695, %v5419_v21 }
 0xccc   :  { %v9618_v50 = vmul.f32 -1.442695, %v5420_v51  ;;  %v9619_v7 = vmul.f32 -1.442695, %v5422_v19 }
 0xccd   :  { %12917 = vpow2.f32 %v9617_v47  ;;  %v5443_v47 = vrot.slane %v14931_v24, 6 }
 0xcce   :  { %12919 = vpow2.f32 %v9618_v50 }
 0xccf   :  { %12921 = vpow2.f32 %v9619_v7 }
 0xcd0   :  { %12923 = vtanh.f32 %v5421_v28 }
 0xcd7   :  { %v12918_v36 = vpop.eup %12917 }
 0xcd8   :  { %v12920_v52 = vpop.eup %12919  ;;  %v5426_v10 = vadd.f32 1.0, %v12918_v36 }
 0xcd9   :  { %v5432_v25 = vadd.f32 1.0, %v12920_v52  ;;  %v12922_v41 = vpop.eup %12921 }
 0xcda   :  { %12925 = vrcp.f32 %v5426_v10  ;;  %v12924_v15 = vpop.eup %12923  ;;  %v5439_v43 = vadd.f32 1.0, %v12922_v41 }
 0xcdb   :  { %12927 = vrcp.f32 %v5432_v25 }
 0xcdc   :  { %12929 = vrcp.f32 %v5439_v43 }
 0xce4   :  { %v12926_v16 = vpop.eup %12925 }
 0xce5   :  { %v12928_v59 = vpop.eup %12927  ;;  %v5446_v14 = vmul.f32 %v12926_v16, %v12924_v15 }
 0xce6   :  { %v5445_v9 = vmul.f32 %v12928_v59, %v5443_v47  ;;  %v12930_v19 = vpop.eup %12929 }
 0xce8   :  { %v15023_v45 = vadd.f32 %v5446_v14, %v5445_v9  ;;  %v5619_v14 = vrot.slane %v14965_v13, 2 }
 0xcea   :  { %v5519_v34 = vpop.f32.mrb[54].mxu0  ;;  %v5590_v21 = vpop.f32.mrb[70].mxu1  ;;  %12931 = vtanh.f32 %v15023_v45 }
 0xceb   :  { %v5595_v36 = vadd.f32 %v5519_v34, %v14743_v44  ;;  %v5521_v10 = vpop.f32.mrb[55].mxu0  ;;  %v5592_v28 = vpop.f32.mrb[71].mxu1  ;;  %v5597_v41 = vadd.f32 %v5590_v21, %v16087_v0 }
 0xcec   :  { %v5596_v51 = vadd.f32 %v5521_v10, %v14747_v1  ;;  %v5598_v24 = vadd.f32 %v5592_v28, %v16085_v48 }
 0xced   :  { %v9620_v50 = vmul.f32 -1.442695, %v5595_v36 }
 0xcee   :  { %v9621_v7 = vmul.f32 -1.442695, %v5596_v51  ;;  %v9622_v25 = vmul.f32 -1.442695, %v5598_v24  ;;  %v16180_v51 = vld [vmem:[#allocation46_spill] sm:$0xff]  ;;  %v16183_v24 = vld [vmem:[#allocation56_spill] sm:$0xff] }
 0xcef   :  { %12933 = vpow2.f32 %v9620_v50  ;;  %v16181_v50 = vld [vmem:[#allocation49_spill] sm:$0xff] }
 0xcf0   :  { %12935 = vpow2.f32 %v9621_v7  ;;  %v16182_v7 = vld [vmem:[#allocation54_spill] sm:$0xff] }
 0xcf1   :  { %12937 = vpow2.f32 %v9622_v25  ;;  %v16187_v25 = vld [vmem:[#allocation37_spill] sm:$0xff] }
 0xcf2   :  { %12939 = vtanh.f32 %v5597_v41  ;;  %v16188_v41 = vld [vmem:[#allocation21_spill] sm:$0xff] }
 0xcf4   :  { %v12932_v37 = vpop.eup %12931 }
 0xcf5   :  { %v5449_v52 = vmul.f32 %v12932_v37, %v12930_v19  ;;  %v16184_v19 = vld [vmem:[#allocation19_spill] sm:$0xff]  ;;  %v16185_v37 = vld [vmem:[#allocation34_spill] sm:$0xff] }
 0xcf7   :  { %v15030_v15 = vrot.slane %v5449_v52, 6  ;;  %v16186_v52 = vld [vmem:[#allocation20_spill] sm:$0xff] }
 0xcf9   :  { %16178 = vst [vmem:[#allocation62_spill] sm:$0xff] %v15030_v15  ;;  %v12934_v16 = vpop.eup %12933  ;;  %5694 = vmatmul.mubr.f32.vlgmr.msra.gmra.mrb[56].mxu0 %v15030_v15  ;;  %5765 = vmatmul.mubr.f32.vlgmr.msra.gmra.mrb[72].mxu1 %v15030_v15  ;;  %v16204_v15 = vld [vmem:[#allocation25_spill] sm:$0xff] }
 0xcfa   :  { %v12936_v1 = vpop.eup %12935  ;;  %v5602_v44 = vadd.f32 1.0, %v12934_v16  ;;  %11664 = vmatpush1.bf16.msra.mxu0 %v14593_v62  ;;  %11696 = vmatpush1.bf16.msra.mxu1 %v14595_v61  ;;  %v16189_v16 = vld [vmem:[#allocation38_spill] sm:$0xff] }
 0xcfb   :  { %v5608_v48 = vadd.f32 1.0, %v12936_v1  ;;  %11666 = vmatprep.subr.bf16.mxu0 %v16088_v18  ;;  %11698 = vmatprep.subr.bf16.mxu1 %v16089_v31  ;;  %v12938_v0 = vpop.eup %12937  ;;  %v16190_v1 = vld [vmem:[#allocation87_spill] sm:$0xff] }
 0xcfc   :  { %12941 = vrcp.f32 %v5602_v44  ;;  %5866 = vmatprep.mubr.f32.mxu0 %v15809_v58  ;;  %5937 = vmatprep.mubr.f32.mxu1 %v15809_v58  ;;  %v12940_v47 = vpop.eup %12939  ;;  %v5615_v34 = vadd.f32 1.0, %v12938_v0  ;;  %v16191_v44 = vld [vmem:[#allocation75_spill] sm:$0xff]  ;;  %v16193_v0 = vld [vmem:[#allocation78_spill] sm:$0xff] }
 0xcfd   :  { %12943 = vrcp.f32 %v5608_v48  ;;  %v16192_v48 = vld [vmem:[#allocation76_spill] sm:$0xff] }
 0xcfe   :  { %11668 = vmatpush1.bf16.msra.mxu0 %v16090_v6  ;;  %11700 = vmatpush1.bf16.msra.mxu1 %v16091_v42  ;;  %12945 = vrcp.f32 %v5615_v34  ;;  %v16199_v34 = vld [vmem:[#allocation39_spill] sm:$0xff] }
 0xcff   :  { %11670 = vmatprep.subr.bf16.mxu0 %v16117_v40  ;;  %11702 = vmatprep.subr.bf16.mxu1 %v16118_v49 }
 0xd02   :  { %11672 = vmatpush1.bf16.msra.mxu0 %v16119_v32  ;;  %11704 = vmatpush1.bf16.msra.mxu1 %v16120_v11 }
 0xd03   :  { %11674 = vmatprep.subr.bf16.mxu0 %v16096_v39  ;;  %11706 = vmatprep.subr.bf16.mxu1 %v16097_v38 }
 0xd06   :  { %v12942_v59 = vpop.eup %12941  ;;  %11676 = vmatpush1.bf16.msra.mxu0 %v16098_v4  ;;  %11708 = vmatpush1.bf16.msra.mxu1 %v16121_v12 }
 0xd07   :  { %v12944_v43 = vpop.eup %12943  ;;  %v5622_v9 = vmul.f32 %v12942_v59, %v12940_v47  ;;  %11678 = vmatprep.subr.bf16.mxu0 %v14636_v20  ;;  %11710 = vmatprep.subr.bf16.mxu1 %v14638_v26  ;;  %v16194_v47 = vld [vmem:[#allocation77_spill] sm:$0xff]  ;;  %v16195_v59 = vld [vmem:[#allocation63_spill] sm:$0xff] }
 0xd08   :  { %v5621_v21 = vmul.f32 %v12944_v43, %v5619_v14  ;;  %v12946_v13 = vpop.eup %12945  ;;  %v16196_v14 = vld [vmem:[#allocation66_spill] sm:$0xff] }
 0xd09   :  { %v16197_v43 = vld [vmem:[#allocation74_spill] sm:$0xff] }
 0xd0a   :  { %v15053_v36 = vadd.f32 %v5622_v9, %v5621_v21  ;;  %11680 = vmatpush1.bf16.msra.mxu0 %v14643_v60  ;;  %11712 = vmatpush1.bf16.msra.mxu1 %v14645_v30  ;;  %v16198_v9 = vld [vmem:[#allocation22_spill] sm:$0xff]  ;;  %v16200_v21 = vld [vmem:[#allocation23_spill] sm:$0xff] }
 0xd0b   :  { %11682 = vmatprep.subr.bf16.mxu0 %v14649_v63  ;;  %11714 = vmatprep.subr.bf16.mxu1 %v14651_v53 }
 0xd0c   :  { %12947 = vtanh.f32 %v15053_v36 }
 0xd0e   :  { %11684 = vmatpush1.bf16.msra.mxu0 %v14657_v54  ;;  %11716 = vmatpush1.bf16.msra.mxu1 %v14659_v8 }
 0xd0f   :  { %11686 = vmatprep.subr.bf16.mxu0 %v14663_v29  ;;  %11718 = vmatprep.subr.bf16.mxu1 %v14665_v3 }
 0xd12   :  { %11688 = vmatpush1.bf16.msra.mxu0 %v14670_v5  ;;  %11720 = vmatpush1.bf16.msra.mxu1 %v14672_v35 }
 0xd13   :  { %11690 = vmatprep.subr.bf16.mxu0 %v14676_v17  ;;  %11722 = vmatprep.subr.bf16.mxu1 %v14678_v46 }
 0xd16   :  { %v12948_v10 = vpop.eup %12947  ;;  %11692 = vmatpush1.bf16.msra.mxu0 %v14682_v23  ;;  %11724 = vmatpush1.bf16.msra.mxu1 %v14684_v2 }
 0xd17   :  { %v15070_v28 = vmul.f32 %v12948_v10, %v12946_v13  ;;  %11726 = vmatprep.subr.bf16.mxu0 %v14480_v56  ;;  %11758 = vmatprep.subr.bf16.mxu1 %v14482_v57  ;;  %v16201_v13 = vld [vmem:[#allocation40_spill] sm:$0xff] }
 0xd18   :  { %v16202_v10 = vld [vmem:[#allocation24_spill] sm:$0xff] }
 0xd19   :  { %16179 = vst [vmem:[#allocation60_spill] sm:$0xff] %v15070_v28  ;;  %5867 = vmatmul.mubr.f32.vlgmr.msra.gmra.mrb[58].mxu0 %v15070_v28  ;;  %5938 = vmatmul.mubr.f32.vlgmr.msra.gmra.mrb[74].mxu1 %v15070_v28  ;;  %v16203_v28 = vld [vmem:[#allocation41_spill] sm:$0xff] }
 0xd1a   :  { %11728 = vmatpush1.bf16.msra.mxu0 %v14484_v27  ;;  %11760 = vmatpush1.bf16.msra.mxu1 %v14487_v22 }
 0xd1b   :  { %11730 = vmatprep.subr.bf16.mxu0 %v14492_v55  ;;  %11762 = vmatprep.subr.bf16.mxu1 %v14494_v33 }
 0xd1c   :  { %6051 = vmatprep.mubr.f32.mxu0 %v15809_v58  ;;  %6122 = vmatprep.mubr.f32.mxu1 %v15809_v58 }
 0xd1e   :  { %11732 = vmatpush1.bf16.msra.mxu0 %v16180_v51  ;;  %11764 = vmatpush1.bf16.msra.mxu1 %v16181_v50 }
 0xd1f   :  { %11734 = vmatprep.subr.bf16.mxu0 %v16182_v7  ;;  %11766 = vmatprep.subr.bf16.mxu1 %v16183_v24 }
 0xd22   :  { %11736 = vmatpush1.bf16.msra.mxu0 %v16184_v19  ;;  %11768 = vmatpush1.bf16.msra.mxu1 %v16185_v37 }
 0xd23   :  { %11738 = vmatprep.subr.bf16.mxu0 %v16186_v52  ;;  %11770 = vmatprep.subr.bf16.mxu1 %v16187_v25 }
 0xd26   :  { %11740 = vmatpush1.bf16.msra.mxu0 %v16188_v41  ;;  %11772 = vmatpush1.bf16.msra.mxu1 %v16189_v16 }
 0xd27   :  { %11742 = vmatprep.subr.bf16.mxu0 %v16190_v1  ;;  %11774 = vmatprep.subr.bf16.mxu1 %v16191_v44  ;;  %v16209_v44 = vld [vmem:[#allocation67_spill] sm:$0xff] }
 0xd2a   :  { %11744 = vmatpush1.bf16.msra.mxu0 %v16192_v48  ;;  %11776 = vmatpush1.bf16.msra.mxu1 %v16193_v0  ;;  %v16208_v0 = vld [vmem:[#allocation64_spill] sm:$0xff] }
 0xd2b   :  { %11746 = vmatprep.subr.bf16.mxu0 %v16194_v47  ;;  %11778 = vmatprep.subr.bf16.mxu1 %v16195_v59  ;;  %v16205_v47 = vld [vmem:[#allocation42_spill] sm:$0xff] }
 0xd2c   :  { %v16206_v59 = vld [vmem:[#allocation26_spill] sm:$0xff] }
 0xd2e   :  { %11748 = vmatpush1.bf16.msra.mxu0 %v16196_v14  ;;  %11780 = vmatpush1.bf16.msra.mxu1 %v16197_v43  ;;  %v16207_v14 = vld [vmem:[#allocation43_spill] sm:$0xff] }
 0xd2f   :  { %11750 = vmatprep.subr.bf16.mxu0 %v16198_v9  ;;  %11782 = vmatprep.subr.bf16.mxu1 %v16199_v34 }
 0xd32   :  { %11752 = vmatpush1.bf16.msra.mxu0 %v16200_v21  ;;  %11784 = vmatpush1.bf16.msra.mxu1 %v16201_v13 }
 0xd33   :  { %11754 = vmatprep.subr.bf16.mxu0 %v16202_v10  ;;  %11786 = vmatprep.subr.bf16.mxu1 %v16203_v28  ;;  %v16210_v28 = vld [vmem:[#allocation82_spill] sm:$0xff] }
 0xd36   :  { %11756 = vmatpush1.bf16.msra.mxu0 %v16204_v15  ;;  %11788 = vmatpush1.bf16.msra.mxu1 %v16205_v47  ;;  %v16211_v47 = vld [vmem:[#allocation81_spill] sm:$0xff] }
 0xd37   :  { %11790 = vmatprep.subr.bf16.mxu0 %v16206_v59  ;;  %11822 = vmatprep.subr.bf16.mxu1 %v16207_v14 }
 0xdcc   :  { %v5695_v43 = vpop.f32.mrb[56].mxu0  ;;  %v5766_v9 = vpop.f32.mrb[72].mxu1 }
 0xdcd   :  { %v5771_v34 = vadd.f32 %v5695_v43, %v16208_v0  ;;  %v5697_v48 = vpop.f32.mrb[57].mxu0  ;;  %v5768_v21 = vpop.f32.mrb[73].mxu1  ;;  %v5773_v41 = vadd.f32 %v5766_v9, %v16211_v47 }
 0xdce   :  { %v5772_v13 = vadd.f32 %v5697_v48, %v16209_v44  ;;  %v5774_v15 = vadd.f32 %v5768_v21, %v16210_v28  ;;  %v16213_v28 = vld [vmem:[#allocation70_spill] sm:$0xff] }
 0xdcf   :  { %v9623_v1 = vmul.f32 -1.442695, %v5771_v34  ;;  %v5795_v34 = vrot.slane %v15023_v45, 6 }
 0xdd0   :  { %v9624_v10 = vmul.f32 -1.442695, %v5772_v13  ;;  %v9625_v16 = vmul.f32 -1.442695, %v5774_v15 }
 0xdd1   :  { %12949 = vpow2.f32 %v9623_v1 }
 0xdd2   :  { %12951 = vpow2.f32 %v9624_v10 }
 0xdd3   :  { %12953 = vpow2.f32 %v9625_v16 }
 0xdd4   :  { %12955 = vtanh.f32 %v5773_v41 }
 0xddb   :  { %v12950_v59 = vpop.eup %12949 }
 0xddc   :  { %v12952_v25 = vpop.eup %12951  ;;  %v5778_v14 = vadd.f32 1.0, %v12950_v59 }
 0xddd   :  { %v5784_v52 = vadd.f32 1.0, %v12952_v25  ;;  %v12954_v43 = vpop.eup %12953 }
 0xdde   :  { %12957 = vrcp.f32 %v5778_v14  ;;  %v12956_v0 = vpop.eup %12955  ;;  %v5791_v10 = vadd.f32 1.0, %v12954_v43  ;;  %v16214_v43 = vld [vmem:[#allocation84_spill] sm:$0xff] }
 0xddf   :  { %12959 = vrcp.f32 %v5784_v52  ;;  %v16212_v52 = vld [vmem:[#allocation69_spill] sm:$0xff] }
 0xde0   :  { %12961 = vrcp.f32 %v5791_v10 }
 0xde8   :  { %v12958_v48 = vpop.eup %12957 }
 0xde9   :  { %v12960_v1 = vpop.eup %12959  ;;  %v5798_v13 = vmul.f32 %v12958_v48, %v12956_v0 }
 0xdea   :  { %v5797_v21 = vmul.f32 %v12960_v1, %v5795_v34  ;;  %v12962_v34 = vpop.eup %12961 }
 0xdec   :  { %v15115_v15 = vadd.f32 %v5798_v13, %v5797_v21  ;;  %v5868_v9 = vpop.f32.mrb[58].mxu0  ;;  %v5939_v47 = vpop.f32.mrb[74].mxu1 }
 0xded   :  { %v5948_v59 = vrot.slane %v5868_v9, 2  ;;  %v5870_v16 = vpop.f32.mrb[59].mxu0  ;;  %v5941_v41 = vpop.f32.mrb[75].mxu1  ;;  %v5950_v1 = vrot.slane %v5939_v47, 2  ;;  %v16216_v9 = vld [vmem:[#allocation83_spill] sm:$0xff] }
 0xdee   :  { %v5949_v25 = vrot.slane %v5870_v16, 2  ;;  %12963 = vtanh.f32 %v15115_v15  ;;  %v5951_v0 = vrot.slane %v5941_v41, 2 }
 0xdef   :  { %v5956_v14 = vadd.f32 %v5948_v59, %v16212_v52  ;;  %v5958_v16 = vadd.f32 %v5950_v1, %v16216_v9 }
 0xdf0   :  { %v5957_v44 = vadd.f32 %v5949_v25, %v16213_v28  ;;  %v5959_v48 = vadd.f32 %v5951_v0, %v16214_v43 }
 0xdf1   :  { %v9626_v45 = vmul.f32 -1.442695, %v5956_v14 }
 0xdf2   :  { %v9627_v37 = vmul.f32 -1.442695, %v5957_v44  ;;  %v9628_v21 = vmul.f32 -1.442695, %v5959_v48 }
 0xdf3   :  { %12965 = vpow2.f32 %v9626_v45  ;;  %v5980_v45 = vrot.slane %v15053_v36, 2 }
 0xdf4   :  { %12967 = vpow2.f32 %v9627_v37 }
 0xdf5   :  { %12969 = vpow2.f32 %v9628_v21 }
 0xdf6   :  { %12971 = vtanh.f32 %v5958_v16 }
 0xdf8   :  { %v12964_v13 = vpop.eup %12963 }
 0xdf9   :  { %v15121_v10 = vmul.f32 %v12964_v13, %v12962_v34 }
 0xdfb   :  { %16215 = vst [vmem:[#allocation27_spill] sm:$0xff] %v15121_v10  ;;  %6052 = vmatmul.mubr.f32.vlgmr.msra.gmra.mrb[60].mxu0 %v15121_v10  ;;  %6123 = vmatmul.mubr.f32.vlgmr.msra.gmra.mrb[76].mxu1 %v15121_v10  ;;  %v16232_v10 = vld [vmem:[#allocation39_spill] sm:$0xff] }
 0xdfc   :  { %11792 = vmatpush1.bf16.msra.mxu0 %v14593_v62  ;;  %11824 = vmatpush1.bf16.msra.mxu1 %v14595_v61 }
 0xdfd   :  { %v12966_v44 = vpop.eup %12965  ;;  %11794 = vmatprep.subr.bf16.mxu0 %v16088_v18  ;;  %11826 = vmatprep.subr.bf16.mxu1 %v16089_v31 }
 0xdfe   :  { %v12968_v37 = vpop.eup %12967  ;;  %v5963_v47 = vadd.f32 1.0, %v12966_v44  ;;  %6239 = vmatprep.mubr.f32.mxu0 %v15809_v58  ;;  %6310 = vmatprep.mubr.f32.mxu1 %v15809_v58 }
 0xdff   :  { %v5969_v59 = vadd.f32 1.0, %v12968_v37  ;;  %v12970_v41 = vpop.eup %12969  ;;  %v16218_v37 = vld [vmem:[#allocation34_spill] sm:$0xff] }
 0xe00   :  { %12973 = vrcp.f32 %v5963_v47  ;;  %11796 = vmatpush1.bf16.msra.mxu0 %v16090_v6  ;;  %11828 = vmatpush1.bf16.msra.mxu1 %v16091_v42  ;;  %v12972_v25 = vpop.eup %12971  ;;  %v5976_v34 = vadd.f32 1.0, %v12970_v41  ;;  %v16219_v47 = vld [vmem:[#allocation20_spill] sm:$0xff]  ;;  %v16221_v41 = vld [vmem:[#allocation21_spill] sm:$0xff] }
 0xe01   :  { %12975 = vrcp.f32 %v5969_v59  ;;  %11798 = vmatprep.subr.bf16.mxu0 %v16117_v40  ;;  %11830 = vmatprep.subr.bf16.mxu1 %v16118_v49  ;;  %v16220_v59 = vld [vmem:[#allocation37_spill] sm:$0xff] }
 0xe02   :  { %12977 = vrcp.f32 %v5976_v34  ;;  %v16227_v34 = vld [vmem:[#allocation77_spill] sm:$0xff] }
 0xe04   :  { %11800 = vmatpush1.bf16.msra.mxu0 %v16119_v32  ;;  %11832 = vmatpush1.bf16.msra.mxu1 %v16120_v11 }
 0xe05   :  { %11802 = vmatprep.subr.bf16.mxu0 %v16096_v39  ;;  %11834 = vmatprep.subr.bf16.mxu1 %v16097_v38 }
 0xe08   :  { %11804 = vmatpush1.bf16.msra.mxu0 %v16098_v4  ;;  %11836 = vmatpush1.bf16.msra.mxu1 %v16121_v12 }
 0xe09   :  { %11806 = vmatprep.subr.bf16.mxu0 %v14636_v20  ;;  %11838 = vmatprep.subr.bf16.mxu1 %v14638_v26 }
 0xe0a   :  { %v12974_v14 = vpop.eup %12973 }
 0xe0b   :  { %v12976_v0 = vpop.eup %12975  ;;  %v5983_v48 = vmul.f32 %v12974_v14, %v12972_v25  ;;  %v16222_v25 = vld [vmem:[#allocation38_spill] sm:$0xff]  ;;  %v16223_v14 = vld [vmem:[#allocation87_spill] sm:$0xff] }
 0xe0c   :  { %v5982_v1 = vmul.f32 %v12976_v0, %v5980_v45  ;;  %11808 = vmatpush1.bf16.msra.mxu0 %v14643_v60  ;;  %11840 = vmatpush1.bf16.msra.mxu1 %v14645_v30  ;;  %v12978_v36 = vpop.eup %12977  ;;  %v16224_v45 = vld [vmem:[#allocation75_spill] sm:$0xff]  ;;  %v16225_v0 = vld [vmem:[#allocation76_spill] sm:$0xff] }
 0xe0d   :  { %11810 = vmatprep.subr.bf16.mxu0 %v14649_v63  ;;  %11842 = vmatprep.subr.bf16.mxu1 %v14651_v53 }
 0xe0e   :  { %v15149_v13 = vadd.f32 %v5983_v48, %v5982_v1  ;;  %v16226_v48 = vld [vmem:[#allocation78_spill] sm:$0xff]  ;;  %v16228_v1 = vld [vmem:[#allocation63_spill] sm:$0xff] }
 0xe10   :  { %11812 = vmatpush1.bf16.msra.mxu0 %v14657_v54  ;;  %11844 = vmatpush1.bf16.msra.mxu1 %v14659_v8  ;;  %12979 = vtanh.f32 %v15149_v13 }
 0xe11   :  { %11814 = vmatprep.subr.bf16.mxu0 %v14663_v29  ;;  %11846 = vmatprep.subr.bf16.mxu1 %v14665_v3 }
 0xe14   :  { %11816 = vmatpush1.bf16.msra.mxu0 %v14670_v5  ;;  %11848 = vmatpush1.bf16.msra.mxu1 %v14672_v35 }
 0xe15   :  { %11818 = vmatprep.subr.bf16.mxu0 %v14676_v17  ;;  %11850 = vmatprep.subr.bf16.mxu1 %v14678_v46 }
 0xe18   :  { %11820 = vmatpush1.bf16.msra.mxu0 %v14682_v23  ;;  %11852 = vmatpush1.bf16.msra.mxu1 %v14684_v2 }
 0xe19   :  { %11854 = vmatprep.subr.bf16.mxu0 %v14480_v56  ;;  %11886 = vmatprep.subr.bf16.mxu1 %v14482_v57 }
 0xe1a   :  { %v12980_v21 = vpop.eup %12979 }
 0xe1b   :  { %v5986_v16 = vmul.f32 %v12980_v21, %v12978_v36  ;;  %v16229_v36 = vld [vmem:[#allocation66_spill] sm:$0xff] }
 0xe1c   :  { %v16230_v21 = vld [vmem:[#allocation74_spill] sm:$0xff] }
 0xe1d   :  { %v15164_v44 = vrot.slane %v5986_v16, 6  ;;  %v16231_v16 = vld [vmem:[#allocation22_spill] sm:$0xff] }
 0xe1f   :  { %16217 = vst [vmem:[#allocation65_spill] sm:$0xff] %v15164_v44  ;;  %6240 = vmatmul.mubr.f32.vlgmr.msra.gmra.mrb[62].mxu0 %v15164_v44  ;;  %6311 = vmatmul.mubr.f32.vlgmr.msra.gmra.mrb[78].mxu1 %v15164_v44  ;;  %v16233_v44 = vld [vmem:[#allocation23_spill] sm:$0xff] }
 0xe20   :  { %11856 = vmatpush1.bf16.msra.mxu0 %v14484_v27  ;;  %11888 = vmatpush1.bf16.msra.mxu1 %v14487_v22 }
 0xe21   :  { %11858 = vmatprep.subr.bf16.mxu0 %v14492_v55  ;;  %11890 = vmatprep.subr.bf16.mxu1 %v14494_v33 }
 0xe22   :  { %6427 = vmatprep.mubr.f32.mxu0 %v15809_v58  ;;  %6498 = vmatprep.mubr.f32.mxu1 %v15809_v58 }
 0xe24   :  { %11860 = vmatpush1.bf16.msra.mxu0 %v16180_v51  ;;  %11892 = vmatpush1.bf16.msra.mxu1 %v16181_v50 }
 0xe25   :  { %11862 = vmatprep.subr.bf16.mxu0 %v16182_v7  ;;  %11894 = vmatprep.subr.bf16.mxu1 %v16183_v24 }
 0xe28   :  { %11864 = vmatpush1.bf16.msra.mxu0 %v16184_v19  ;;  %11896 = vmatpush1.bf16.msra.mxu1 %v16218_v37 }
 0xe29   :  { %11866 = vmatprep.subr.bf16.mxu0 %v16219_v47  ;;  %11898 = vmatprep.subr.bf16.mxu1 %v16220_v59  ;;  %v16241_v59 = vld [vmem:[#allocation64_spill] sm:$0xff]  ;;  %v16242_v47 = vld [vmem:[#allocation67_spill] sm:$0xff] }
 0xe2c   :  { %11868 = vmatpush1.bf16.msra.mxu0 %v16221_v41  ;;  %11900 = vmatpush1.bf16.msra.mxu1 %v16222_v25 }
 0xe2d   :  { %11870 = vmatprep.subr.bf16.mxu0 %v16223_v14  ;;  %11902 = vmatprep.subr.bf16.mxu1 %v16224_v45  ;;  %v16234_v14 = vld [vmem:[#allocation40_spill] sm:$0xff] }
 0xe2e   :  { %v16235_v45 = vld [vmem:[#allocation24_spill] sm:$0xff] }
 0xe30   :  { %11872 = vmatpush1.bf16.msra.mxu0 %v16225_v0  ;;  %11904 = vmatpush1.bf16.msra.mxu1 %v16226_v48  ;;  %v16236_v0 = vld [vmem:[#allocation41_spill] sm:$0xff] }
 0xe31   :  { %11874 = vmatprep.subr.bf16.mxu0 %v16227_v34  ;;  %11906 = vmatprep.subr.bf16.mxu1 %v16228_v1  ;;  %v16237_v48 = vld [vmem:[#allocation25_spill] sm:$0xff]  ;;  %v16238_v34 = vld [vmem:[#allocation42_spill] sm:$0xff] }
 0xe32   :  { %v16239_v1 = vld [vmem:[#allocation26_spill] sm:$0xff] }
 0xe34   :  { %11876 = vmatpush1.bf16.msra.mxu0 %v16229_v36  ;;  %11908 = vmatpush1.bf16.msra.mxu1 %v16230_v21  ;;  %v16240_v36 = vld [vmem:[#allocation43_spill] sm:$0xff] }
 0xe35   :  { %11878 = vmatprep.subr.bf16.mxu0 %v16231_v16  ;;  %11910 = vmatprep.subr.bf16.mxu1 %v16232_v10 }
 0xe38   :  { %11880 = vmatpush1.bf16.msra.mxu0 %v16233_v44  ;;  %11912 = vmatpush1.bf16.msra.mxu1 %v16234_v14 }
 0xe39   :  { %11882 = vmatprep.subr.bf16.mxu0 %v16235_v45  ;;  %11914 = vmatprep.subr.bf16.mxu1 %v16236_v0 }
 0xe3c   :  { %11884 = vmatpush1.bf16.msra.mxu0 %v16237_v48  ;;  %11916 = vmatpush1.bf16.msra.mxu1 %v16238_v34  ;;  %v16243_v34 = vld [vmem:[#allocation82_spill] sm:$0xff] }
 0xe3d   :  { %11918 = vmatprep.subr.bf16.mxu0 %v16239_v1  ;;  %11950 = vmatprep.subr.bf16.mxu1 %v16240_v36  ;;  %v16244_v36 = vld [vmem:[#allocation81_spill] sm:$0xff] }
 0xece   :  { %v6053_v21 = vpop.f32.mrb[60].mxu0  ;;  %v6124_v16 = vpop.f32.mrb[76].mxu1 }
 0xecf   :  { %v6133_v25 = vrot.slane %v6053_v21, 6  ;;  %v6055_v10 = vpop.f32.mrb[61].mxu0  ;;  %v6126_v41 = vpop.f32.mrb[77].mxu1  ;;  %v6135_v1 = vrot.slane %v6124_v16, 6 }
 0xed0   :  { %v6134_v44 = vrot.slane %v6055_v10, 6  ;;  %v6136_v19 = vrot.slane %v6126_v41, 6 }
 0xed1   :  { %v6141_v14 = vadd.f32 %v6133_v25, %v16241_v59  ;;  %v6143_v7 = vadd.f32 %v6135_v1, %v16244_v36 }
 0xed2   :  { %v6142_v45 = vadd.f32 %v6134_v44, %v16242_v47  ;;  %v6144_v48 = vadd.f32 %v6136_v19, %v16243_v34 }
 0xed3   :  { %v9629_v37 = vmul.f32 -1.442695, %v6141_v14 }
 0xed4   :  { %v9630_v0 = vmul.f32 -1.442695, %v6142_v45  ;;  %v9631_v24 = vmul.f32 -1.442695, %v6144_v48 }
 0xed5   :  { %12981 = vpow2.f32 %v9629_v37  ;;  %v6165_v37 = vrot.slane %v15115_v15, 6 }
 0xed6   :  { %12983 = vpow2.f32 %v9630_v0 }
 0xed7   :  { %12985 = vpow2.f32 %v9631_v24 }
 0xed8   :  { %12987 = vtanh.f32 %v6143_v7 }
 0xedf   :  { %v12982_v50 = vpop.eup %12981 }
 0xee0   :  { %v12984_v21 = vpop.eup %12983  ;;  %v6148_v51 = vadd.f32 1.0, %v12982_v50 }
 0xee1   :  { %v6154_v10 = vadd.f32 1.0, %v12984_v21  ;;  %v12986_v44 = vpop.eup %12985 }
 0xee2   :  { %12989 = vrcp.f32 %v6148_v51  ;;  %v12988_v25 = vpop.eup %12987  ;;  %v6161_v19 = vadd.f32 1.0, %v12986_v44 }
 0xee3   :  { %12991 = vrcp.f32 %v6154_v10 }
 0xee4   :  { %12993 = vrcp.f32 %v6161_v19 }
 0xeec   :  { %v12990_v14 = vpop.eup %12989 }
 0xeed   :  { %v12992_v41 = vpop.eup %12991  ;;  %v6168_v45 = vmul.f32 %v12990_v14, %v12988_v25 }
 0xeee   :  { %v6167_v0 = vmul.f32 %v12992_v41, %v6165_v37  ;;  %v12994_v44 = vpop.eup %12993 }
 0xef0   :  { %v15207_v48 = vadd.f32 %v6168_v45, %v6167_v0 }
 0xef2   :  { %v6241_v1 = vpop.f32.mrb[62].mxu0  ;;  %v6312_v16 = vpop.f32.mrb[78].mxu1  ;;  %12995 = vtanh.f32 %v15207_v48 }
 0xef3   :  { %v6321_v50 = vrot.slane %v6241_v1, 4  ;;  %v6243_v7 = vpop.f32.mrb[63].mxu0  ;;  %v6314_v51 = vpop.f32.mrb[79].mxu1  ;;  %v6323_v41 = vrot.slane %v6312_v16, 4 }
 0xef4   :  { %v6322_v24 = vrot.slane %v6243_v7, 4  ;;  %v6324_v25 = vrot.slane %v6314_v51, 4 }
 0xef5   :  { %v6329_v21 = vadd.f32 %v6321_v50, %v16212_v52  ;;  %v6331_v1 = vadd.f32 %v6323_v41, %v16216_v9 }
 0xef6   :  { %v6330_v10 = vadd.f32 %v6322_v24, %v16213_v28  ;;  %v6332_v37 = vadd.f32 %v6324_v25, %v16214_v43 }
 0xef7   :  { %v9632_v15 = vmul.f32 -1.442695, %v6329_v21 }
 0xef8   :  { %v9633_v36 = vmul.f32 -1.442695, %v6330_v10  ;;  %v9634_v0 = vmul.f32 -1.442695, %v6332_v37  ;;  %v6353_v10 = vrot.slane %v15149_v13, 2 }
 0xef9   :  { %12997 = vpow2.f32 %v9632_v15 }
 0xefa   :  { %12999 = vpow2.f32 %v9633_v36 }
 0xefb   :  { %13001 = vpow2.f32 %v9634_v0 }
 0xefc   :  { %v12996_v14 = vpop.eup %12995  ;;  %13003 = vtanh.f32 %v6331_v1  ;;  %v16247_v1 = vld [vmem:[#allocation54_spill] sm:$0xff] }
 0xefd   :  { %v6171_v45 = vmul.f32 %v12996_v14, %v12994_v44 }
 0xeff   :  { %v15213_v19 = vrot.slane %v6171_v45, 2 }
 0xf01   :  { %6428 = vmatmul.mubr.f32.vlgmr.msra.gmra.mrb[64].mxu0 %v15213_v19  ;;  %6499 = vmatmul.mubr.f32.vlgmr.msra.gmra.mrb[80].mxu1 %v15213_v19 }
 0xf02   :  { %11920 = vmatpush1.bf16.msra.mxu0 %v14593_v62  ;;  %11952 = vmatpush1.bf16.msra.mxu1 %v14595_v61 }
 0xf03   :  { %v12998_v36 = vpop.eup %12997  ;;  %11922 = vmatprep.subr.bf16.mxu0 %v16088_v18  ;;  %11954 = vmatprep.subr.bf16.mxu1 %v16089_v31 }
 0xf04   :  { %v13000_v16 = vpop.eup %12999  ;;  %v6336_v50 = vadd.f32 1.0, %v12998_v36  ;;  %6615 = vmatprep.mubr.f32.mxu0 %v15809_v58  ;;  %6686 = vmatprep.mubr.f32.mxu1 %v15809_v58  ;;  %v16248_v36 = vld [vmem:[#allocation56_spill] sm:$0xff] }
 0xf05   :  { %v6342_v7 = vadd.f32 1.0, %v13000_v16  ;;  %v13002_v51 = vpop.eup %13001  ;;  %v16249_v16 = vld [vmem:[#allocation19_spill] sm:$0xff] }
 0xf06   :  { %13005 = vrcp.f32 %v6336_v50  ;;  %11924 = vmatpush1.bf16.msra.mxu0 %v16090_v6  ;;  %11956 = vmatpush1.bf16.msra.mxu1 %v16091_v42  ;;  %v13004_v24 = vpop.eup %13003  ;;  %v6349_v44 = vadd.f32 1.0, %v13002_v51  ;;  %v16254_v50 = vld [vmem:[#allocation38_spill] sm:$0xff]  ;;  %v16256_v51 = vld [vmem:[#allocation75_spill] sm:$0xff] }
 0xf07   :  { %13007 = vrcp.f32 %v6342_v7  ;;  %11926 = vmatprep.subr.bf16.mxu0 %v16117_v40  ;;  %11958 = vmatprep.subr.bf16.mxu1 %v16118_v49  ;;  %v16255_v7 = vld [vmem:[#allocation87_spill] sm:$0xff] }
 0xf08   :  { %13009 = vrcp.f32 %v6349_v44  ;;  %v16262_v44 = vld [vmem:[#allocation74_spill] sm:$0xff] }
 0xf0a   :  { %11928 = vmatpush1.bf16.msra.mxu0 %v16119_v32  ;;  %11960 = vmatpush1.bf16.msra.mxu1 %v16120_v11 }
 0xf0b   :  { %11930 = vmatprep.subr.bf16.mxu0 %v16096_v39  ;;  %11962 = vmatprep.subr.bf16.mxu1 %v16097_v38 }
 0xf0e   :  { %11932 = vmatpush1.bf16.msra.mxu0 %v16098_v4  ;;  %11964 = vmatpush1.bf16.msra.mxu1 %v16121_v12 }
 0xf0f   :  { %11934 = vmatprep.subr.bf16.mxu0 %v14636_v20  ;;  %11966 = vmatprep.subr.bf16.mxu1 %v14638_v26 }
 0xf10   :  { %v13006_v21 = vpop.eup %13005 }
 0xf11   :  { %v13008_v15 = vpop.eup %13007  ;;  %v6356_v25 = vmul.f32 %v13006_v21, %v13004_v24  ;;  %v16257_v24 = vld [vmem:[#allocation76_spill] sm:$0xff]  ;;  %v16258_v21 = vld [vmem:[#allocation78_spill] sm:$0xff] }
 0xf12   :  { %v6355_v14 = vmul.f32 %v13008_v15, %v6353_v10  ;;  %11936 = vmatpush1.bf16.msra.mxu0 %v14643_v60  ;;  %11968 = vmatpush1.bf16.msra.mxu1 %v14645_v30  ;;  %v13010_v13 = vpop.eup %13009  ;;  %v16259_v10 = vld [vmem:[#allocation77_spill] sm:$0xff]  ;;  %v16260_v15 = vld [vmem:[#allocation63_spill] sm:$0xff] }
 0xf13   :  { %11938 = vmatprep.subr.bf16.mxu0 %v14649_v63  ;;  %11970 = vmatprep.subr.bf16.mxu1 %v14651_v53 }
 0xf14   :  { %v15241_v37 = vadd.f32 %v6356_v25, %v6355_v14  ;;  %v16261_v25 = vld [vmem:[#allocation66_spill] sm:$0xff] }
 0xf15   :  { %v16263_v14 = vld [vmem:[#allocation22_spill] sm:$0xff] }
 0xf16   :  { %11940 = vmatpush1.bf16.msra.mxu0 %v14657_v54  ;;  %11972 = vmatpush1.bf16.msra.mxu1 %v14659_v8  ;;  %13011 = vtanh.f32 %v15241_v37 }
 0xf17   :  { %11942 = vmatprep.subr.bf16.mxu0 %v14663_v29  ;;  %11974 = vmatprep.subr.bf16.mxu1 %v14665_v3 }
 0xf1a   :  { %11944 = vmatpush1.bf16.msra.mxu0 %v14670_v5  ;;  %11976 = vmatpush1.bf16.msra.mxu1 %v14672_v35 }
 0xf1b   :  { %11946 = vmatprep.subr.bf16.mxu0 %v14676_v17  ;;  %11978 = vmatprep.subr.bf16.mxu1 %v14678_v46 }
 0xf1e   :  { %11948 = vmatpush1.bf16.msra.mxu0 %v14682_v23  ;;  %11980 = vmatpush1.bf16.msra.mxu1 %v14684_v2 }
 0xf1f   :  { %11982 = vmatprep.subr.bf16.mxu0 %v14480_v56  ;;  %12014 = vmatprep.subr.bf16.mxu1 %v14482_v57  ;;  %v16245_v56 = vld [vmem:[#allocation46_spill] sm:$0xff]  ;;  %v16246_v57 = vld [vmem:[#allocation49_spill] sm:$0xff] }
 0xf20   :  { %v13012_v41 = vpop.eup %13011 }
 0xf21   :  { %v6359_v45 = vmul.f32 %v13012_v41, %v13010_v13  ;;  %v16264_v13 = vld [vmem:[#allocation39_spill] sm:$0xff] }
 0xf22   :  { %v16265_v41 = vld [vmem:[#allocation23_spill] sm:$0xff] }
 0xf23   :  { %v15256_v0 = vrot.slane %v6359_v45, 4  ;;  %v16266_v45 = vld [vmem:[#allocation40_spill] sm:$0xff] }
 0xf25   :  { %6616 = vmatmul.mubr.f32.vlgmr.msra.gmra.mrb[66].mxu0 %v15256_v0  ;;  %6687 = vmatmul.mubr.f32.vlgmr.msra.gmra.mrb[82].mxu1 %v15256_v0 }
 0xf26   :  { %11984 = vmatpush1.bf16.msra.mxu0 %v14484_v27  ;;  %12016 = vmatpush1.bf16.msra.mxu1 %v14487_v22  ;;  %v16250_v27 = vld [vmem:[#allocation34_spill] sm:$0xff]  ;;  %v16251_v22 = vld [vmem:[#allocation20_spill] sm:$0xff] }
 0xf27   :  { %11986 = vmatprep.subr.bf16.mxu0 %v14492_v55  ;;  %12018 = vmatprep.subr.bf16.mxu1 %v14494_v33  ;;  %v16252_v55 = vld [vmem:[#allocation37_spill] sm:$0xff] }
 0xf28   :  { %6803 = vmatprep.mubr.f32.mxu0 %v15809_v58  ;;  %6874 = vmatprep.mubr.f32.mxu1 %v15809_v58  ;;  %v16253_v33 = vld [vmem:[#allocation21_spill] sm:$0xff] }
 0xf2a   :  { %11988 = vmatpush1.bf16.msra.mxu0 %v16245_v56  ;;  %12020 = vmatpush1.bf16.msra.mxu1 %v16246_v57  ;;  %v16267_v56 = vld [vmem:[#allocation24_spill] sm:$0xff]  ;;  %v16268_v57 = vld [vmem:[#allocation41_spill] sm:$0xff] }
 0xf2b   :  { %11990 = vmatprep.subr.bf16.mxu0 %v16247_v1  ;;  %12022 = vmatprep.subr.bf16.mxu1 %v16248_v36  ;;  %v16269_v1 = vld [vmem:[#allocation25_spill] sm:$0xff]  ;;  %v16270_v36 = vld [vmem:[#allocation42_spill] sm:$0xff] }
 0xf2e   :  { %11992 = vmatpush1.bf16.msra.mxu0 %v16249_v16  ;;  %12024 = vmatpush1.bf16.msra.mxu1 %v16250_v27  ;;  %v16271_v16 = vld [vmem:[#allocation26_spill] sm:$0xff]  ;;  %v16272_v27 = vld [vmem:[#allocation43_spill] sm:$0xff] }
 0xf2f   :  { %11994 = vmatprep.subr.bf16.mxu0 %v16251_v22  ;;  %12026 = vmatprep.subr.bf16.mxu1 %v16252_v55 }
 0xf32   :  { %11996 = vmatpush1.bf16.msra.mxu0 %v16253_v33  ;;  %12028 = vmatpush1.bf16.msra.mxu1 %v16254_v50 }
 0xf33   :  { %11998 = vmatprep.subr.bf16.mxu0 %v16255_v7  ;;  %12030 = vmatprep.subr.bf16.mxu1 %v16256_v51 }
 0xf36   :  { %12000 = vmatpush1.bf16.msra.mxu0 %v16257_v24  ;;  %12032 = vmatpush1.bf16.msra.mxu1 %v16258_v21 }
 0xf37   :  { %12002 = vmatprep.subr.bf16.mxu0 %v16259_v10  ;;  %12034 = vmatprep.subr.bf16.mxu1 %v16260_v15 }
 0xf3a   :  { %12004 = vmatpush1.bf16.msra.mxu0 %v16261_v25  ;;  %12036 = vmatpush1.bf16.msra.mxu1 %v16262_v44 }
 0xf3b   :  { %12006 = vmatprep.subr.bf16.mxu0 %v16263_v14  ;;  %12038 = vmatprep.subr.bf16.mxu1 %v16264_v13 }
 0xf3e   :  { %12008 = vmatpush1.bf16.msra.mxu0 %v16265_v41  ;;  %12040 = vmatpush1.bf16.msra.mxu1 %v16266_v45  ;;  %v16273_v41 = vld [vmem:[#allocation81_spill] sm:$0xff] }
 0xf3f   :  { %12010 = vmatprep.subr.bf16.mxu0 %v16267_v56  ;;  %12042 = vmatprep.subr.bf16.mxu1 %v16268_v57 }
 0xf42   :  { %12012 = vmatpush1.bf16.msra.mxu0 %v16269_v1  ;;  %12044 = vmatpush1.bf16.msra.mxu1 %v16270_v36 }
 0xf43   :  { %12046 = vmatprep.subr.bf16.mxu0 %v16271_v16  ;;  %12078 = vmatprep.subr.bf16.mxu1 %v16272_v27 }
 0xfd4   :  { %v6429_v22 = vpop.f32.mrb[64].mxu0  ;;  %v6500_v55 = vpop.f32.mrb[80].mxu1 }
 0xfd5   :  { %v6509_v33 = vrot.slane %v6429_v22, 4  ;;  %v6431_v50 = vpop.f32.mrb[65].mxu0  ;;  %v6502_v7 = vpop.f32.mrb[81].mxu1  ;;  %v6511_v14 = vrot.slane %v6500_v55, 4 }
 0xfd6   :  { %v6510_v51 = vrot.slane %v6431_v50, 4  ;;  %v6512_v25 = vrot.slane %v6502_v7, 4 }
 0xfd7   :  { %v6517_v24 = vadd.f32 %v6509_v33, %v16241_v59  ;;  %v6519_v45 = vadd.f32 %v6511_v14, %v16273_v41  ;;  %v6541_v33 = vrot.slane %v15207_v48, 6 }
 0xfd8   :  { %v6518_v21 = vadd.f32 %v6510_v51, %v16242_v47  ;;  %v6520_v44 = vadd.f32 %v6512_v25, %v16243_v34 }
 0xfd9   :  { %v9635_v10 = vmul.f32 -1.442695, %v6517_v24 }
 0xfda   :  { %v9636_v15 = vmul.f32 -1.442695, %v6518_v21  ;;  %v9637_v13 = vmul.f32 -1.442695, %v6520_v44 }
 0xfdb   :  { %13013 = vpow2.f32 %v9635_v10 }
 0xfdc   :  { %13015 = vpow2.f32 %v9636_v15 }
 0xfdd   :  { %13017 = vpow2.f32 %v9637_v13 }
 0xfde   :  { %13019 = vtanh.f32 %v6519_v45 }
 0xfe5   :  { %v13014_v56 = vpop.eup %13013 }
 0xfe6   :  { %v13016_v57 = vpop.eup %13015  ;;  %v6524_v1 = vadd.f32 1.0, %v13014_v56 }
 0xfe7   :  { %v6530_v36 = vadd.f32 1.0, %v13016_v57  ;;  %v13018_v16 = vpop.eup %13017 }
 0xfe8   :  { %13021 = vrcp.f32 %v6524_v1  ;;  %v13020_v27 = vpop.eup %13019  ;;  %v6537_v51 = vadd.f32 1.0, %v13018_v16 }
 0xfe9   :  { %13023 = vrcp.f32 %v6530_v36 }
 0xfea   :  { %13025 = vrcp.f32 %v6537_v51 }
 0xff2   :  { %v13022_v22 = vpop.eup %13021 }
 0xff3   :  { %v13024_v50 = vpop.eup %13023  ;;  %v6544_v7 = vmul.f32 %v13022_v22, %v13020_v27 }
 0xff4   :  { %v6543_v55 = vmul.f32 %v13024_v50, %v6541_v33  ;;  %v13026_v1 = vpop.eup %13025 }
 0xff6   :  { %v15299_v24 = vadd.f32 %v6544_v7, %v6543_v55 }
 0xff8   :  { %v6617_v21 = vpop.f32.mrb[66].mxu0  ;;  %v6688_v10 = vpop.f32.mrb[82].mxu1  ;;  %13027 = vtanh.f32 %v15299_v24 }
 0xff9   :  { %v6697_v15 = vrot.slane %v6617_v21, 6  ;;  %v6619_v25 = vpop.f32.mrb[67].mxu0  ;;  %v6690_v44 = vpop.f32.mrb[83].mxu1  ;;  %v6699_v27 = vrot.slane %v6688_v10, 6 }
 0xffa   :  { %v6698_v14 = vrot.slane %v6619_v25, 6  ;;  %v6700_v57 = vrot.slane %v6690_v44, 6  ;;  %v12174_v25 = vld [vmem:[#allocation7 + $0x380] ss:$8 sps:$4 sm:$0xff]   ;;  %v12179_v44 = vld [vmem:[#allocation7 + $0x394] ss:$8 sps:$4 sm:$0xff]  }
 0xffb   :  { %v6705_v13 = vadd.f32 %v6697_v15, %v16212_v52  ;;  %v6707_v7 = vadd.f32 %v6699_v27, %v16216_v9  ;;  %v12176_v15 = vld [vmem:[#allocation7 + $0x384] ss:$8 sps:$4 sm:$0xff]  }
 0xffc   :  { %v6706_v45 = vadd.f32 %v6698_v14, %v16213_v28  ;;  %v6708_v16 = vadd.f32 %v6700_v57, %v16214_v43  ;;  %v12177_v14 = vld [vmem:[#allocation7 + $0x390] ss:$8 sps:$4 sm:$0xff]   ;;  %v12188_v57 = vld [vmem:[#allocation7 + $0x3c4] ss:$8 sps:$4 sm:$0xff]  }
 0xffd   :  { %v9638_v48 = vmul.f32 -1.442695, %v6705_v13  ;;  %v12182_v13 = vld [vmem:[#allocation7 + $0x3a4] ss:$8 sps:$4 sm:$0xff]  }
 0xffe   :  { %v9639_v56 = vmul.f32 -1.442695, %v6706_v45  ;;  %v9640_v50 = vmul.f32 -1.442695, %v6708_v16  ;;  %v12180_v45 = vld [vmem:[#allocation7 + $0x3a0] ss:$8 sps:$4 sm:$0xff]  }
 0xfff   :  { %13029 = vpow2.f32 %v9638_v48  ;;  %v12185_v48 = vld [vmem:[#allocation7 + $0x3b4] ss:$8 sps:$4 sm:$0xff]   ;;  %v12189_v16 = vld [vmem:[#allocation7 + $0x3d0] ss:$8 sps:$4 sm:$0xff]   ;;  %v12194_v27 = vld [vmem:[#allocation7 + $0x3e4] ss:$8 sps:$4 sm:$0xff]  }
0x1000   :  { %13031 = vpow2.f32 %v9639_v56  ;;  %v12183_v56 = vld [vmem:[#allocation7 + $0x3b0] ss:$8 sps:$4 sm:$0xff]  }
0x1001   :  { %13033 = vpow2.f32 %v9640_v50  ;;  %v12197_v50 = vld [vmem:[#allocation7 + $0x3f4] ss:$8 sps:$4 sm:$0xff]  }
0x1002   :  { %v13028_v36 = vpop.eup %13027  ;;  %13035 = vtanh.f32 %v6707_v7  ;;  %v12195_v7 = vld [vmem:[#allocation7 + $0x3f0] ss:$8 sps:$4 sm:$0xff]  }
0x1003   :  { %v6547_v22 = vmul.f32 %v13028_v36, %v13026_v1  ;;  %v12186_v1 = vld [vmem:[#allocation7 + $0x3c0] ss:$8 sps:$4 sm:$0xff]   ;;  %v12191_v36 = vld [vmem:[#allocation7 + $0x3d4] ss:$8 sps:$4 sm:$0xff]  }
0x1005   :  { %v15305_v33 = vrot.slane %v6547_v22, 4  ;;  %v12192_v22 = vld [vmem:[#allocation7 + $0x3e0] ss:$8 sps:$4 sm:$0xff]  }
0x1007   :  { %6804 = vmatmul.mubr.f32.vlgmr.msra.gmra.mrb[68].mxu0 %v15305_v33  ;;  %6875 = vmatmul.mubr.f32.vlgmr.msra.gmra.mrb[84].mxu1 %v15305_v33 }
0x1008   :  { %12048 = vmatpush1.bf16.msra.mxu0 %v14593_v62  ;;  %12080 = vmatpush1.bf16.msra.mxu1 %v14595_v61 }
0x1009   :  { %v13030_v51 = vpop.eup %13029  ;;  %12050 = vmatprep.subr.bf16.mxu0 %v16088_v18  ;;  %12082 = vmatprep.subr.bf16.mxu1 %v16089_v31  ;;  %v6729_v31 = vrot.slane %v15241_v37, 2  ;;  %v12171_v37 = vld [vmem:[#allocation7 + $0x370] ss:$8 sps:$4 sm:$0xff]  }
0x100a   :  { %v13032_v55 = vpop.eup %13031  ;;  %v6712_v21 = vadd.f32 1.0, %v13030_v51  ;;  %6991 = vmatprep.mubr.f32.mxu0 %v15809_v58  ;;  %7062 = vmatprep.mubr.f32.mxu1 %v15809_v58  ;;  %v12200_v51 = vld [vmem:[#allocation7 + $0x404] ss:$8 sps:$4 sm:$0xff]  }
0x100b   :  { %v6718_v10 = vadd.f32 1.0, %v13032_v55  ;;  %v13034_v62 = vpop.eup %13033  ;;  %v12198_v55 = vld [vmem:[#allocation7 + $0x400] ss:$8 sps:$4 sm:$0xff]  }
0x100c   :  { %13037 = vrcp.f32 %v6712_v21  ;;  %12052 = vmatpush1.bf16.msra.mxu0 %v16090_v6  ;;  %12084 = vmatpush1.bf16.msra.mxu1 %v16091_v42  ;;  %v13036_v61 = vpop.eup %13035  ;;  %v16275_v21 = vld [vmem:[#allocation62_spill] sm:$0xff] }
0x100d   :  { %13039 = vrcp.f32 %v6718_v10  ;;  %12054 = vmatprep.subr.bf16.mxu0 %v16117_v40  ;;  %12086 = vmatprep.subr.bf16.mxu1 %v16118_v49  ;;  %v6725_v40 = vadd.f32 1.0, %v13034_v62  ;;  %v7109_v10 = vpack.c.bf16 %v16275_v21, %v16275_v21  ;;  %v12203_v62 = vld [vmem:[#allocation7 + $0x414] ss:$8 sps:$4 sm:$0xff]   ;;  %v12234_v21 = vld [vmem:[#allocation7 + $0x4c0] ss:$8 sps:$4 sm:$0xff]  }
0x100f   :  { %13041 = vrcp.f32 %v6725_v40  ;;  %v12300_v40 = vld [vmem:[#allocation7] ss:$8 sps:$4 sm:$0xff]  }
0x1010   :  { %12056 = vmatpush1.bf16.msra.mxu0 %v16119_v32  ;;  %12088 = vmatpush1.bf16.msra.mxu1 %v16120_v11  ;;  %v12170_v32 = vld [vmem:[#allocation7 + $0x364] ss:$8 sps:$4 sm:$0xff]   ;;  %v12168_v11 = vld [vmem:[#allocation7 + $0x360] ss:$8 sps:$4 sm:$0xff]  }
0x1011   :  { %12058 = vmatprep.subr.bf16.mxu0 %v16096_v39  ;;  %12090 = vmatprep.subr.bf16.mxu1 %v16097_v38  ;;  %v12167_v38 = vld [vmem:[#allocation7 + $0x354] ss:$8 sps:$4 sm:$0xff]  }
0x1014   :  { %12060 = vmatpush1.bf16.msra.mxu0 %v16098_v4  ;;  %12092 = vmatpush1.bf16.msra.mxu1 %v16121_v12  ;;  %v12165_v4 = vld [vmem:[#allocation7 + $0x350] ss:$8 sps:$4 sm:$0xff]   ;;  %v12173_v12 = vld [vmem:[#allocation7 + $0x374] ss:$8 sps:$4 sm:$0xff]  }
0x1015   :  { %12062 = vmatprep.subr.bf16.mxu0 %v14636_v20  ;;  %12094 = vmatprep.subr.bf16.mxu1 %v14638_v26 }
0x1016   :  { %v13038_v18 = vpop.eup %13037 }
0x1017   :  { %v13040_v6 = vpop.eup %13039  ;;  %v6732_v42 = vmul.f32 %v13038_v18, %v13036_v61  ;;  %v16276_v61 = vld [vmem:[#allocation60_spill] sm:$0xff] }
0x1018   :  { %v6731_v49 = vmul.f32 %v13040_v6, %v6729_v31  ;;  %12064 = vmatpush1.bf16.msra.mxu0 %v14643_v60  ;;  %12096 = vmatpush1.bf16.msra.mxu1 %v14645_v30  ;;  %v12150_v30 = vld [vmem:[#allocation7 + $0x300] ss:$8 sps:$4 sm:$0xff]   ;;  %v7112_v18 = vpack.c.bf16 %v16276_v61, %v16276_v61  ;;  %v12201_v31 = vld [vmem:[#allocation7 + $0x410] ss:$8 sps:$4 sm:$0xff]   ;;  %v12206_v6 = vld [vmem:[#allocation7 + $0x424] ss:$8 sps:$4 sm:$0xff]  }
0x1019   :  { %12066 = vmatprep.subr.bf16.mxu0 %v14649_v63  ;;  %12098 = vmatprep.subr.bf16.mxu1 %v14651_v53  ;;  %v12152_v63 = vld [vmem:[#allocation7 + $0x304] ss:$8 sps:$4 sm:$0xff]   ;;  %v13042_v60 = vpop.eup %13041  ;;  %v12366_v61 = vld [vmem:[#allocation7 + $0xb0] ss:$8 sps:$4 sm:$0xff]  }
0x101a   :  { %v15333_v39 = vadd.f32 %v6732_v42, %v6731_v49  ;;  %v12302_v42 = vld [vmem:[#allocation7 + $0x4] ss:$8 sps:$4 sm:$0xff]   ;;  %v12204_v49 = vld [vmem:[#allocation7 + $0x420] ss:$8 sps:$4 sm:$0xff]  }
0x101c   :  { %12068 = vmatpush1.bf16.msra.mxu0 %v14657_v54  ;;  %12100 = vmatpush1.bf16.msra.mxu1 %v14659_v8  ;;  %13043 = vtanh.f32 %v15333_v39  ;;  %v12155_v54 = vld [vmem:[#allocation7 + $0x314] ss:$8 sps:$4 sm:$0xff]  }
0x101d   :  { %12070 = vmatprep.subr.bf16.mxu0 %v14663_v29  ;;  %12102 = vmatprep.subr.bf16.mxu1 %v14665_v3  ;;  %v16274_v8 = vld [vmem:[#allocation65_spill] sm:$0xff] }
0x101e   :  { %v7110_v29 = vpack.c.bf16 %v16274_v8, %v16274_v8  ;;  %v12153_v3 = vld [vmem:[#allocation7 + $0x310] ss:$8 sps:$4 sm:$0xff]   ;;  %v12312_v8 = vld [vmem:[#allocation7 + $0x20] ss:$8 sps:$4 sm:$0xff]  }
0x1020   :  { %12072 = vmatpush1.bf16.msra.mxu0 %v14670_v5  ;;  %12104 = vmatpush1.bf16.msra.mxu1 %v14672_v35  ;;  %v12158_v5 = vld [vmem:[#allocation7 + $0x324] ss:$8 sps:$4 sm:$0xff]   ;;  %v12156_v35 = vld [vmem:[#allocation7 + $0x320] ss:$8 sps:$4 sm:$0xff]  }
0x1021   :  { %12074 = vmatprep.subr.bf16.mxu0 %v14676_v17  ;;  %12106 = vmatprep.subr.bf16.mxu1 %v14678_v46  ;;  %v12161_v17 = vld [vmem:[#allocation7 + $0x334] ss:$8 sps:$4 sm:$0xff]   ;;  %v12159_v46 = vld [vmem:[#allocation7 + $0x330] ss:$8 sps:$4 sm:$0xff]  }
0x1024   :  { %12076 = vmatpush1.bf16.msra.mxu0 %v14682_v23  ;;  %12108 = vmatpush1.bf16.msra.mxu1 %v14684_v2  ;;  %v12164_v23 = vld [vmem:[#allocation7 + $0x344] ss:$8 sps:$4 sm:$0xff]   ;;  %v12162_v2 = vld [vmem:[#allocation7 + $0x340] ss:$8 sps:$4 sm:$0xff]  }
0x1025   :  { %8790 = vmatprep.subr.bf16.mxu0 %v12152_v63  ;;  %8667 = vmatprep.subr.bf16.mxu1 %v12302_v42  ;;  %v12209_v63 = vld [vmem:[#allocation7 + $0x434] ss:$8 sps:$4 sm:$0xff]   ;;  %v12374_v42 = vld [vmem:[#allocation7 + $0xc4] ss:$8 sps:$4 sm:$0xff]  }
0x1026   :  { %v13044_v20 = vpop.eup %13043 }
0x1027   :  { %v6735_v26 = vmul.f32 %v13044_v20, %v13042_v60  ;;  %v12308_v60 = vld [vmem:[#allocation7 + $0x14] ss:$8 sps:$4 sm:$0xff]   ;;  %v12306_v20 = vld [vmem:[#allocation7 + $0x10] ss:$8 sps:$4 sm:$0xff]  }
0x1029   :  { %v15346_v53 = vrot.slane %v6735_v26, 2  ;;  %v12207_v26 = vld [vmem:[#allocation7 + $0x430] ss:$8 sps:$4 sm:$0xff]  }
0x102b   :  { %6992 = vmatmul.mubr.f32.vlgmr.msra.gmra.mrb[70].mxu0 %v15346_v53  ;;  %7063 = vmatmul.mubr.f32.vlgmr.msra.gmra.mrb[86].mxu1 %v15346_v53 }
0x102c   :  { %8791 = vmatpush1.bf16.msra.mxu0 %v12150_v30  ;;  %8822 = vmatprep.mubr.bf16.mxu0 %v7110_v29  ;;  %v12212_v30 = vld [vmem:[#allocation7 + $0x444] ss:$8 sps:$4 sm:$0xff]   ;;  %v12210_v29 = vld [vmem:[#allocation7 + $0x440] ss:$8 sps:$4 sm:$0xff]  }
0x102d   :  { %8792 = vmatprep.subr.bf16.mxu0 %v12155_v54  ;;  %8668 = vmatpush1.bf16.msra.mxu1 %v12300_v40  ;;  %v12314_v54 = vld [vmem:[#allocation7 + $0x24] ss:$8 sps:$4 sm:$0xff]   ;;  %v12240_v40 = vld [vmem:[#allocation7 + $0x4e0] ss:$8 sps:$4 sm:$0xff]  }
0x102e   :  { %8669 = vmatprep.subr.bf16.mxu1 %v12308_v60  ;;  %v12380_v60 = vld [vmem:[#allocation7 + $0xd4] ss:$8 sps:$4 sm:$0xff]  }
0x1030   :  { %8793 = vmatpush1.bf16.msra.mxu0 %v12153_v3  ;;  %v12215_v3 = vld [vmem:[#allocation7 + $0x454] ss:$8 sps:$4 sm:$0xff]  }
0x1031   :  { %8794 = vmatprep.subr.bf16.mxu0 %v12158_v5  ;;  %8670 = vmatpush1.bf16.msra.mxu1 %v12306_v20  ;;  %v12320_v5 = vld [vmem:[#allocation7 + $0x34] ss:$8 sps:$4 sm:$0xff]   ;;  %v12243_v20 = vld [vmem:[#allocation7 + $0x4f0] ss:$8 sps:$4 sm:$0xff]  }
0x1032   :  { %8671 = vmatprep.subr.bf16.mxu1 %v12314_v54  ;;  %v12386_v54 = vld [vmem:[#allocation7 + $0xe4] ss:$8 sps:$4 sm:$0xff]  }
0x1034   :  { %8795 = vmatpush1.bf16.msra.mxu0 %v12156_v35  ;;  %v12318_v35 = vld [vmem:[#allocation7 + $0x30] ss:$8 sps:$4 sm:$0xff]  }
0x1035   :  { %8796 = vmatprep.subr.bf16.mxu0 %v12161_v17  ;;  %8672 = vmatpush1.bf16.msra.mxu1 %v12312_v8  ;;  %v12213_v17 = vld [vmem:[#allocation7 + $0x450] ss:$8 sps:$4 sm:$0xff]   ;;  %v12246_v8 = vld [vmem:[#allocation7 + $0x500] ss:$8 sps:$4 sm:$0xff]  }
0x1036   :  { %8673 = vmatprep.subr.bf16.mxu1 %v12320_v5  ;;  %v12251_v5 = vld [vmem:[#allocation7 + $0x514] ss:$8 sps:$4 sm:$0xff]  }
0x1038   :  { %8797 = vmatpush1.bf16.msra.mxu0 %v12159_v46  ;;  %v12218_v46 = vld [vmem:[#allocation7 + $0x464] ss:$8 sps:$4 sm:$0xff]  }
0x1039   :  { %8798 = vmatprep.subr.bf16.mxu0 %v12164_v23  ;;  %8674 = vmatpush1.bf16.msra.mxu1 %v12318_v35  ;;  %v12326_v23 = vld [vmem:[#allocation7 + $0x44] ss:$8 sps:$4 sm:$0xff]  }
0x103a   :  { %8675 = vmatprep.subr.bf16.mxu1 %v12326_v23  ;;  %v16278_v35 = vld [vmem:[#allocation59_spill] sm:$0xff]  ;;  %v12390_v23 = vld [vmem:[#allocation7 + $0xf0] ss:$8 sps:$4 sm:$0xff]  }
0x103c   :  { %8799 = vmatpush1.bf16.msra.mxu0 %v12162_v2  ;;  %v12324_v2 = vld [vmem:[#allocation7 + $0x40] ss:$8 sps:$4 sm:$0xff]  }
0x103d   :  { %8800 = vmatprep.subr.bf16.mxu0 %v12167_v38  ;;  %v12216_v38 = vld [vmem:[#allocation7 + $0x460] ss:$8 sps:$4 sm:$0xff]   ;;  %8676 = vmatpush1.bf16.msra.mxu1 %v12324_v2  ;;  %v12249_v2 = vld [vmem:[#allocation7 + $0x510] ss:$8 sps:$4 sm:$0xff]  }
0x1040   :  { %8801 = vmatpush1.bf16.msra.mxu0 %v12165_v4  ;;  %v12221_v4 = vld [vmem:[#allocation7 + $0x474] ss:$8 sps:$4 sm:$0xff]  }
0x1041   :  { %8802 = vmatprep.subr.bf16.mxu0 %v12170_v32  ;;  %v12332_v32 = vld [vmem:[#allocation7 + $0x54] ss:$8 sps:$4 sm:$0xff]  }
0x1042   :  { %8677 = vmatprep.subr.bf16.mxu1 %v12332_v32  ;;  %v12252_v32 = vld [vmem:[#allocation7 + $0x520] ss:$8 sps:$4 sm:$0xff]  }
0x1044   :  { %8803 = vmatpush1.bf16.msra.mxu0 %v12168_v11  ;;  %v12330_v11 = vld [vmem:[#allocation7 + $0x50] ss:$8 sps:$4 sm:$0xff]  }
0x1045   :  { %8804 = vmatprep.subr.bf16.mxu0 %v12173_v12  ;;  %v12219_v12 = vld [vmem:[#allocation7 + $0x470] ss:$8 sps:$4 sm:$0xff]   ;;  %8678 = vmatpush1.bf16.msra.mxu1 %v12330_v11  ;;  %v12257_v11 = vld [vmem:[#allocation7 + $0x534] ss:$8 sps:$4 sm:$0xff]  }
0x1048   :  { %8805 = vmatpush1.bf16.msra.mxu0 %v12171_v37  ;;  %v12224_v37 = vld [vmem:[#allocation7 + $0x484] ss:$8 sps:$4 sm:$0xff]  }
0x1049   :  { %8806 = vmatprep.subr.bf16.mxu0 %v12176_v15  ;;  %v12338_v15 = vld [vmem:[#allocation7 + $0x64] ss:$8 sps:$4 sm:$0xff]  }
0x104a   :  { %8679 = vmatprep.subr.bf16.mxu1 %v12338_v15  ;;  %v12258_v15 = vld [vmem:[#allocation7 + $0x540] ss:$8 sps:$4 sm:$0xff]  }
0x104c   :  { %8807 = vmatpush1.bf16.msra.mxu0 %v12174_v25  ;;  %v12336_v25 = vld [vmem:[#allocation7 + $0x60] ss:$8 sps:$4 sm:$0xff]  }
0x104d   :  { %8808 = vmatprep.subr.bf16.mxu0 %v12179_v44  ;;  %v12222_v44 = vld [vmem:[#allocation7 + $0x480] ss:$8 sps:$4 sm:$0xff]   ;;  %8680 = vmatpush1.bf16.msra.mxu1 %v12336_v25  ;;  %v12263_v25 = vld [vmem:[#allocation7 + $0x554] ss:$8 sps:$4 sm:$0xff]  }
0x1050   :  { %8809 = vmatpush1.bf16.msra.mxu0 %v12177_v14  ;;  %v12227_v14 = vld [vmem:[#allocation7 + $0x494] ss:$8 sps:$4 sm:$0xff]  }
0x1051   :  { %8810 = vmatprep.subr.bf16.mxu0 %v12182_v13  ;;  %v12344_v13 = vld [vmem:[#allocation7 + $0x74] ss:$8 sps:$4 sm:$0xff]  }
0x1052   :  { %8681 = vmatprep.subr.bf16.mxu1 %v12344_v13  ;;  %v12264_v13 = vld [vmem:[#allocation7 + $0x560] ss:$8 sps:$4 sm:$0xff]  }
0x1054   :  { %8811 = vmatpush1.bf16.msra.mxu0 %v12180_v45  ;;  %v12342_v45 = vld [vmem:[#allocation7 + $0x70] ss:$8 sps:$4 sm:$0xff]  }
0x1055   :  { %8812 = vmatprep.subr.bf16.mxu0 %v12185_v48  ;;  %v12225_v48 = vld [vmem:[#allocation7 + $0x490] ss:$8 sps:$4 sm:$0xff]   ;;  %8682 = vmatpush1.bf16.msra.mxu1 %v12342_v45  ;;  %v12269_v45 = vld [vmem:[#allocation7 + $0x574] ss:$8 sps:$4 sm:$0xff]  }
0x1058   :  { %8813 = vmatpush1.bf16.msra.mxu0 %v12183_v56  ;;  %v12230_v56 = vld [vmem:[#allocation7 + $0x4a4] ss:$8 sps:$4 sm:$0xff]  }
0x1059   :  { %8814 = vmatprep.subr.bf16.mxu0 %v12188_v57  ;;  %v12350_v57 = vld [vmem:[#allocation7 + $0x84] ss:$8 sps:$4 sm:$0xff]  }
0x105a   :  { %8683 = vmatprep.subr.bf16.mxu1 %v12350_v57  ;;  %v12270_v57 = vld [vmem:[#allocation7 + $0x580] ss:$8 sps:$4 sm:$0xff]  }
0x105c   :  { %8815 = vmatpush1.bf16.msra.mxu0 %v12186_v1  ;;  %v12348_v1 = vld [vmem:[#allocation7 + $0x80] ss:$8 sps:$4 sm:$0xff]  }
0x105d   :  { %8816 = vmatprep.subr.bf16.mxu0 %v12191_v36  ;;  %v12228_v36 = vld [vmem:[#allocation7 + $0x4a0] ss:$8 sps:$4 sm:$0xff]   ;;  %8684 = vmatpush1.bf16.msra.mxu1 %v12348_v1  ;;  %v12275_v1 = vld [vmem:[#allocation7 + $0x594] ss:$8 sps:$4 sm:$0xff]  }
0x1060   :  { %8817 = vmatpush1.bf16.msra.mxu0 %v12189_v16  ;;  %v12233_v16 = vld [vmem:[#allocation7 + $0x4b4] ss:$8 sps:$4 sm:$0xff]  }
0x1061   :  { %8818 = vmatprep.subr.bf16.mxu0 %v12194_v27  ;;  %v12356_v27 = vld [vmem:[#allocation7 + $0x94] ss:$8 sps:$4 sm:$0xff]  }
0x1062   :  { %8685 = vmatprep.subr.bf16.mxu1 %v12356_v27  ;;  %v12276_v27 = vld [vmem:[#allocation7 + $0x5a0] ss:$8 sps:$4 sm:$0xff]  }
0x1064   :  { %8819 = vmatpush1.bf16.msra.mxu0 %v12192_v22  ;;  %v12354_v22 = vld [vmem:[#allocation7 + $0x90] ss:$8 sps:$4 sm:$0xff]  }
0x1065   :  { %8820 = vmatprep.subr.bf16.mxu0 %v12197_v50  ;;  %v12231_v50 = vld [vmem:[#allocation7 + $0x4b0] ss:$8 sps:$4 sm:$0xff]   ;;  %8686 = vmatpush1.bf16.msra.mxu1 %v12354_v22  ;;  %v12281_v22 = vld [vmem:[#allocation7 + $0x5b4] ss:$8 sps:$4 sm:$0xff]  }
0x1068   :  { %8821 = vmatpush1.bf16.msra.mxu0 %v12195_v7  ;;  %v12236_v7 = vld [vmem:[#allocation7 + $0x4c4] ss:$8 sps:$4 sm:$0xff]  }
0x1069   :  { %8831 = vmatprep.subr.bf16.mxu0 %v12200_v51  ;;  %v12362_v51 = vld [vmem:[#allocation7 + $0xa4] ss:$8 sps:$4 sm:$0xff]  }
0x106a   :  { %8687 = vmatprep.subr.bf16.mxu1 %v12362_v51  ;;  %v12282_v51 = vld [vmem:[#allocation7 + $0x5c0] ss:$8 sps:$4 sm:$0xff]  }
0x106b   :  { %8823 = vmatmul.mubr.bf16.vlgmr.msra.gmra.mrb[72].mxu0 %v7109_v10  ;;  %v12239_v10 = vld [vmem:[#allocation7 + $0x4d4] ss:$8 sps:$4 sm:$0xff]  }
0x106c   :  { %8832 = vmatpush1.bf16.msra.mxu0 %v12198_v55  ;;  %8863 = vmatprep.mubr.bf16.mxu0 %v7112_v18  ;;  %v12360_v55 = vld [vmem:[#allocation7 + $0xa0] ss:$8 sps:$4 sm:$0xff]   ;;  %v12237_v18 = vld [vmem:[#allocation7 + $0x4d0] ss:$8 sps:$4 sm:$0xff]  }
0x106d   :  { %8833 = vmatprep.subr.bf16.mxu0 %v12203_v62  ;;  %8688 = vmatpush1.bf16.msra.mxu1 %v12360_v55  ;;  %v12368_v62 = vld [vmem:[#allocation7 + $0xb4] ss:$8 sps:$4 sm:$0xff]  }
0x106e   :  { %8689 = vmatprep.subr.bf16.mxu1 %v12368_v62  ;;  %v12287_v55 = vld [vmem:[#allocation7 + $0x5d4] ss:$8 sps:$4 sm:$0xff]  }
0x1070   :  { %8834 = vmatpush1.bf16.msra.mxu0 %v12201_v31  ;;  %v12242_v31 = vld [vmem:[#allocation7 + $0x4e4] ss:$8 sps:$4 sm:$0xff]  }
0x1071   :  { %8835 = vmatprep.subr.bf16.mxu0 %v12206_v6  ;;  %8690 = vmatpush1.bf16.msra.mxu1 %v12366_v61  ;;  %v12372_v6 = vld [vmem:[#allocation7 + $0xc0] ss:$8 sps:$4 sm:$0xff]  }
0x1072   :  { %8691 = vmatprep.subr.bf16.mxu1 %v12374_v42 }
0x1074   :  { %8836 = vmatpush1.bf16.msra.mxu0 %v12204_v49  ;;  %v12245_v49 = vld [vmem:[#allocation7 + $0x4f4] ss:$8 sps:$4 sm:$0xff]  }
0x1075   :  { %8837 = vmatprep.subr.bf16.mxu0 %v12209_v63  ;;  %8692 = vmatpush1.bf16.msra.mxu1 %v12372_v6  ;;  %v12378_v63 = vld [vmem:[#allocation7 + $0xd0] ss:$8 sps:$4 sm:$0xff]  }
0x1076   :  { %8693 = vmatprep.subr.bf16.mxu1 %v12380_v60  ;;  %v12285_v6 = vld [vmem:[#allocation7 + $0x5d0] ss:$8 sps:$4 sm:$0xff]  }
0x1078   :  { %8838 = vmatpush1.bf16.msra.mxu0 %v12207_v26  ;;  %v12248_v26 = vld [vmem:[#allocation7 + $0x504] ss:$8 sps:$4 sm:$0xff]  }
0x1079   :  { %8839 = vmatprep.subr.bf16.mxu0 %v12212_v30  ;;  %8694 = vmatpush1.bf16.msra.mxu1 %v12378_v63  ;;  %v12384_v30 = vld [vmem:[#allocation7 + $0xe0] ss:$8 sps:$4 sm:$0xff]  }
0x107a   :  { %8695 = vmatprep.subr.bf16.mxu1 %v12386_v54 }
0x107c   :  { %8840 = vmatpush1.bf16.msra.mxu0 %v12210_v29  ;;  %v16277_v29 = vld [vmem:[#allocation27_spill] sm:$0xff] }
0x107d   :  { %8841 = vmatprep.subr.bf16.mxu0 %v12215_v3  ;;  %v7111_v3 = vpack.c.bf16 %v16277_v29, %v16277_v29  ;;  %8696 = vmatpush1.bf16.msra.mxu1 %v12384_v30  ;;  %v12293_v30 = vld [vmem:[#allocation7 + $0x5f4] ss:$8 sps:$4 sm:$0xff]  }
0x1080   :  { %8842 = vmatpush1.bf16.msra.mxu0 %v12213_v17  ;;  %v7114_v17 = vpack.c.bf16 %v16278_v35, %v16278_v35  ;;  %v7113_v35 = vpack.c.bf16 %v15213_v19, %v15213_v19  ;;  %v12303_v19 = vld [vmem:[#allocation7 + $0x620] ss:$8 sps:$4 sm:$0xff]  }
0x1081   :  { %8843 = vmatprep.subr.bf16.mxu0 %v12218_v46  ;;  %v12392_v46 = vld [vmem:[#allocation7 + $0xf4] ss:$8 sps:$4 sm:$0xff]  }
0x1082   :  { %8697 = vmatprep.subr.bf16.mxu1 %v12392_v46  ;;  %v16279_v46 = vld [vmem:[#allocation72_spill] sm:$0xff] }
0x1083   :  { %8698 = vmatpush1.bf16.msra.mxu1 %v12390_v23  ;;  %v7116_v23 = vpack.c.bf16 %v16279_v46, %v16279_v46 }
0x1084   :  { %8844 = vmatpush1.bf16.msra.mxu0 %v12216_v38  ;;  %v12254_v38 = vld [vmem:[#allocation7 + $0x524] ss:$8 sps:$4 sm:$0xff]  }
0x1085   :  { %8845 = vmatprep.subr.bf16.mxu0 %v12221_v4  ;;  %v12398_v4 = vld [vmem:[#allocation7 + $0x104] ss:$8 sps:$4 sm:$0xff]  }
0x1086   :  { %8708 = vmatprep.subr.bf16.mxu1 %v12398_v4  ;;  %v12297_v4 = vld [vmem:[#allocation7 + $0x610] ss:$8 sps:$4 sm:$0xff]  }
0x1088   :  { %8846 = vmatpush1.bf16.msra.mxu0 %v12219_v12  ;;  %v12255_v12 = vld [vmem:[#allocation7 + $0x530] ss:$8 sps:$4 sm:$0xff]  }
0x1089   :  { %8847 = vmatprep.subr.bf16.mxu0 %v12224_v37  ;;  %v12260_v37 = vld [vmem:[#allocation7 + $0x544] ss:$8 sps:$4 sm:$0xff]  }
0x108c   :  { %8848 = vmatpush1.bf16.msra.mxu0 %v12222_v44  ;;  %v12261_v44 = vld [vmem:[#allocation7 + $0x550] ss:$8 sps:$4 sm:$0xff]  }
0x108d   :  { %8849 = vmatprep.subr.bf16.mxu0 %v12227_v14  ;;  %v12266_v14 = vld [vmem:[#allocation7 + $0x564] ss:$8 sps:$4 sm:$0xff]  }
0x1090   :  { %8850 = vmatpush1.bf16.msra.mxu0 %v12225_v48  ;;  %v12267_v48 = vld [vmem:[#allocation7 + $0x570] ss:$8 sps:$4 sm:$0xff]  }
0x1091   :  { %8851 = vmatprep.subr.bf16.mxu0 %v12230_v56  ;;  %v12272_v56 = vld [vmem:[#allocation7 + $0x584] ss:$8 sps:$4 sm:$0xff]  }
0x1094   :  { %8852 = vmatpush1.bf16.msra.mxu0 %v12228_v36  ;;  %v12273_v36 = vld [vmem:[#allocation7 + $0x590] ss:$8 sps:$4 sm:$0xff]  }
0x1095   :  { %8853 = vmatprep.subr.bf16.mxu0 %v12233_v16  ;;  %v12278_v16 = vld [vmem:[#allocation7 + $0x5a4] ss:$8 sps:$4 sm:$0xff]  }
0x1098   :  { %8854 = vmatpush1.bf16.msra.mxu0 %v12231_v50  ;;  %v12279_v50 = vld [vmem:[#allocation7 + $0x5b0] ss:$8 sps:$4 sm:$0xff]  }
0x1099   :  { %8855 = vmatprep.subr.bf16.mxu0 %v12236_v7  ;;  %v12284_v7 = vld [vmem:[#allocation7 + $0x5c4] ss:$8 sps:$4 sm:$0xff]  }
0x109c   :  { %8856 = vmatpush1.bf16.msra.mxu0 %v12234_v21 }
0x109d   :  { %8857 = vmatprep.subr.bf16.mxu0 %v12239_v10 }
0x10a0   :  { %8858 = vmatpush1.bf16.msra.mxu0 %v12237_v18 }
0x10a1   :  { %8859 = vmatprep.subr.bf16.mxu0 %v12242_v31 }
0x10a4   :  { %8860 = vmatpush1.bf16.msra.mxu0 %v12240_v40  ;;  %v12290_v40 = vld [vmem:[#allocation7 + $0x5e4] ss:$8 sps:$4 sm:$0xff]  }
0x10a5   :  { %8861 = vmatprep.subr.bf16.mxu0 %v12245_v49 }
0x10a8   :  { %8862 = vmatpush1.bf16.msra.mxu0 %v12243_v20 }
0x10a9   :  { %8872 = vmatprep.subr.bf16.mxu0 %v12248_v26  ;;  %v12288_v26 = vld [vmem:[#allocation7 + $0x5e0] ss:$8 sps:$4 sm:$0xff]  }
0x10ab   :  { %8864 = vmatmul.mubr.bf16.vlgmr.msra.gmra.mrb[72].mxu0 %v7111_v3 }
0x10ac   :  { %8873 = vmatpush1.bf16.msra.mxu0 %v12246_v8  ;;  %8904 = vmatprep.mubr.bf16.mxu0 %v7114_v17  ;;  %v12291_v8 = vld [vmem:[#allocation7 + $0x5f0] ss:$8 sps:$4 sm:$0xff]   ;;  %v12299_v17 = vld [vmem:[#allocation7 + $0x614] ss:$8 sps:$4 sm:$0xff]  }
0x10ad   :  { %8874 = vmatprep.subr.bf16.mxu0 %v12251_v5  ;;  %v12294_v5 = vld [vmem:[#allocation7 + $0x600] ss:$8 sps:$4 sm:$0xff]  }
0x10b0   :  { %8875 = vmatpush1.bf16.msra.mxu0 %v12249_v2 }
0x10b1   :  { %8876 = vmatprep.subr.bf16.mxu0 %v12254_v38 }
0x10b4   :  { %8877 = vmatpush1.bf16.msra.mxu0 %v12252_v32 }
0x10b5   :  { %8878 = vmatprep.subr.bf16.mxu0 %v12257_v11  ;;  %v12311_v11 = vld [vmem:[#allocation7 + $0x634] ss:$8 sps:$4 sm:$0xff]  }
0x10b8   :  { %8879 = vmatpush1.bf16.msra.mxu0 %v12255_v12  ;;  %v12309_v12 = vld [vmem:[#allocation7 + $0x630] ss:$8 sps:$4 sm:$0xff]  }
0x10b9   :  { %8880 = vmatprep.subr.bf16.mxu0 %v12260_v37  ;;  %v12317_v37 = vld [vmem:[#allocation7 + $0x644] ss:$8 sps:$4 sm:$0xff]  }
0x10bc   :  { %8881 = vmatpush1.bf16.msra.mxu0 %v12258_v15 }
0x10bd   :  { %8882 = vmatprep.subr.bf16.mxu0 %v12263_v25 }
0x10c0   :  { %8883 = vmatpush1.bf16.msra.mxu0 %v12261_v44 }
0x10c1   :  { %8884 = vmatprep.subr.bf16.mxu0 %v12266_v14  ;;  %v6917_v14 = vrot.slane %v15299_v24, 6 }
0x10c4   :  { %8885 = vmatpush1.bf16.msra.mxu0 %v12264_v13  ;;  %v12315_v13 = vld [vmem:[#allocation7 + $0x640] ss:$8 sps:$4 sm:$0xff]  }
0x10c5   :  { %8886 = vmatprep.subr.bf16.mxu0 %v12269_v45 }
0x10c8   :  { %8887 = vmatpush1.bf16.msra.mxu0 %v12267_v48 }
0x10c9   :  { %8888 = vmatprep.subr.bf16.mxu0 %v12272_v56 }
0x10cc   :  { %8889 = vmatpush1.bf16.msra.mxu0 %v12270_v57  ;;  %v12323_v57 = vld [vmem:[#allocation7 + $0x654] ss:$8 sps:$4 sm:$0xff]  }
0x10cd   :  { %8890 = vmatprep.subr.bf16.mxu0 %v12275_v1 }
0x10d0   :  { %8891 = vmatpush1.bf16.msra.mxu0 %v12273_v36 }
0x10d1   :  { %8892 = vmatprep.subr.bf16.mxu0 %v12278_v16  ;;  %v12321_v16 = vld [vmem:[#allocation7 + $0x650] ss:$8 sps:$4 sm:$0xff]  }
0x10d4   :  { %8893 = vmatpush1.bf16.msra.mxu0 %v12276_v27  ;;  %v12329_v27 = vld [vmem:[#allocation7 + $0x664] ss:$8 sps:$4 sm:$0xff]  }
0x10d5   :  { %8894 = vmatprep.subr.bf16.mxu0 %v12281_v22 }
0x10d8   :  { %8895 = vmatpush1.bf16.msra.mxu0 %v12279_v50 }
0x10d9   :  { %8896 = vmatprep.subr.bf16.mxu0 %v12284_v7 }
0x10da   :  { %v6805_v21 = vpop.f32.mrb[68].mxu0  ;;  %v6876_v10 = vpop.f32.mrb[84].mxu1 }
0x10db   :  { %v6885_v62 = vrot.slane %v6805_v21, 2  ;;  %v6807_v61 = vpop.f32.mrb[69].mxu0  ;;  %v6878_v18 = vpop.f32.mrb[85].mxu1  ;;  %v6887_v29 = vrot.slane %v6876_v10, 2  ;;  %v12327_v21 = vld [vmem:[#allocation7 + $0x660] ss:$8 sps:$4 sm:$0xff]  }
0x10dc   :  { %v6886_v31 = vrot.slane %v6807_v61, 2  ;;  %8897 = vmatpush1.bf16.msra.mxu0 %v12282_v51  ;;  %v6888_v20 = vrot.slane %v6878_v18, 2  ;;  %v12333_v18 = vld [vmem:[#allocation7 + $0x670] ss:$8 sps:$4 sm:$0xff]  }
0x10dd   :  { %v6893_v42 = vadd.f32 %v6885_v62, %v16241_v59  ;;  %8898 = vmatprep.subr.bf16.mxu0 %v12287_v55  ;;  %v12296_v59 = vld [vmem:[#allocation7 + $0x604] ss:$8 sps:$4 sm:$0xff]   ;;  %v12335_v62 = vld [vmem:[#allocation7 + $0x674] ss:$8 sps:$4 sm:$0xff]  }
0x10de   :  { %v6894_v49 = vadd.f32 %v6886_v31, %v16242_v47  ;;  %v6896_v54 = vadd.f32 %v6888_v20, %v16243_v34  ;;  %v6895_v47 = vadd.f32 %v6887_v29, %v16273_v41  ;;  %v12305_v41 = vld [vmem:[#allocation7 + $0x624] ss:$8 sps:$4 sm:$0xff]   ;;  %v12345_v20 = vld [vmem:[#allocation7 + $0x690] ss:$8 sps:$4 sm:$0xff]   ;;  %v12351_v29 = vld [vmem:[#allocation7 + $0x6a0] ss:$8 sps:$4 sm:$0xff]  }
0x10df   :  { %v9641_v63 = vmul.f32 -1.442695, %v6893_v42  ;;  %v12341_v31 = vld [vmem:[#allocation7 + $0x684] ss:$8 sps:$4 sm:$0xff]  }
0x10e0   :  { %v9642_v60 = vmul.f32 -1.442695, %v6894_v49  ;;  %8899 = vmatpush1.bf16.msra.mxu0 %v12285_v6  ;;  %v9643_v3 = vmul.f32 -1.442695, %v6896_v54 }
0x10e1   :  { %13045 = vpow2.f32 %v9641_v63  ;;  %8900 = vmatprep.subr.bf16.mxu0 %v12290_v40  ;;  %v12339_v40 = vld [vmem:[#allocation7 + $0x680] ss:$8 sps:$4 sm:$0xff]  }
0x10e2   :  { %13047 = vpow2.f32 %v9642_v60 }
0x10e3   :  { %13049 = vpow2.f32 %v9643_v3  ;;  %v12357_v3 = vld [vmem:[#allocation7 + $0x6b0] ss:$8 sps:$4 sm:$0xff]  }
0x10e4   :  { %8901 = vmatpush1.bf16.msra.mxu0 %v12288_v26  ;;  %13051 = vtanh.f32 %v6895_v47  ;;  %v12363_v47 = vld [vmem:[#allocation7 + $0x6c0] ss:$8 sps:$4 sm:$0xff]  }
0x10e5   :  { %8902 = vmatprep.subr.bf16.mxu0 %v12293_v30  ;;  %v12353_v30 = vld [vmem:[#allocation7 + $0x6a4] ss:$8 sps:$4 sm:$0xff]  }
0x10e8   :  { %8903 = vmatpush1.bf16.msra.mxu0 %v12291_v8 }
0x10e9   :  { %8913 = vmatprep.subr.bf16.mxu0 %v12296_v59  ;;  %v12359_v59 = vld [vmem:[#allocation7 + $0x6b4] ss:$8 sps:$4 sm:$0xff]  }
0x10eb   :  { %v13046_v2 = vpop.eup %13045  ;;  %8905 = vmatmul.mubr.bf16.vlgmr.msra.gmra.mrb[72].mxu0 %v7113_v35 }
0x10ec   :  { %v13048_v34 = vpop.eup %13047  ;;  %v6900_v38 = vadd.f32 1.0, %v13046_v2  ;;  %8914 = vmatpush1.bf16.msra.mxu0 %v12294_v5  ;;  %8945 = vmatprep.mubr.bf16.mxu0 %v7116_v23  ;;  %v7093_v23 = vrot.slane %v15333_v39, 2  ;;  %v12387_v39 = vld [vmem:[#allocation7 + $0x700] ss:$8 sps:$4 sm:$0xff]  }
0x10ed   :  { %v6906_v32 = vadd.f32 1.0, %v13048_v34  ;;  %8915 = vmatprep.subr.bf16.mxu0 %v12299_v17  ;;  %v13050_v15 = vpop.eup %13049  ;;  %v12371_v17 = vld [vmem:[#allocation7 + $0x6d4] ss:$8 sps:$4 sm:$0xff]  }
0x10ee   :  { %13053 = vrcp.f32 %v6900_v38  ;;  %v13052_v25 = vpop.eup %13051  ;;  %v6913_v56 = vadd.f32 1.0, %v13050_v15  ;;  %v12389_v15 = vld [vmem:[#allocation7 + $0x704] ss:$8 sps:$4 sm:$0xff]  }
0x10ef   :  { %13055 = vrcp.f32 %v6906_v32  ;;  %v12369_v32 = vld [vmem:[#allocation7 + $0x6d0] ss:$8 sps:$4 sm:$0xff]  }
0x10f0   :  { %8916 = vmatpush1.bf16.msra.mxu0 %v12297_v4  ;;  %13057 = vrcp.f32 %v6913_v56 }
0x10f1   :  { %8917 = vmatprep.subr.bf16.mxu0 %v12305_v41  ;;  %v12377_v41 = vld [vmem:[#allocation7 + $0x6e4] ss:$8 sps:$4 sm:$0xff]  }
0x10f4   :  { %8918 = vmatpush1.bf16.msra.mxu0 %v12303_v19 }
0x10f5   :  { %8919 = vmatprep.subr.bf16.mxu0 %v12311_v11  ;;  %v12375_v11 = vld [vmem:[#allocation7 + $0x6e0] ss:$8 sps:$4 sm:$0xff]  }
0x10f8   :  { %v13054_v44 = vpop.eup %13053  ;;  %8920 = vmatpush1.bf16.msra.mxu0 %v12309_v12  ;;  %v12383_v12 = vld [vmem:[#allocation7 + $0x6f4] ss:$8 sps:$4 sm:$0xff]  }
0x10f9   :  { %v13056_v45 = vpop.eup %13055  ;;  %v6920_v48 = vmul.f32 %v13054_v44, %v13052_v25  ;;  %8921 = vmatprep.subr.bf16.mxu0 %v12317_v37  ;;  %v12381_v37 = vld [vmem:[#allocation7 + $0x6f0] ss:$8 sps:$4 sm:$0xff]   ;;  %v7115_v44 = vpack.c.bf16 %v15305_v33, %v15305_v33  ;;  %v7106_v33 = vpack.c.bf16 %v15346_v53, %v15346_v53  ;;  %v12411_v53 = vld [vmem:[#allocation7 + $0x740] ss:$8 sps:$4 sm:$0xff]  }
0x10fa   :  { %v6919_v1 = vmul.f32 %v13056_v45, %v6917_v14  ;;  %v13058_v42 = vpop.eup %13057  ;;  %v12395_v14 = vld [vmem:[#allocation7 + $0x714] ss:$8 sps:$4 sm:$0xff]  }
0x10fb   :  { %v16280_v45 = vld [vmem:[#allocation36_spill] sm:$0xff] }
0x10fc   :  { %v6921_v36 = vadd.f32 %v6920_v48, %v6919_v1  ;;  %8922 = vmatpush1.bf16.msra.mxu0 %v12315_v13  ;;  %v7118_v48 = vpack.c.bf16 %v16280_v45, %v16280_v45  ;;  %v12479_v45 = vld [vmem:[#allocation7 + $0x7f4] ss:$8 sps:$4 sm:$0xff]  }
0x10fd   :  { %8923 = vmatprep.subr.bf16.mxu0 %v12323_v57  ;;  %v12393_v57 = vld [vmem:[#allocation7 + $0x710] ss:$8 sps:$4 sm:$0xff]  }
0x10fe   :  { %v6993_v22 = vpop.f32.mrb[70].mxu0  ;;  %v7064_v50 = vpop.f32.mrb[86].mxu1  ;;  %13059 = vtanh.f32 %v6921_v36  ;;  %v12396_v36 = vld [vmem:[#allocation7 + $0x100] ss:$8 sps:$4 sm:$0xff]  }
0x10ff   :  { %v7069_v7 = vadd.f32 %v6993_v22, %v16212_v52  ;;  %v6995_v24 = vpop.f32.mrb[71].mxu0  ;;  %v7066_v51 = vpop.f32.mrb[87].mxu1  ;;  %v7071_v60 = vadd.f32 %v7064_v50, %v16216_v9  ;;  %v12365_v9 = vld [vmem:[#allocation7 + $0x6c4] ss:$8 sps:$4 sm:$0xff]   ;;  %v12404_v50 = vld [vmem:[#allocation7 + $0x114] ss:$8 sps:$4 sm:$0xff]  }
0x1100   :  { %v7070_v55 = vadd.f32 %v6995_v24, %v16213_v28  ;;  %8924 = vmatpush1.bf16.msra.mxu0 %v12321_v16  ;;  %v7072_v6 = vadd.f32 %v7066_v51, %v16214_v43  ;;  %v12347_v28 = vld [vmem:[#allocation7 + $0x694] ss:$8 sps:$4 sm:$0xff]   ;;  %v12401_v22 = vld [vmem:[#allocation7 + $0x724] ss:$8 sps:$4 sm:$0xff]   ;;  %v12402_v24 = vld [vmem:[#allocation7 + $0x110] ss:$8 sps:$4 sm:$0xff]  }
0x1101   :  { %v9644_v10 = vmul.f32 -1.442695, %v7069_v7  ;;  %8925 = vmatprep.subr.bf16.mxu0 %v12329_v27  ;;  %v16281_v16 = vld [vmem:[#allocation53_spill] sm:$0xff]  ;;  %v12399_v7 = vld [vmem:[#allocation7 + $0x720] ss:$8 sps:$4 sm:$0xff]  }
0x1102   :  { %v9645_v61 = vmul.f32 -1.442695, %v7070_v55  ;;  %v9646_v63 = vmul.f32 -1.442695, %v7072_v6  ;;  %v7103_v27 = vpack.c.bf16 %v16281_v16, %v16281_v16  ;;  %v12407_v51 = vld [vmem:[#allocation7 + $0x734] ss:$8 sps:$4 sm:$0xff]  }
0x1103   :  { %13061 = vpow2.f32 %v9644_v10  ;;  %v12410_v55 = vld [vmem:[#allocation7 + $0x124] ss:$8 sps:$4 sm:$0xff]   ;;  %v12408_v10 = vld [vmem:[#allocation7 + $0x120] ss:$8 sps:$4 sm:$0xff]  }
0x1104   :  { %13063 = vpow2.f32 %v9645_v61  ;;  %8926 = vmatpush1.bf16.msra.mxu0 %v12327_v21  ;;  %v12405_v21 = vld [vmem:[#allocation7 + $0x730] ss:$8 sps:$4 sm:$0xff]   ;;  %v12416_v61 = vld [vmem:[#allocation7 + $0x134] ss:$8 sps:$4 sm:$0xff]   ;;  %v12422_v6 = vld [vmem:[#allocation7 + $0x144] ss:$8 sps:$4 sm:$0xff]  }
0x1105   :  { %8927 = vmatprep.subr.bf16.mxu0 %v12335_v62  ;;  %13065 = vpow2.f32 %v9646_v63  ;;  %v12413_v62 = vld [vmem:[#allocation7 + $0x744] ss:$8 sps:$4 sm:$0xff]   ;;  %v12423_v63 = vld [vmem:[#allocation7 + $0x760] ss:$8 sps:$4 sm:$0xff]  }
0x1106   :  { %13067 = vtanh.f32 %v7071_v60  ;;  %v12426_v60 = vld [vmem:[#allocation7 + $0x150] ss:$8 sps:$4 sm:$0xff]  }
0x1108   :  { %v13060_v52 = vpop.eup %13059  ;;  %8928 = vmatpush1.bf16.msra.mxu0 %v12333_v18  ;;  %v12414_v18 = vld [vmem:[#allocation7 + $0x130] ss:$8 sps:$4 sm:$0xff]  }
0x1109   :  { %8929 = vmatprep.subr.bf16.mxu0 %v12341_v31  ;;  %v15372_v49 = vmul.f32 %v13060_v52, %v13058_v42  ;;  %v12419_v31 = vld [vmem:[#allocation7 + $0x754] ss:$8 sps:$4 sm:$0xff]   ;;  %v12417_v42 = vld [vmem:[#allocation7 + $0x750] ss:$8 sps:$4 sm:$0xff]   ;;  %v12420_v52 = vld [vmem:[#allocation7 + $0x140] ss:$8 sps:$4 sm:$0xff]  }
0x110c   :  { %8930 = vmatpush1.bf16.msra.mxu0 %v12339_v40  ;;  %v12425_v40 = vld [vmem:[#allocation7 + $0x764] ss:$8 sps:$4 sm:$0xff]  }
0x110d   :  { %v13062_v26 = vpop.eup %13061  ;;  %8931 = vmatprep.subr.bf16.mxu0 %v12347_v28  ;;  %v12428_v28 = vld [vmem:[#allocation7 + $0x154] ss:$8 sps:$4 sm:$0xff]  }
0x110e   :  { %v13064_v54 = vpop.eup %13063  ;;  %v7076_v8 = vadd.f32 1.0, %v13062_v26  ;;  %v12434_v26 = vld [vmem:[#allocation7 + $0x164] ss:$8 sps:$4 sm:$0xff]  }
0x110f   :  { %v7082_v43 = vadd.f32 1.0, %v13064_v54  ;;  %v13066_v5 = vpop.eup %13065  ;;  %v12432_v54 = vld [vmem:[#allocation7 + $0x160] ss:$8 sps:$4 sm:$0xff]  }
0x1110   :  { %13069 = vrcp.f32 %v7076_v8  ;;  %8932 = vmatpush1.bf16.msra.mxu0 %v12345_v20  ;;  %v13068_v35 = vpop.eup %13067  ;;  %v7089_v38 = vadd.f32 1.0, %v13066_v5  ;;  %v12431_v20 = vld [vmem:[#allocation7 + $0x774] ss:$8 sps:$4 sm:$0xff]   ;;  %v12437_v8 = vld [vmem:[#allocation7 + $0x784] ss:$8 sps:$4 sm:$0xff]  }
0x1111   :  { %13071 = vrcp.f32 %v7082_v43  ;;  %8933 = vmatprep.subr.bf16.mxu0 %v12353_v30  ;;  %v12429_v30 = vld [vmem:[#allocation7 + $0x770] ss:$8 sps:$4 sm:$0xff]   ;;  %v12440_v43 = vld [vmem:[#allocation7 + $0x174] ss:$8 sps:$4 sm:$0xff]  }
0x1112   :  { %13073 = vrcp.f32 %v7089_v38  ;;  %v12441_v5 = vld [vmem:[#allocation7 + $0x790] ss:$8 sps:$4 sm:$0xff]  }
0x1113   :  { %v12453_v38 = vld [vmem:[#allocation7 + $0x7b0] ss:$8 sps:$4 sm:$0xff]  }
0x1114   :  { %8934 = vmatpush1.bf16.msra.mxu0 %v12351_v29  ;;  %v12435_v29 = vld [vmem:[#allocation7 + $0x780] ss:$8 sps:$4 sm:$0xff]  }
0x1115   :  { %8935 = vmatprep.subr.bf16.mxu0 %v12359_v59  ;;  %v12438_v59 = vld [vmem:[#allocation7 + $0x170] ss:$8 sps:$4 sm:$0xff]  }
0x1118   :  { %8936 = vmatpush1.bf16.msra.mxu0 %v12357_v3  ;;  %v12443_v3 = vld [vmem:[#allocation7 + $0x794] ss:$8 sps:$4 sm:$0xff]  }
0x1119   :  { %8937 = vmatprep.subr.bf16.mxu0 %v12365_v9  ;;  %v12446_v9 = vld [vmem:[#allocation7 + $0x184] ss:$8 sps:$4 sm:$0xff]  }
0x111a   :  { %v13070_v46 = vpop.eup %13069 }
0x111b   :  { %v13072_v2 = vpop.eup %13071  ;;  %v7096_v34 = vmul.f32 %v13070_v46, %v13068_v35  ;;  %v12449_v35 = vld [vmem:[#allocation7 + $0x7a4] ss:$8 sps:$4 sm:$0xff]   ;;  %v12447_v46 = vld [vmem:[#allocation7 + $0x7a0] ss:$8 sps:$4 sm:$0xff]  }
0x111c   :  { %v7095_v4 = vmul.f32 %v13072_v2, %v7093_v23  ;;  %8938 = vmatpush1.bf16.msra.mxu0 %v12363_v47  ;;  %v13074_v25 = vpop.eup %13073  ;;  %v12444_v47 = vld [vmem:[#allocation7 + $0x180] ss:$8 sps:$4 sm:$0xff]   ;;  %v12450_v23 = vld [vmem:[#allocation7 + $0x190] ss:$8 sps:$4 sm:$0xff]   ;;  %v12455_v2 = vld [vmem:[#allocation7 + $0x7b4] ss:$8 sps:$4 sm:$0xff]  }
0x111d   :  { %8939 = vmatprep.subr.bf16.mxu0 %v12371_v17  ;;  %v12452_v17 = vld [vmem:[#allocation7 + $0x194] ss:$8 sps:$4 sm:$0xff]  }
0x111e   :  { %v7097_v19 = vadd.f32 %v7096_v34, %v7095_v4  ;;  %v12458_v34 = vld [vmem:[#allocation7 + $0x1a4] ss:$8 sps:$4 sm:$0xff]   ;;  %v12456_v4 = vld [vmem:[#allocation7 + $0x1a0] ss:$8 sps:$4 sm:$0xff]  }
0x1120   :  { %8940 = vmatpush1.bf16.msra.mxu0 %v12369_v32  ;;  %13075 = vtanh.f32 %v7097_v19  ;;  %v12461_v32 = vld [vmem:[#allocation7 + $0x7c4] ss:$8 sps:$4 sm:$0xff]   ;;  %v12459_v19 = vld [vmem:[#allocation7 + $0x7c0] ss:$8 sps:$4 sm:$0xff]  }
0x1121   :  { %8941 = vmatprep.subr.bf16.mxu0 %v12377_v41  ;;  %v12464_v41 = vld [vmem:[#allocation7 + $0x1b4] ss:$8 sps:$4 sm:$0xff]  }
0x1124   :  { %8942 = vmatpush1.bf16.msra.mxu0 %v12375_v11  ;;  %v12462_v11 = vld [vmem:[#allocation7 + $0x1b0] ss:$8 sps:$4 sm:$0xff]  }
0x1125   :  { %8943 = vmatprep.subr.bf16.mxu0 %v12383_v12  ;;  %v12467_v12 = vld [vmem:[#allocation7 + $0x7d4] ss:$8 sps:$4 sm:$0xff]  }
0x1128   :  { %8944 = vmatpush1.bf16.msra.mxu0 %v12381_v37  ;;  %v12470_v37 = vld [vmem:[#allocation7 + $0x1c4] ss:$8 sps:$4 sm:$0xff]  }
0x1129   :  { %8954 = vmatprep.subr.bf16.mxu0 %v12389_v15  ;;  %v12465_v15 = vld [vmem:[#allocation7 + $0x7d0] ss:$8 sps:$4 sm:$0xff]  }
0x112a   :  { %v13076_v13 = vpop.eup %13075 }
0x112b   :  { %8946 = vmatmul.mubr.bf16.vlgmr.msra.gmra.mrb[72].mxu0 %v7115_v44  ;;  %v7099_v56 = vmul.f32 %v13076_v13, %v13074_v25  ;;  %v12473_v25 = vld [vmem:[#allocation7 + $0x7e4] ss:$8 sps:$4 sm:$0xff]   ;;  %v12476_v44 = vld [vmem:[#allocation7 + $0x1d4] ss:$8 sps:$4 sm:$0xff]   ;;  %v12474_v13 = vld [vmem:[#allocation7 + $0x1d0] ss:$8 sps:$4 sm:$0xff]  }
0x112c   :  { %8955 = vmatpush1.bf16.msra.mxu0 %v12387_v39  ;;  %8986 = vmatprep.mubr.bf16.mxu0 %v7118_v48  ;;  %v12468_v39 = vld [vmem:[#allocation7 + $0x1c0] ss:$8 sps:$4 sm:$0xff]   ;;  %v12482_v48 = vld [vmem:[#allocation7 + $0x1e4] ss:$8 sps:$4 sm:$0xff]  }
0x112d   :  { %8956 = vmatprep.subr.bf16.mxu0 %v12395_v14  ;;  %v7104_v1 = vpack.c.bf16 %v7099_v56, %v7099_v56  ;;  %v12471_v14 = vld [vmem:[#allocation7 + $0x7e0] ss:$8 sps:$4 sm:$0xff]   ;;  %v12477_v56 = vld [vmem:[#allocation7 + $0x7f0] ss:$8 sps:$4 sm:$0xff]  }
0x112f   :  { %8699 = vmatprep.mubr.bf16.mxu1 %v7104_v1  ;;  %v7101_v1 = vrot.slane %v15372_v49, 6  ;;  %v12489_v49 = vld [vmem:[#allocation7 + $0x210] ss:$8 sps:$4 sm:$0xff]  }
0x1130   :  { %8957 = vmatpush1.bf16.msra.mxu0 %v12393_v57  ;;  %8700 = vmatmul.mubr.bf16.vlgmr.msra.gmra.mrb[88].mxu1 %v7103_v27  ;;  %v12480_v57 = vld [vmem:[#allocation7 + $0x1e0] ss:$8 sps:$4 sm:$0xff]   ;;  %v12483_v27 = vld [vmem:[#allocation7 + $0x1f0] ss:$8 sps:$4 sm:$0xff]  }
0x1131   :  { %8709 = vmatpush1.bf16.msra.mxu1 %v12396_v36  ;;  %8740 = vmatprep.mubr.bf16.mxu1 %v7106_v33  ;;  %v12485_v36 = vld [vmem:[#allocation7 + $0x1f4] ss:$8 sps:$4 sm:$0xff]   ;;  %v7117_v16 = vpack.c.bf16 %v7101_v1, %v7101_v1  ;;  %v16282_v33 = vld [vmem:[#allocation55_spill] sm:$0xff] }
0x1132   :  { %8958 = vmatprep.subr.bf16.mxu0 %v12401_v22  ;;  %8710 = vmatprep.subr.bf16.mxu1 %v12404_v50  ;;  %v12488_v22 = vld [vmem:[#allocation7 + $0x204] ss:$8 sps:$4 sm:$0xff]   ;;  %v12486_v50 = vld [vmem:[#allocation7 + $0x200] ss:$8 sps:$4 sm:$0xff]  }
0x1134   :  { %8959 = vmatpush1.bf16.msra.mxu0 %v12399_v7  ;;  %v7105_v7 = vpack.c.bf16 %v16282_v33, %v16282_v33 }
0x1135   :  { %8711 = vmatpush1.bf16.msra.mxu1 %v12402_v24  ;;  %8960 = vmatprep.subr.bf16.mxu0 %v12407_v51  ;;  %v12491_v24 = vld [vmem:[#allocation7 + $0x214] ss:$8 sps:$4 sm:$0xff]   ;;  %v7108_v51 = vpack.c.bf16 %v15256_v0, %v15256_v0  ;;  %v12501_v0 = vld [vmem:[#allocation7 + $0x250] ss:$8 sps:$4 sm:$0xff]  }
0x1136   :  { %8712 = vmatprep.subr.bf16.mxu1 %v12410_v55  ;;  %v12494_v55 = vld [vmem:[#allocation7 + $0x224] ss:$8 sps:$4 sm:$0xff]  }
0x1138   :  { %8961 = vmatpush1.bf16.msra.mxu0 %v12405_v21  ;;  %v12492_v21 = vld [vmem:[#allocation7 + $0x220] ss:$8 sps:$4 sm:$0xff]  }
0x1139   :  { %8713 = vmatpush1.bf16.msra.mxu1 %v12408_v10  ;;  %8962 = vmatprep.subr.bf16.mxu0 %v12413_v62  ;;  %v12497_v10 = vld [vmem:[#allocation7 + $0x234] ss:$8 sps:$4 sm:$0xff]   ;;  %v12495_v62 = vld [vmem:[#allocation7 + $0x230] ss:$8 sps:$4 sm:$0xff]  }
0x113a   :  { %8714 = vmatprep.subr.bf16.mxu1 %v12416_v61  ;;  %v12500_v61 = vld [vmem:[#allocation7 + $0x244] ss:$8 sps:$4 sm:$0xff]  }
0x113c   :  { %8963 = vmatpush1.bf16.msra.mxu0 %v12411_v53  ;;  %v12498_v53 = vld [vmem:[#allocation7 + $0x240] ss:$8 sps:$4 sm:$0xff]  }
0x113d   :  { %8715 = vmatpush1.bf16.msra.mxu1 %v12414_v18  ;;  %8964 = vmatprep.subr.bf16.mxu0 %v12419_v31  ;;  %v12503_v18 = vld [vmem:[#allocation7 + $0x254] ss:$8 sps:$4 sm:$0xff]   ;;  %v12506_v31 = vld [vmem:[#allocation7 + $0x264] ss:$8 sps:$4 sm:$0xff]  }
0x113e   :  { %8716 = vmatprep.subr.bf16.mxu1 %v12422_v6  ;;  %v12504_v6 = vld [vmem:[#allocation7 + $0x260] ss:$8 sps:$4 sm:$0xff]  }
0x1140   :  { %8965 = vmatpush1.bf16.msra.mxu0 %v12417_v42  ;;  %v12509_v42 = vld [vmem:[#allocation7 + $0x274] ss:$8 sps:$4 sm:$0xff]  }
0x1141   :  { %8717 = vmatpush1.bf16.msra.mxu1 %v12420_v52  ;;  %8966 = vmatprep.subr.bf16.mxu0 %v12425_v40  ;;  %v12507_v52 = vld [vmem:[#allocation7 + $0x270] ss:$8 sps:$4 sm:$0xff]   ;;  %v12512_v40 = vld [vmem:[#allocation7 + $0x284] ss:$8 sps:$4 sm:$0xff]  }
0x1142   :  { %8718 = vmatprep.subr.bf16.mxu1 %v12428_v28  ;;  %v12510_v28 = vld [vmem:[#allocation7 + $0x280] ss:$8 sps:$4 sm:$0xff]  }
0x1144   :  { %8967 = vmatpush1.bf16.msra.mxu0 %v12423_v63  ;;  %v12515_v63 = vld [vmem:[#allocation7 + $0x294] ss:$8 sps:$4 sm:$0xff]  }
0x1145   :  { %8719 = vmatpush1.bf16.msra.mxu1 %v12426_v60  ;;  %8968 = vmatprep.subr.bf16.mxu0 %v12431_v20  ;;  %v12513_v60 = vld [vmem:[#allocation7 + $0x290] ss:$8 sps:$4 sm:$0xff]   ;;  %v12518_v20 = vld [vmem:[#allocation7 + $0x2a4] ss:$8 sps:$4 sm:$0xff]  }
0x1146   :  { %8720 = vmatprep.subr.bf16.mxu1 %v12434_v26  ;;  %v12516_v26 = vld [vmem:[#allocation7 + $0x2a0] ss:$8 sps:$4 sm:$0xff]  }
0x1148   :  { %8969 = vmatpush1.bf16.msra.mxu0 %v12429_v30  ;;  %v12521_v30 = vld [vmem:[#allocation7 + $0x2b4] ss:$8 sps:$4 sm:$0xff]  }
0x1149   :  { %8721 = vmatpush1.bf16.msra.mxu1 %v12432_v54  ;;  %8970 = vmatprep.subr.bf16.mxu0 %v12437_v8  ;;  %v12519_v54 = vld [vmem:[#allocation7 + $0x2b0] ss:$8 sps:$4 sm:$0xff]   ;;  %v12524_v8 = vld [vmem:[#allocation7 + $0x2c4] ss:$8 sps:$4 sm:$0xff]  }
0x114a   :  { %8722 = vmatprep.subr.bf16.mxu1 %v12440_v43  ;;  %v12522_v43 = vld [vmem:[#allocation7 + $0x2c0] ss:$8 sps:$4 sm:$0xff]  }
0x114c   :  { %8971 = vmatpush1.bf16.msra.mxu0 %v12435_v29  ;;  %v12527_v29 = vld [vmem:[#allocation7 + $0x2d4] ss:$8 sps:$4 sm:$0xff]  }
0x114d   :  { %8723 = vmatpush1.bf16.msra.mxu1 %v12438_v59  ;;  %8972 = vmatprep.subr.bf16.mxu0 %v12443_v3  ;;  %v12525_v59 = vld [vmem:[#allocation7 + $0x2d0] ss:$8 sps:$4 sm:$0xff]   ;;  %v12530_v3 = vld [vmem:[#allocation7 + $0x2e4] ss:$8 sps:$4 sm:$0xff]  }
0x114e   :  { %8724 = vmatprep.subr.bf16.mxu1 %v12446_v9  ;;  %v12528_v9 = vld [vmem:[#allocation7 + $0x2e0] ss:$8 sps:$4 sm:$0xff]  }
0x1150   :  { %8973 = vmatpush1.bf16.msra.mxu0 %v12441_v5  ;;  %v12533_v5 = vld [vmem:[#allocation7 + $0x2f4] ss:$8 sps:$4 sm:$0xff]  }
0x1151   :  { %8725 = vmatpush1.bf16.msra.mxu1 %v12444_v47  ;;  %8974 = vmatprep.subr.bf16.mxu0 %v12449_v35  ;;  %v12531_v47 = vld [vmem:[#allocation7 + $0x2f0] ss:$8 sps:$4 sm:$0xff]  }
0x1152   :  { %8726 = vmatprep.subr.bf16.mxu1 %v12452_v17  ;;  %v16283_v35 = vld [vmem:[#allocation61_spill] sm:$0xff] }
0x1153   :  { %v7107_v17 = vpack.c.bf16 %v16283_v35, %v16283_v35 }
0x1154   :  { %8975 = vmatpush1.bf16.msra.mxu0 %v12447_v46  ;;  %v12534_v46 = vld [vmem:[%s15542_s8 + $0x40] sm:$0xff]  }
0x1155   :  { %8727 = vmatpush1.bf16.msra.mxu1 %v12450_v23  ;;  %8976 = vmatprep.subr.bf16.mxu0 %v12455_v2  ;;  %v12535_v23 = vld [vmem:[%s15542_s8] sm:$0xff]   ;;  %v12536_v2 = vld [vmem:[%s15542_s8 + $0x48] sm:$0xff]  }
0x1156   :  { %8728 = vmatprep.subr.bf16.mxu1 %v12458_v34  ;;  %v12537_v34 = vld [vmem:[%s15542_s8 + $0x8] sm:$0xff]  }
0x1158   :  { %8977 = vmatpush1.bf16.msra.mxu0 %v12453_v38  ;;  %v12538_v38 = vld [vmem:[%s15542_s8 + $0x50] sm:$0xff]  }
0x1159   :  { %8729 = vmatpush1.bf16.msra.mxu1 %v12456_v4  ;;  %8978 = vmatprep.subr.bf16.mxu0 %v12461_v32  ;;  %v12539_v4 = vld [vmem:[%s15542_s8 + $0x10] sm:$0xff]   ;;  %v12540_v32 = vld [vmem:[%s15542_s8 + $0x58] sm:$0xff]  }
0x115a   :  { %8730 = vmatprep.subr.bf16.mxu1 %v12464_v41  ;;  %v12541_v41 = vld [vmem:[%s15542_s8 + $0x18] sm:$0xff]  }
0x115c   :  { %8979 = vmatpush1.bf16.msra.mxu0 %v12459_v19  ;;  %v12542_v19 = vld [vmem:[%s15542_s8 + $0x60] sm:$0xff]  }
0x115d   :  { %8731 = vmatpush1.bf16.msra.mxu1 %v12462_v11  ;;  %8980 = vmatprep.subr.bf16.mxu0 %v12467_v12  ;;  %v12543_v11 = vld [vmem:[%s15542_s8 + $0x20] sm:$0xff]   ;;  %v12544_v12 = vld [vmem:[%s15542_s8 + $0x68] sm:$0xff]  }
0x115e   :  { %8732 = vmatprep.subr.bf16.mxu1 %v12470_v37  ;;  %v12545_v37 = vld [vmem:[%s15542_s8 + $0x28] sm:$0xff]  }
0x1160   :  { %8981 = vmatpush1.bf16.msra.mxu0 %v12465_v15  ;;  %v12546_v15 = vld [vmem:[%s15542_s8 + $0x70] sm:$0xff]  }
0x1161   :  { %8733 = vmatpush1.bf16.msra.mxu1 %v12468_v39  ;;  %8982 = vmatprep.subr.bf16.mxu0 %v12473_v25  ;;  %v12547_v39 = vld [vmem:[%s15542_s8 + $0x30] sm:$0xff]   ;;  %v12548_v25 = vld [vmem:[%s15542_s8 + $0x78] sm:$0xff]  }
0x1162   :  { %8734 = vmatprep.subr.bf16.mxu1 %v12476_v44  ;;  %v12549_v44 = vld [vmem:[%s15542_s8 + $0x38] sm:$0xff]  }
0x1164   :  { %8983 = vmatpush1.bf16.msra.mxu0 %v12471_v14 }
0x1165   :  { %8735 = vmatpush1.bf16.msra.mxu1 %v12474_v13  ;;  %8984 = vmatprep.subr.bf16.mxu0 %v12479_v45 }
0x1166   :  { %8736 = vmatprep.subr.bf16.mxu1 %v12482_v48 }
0x1168   :  { %8985 = vmatpush1.bf16.msra.mxu0 %v12477_v56  ;;  %v7375_v56 = vld [vmem:[%s15541_s7] sm:$0x3] }
0x1169   :  { %8737 = vmatpush1.bf16.msra.mxu1 %v12480_v57  ;;  %v16284_v57 = vld [vmem:[#allocation57_spill] sm:$0xff] }
0x116a   :  { %8738 = vmatprep.subr.bf16.mxu1 %v12485_v36  ;;  %v7380_v1 = vrot.slane %v7375_v56, %v16284_v57  ;;  %v16285_v36 = vld [vmem:[#allocation58_spill] sm:$0xff] }
0x116b   :  { %8987 = vmatmul.mubr.bf16.vlgmr.msra.gmra.mrb[72].mxu0 %v7117_v16  ;;  %v7384_v16 = vrot.slane %v7375_v56, %v16285_v36 }
0x116d   :  { %8739 = vmatpush1.bf16.msra.mxu1 %v12483_v27 }
0x116e   :  { %8749 = vmatprep.subr.bf16.mxu1 %v12488_v22 }
0x1170   :  { %8741 = vmatmul.mubr.bf16.vlgmr.msra.gmra.mrb[88].mxu1 %v7105_v7 }
0x1171   :  { %8750 = vmatpush1.bf16.msra.mxu1 %v12486_v50  ;;  %8781 = vmatprep.mubr.bf16.mxu1 %v7108_v51 }
0x1172   :  { %8751 = vmatprep.subr.bf16.mxu1 %v12491_v24 }
0x1175   :  { %8752 = vmatpush1.bf16.msra.mxu1 %v12489_v49 }
0x1176   :  { %8753 = vmatprep.subr.bf16.mxu1 %v12494_v55 }
0x1179   :  { %8754 = vmatpush1.bf16.msra.mxu1 %v12492_v21 }
0x117a   :  { %8755 = vmatprep.subr.bf16.mxu1 %v12497_v10 }
0x117d   :  { %8756 = vmatpush1.bf16.msra.mxu1 %v12495_v62  ;;  %v12550_v62 = vld [vmem:[%s15544_s10] sm:$0xff]  }
0x117e   :  { %8757 = vmatprep.subr.bf16.mxu1 %v12500_v61 }
0x1181   :  { %8758 = vmatpush1.bf16.msra.mxu1 %v12498_v53  ;;  %v12551_v53 = vld [vmem:[%s15544_s10 + $0x8] sm:$0xff]  }
0x1182   :  { %8759 = vmatprep.subr.bf16.mxu1 %v12503_v18  ;;  %v12552_v18 = vld [vmem:[%s15544_s10 + $0x10] sm:$0xff]  }
0x1185   :  { %8760 = vmatpush1.bf16.msra.mxu1 %v12501_v0  ;;  %v12553_v0 = vld [vmem:[%s15544_s10 + $0x18] sm:$0xff]  }
0x1186   :  { %8761 = vmatprep.subr.bf16.mxu1 %v12506_v31  ;;  %v12554_v31 = vld [vmem:[%s15544_s10 + $0x20] sm:$0xff]  }
0x1189   :  { %8762 = vmatpush1.bf16.msra.mxu1 %v12504_v6  ;;  %v12555_v6 = vld [vmem:[%s15544_s10 + $0x28] sm:$0xff]  }
0x118a   :  { %8763 = vmatprep.subr.bf16.mxu1 %v12509_v42  ;;  %v12556_v42 = vld [vmem:[%s15544_s10 + $0x30] sm:$0xff]  }
0x118d   :  { %8764 = vmatpush1.bf16.msra.mxu1 %v12507_v52  ;;  %v12557_v52 = vld [vmem:[%s15544_s10 + $0x38] sm:$0xff]  }
0x118e   :  { %8765 = vmatprep.subr.bf16.mxu1 %v12512_v40 }
0x1191   :  { %8766 = vmatpush1.bf16.msra.mxu1 %v12510_v28  ;;  %v9903_v28 = vld [vmem:[#allocation8] ss:$0 sm:$0xff] }
0x1192   :  { %8767 = vmatprep.subr.bf16.mxu1 %v12515_v63 }
0x1195   :  { %8768 = vmatpush1.bf16.msra.mxu1 %v12513_v60 }
0x1196   :  { %8769 = vmatprep.subr.bf16.mxu1 %v12518_v20 }
0x1199   :  { %8770 = vmatpush1.bf16.msra.mxu1 %v12516_v26 }
0x119a   :  { %8771 = vmatprep.subr.bf16.mxu1 %v12521_v30 }
0x119d   :  { %8772 = vmatpush1.bf16.msra.mxu1 %v12519_v54 }
0x119e   :  { %8773 = vmatprep.subr.bf16.mxu1 %v12524_v8  ;;  %v12558_v8 = vld [vmem:[%s15546_s12] sm:$0xff]  }
0x11a1   :  { %8774 = vmatpush1.bf16.msra.mxu1 %v12522_v43 }
0x11a2   :  { %8775 = vmatprep.subr.bf16.mxu1 %v12527_v29  ;;  %v12559_v29 = vld [vmem:[%s15546_s12 + $0x8] sm:$0xff]  }
0x11a5   :  { %8776 = vmatpush1.bf16.msra.mxu1 %v12525_v59  ;;  %v12560_v59 = vld [vmem:[%s15546_s12 + $0x10] sm:$0xff]  }
0x11a6   :  { %8777 = vmatprep.subr.bf16.mxu1 %v12530_v3  ;;  %v12561_v3 = vld [vmem:[%s15546_s12 + $0x18] sm:$0xff]  }
0x11a9   :  { %8778 = vmatpush1.bf16.msra.mxu1 %v12528_v9  ;;  %v9920_v9 = vld [vmem:[#allocation10] ss:$0 sm:$0xff] }
0x11aa   :  { %8779 = vmatprep.subr.bf16.mxu1 %v12533_v5 }
0x11ad   :  { %8780 = vmatpush1.bf16.msra.mxu1 %v12531_v47 }
0x11ae   :  { %9942 = vmatprep.subr.bf16.mxu1 %v12534_v46 }
0x11b0   :  { %8782 = vmatmul.mubr.bf16.vlgmr.msra.gmra.mrb[88].mxu1 %v7107_v17 }
0x11b1   :  { %9943 = vmatpush3.bf16.msra.mxu1 %v12535_v23 }
0x11b2   :  { %9944 = vmatprep.subr.bf16.mxu1 %v12536_v2 }
0x11b5   :  { %9945 = vmatpush3.bf16.msra.mxu1 %v12537_v34  ;;  %v12562_v34 = vld [vmem:[%s15548_s14] sm:$0xff]  }
0x11b6   :  { %9946 = vmatprep.subr.bf16.mxu1 %v12538_v38  ;;  %v12563_v38 = vld [vmem:[%s15548_s14 + $0x8] sm:$0xff]  }
0x11b9   :  { %9947 = vmatpush3.bf16.msra.mxu1 %v12539_v4  ;;  %v9929_v4 = vld [vmem:[#allocation11] ss:$0 sm:$0xff] }
0x11ba   :  { %9948 = vmatprep.subr.bf16.mxu1 %v12540_v32 }
0x11bd   :  { %9949 = vmatpush3.bf16.msra.mxu1 %v12541_v41 }
0x11be   :  { %9950 = vmatprep.subr.bf16.mxu1 %v12542_v19 }
0x11c1   :  { %9951 = vmatpush3.bf16.msra.mxu1 %v12543_v11 }
0x11c2   :  { %9952 = vmatprep.subr.bf16.mxu1 %v12544_v12 }
0x11c5   :  { %9953 = vmatpush3.bf16.msra.mxu1 %v12545_v37 }
0x11c6   :  { %9954 = vmatprep.subr.bf16.mxu1 %v12546_v15 }
0x11c9   :  { %9955 = vmatpush3.bf16.msra.mxu1 %v12547_v39  ;;  %v12564_v39 = vld [vmem:[%s15550_s16] sm:$0xff]  }
0x11ca   :  { %9956 = vmatprep.subr.bf16.mxu1 %v12548_v25  ;;  %v9935_v25 = vld [vmem:[%s15549_s15] ss:$0 sm:$0xff]  ;;  %s13257_s15 = smov [#allocation13]  }
0x11cb   :  { %s9520_s16 = sshll.u32 %s13257_s15, 4  ;;  %s9521_s16 = int_to_ptr.vmem [resolvable:$true] %s9520_s16 }
0x11cc   :  { %p13218_p7 = scmp.lt.s32.totalorder %s9521_s16, %s9521_s16 }
0x11cd   :  { %9957 = vmatpush3.bf16.msra.mxu1 %v12549_v44 }
0x11ce   :  { %9983 = vmatprep.subr.bf16.mxu1 %v15809_v58 }
0x123e   :  { %v8988_v14 = vpop.f32.mrb[72].mxu0 }
0x123f   :  { %v8990_v13 = vpop.f32.mrb[73].mxu0 }
0x1240   :  { %v8992_v45 = vpop.f32.mrb[74].mxu0 }
0x1241   :  { %v8993_v48 = vpop.f32.mrb[75].mxu0 }
0x1283   :  { %v8783_v27 = vpop.f32.mrb[88].mxu1 }
0x1284   :  { %v12109_v22 = vadd.f32 %v8783_v27, %v7380_v1  ;;  %v8785_v50 = vpop.f32.mrb[89].mxu1 }
0x1285   :  { %v12111_v33 = vadd.f32 %v8785_v50, %v7384_v16  ;;  %v8787_v7 = vpop.f32.mrb[90].mxu1 }
0x1286   :  { %v12110_v24 = vadd.f32 %v12109_v22, %v8988_v14  ;;  %v8788_v51 = vpop.f32.mrb[91].mxu1 }
0x1287   :  { %v12112_v49 = vadd.f32 %v12111_v33, %v8990_v13 }
0x1288   :  { %v8995_v55 = vmax.f32 %v12110_v24, 0.0 }
0x1289   :  { %v8996_v21 = vmax.f32 %v12112_v49, 0.0 }
0x128a   :  { %v8997_v61 = vpack.c.bf16 %v8995_v55, %v8995_v55 }
0x128b   :  { %v8998_v10 = vpack.c.bf16 %v8996_v21, %v8996_v21 }
0x128d   :  { %9166 = vmatprep.mubr.bf16.mxu1 %v8998_v10 }
0x128e   :  { %9167 = vmatmul.mubr.bf16.vlgmr.msra.gmra.mrb[92].mxu1 %v8997_v61 }
0x128f   :  { %9984 = vmatpush3.bf16.msra.mxu1 %v12550_v62  ;;  %9999 = vmatprep.mubr.msk.bf16.mxu1 %vm13256_vm8, %v15809_v58 }
0x1290   :  { %9985 = vmatprep.subr.bf16.mxu1 %v15809_v58 }
0x1293   :  { %9986 = vmatpush3.bf16.msra.mxu1 %v12551_v53 }
0x1294   :  { %9987 = vmatprep.subr.bf16.mxu1 %v15809_v58 }
0x1297   :  { %9988 = vmatpush3.bf16.msra.mxu1 %v12552_v18 }
0x1298   :  { %9989 = vmatprep.subr.bf16.mxu1 %v15809_v58 }
0x129b   :  { %9990 = vmatpush3.bf16.msra.mxu1 %v12553_v0 }
0x129c   :  { %9991 = vmatprep.subr.bf16.mxu1 %v15809_v58 }
0x129f   :  { %9992 = vmatpush3.bf16.msra.mxu1 %v12554_v31 }
0x12a0   :  { %9993 = vmatprep.subr.bf16.mxu1 %v15809_v58 }
0x12a3   :  { %9994 = vmatpush3.bf16.msra.mxu1 %v12555_v6 }
0x12a4   :  { %9995 = vmatprep.subr.bf16.mxu1 %v15809_v58 }
0x12a7   :  { %9996 = vmatpush3.bf16.msra.mxu1 %v12556_v42 }
0x12a8   :  { %9997 = vmatprep.subr.bf16.mxu1 %v15809_v58 }
0x12ab   :  { %9998 = vmatpush3.bf16.msra.mxu1 %v12557_v52 }
0x12ac   :  { %10003 = vmatprep.subr.bf16.mxu1 %v15809_v58 }
0x1361   :  { %v9958_v40 = vpop.f32.mrb[92].mxu1 }
0x1362   :  { %v9959_v63 = vpop.f32.mrb[93].mxu1 }
0x1363   :  { %v9960_v60 = vadd.f32 %v9959_v63, %v9958_v40  ;;  %v9961_v20 = vpop.f32.mrb[94].mxu1 }
0x1364   :  { %v9962_v26 = vpop.f32.mrb[95].mxu1 }
0x1365   :  { %v9169_v30 = vadd.f32 %v9960_v60, %v9903_v28 }
0x1367   :  { %v9174_v54 = vmax.f32 %v9169_v30, 0.0 }
0x1369   :  { %v9175_v43 = vpack.c.bf16 %v9174_v54, %v9174_v54 }
0x136b   :  { %10000 = vmatmul.mubr.bf16.vlgmr.msra.gmra.mrb[96].mxu1 %v9175_v43 }
0x136c   :  { %10004 = vmatpush3.bf16.msra.mxu1 %v12558_v8  ;;  %10011 = vmatprep.mubr.msk.bf16.mxu1 %vm13256_vm8, %v15809_v58 }
0x136d   :  { %10005 = vmatprep.subr.bf16.mxu1 %v15809_v58 }
0x1370   :  { %10006 = vmatpush3.bf16.msra.mxu1 %v12559_v29 }
0x1371   :  { %10007 = vmatprep.subr.bf16.mxu1 %v15809_v58 }
0x1374   :  { %10008 = vmatpush3.bf16.msra.mxu1 %v12560_v59 }
0x1375   :  { %10009 = vmatprep.subr.bf16.mxu1 %v15809_v58 }
0x1378   :  { %10010 = vmatpush3.bf16.msra.mxu1 %v12561_v3 }
0x1379   :  { %10015 = vmatprep.subr.bf16.mxu1 %v15809_v58 }
0x143e   :  { %v9281_v5 = vpop.f32.mrb[96].mxu1 }
0x143f   :  { %v9282_v47 = vadd.f32 %v9920_v9, %v9281_v5  ;;  %v10001_v35 = vpop.f32.mrb[97].mxu1 }
0x1440   :  { %v9284_v17 = vpop.f32.mrb[98].mxu1 }
0x1441   :  { %v9287_v46 = vmax.f32 %v9282_v47, 0.0  ;;  %v10002_v23 = vpop.f32.mrb[99].mxu1 }
0x1443   :  { %v9288_v2 = vpack.c.bf16 %v9287_v46, %v9287_v46 }
0x1445   :  { %10012 = vmatmul.mubr.msk.bf16.vlgmr.msra.gmra.mrb[100].mxu1 %vm9328_vm9, %v9288_v2 }
0x1446   :  { %10019 = vmatprep.mubr.msk.bf16.mxu1 %vm13256_vm8, %v15809_v58  ;;  %10016 = vmatpush3.bf16.msra.mxu1 %v12562_v34 }
0x1447   :  { %10017 = vmatprep.subr.bf16.mxu1 %v15809_v58 }
0x144a   :  { %10018 = vmatpush3.bf16.msra.mxu1 %v12563_v38 }
0x144b   :  { %10023 = vmatprep.subr.bf16.mxu1 %v15809_v58 }
0x1518   :  { %v9366_v32 = vpop.f32.mrb[100].mxu1 }
0x1519   :  { %v9367_v41 = vadd.f32 %v9929_v4, %v9366_v32  ;;  %v10013_v19 = vpop.f32.mrb[101].mxu1 }
0x151a   :  { %v9369_v11 = vpop.f32.mrb[102].mxu1 }
0x151b   :  { %v9372_v12 = vmax.f32 %v9367_v41, 0.0  ;;  %v10014_v37 = vpop.f32.mrb[103].mxu1 }
0x151d   :  { %v9373_v15 = vpack.c.bf16 %v9372_v12, %v9372_v12 }
0x151f   :  { %10020 = vmatmul.mubr.msk.bf16.vlgmr.msra.gmra.mrb[104].mxu1 %vm9397_vm10, %v9373_v15 }
0x1520   :  { %10025 = vmatprep.mubr.msk.bf16.mxu1 %vm13256_vm8, %v15809_v58  ;;  %10024 = vmatpush3.bf16.msra.mxu1 %v12564_v39  ;;  %v9939_v58 = vld [vmem:[%s15551_s17] ss:$0 sm:$0xff]  ;;  %s13213_s17 = scalar_lea.vmem %s9521_s16, 32 }
0x1521   :  { %p13214_p6 = scmp.ne.s32.totalorder %s9521_s16, %s13213_s17  ;;  %p13219_p8 = scmp.lt.s32.totalorder %s13213_s17, %s13213_s17 }
0x1523   :  { %p13220_p9 = por %p13219_p8, %p13218_p7 }
0x1525   :  { %p13221_p10 = pnand %p13220_p9, %p13214_p6 }
0x15f2   :  { %v9435_v44 = vpop.f32.mrb[104].mxu1 }
0x15f3   :  { %v9436_v14 = vadd.f32 %v9935_v25, %v9435_v44  ;;  %v10021_v13 = vpop.f32.mrb[105].mxu1 }
0x15f4   :  { %v9438_v45 = vpop.f32.mrb[106].mxu1 }
0x15f5   :  { %v9441_v48 = vmax.f32 %v9436_v14, 0.0  ;;  %v10022_v56 = vpop.f32.mrb[107].mxu1 }
0x15f7   :  { %v9442_v57 = vpack.c.bf16 %v9441_v48, %v9441_v48 }
0x15f9   :  { %10026 = vmatmul.mubr.msk.bf16.vlgmr.msra.gmra.mrb[108].mxu1 %vm214_vm7, %v9442_v57 }
0x16cc   :  { %v9495_v1 = vpop.f32.mrb[108].mxu1 }
0x16cd   :  { %v9496_v36 = vadd.f32 %v9939_v58, %v9495_v1  ;;  %v10027_v16 = vpop.f32.mrb[109].mxu1 }
0x16ce   :  { %v9498_v27 = vpop.f32.mrb[110].mxu1 }
0x16cf   :  { %v10028_v22 = vpop.f32.mrb[111].mxu1  ;;  %v9502_v50 = vsel %vm9501_vm11, %v9496_v36, -inf }
0x16d0   :  { %9503 = vmax.xlane.f32.xlu0 %v9502_v50 }
0x175d   :  { %v9504_v33 = vpop.xlane.xlu0 %9503 }
0x175e   :  { %v9505_v7 = vsub.f32 %v9496_v36, %v9504_v33 }
0x1760   :  { %v9506_v24 = vmul.f32 1.442695, %v9505_v7 }
0x1762   :  { %13077 = vpow2.f32 %v9506_v24 }
0x176c   :  { %v13078_v51 = vpop.eup %13077 }
0x176d   :  { %v9508_v49 = vsel %vm9501_vm11, %v13078_v51, 0.0 }
0x176e   :  { %9509 = vadd.xlane.f32.xlu0 %v9508_v49 }
0x17fb   :  { %v9510_v55 = vpop.xlane.xlu0 %9509 }
0x17fc   :  { %13079 = vrcp.f32 %v9510_v55 }
0x1806   :  { %v13080_v21 = vpop.eup %13079 }
0x1807   :  { %v9512_v10 = vmul.f32 %v13080_v21, %v13078_v51 }
0x1809   :  { %9513 = vst.msk [vmem:[#allocation13] sm:$0x3] %vm9501_vm11, %v9512_v10 }
0x180a   :  { %13224 = shalt.err (!%p13221_p10)
}
0x180b   :  { %s13225_s11 = scalar_lea.hbm %s15552_s18, 32 }
0x180c   :  { %p13226_p11 = scmp.ne.s32.totalorder %s15552_s18, %s13225_s11  ;;  %p13229_p12 = scmp.lt.u32.totalorder %s13225_s11, %s15552_s18 }
0x180e   :  { %p13231_p13 = pnand %p13229_p12, %p13226_p11 }
0x1810   :  { %13234 = shalt.err (!%p13231_p13)
}
0x1811   :  { %9523 = dma.vmem_to_hbm [thread:$0]  %s9521_s16, 32, %s15552_s18, [#allocation4]  }
0x1812   :  { %13243 = dma.done.wait [#allocation4], 32  }
0x1813   :  { %13244 = vsyncadd [#allocation4], 4294967264 }
0x1814   :  { %9527 = vsyncpa [#allocation3], 1 }
0x1815   :  { %9528 = vsyncpa [#allocation6], 1 }
0x1816   :  { %9529 = vsyncpa [#allocation9], 1 }
0x1817   :  { %9530 = vsyncpa [#allocation12], 1 }
0x1818   :  { %9531 = vsyncpa [#allocation4], 1 }

</bundles_post_ra>
